<compile_context>
chip_gen: v5e
topology: v5e:2x2
jax: 0.10.0
libtpu: 0.0.40
codegen_flags: <defaults>
</compile_context>

<pallas_src>
import functools

import jax
import jax.numpy as jnp
from jax.experimental import pallas as pl
from jax.experimental.pallas import tpu as pltpu

F32 = jnp.float32
BF16 = jnp.bfloat16
_EPS = 1e-12  # guards sqrt(0) (inf gradient at coincident points)


def _pick_tile(n, pref):
    """Largest tile <= pref that divides n (multiple of 8), else the whole axis.
    TODO(synk): masked ragged tail (pl.when + masked store) for awkward prime N."""
    if n <= pref:
        return n
    t = (pref // 8) * 8
    while t >= 8:
        if n % t == 0:
            return t
        t -= 8
    return n


# ----------------------------------------------------------------------------
# Kernel 1: fused pointwise MLP + global max-pool (PointNet encoder)
#   first (K=3) layer on the VPU (broadcast-FMA), tail layers on the MXU (bf16 x bf16
#   -> f32), global max kept as a running max in VMEM scratch across point tiles.
# ----------------------------------------------------------------------------
def _mlp_maxpool_kernel(*args, cin, n_tail):
    x_ref, w1_ref, b1_ref = args[0], args[1], args[2]
    tail = args[3:3 + 2 * n_tail]
    o_ref = args[3 + 2 * n_tail]
    gmax = args[4 + 2 * n_tail]
    ti = pl.program_id(1)

    x = x_ref[0]                                         # (nt, cin) f32
    w1 = w1_ref[...]                                     # (cin, C1) f32
    # K=cin(=3) first layer: per-coordinate broadcast-FMA on the VPU instead of a
    # 3/256-wide MXU contraction (VALU has slack; biggest relative win on v5e).
    y = x[:, 0:1] * w1[0:1, :]
    for k in range(1, cin):
        y = y + x[:, k:k + 1] * w1[k:k + 1, :]
    y = y + b1_ref[...]

    for li in range(n_tail):
        h = jnp.maximum(y, 0.0).astype(BF16)
        w = tail[2 * li][...]                            # bf16 (Cin, Cout)
        b = tail[2 * li + 1][...]                        # f32  (1, Cout)
        y = jnp.dot(h, w, preferred_element_type=F32) + b

    tile_max = jnp.max(y, axis=0, keepdims=True)         # (1, C_last), no ReLU pre-pool

    @pl.when(ti == 0)
    def _():
        gmax[...] = jnp.full_like(gmax, -jnp.inf)

    gmax[...] = jnp.maximum(gmax[...], tile_max)

    @pl.when(ti == pl.num_programs(1) - 1)
    def _():
        o_ref[0] = gmax[...]


def encode_maxpool(x, first, tail):
    """Fused pointwise MLP + global max-pool.  x: (B, N, Cin) -> (B, C_last)."""
    B, N, cin = x.shape
    nt = _pick_tile(N, 2048)                             # (nt,256) f32 acts ~2 MiB @2048
    n_tiles = N // nt
    w1, b1 = first
    c_out = tail[-1][0].shape[1] if tail else w1.shape[1]

    operands = [x, w1, b1]
    in_specs = [pl.BlockSpec((1, nt, cin), lambda bi, ti: (bi, ti, 0)),
                pl.BlockSpec(w1.shape, lambda bi, ti: (0, 0)),
                pl.BlockSpec(b1.shape, lambda bi, ti: (0, 0))]
    for w, b in tail:
        operands.append(w.astype(BF16))                  # pre-cast: halves weight DMA
        in_specs.append(pl.BlockSpec(w.shape, lambda bi, ti: (0, 0)))
        operands.append(b)
        in_specs.append(pl.BlockSpec(b.shape, lambda bi, ti: (0, 0)))

    out = pl.pallas_call(
        functools.partial(_mlp_maxpool_kernel, cin=cin, n_tail=len(tail)),
        out_shape=jax.ShapeDtypeStruct((B, 1, c_out), F32),
        grid=(B, n_tiles),
        in_specs=in_specs,
        out_specs=pl.BlockSpec((1, 1, c_out), lambda bi, ti: (bi, 0, 0)),
        scratch_shapes=[pltpu.VMEM((1, c_out), F32)],
        compiler_params=pltpu.CompilerParams(
            dimension_semantics=("parallel", "arbitrary")),
    )(*operands)
    return out[:, 0, :]


# ----------------------------------------------------------------------------
# Kernel 2: fused conditioned MLP with residual (decoder / refinement stages)
#   out = xyz + MLP([xyz, code] | g)  where the global-feature contribution
#   (g @ wg + b1) is a precomputed per-batch (1, H) bias.
# ----------------------------------------------------------------------------
def _cond_mlp_kernel(*args, cin, n_tail):
    xc_ref, gb_ref, w1_ref = args[0], args[1], args[2]
    tail = args[3:3 + 2 * n_tail]
    o_ref = args[3 + 2 * n_tail]

    xc = xc_ref[0]                                       # (nt, cin) f32  [xyz | code]
    w1 = w1_ref[...]                                     # (cin, H) f32
    # K=3/5 first layer on the VPU (broadcast-FMA) instead of tiny-K MXU pushes.
    y = xc[:, 0:1] * w1[0:1, :]
    for k in range(1, cin):
        y = y + xc[:, k:k + 1] * w1[k:k + 1, :]
    y = y + gb_ref[0]                                    # (1, H) = g @ wg + b1 (hoisted)

    for li in range(n_tail):
        h = jnp.maximum(y, 0.0).astype(BF16)
        w = tail[2 * li][...]
        b = tail[2 * li + 1][...]
        y = jnp.dot(h, w, preferred_element_type=F32) + b

    # TODO(synk): Cout=3 output -> masked lane stores; channels-first layout would
    # make this lane-dense at production N (negligible at these sizes).
    o_ref[0] = (xc[:, 0:3] + y).astype(o_ref.dtype)


def cond_mlp_residual(xc, gbias, w1, tail):
    """xc: (B, N, Cin) with xyz in the first 3 channels, gbias: (B, H) -> (B, N, 3)."""
    B, N, cin = xc.shape
    H = gbias.shape[1]
    nt = _pick_tile(N, 1024)
    n_tiles = N // nt
    gb3 = gbias[:, None, :]                              # (B, 1, H)

    operands = [xc, gb3, w1]
    in_specs = [pl.BlockSpec((1, nt, cin), lambda bi, ti: (bi, ti, 0)),
                pl.BlockSpec((1, 1, H), lambda bi, ti: (bi, 0, 0)),
                pl.BlockSpec(w1.shape, lambda bi, ti: (0, 0))]
    for w, b in tail:
        operands.append(w.astype(BF16))
        in_specs.append(pl.BlockSpec(w.shape, lambda bi, ti: (0, 0)))
        operands.append(b)
        in_specs.append(pl.BlockSpec(b.shape, lambda bi, ti: (0, 0)))

    return pl.pallas_call(
        functools.partial(_cond_mlp_kernel, cin=cin, n_tail=len(tail)),
        out_shape=jax.ShapeDtypeStruct((B, N, 3), F32),
        grid=(B, n_tiles),
        in_specs=in_specs,
        out_specs=pl.BlockSpec((1, nt, 3), lambda bi, ti: (bi, ti, 0)),
        compiler_params=pltpu.CompilerParams(
            dimension_semantics=("parallel", "parallel")),
    )(*operands)


# ----------------------------------------------------------------------------
# Kernel 3: batched, tiled chamfer-distance statistics
#   grid = (S predictions, B, M-tiles); predictions padded to a common lane-dense
#   (3, N_pad) layout, valid-N via scalar prefetch.  Distances computed as one
#   augmented K=5 f32 matmul; pred->gt direction is a running lane-dense min in
#   VMEM scratch, so the full (N, M) matrix is never materialized.
# ----------------------------------------------------------------------------
def _chamfer_kernel(nv_ref, p_ref, q_ref, o_ref, paug_ref, dmin_ref, acc_ref,
                    *, m_total):
    s = pl.program_id(0)
    mi = pl.program_id(2)
    n_pad = dmin_ref.shape[1]

    lane = jax.lax.broadcasted_iota(jnp.int32, (1, n_pad), 1)
    valid = lane < nv_ref[s]                             # (1, n_pad) lane mask

    @pl.when(mi == 0)
    def _():
        p = p_ref[0, 0]                                  # (3, n_pad) f32, lane-dense
        pn = jnp.sum(p * p, axis=0, keepdims=True)       # (1, n_pad)  (hoisted |p|^2)
        paug_ref[...] = jnp.concatenate(
            [p, jnp.ones((1, n_pad), F32), pn], axis=0)  # (5, n_pad) augmented P
        dmin_ref[...] = jnp.full_like(dmin_ref, jnp.inf)
        acc_ref[...] = jnp.zeros_like(acc_ref)

    q = q_ref[0]                                         # (mt, 3) f32
    mt = q.shape[0]
    qn = jnp.sum(q * q, axis=1, keepdims=True)           # (mt, 1)
    q_aug = jnp.concatenate(
        [-2.0 * q, qn, jnp.ones((mt, 1), F32)], axis=1)  # (mt, 5)

    # d[m, n] = |q_m - p_n|^2 via one f32 matmul (norm terms folded into K=5);
    # f32 keeps the pn+qn-2qp cancellation accurate (do not bf16-cast these).
    d = jnp.maximum(
        jnp.dot(q_aug, paug_ref[...], preferred_element_type=F32), 0.0)  # (mt, n_pad)

    # pred -> nearest gt: sublane reduce + running elementwise min (lane-dense).
    dmin_ref[...] = jnp.minimum(dmin_ref[...], jnp.min(d, axis=0, keepdims=True))

    # gt -> nearest pred: complete within this M tile (full N resident); mask pad lanes.
    # TODO(synk): for very large N, tile N too and make this a running min as well.
    d2 = jnp.min(jnp.where(valid, d, jnp.inf), axis=1, keepdims=True)    # (mt, 1)
    s_d2 = jnp.sum(d2, axis=0, keepdims=True)                            # (1, 1)
    s_r2 = jnp.sum(jnp.sqrt(d2 + _EPS), axis=0, keepdims=True)           # (1, 1)
    acc_ref[...] = acc_ref[...] + jnp.concatenate([s_d2, s_r2], axis=1)

    @pl.when(mi == pl.num_programs(2) - 1)
    def _():
        inv_n = 1.0 / nv_ref[s].astype(F32)
        d1 = dmin_ref[...]                                               # (1, n_pad)
        m1 = jnp.sum(jnp.where(valid, d1, 0.0), axis=1, keepdims=True) * inv_n
        s1 = jnp.sum(jnp.where(valid, jnp.sqrt(d1 + _EPS), 0.0),
                     axis=1, keepdims=True) * inv_n
        inv_m = 1.0 / m_total
        m2 = acc_ref[:, 0:1] * inv_m
        s2 = acc_ref[:, 1:2] * inv_m
        o_ref[0, 0] = jnp.concatenate([m1, m2, s1, s2], axis=1)          # (1, 4)


def chamfer_stats_batched(preds, gt, *, mt_pref=128):
    """preds: list of (B, Ni, 3), gt: (B, M, 3) -> (S, B, 4) =
       [mean d1, mean d2, mean sqrt d1, mean sqrt d2] per prediction/batch."""
    S = len(preds)
    B, M, _ = gt.shape
    n_valid = jnp.array([p.shape[1] for p in preds], dtype=jnp.int32)
    n_max = max(p.shape[1] for p in preds)
    n_pad = ((n_max + 127) // 128) * 128                 # lane-dense point axis

    def to_cf_padded(p):                                 # (B, Ni, 3) -> (B, 3, n_pad)
        pcf = jnp.transpose(p, (0, 2, 1))
        return jnp.pad(pcf, ((0, 0), (0, 0), (0, n_pad - p.shape[1])))

    stacked = jnp.stack([to_cf_padded(p) for p in preds], axis=0)        # (S,B,3,n_pad)

    # mt_pref=128 exercises the running-min path at demo sizes; raise to ~512 for
    # production M (live d tile is mt*n_pad*4 B -- budget vs v7x 64 MiB / 32 MiB scoped).
    mt = _pick_tile(M, mt_pref)
    n_m = M // mt

    out = pl.pallas_call(
        functools.partial(_chamfer_kernel, m_total=float(M)),
        out_shape=jax.ShapeDtypeStruct((S, B, 1, 4), F32),
        grid_spec=pltpu.PrefetchScalarGridSpec(
            num_scalar_prefetch=1,
            grid=(S, B, n_m),
            in_specs=[
                pl.BlockSpec((1, 1, 3, n_pad), lambda s, b, mi, nv: (s, b, 0, 0)),
                pl.BlockSpec((1, mt, 3), lambda s, b, mi, nv: (b, mi, 0)),
            ],
            out_specs=pl.BlockSpec((1, 1, 1, 4), lambda s, b, mi, nv: (s, b, 0, 0)),
            scratch_shapes=[
                pltpu.VMEM((5, n_pad), F32),   # augmented P (coords, ones, |p|^2)
                pltpu.VMEM((1, n_pad), F32),   # running pred->gt min (lane-dense)
                pltpu.VMEM((1, 2), F32),       # [sum d2, sum sqrt d2]
            ]),
        compiler_params=pltpu.CompilerParams(
            dimension_semantics=("parallel", "parallel", "arbitrary")),
    )(n_valid, stacked, gt)
    return out[:, :, 0, :]                               # (S, B, 4)


# ----------------------------------------------------------------------------
# Model glue (plain JAX: parameter plumbing, tiny repeats/codes, loss combine)
# ----------------------------------------------------------------------------
def encoder(x, p):
    """PointsEncoder_pointwise (synthetic PointNet): fused 3->64->128->256 + max-pool."""
    # TODO(synk): original encoder also returns per-point features & label conditioning;
    # only the global feature is consumed downstream in this synthetic equivalent.
    return encode_maxpool(x, (p["e_w1"], p["e_b1"]),
                          [(p["e_w2"], p["e_b2"]), (p["e_w3"], p["e_b3"])])


def sp_decoder(sphere, g_feat, p):
    """SP_DecoderEigen3steps (synthetic): deform sphere points conditioned on g_feat."""
    gbias = jnp.dot(g_feat, p["d_wg"]) + p["d_b1"]       # (B, 128), hoisted conditioning
    return cond_mlp_residual(sphere, gbias, p["d_wx"],
                             [(p["d_w2"], p["d_b2"]), (p["d_w3"], p["d_b3"])])


def refine_stage(parent, ratio, g2, sp):
    """Folding-style refinement / upsampling stage."""
    B, Np, _ = parent.shape
    child = jnp.repeat(parent, ratio, axis=1)            # tiny (B, Np*r, 3)
    g1d = jnp.linspace(-0.05, 0.05, ratio, dtype=F32)
    code = jnp.stack([g1d, -g1d], axis=1)                # (r, 2)
    code = jnp.tile(code, (Np, 1))                       # (Np*r, 2)
    xc = jnp.concatenate(
        [child, jnp.broadcast_to(code[None], (B, Np * ratio, 2))], axis=-1)  # (B,*,5)
    w1 = jnp.concatenate([sp["wx"], sp["wc"]], axis=0)   # (5, 128) merged first layer
    gbias = jnp.dot(g2, sp["wg"]) + sp["b1"]             # (B, 128), hoisted conditioning
    return cond_mlp_residual(xc, gbias, w1,
                             [(sp["w2"], sp["b2"]), (sp["w3"], sp["b3"])])


def re_module(coarse_raw, x, p):
    """RE_Module (synthetic cascaded refinement): coarse_high -> coarse -> fine."""
    pts = jnp.concatenate([coarse_raw, x], axis=1)
    g2 = encode_maxpool(pts, (p["r_w1"], p["r_b1"]), [(p["r_w2"], p["r_b2"])])
    coarse_high = refine_stage(coarse_raw, 2, g2, p["s1"])      # (B, 128, 3)
    coarse = refine_stage(coarse_high, 1, g2, p["s2"])          # (B, 128, 3)
    fine = refine_stage(coarse, 2, g2, p["s3"])                 # (B, 256, 3)
    return coarse_raw, coarse_high, coarse, fine


def calc_cd_from_stats(st):
    cd_p = 0.5 * (st[..., 2] + st[..., 3])
    cd_t = st[..., 0] + st[..., 1]
    return cd_p, cd_t


def model_forward(x, gt, params, alpha):
    """Model.forward, prefix='train'.  x: (B, N, 3), gt: (B, M, 3)."""
    B = x.shape[0]
    g_feat = encoder(x, params)
    sphere = jnp.broadcast_to(params["sphere"][None], (B,) + params["sphere"].shape)
    coarse_raw = sp_decoder(sphere, g_feat, params)
    _, coarse_high, coarse, fine = re_module(coarse_raw, x, params)

    # all four chamfer evaluations batched into ONE pallas_call
    stats = chamfer_stats_batched([coarse_raw, coarse_high, coarse, fine], gt)

    l1_p, l1_t = calc_cd_from_stats(stats[0])
    l2_p, _ = calc_cd_from_stats(stats[1])
    l3_p, _ = calc_cd_from_stats(stats[2])
    l4_p, l4_t = calc_cd_from_stats(stats[3])
    total = (l1_p.mean() * 10.0 + l2_p.mean() * 0.5
             + l3_p.mean() + l4_p.mean() * alpha)
    return fine, l1_t, l4_t, total


# ----------------------------------------------------------------------------
# Deterministic parameter init
# ----------------------------------------------------------------------------
def fibonacci_sphere(n, radius):
    i = jnp.arange(n, dtype=F32)
    golden = jnp.pi * (3.0 - jnp.sqrt(5.0))
    y = 1.0 - 2.0 * (i + 0.5) / n
    r = jnp.sqrt(jnp.maximum(1.0 - y * y, 0.0))
    theta = golden * i
    return radius * jnp.stack([jnp.cos(theta) * r, y, jnp.sin(theta) * r], axis=1)


def init_params(key, num_coarse_raw=64, g_dim=256, g2_dim=128, radius=0.5):
    keys = iter(jax.random.split(key, 64))

    def w(shape, scale=0.1):
        return scale * jax.random.normal(next(keys), shape, F32)

    def stage():
        return {"wx": w((3, 128)), "wc": w((2, 128)), "wg": w((g2_dim, 128)),
                "b1": jnp.zeros((1, 128), F32),
                "w2": w((128, 64)), "b2": jnp.zeros((1, 64), F32),
                "w3": w((64, 3), 0.05), "b3": jnp.zeros((1, 3), F32)}

    p = {
        # PointsEncoder_pointwise: 3 -> 64 -> 128 -> 256 (+ fused max-pool)
        "e_w1": w((3, 64)), "e_b1": jnp.zeros((1, 64), F32),
        "e_w2": w((64, 128)), "e_b2": jnp.zeros((1, 128), F32),
        "e_w3": w((128, g_dim)), "e_b3": jnp.zeros((1, g_dim), F32),
        # SP_DecoderEigen3steps: first layer split into xyz / g_feat parts
        "d_wx": w((3, 128)), "d_wg": w((g_dim, 128)), "d_b1": jnp.zeros((1, 128), F32),
        "d_w2": w((128, 64)), "d_b2": jnp.zeros((1, 64), F32),
        "d_w3": w((64, 3), 0.05), "d_b3": jnp.zeros((1, 3), F32),
        # RE_Module mini-encoder: 3 -> 64 -> 128 (+ fused max-pool)
        "r_w1": w((3, 64)), "r_b1": jnp.zeros((1, 64), F32),
        "r_w2": w((64, g2_dim)), "r_b2": jnp.zeros((1, g2_dim), F32),
        # refinement stages: xyz (3) + grid code (2) + g2 (128), first layer split
        "s1": stage(), "s2": stage(), "s3": stage(),
        # get_spherepoints(num_coarse_raw, radius) equivalent (deterministic)
        "sphere": fibonacci_sphere(num_coarse_raw, radius),
    }
    return p


# ----------------------------------------------------------------------------
if __name__ == "__main__":
    B, N_in, NUM_FINE = 2, 128, 256          # small synthetic shapes
    key = jax.random.PRNGKey(0)
    kx, kg, kp = jax.random.split(key, 3)

    x = jax.random.normal(kx, (B, N_in, 3), F32)       # partial input cloud
    gt = jax.random.normal(kg, (B, NUM_FINE, 3), F32)  # ground-truth cloud
    params = init_params(kp)

    fwd = jax.jit(model_forward)
    fine, loss1_t, loss4_t, total_loss = fwd(x, gt, params, 0.5)
    jax.block_until_ready((fine, loss1_t, loss4_t, total_loss))

    assert fine.shape == (B, NUM_FINE, 3)
    assert loss1_t.shape == (B,) and loss4_t.shape == (B,)
    assert total_loss.shape == ()
    print("KERNEL_OK")
</pallas_src>

<mosaic_0001>
module attributes {stable_mosaic.version = 11 : i64} {
  func.func @_mlp_maxpool_kernel(%arg0: i32, %arg1: i32, %arg2: memref<1x128x3xf32, #tpu.memory_space<vmem>>, %arg3: memref<3x64xf32, #tpu.memory_space<vmem>>, %arg4: memref<1x64xf32, #tpu.memory_space<vmem>>, %arg5: memref<64x128xbf16, #tpu.memory_space<vmem>>, %arg6: memref<1x128xf32, #tpu.memory_space<vmem>>, %arg7: memref<128x256xbf16, #tpu.memory_space<vmem>>, %arg8: memref<1x256xf32, #tpu.memory_space<vmem>>, %arg9: memref<1x1x256xf32, #tpu.memory_space<vmem>>, %arg10: memref<1x256xf32, #tpu.memory_space<vmem>>) attributes {dimension_semantics = [#tpu.dimension_semantics<parallel>, #tpu.dimension_semantics<arbitrary>], iteration_bounds = array<i64: 2, 1>, scalar_prefetch = 0 : i64, scratch_operands = 1 : i64, tpu.core_type = #tpu.core_type<tc>, window_params = [{transform_indices = @transform_0, window_bounds = array<i64: 1, 128, 3>}, {pipeline_mode = #tpu.pipeline_mode<synchronous>, transform_indices = @transform_1, window_bounds = array<i64: 3, 64>}, {pipeline_mode = #tpu.pipeline_mode<synchronous>, transform_indices = @transform_2, window_bounds = array<i64: 1, 64>}, {pipeline_mode = #tpu.pipeline_mode<synchronous>, transform_indices = @transform_3, window_bounds = array<i64: 64, 128>}, {pipeline_mode = #tpu.pipeline_mode<synchronous>, transform_indices = @transform_4, window_bounds = array<i64: 1, 128>}, {pipeline_mode = #tpu.pipeline_mode<synchronous>, transform_indices = @transform_5, window_bounds = array<i64: 128, 256>}, {pipeline_mode = #tpu.pipeline_mode<synchronous>, transform_indices = @transform_6, window_bounds = array<i64: 1, 256>}, {transform_indices = @transform_7, window_bounds = array<i64: 1, 1, 256>}]} {
    %c0 = arith.constant 0 : index
    %c0_0 = arith.constant 0 : index
    %c0_1 = arith.constant 0 : index
    %0 = vector.load %arg2[%c0, %c0_0, %c0_1] : memref<1x128x3xf32, #tpu.memory_space<vmem>>, vector<1x128x3xf32>
    %1 = vector.shape_cast %0 : vector<1x128x3xf32> to vector<128x3xf32>
    %c0_2 = arith.constant 0 : index
    %c0_3 = arith.constant 0 : index
    %2 = vector.load %arg3[%c0_2, %c0_3] : memref<3x64xf32, #tpu.memory_space<vmem>>, vector<3x64xf32>
    %3 = vector.extract_strided_slice %1 {offsets = [0, 0], sizes = [128, 1], strides = [1, 1]} : vector<128x3xf32> to vector<128x1xf32>
    %4 = vector.extract_strided_slice %2 {offsets = [0, 0], sizes = [1, 64], strides = [1, 1]} : vector<3x64xf32> to vector<1x64xf32>
    %5 = vector.broadcast %3 : vector<128x1xf32> to vector<128x64xf32>
    %6 = vector.broadcast %4 : vector<1x64xf32> to vector<128x64xf32>
    %7 = arith.mulf %5, %6 : vector<128x64xf32>
    %8 = vector.extract_strided_slice %1 {offsets = [0, 1], sizes = [128, 1], strides = [1, 1]} : vector<128x3xf32> to vector<128x1xf32>
    %9 = vector.extract_strided_slice %2 {offsets = [1, 0], sizes = [1, 64], strides = [1, 1]} : vector<3x64xf32> to vector<1x64xf32>
    %10 = vector.broadcast %8 : vector<128x1xf32> to vector<128x64xf32>
    %11 = vector.broadcast %9 : vector<1x64xf32> to vector<128x64xf32>
    %12 = arith.mulf %10, %11 : vector<128x64xf32>
    %13 = arith.addf %7, %12 : vector<128x64xf32>
    %14 = vector.extract_strided_slice %1 {offsets = [0, 2], sizes = [128, 1], strides = [1, 1]} : vector<128x3xf32> to vector<128x1xf32>
    %15 = vector.extract_strided_slice %2 {offsets = [2, 0], sizes = [1, 64], strides = [1, 1]} : vector<3x64xf32> to vector<1x64xf32>
    %16 = vector.broadcast %14 : vector<128x1xf32> to vector<128x64xf32>
    %17 = vector.broadcast %15 : vector<1x64xf32> to vector<128x64xf32>
    %18 = arith.mulf %16, %17 : vector<128x64xf32>
    %19 = arith.addf %13, %18 : vector<128x64xf32>
    %c0_4 = arith.constant 0 : index
    %c0_5 = arith.constant 0 : index
    %20 = vector.load %arg4[%c0_4, %c0_5] : memref<1x64xf32, #tpu.memory_space<vmem>>, vector<1x64xf32>
    %21 = vector.broadcast %20 : vector<1x64xf32> to vector<128x64xf32>
    %22 = arith.addf %19, %21 : vector<128x64xf32>
    %cst = arith.constant 0.000000e+00 : f32
    %23 = vector.broadcast %cst : f32 to vector<128x64xf32>
    %24 = arith.maximumf %22, %23 : vector<128x64xf32>
    %25 = arith.truncf %24 : vector<128x64xf32> to vector<128x64xbf16>
    %c0_6 = arith.constant 0 : index
    %c0_7 = arith.constant 0 : index
    %26 = vector.load %arg5[%c0_6, %c0_7] : memref<64x128xbf16, #tpu.memory_space<vmem>>, vector<64x128xbf16>
    %c0_8 = arith.constant 0 : index
    %c0_9 = arith.constant 0 : index
    %27 = vector.load %arg6[%c0_8, %c0_9] : memref<1x128xf32, #tpu.memory_space<vmem>>, vector<1x128xf32>
    %cst_10 = arith.constant dense<0.000000e+00> : vector<128x128xf32>
    %28 = tpu.matmul %25, %26, %cst_10 {dimension_numbers = #tpu.dot_dimension_numbers<[1], [0], [0], [1], [0, 0, 1, 1], [], []>} : vector<128x64xbf16>, vector<64x128xbf16>, vector<128x128xf32> -> vector<128x128xf32>
    %29 = vector.broadcast %27 : vector<1x128xf32> to vector<128x128xf32>
    %30 = arith.addf %28, %29 : vector<128x128xf32>
    %cst_11 = arith.constant 0.000000e+00 : f32
    %31 = vector.broadcast %cst_11 : f32 to vector<128x128xf32>
    %32 = arith.maximumf %30, %31 : vector<128x128xf32>
    %33 = arith.truncf %32 : vector<128x128xf32> to vector<128x128xbf16>
    %c0_12 = arith.constant 0 : index
    %c0_13 = arith.constant 0 : index
    %34 = vector.load %arg7[%c0_12, %c0_13] : memref<128x256xbf16, #tpu.memory_space<vmem>>, vector<128x256xbf16>
    %c0_14 = arith.constant 0 : index
    %c0_15 = arith.constant 0 : index
    %35 = vector.load %arg8[%c0_14, %c0_15] : memref<1x256xf32, #tpu.memory_space<vmem>>, vector<1x256xf32>
    %cst_16 = arith.constant dense<0.000000e+00> : vector<128x256xf32>
    %36 = tpu.matmul %33, %34, %cst_16 {dimension_numbers = #tpu.dot_dimension_numbers<[1], [0], [0], [1], [0, 0, 1, 1], [], []>} : vector<128x128xbf16>, vector<128x256xbf16>, vector<128x256xf32> -> vector<128x256xf32>
    %37 = vector.broadcast %35 : vector<1x256xf32> to vector<128x256xf32>
    %38 = arith.addf %36, %37 : vector<128x256xf32>
    %cst_17 = arith.constant dense<0xFF800000> : vector<256xf32>
    %39 = vector.multi_reduction <maximumf>, %38, %cst_17 [0] : vector<128x256xf32> to vector<256xf32>
    %40 = vector.shape_cast %39 : vector<256xf32> to vector<1x256xf32>
    %c0_i32 = arith.constant 0 : i32
    %41 = arith.cmpi eq, %arg1, %c0_i32 : i32
    %42 = arith.extui %41 : i1 to i32
    %c0_i32_18 = arith.constant 0 : i32
    %43 = arith.cmpi ne, %42, %c0_i32_18 : i32
    scf.if %43 {
      %cst_25 = arith.constant 0xFF800000 : f32
      %50 = vector.broadcast %cst_25 : f32 to vector<1x256xf32>
      %c0_26 = arith.constant 0 : index
      %c0_27 = arith.constant 0 : index
      %51 = vector.load %arg10[%c0_26, %c0_27] : memref<1x256xf32, #tpu.memory_space<vmem>>, vector<1x256xf32>
      tpu.vector_store %arg10[%c0_26, %c0_27], %50 {strides = array<i32>} : memref<1x256xf32, #tpu.memory_space<vmem>>, vector<1x256xf32>,
    } else {
    }
    %c0_19 = arith.constant 0 : index
    %c0_20 = arith.constant 0 : index
    %44 = vector.load %arg10[%c0_19, %c0_20] : memref<1x256xf32, #tpu.memory_space<vmem>>, vector<1x256xf32>
    %45 = arith.maximumf %44, %40 : vector<1x256xf32>
    %c0_21 = arith.constant 0 : index
    %c0_22 = arith.constant 0 : index
    %46 = vector.load %arg10[%c0_21, %c0_22] : memref<1x256xf32, #tpu.memory_space<vmem>>, vector<1x256xf32>
    tpu.vector_store %arg10[%c0_21, %c0_22], %45 {strides = array<i32>} : memref<1x256xf32, #tpu.memory_space<vmem>>, vector<1x256xf32>,
    %c0_i32_23 = arith.constant 0 : i32
    %47 = arith.cmpi eq, %arg1, %c0_i32_23 : i32
    %48 = arith.extui %47 : i1 to i32
    %c0_i32_24 = arith.constant 0 : i32
    %49 = arith.cmpi ne, %48, %c0_i32_24 : i32
    scf.if %49 {
      %c0_25 = arith.constant 0 : index
      %c0_26 = arith.constant 0 : index
      %50 = vector.load %arg10[%c0_25, %c0_26] : memref<1x256xf32, #tpu.memory_space<vmem>>, vector<1x256xf32>
      %c0_27 = arith.constant 0 : index
      %c0_28 = arith.constant 0 : index
      %c0_29 = arith.constant 0 : index
      %51 = vector.load %arg9[%c0_27, %c0_28, %c0_29] : memref<1x1x256xf32, #tpu.memory_space<vmem>>, vector<1x1x256xf32>
      %52 = vector.shape_cast %51 : vector<1x1x256xf32> to vector<1x256xf32>
      %53 = vector.shape_cast %50 : vector<1x256xf32> to vector<1x1x256xf32>
      tpu.vector_store %arg9[%c0_27, %c0_28, %c0_29], %53 {strides = array<i32>} : memref<1x1x256xf32, #tpu.memory_space<vmem>>, vector<1x1x256xf32>,
    } else {
    }
    return
  }
  func.func @transform_0(%arg0: i32, %arg1: i32) -> (i32, i32, i32) {
    %c0_i32 = arith.constant 0 : i32
    %c0_i32_0 = arith.constant 0 : i32
    return %arg0, %arg1, %c0_i32 : i32, i32, i32
  }
  func.func @transform_1(%arg0: i32, %arg1: i32) -> (i32, i32) {
    %c0_i32 = arith.constant 0 : i32
    %c0_i32_0 = arith.constant 0 : i32
    %c0_i32_1 = arith.constant 0 : i32
    return %c0_i32, %c0_i32_0 : i32, i32
  }
  func.func @transform_2(%arg0: i32, %arg1: i32) -> (i32, i32) {
    %c0_i32 = arith.constant 0 : i32
    %c0_i32_0 = arith.constant 0 : i32
    %c0_i32_1 = arith.constant 0 : i32
    return %c0_i32, %c0_i32_0 : i32, i32
  }
  func.func @transform_3(%arg0: i32, %arg1: i32) -> (i32, i32) {
    %c0_i32 = arith.constant 0 : i32
    %c0_i32_0 = arith.constant 0 : i32
    %c0_i32_1 = arith.constant 0 : i32
    return %c0_i32, %c0_i32_0 : i32, i32
  }
  func.func @transform_4(%arg0: i32, %arg1: i32) -> (i32, i32) {
    %c0_i32 = arith.constant 0 : i32
    %c0_i32_0 = arith.constant 0 : i32
    %c0_i32_1 = arith.constant 0 : i32
    return %c0_i32, %c0_i32_0 : i32, i32
  }
  func.func @transform_5(%arg0: i32, %arg1: i32) -> (i32, i32) {
    %c0_i32 = arith.constant 0 : i32
    %c0_i32_0 = arith.constant 0 : i32
    %c0_i32_1 = arith.constant 0 : i32
    return %c0_i32, %c0_i32_0 : i32, i32
  }
  func.func @transform_6(%arg0: i32, %arg1: i32) -> (i32, i32) {
    %c0_i32 = arith.constant 0 : i32
    %c0_i32_0 = arith.constant 0 : i32
    %c0_i32_1 = arith.constant 0 : i32
    return %c0_i32, %c0_i32_0 : i32, i32
  }
  func.func @transform_7(%arg0: i32, %arg1: i32) -> (i32, i32, i32) {
    %c0_i32 = arith.constant 0 : i32
    %c0_i32_0 = arith.constant 0 : i32
    %c0_i32_1 = arith.constant 0 : i32
    return %arg0, %c0_i32, %c0_i32_0 : i32, i32, i32
  }
}

module attributes {stable_mosaic.version = 11 : i64} {
  func.func @_cond_mlp_kernel(%arg0: i32, %arg1: i32, %arg2: memref<1x64x3xf32, #tpu.memory_space<vmem>>, %arg3: memref<1x1x128xf32, #tpu.memory_space<vmem>>, %arg4: memref<3x128xf32, #tpu.memory_space<vmem>>, %arg5: memref<128x64xbf16, #tpu.memory_space<vmem>>, %arg6: memref<1x64xf32, #tpu.memory_space<vmem>>, %arg7: memref<64x3xbf16, #tpu.memory_space<vmem>>, %arg8: memref<1x3xf32, #tpu.memory_space<vmem>>, %arg9: memref<1x64x3xf32, #tpu.memory_space<vmem>>) attributes {dimension_semantics = [#tpu.dimension_semantics<parallel>, #tpu.dimension_semantics<parallel>], iteration_bounds = array<i64: 2, 1>, scalar_prefetch = 0 : i64, scratch_operands = 0 : i64, tpu.core_type = #tpu.core_type<tc>, window_params = [{transform_indices = @transform_0, window_bounds = array<i64: 1, 64, 3>}, {transform_indices = @transform_1, window_bounds = array<i64: 1, 1, 128>}, {pipeline_mode = #tpu.pipeline_mode<synchronous>, transform_indices = @transform_2, window_bounds = array<i64: 3, 128>}, {pipeline_mode = #tpu.pipeline_mode<synchronous>, transform_indices = @transform_3, window_bounds = array<i64: 128, 64>}, {pipeline_mode = #tpu.pipeline_mode<synchronous>, transform_indices = @transform_4, window_bounds = array<i64: 1, 64>}, {pipeline_mode = #tpu.pipeline_mode<synchronous>, transform_indices = @transform_5, window_bounds = array<i64: 64, 3>}, {pipeline_mode = #tpu.pipeline_mode<synchronous>, transform_indices = @transform_6, window_bounds = array<i64: 1, 3>}, {transform_indices = @transform_7, window_bounds = array<i64: 1, 64, 3>}]} {
    %c0 = arith.constant 0 : index
    %c0_0 = arith.constant 0 : index
    %c0_1 = arith.constant 0 : index
    %0 = vector.load %arg2[%c0, %c0_0, %c0_1] : memref<1x64x3xf32, #tpu.memory_space<vmem>>, vector<1x64x3xf32>
    %1 = vector.shape_cast %0 : vector<1x64x3xf32> to vector<64x3xf32>
    %c0_2 = arith.constant 0 : index
    %c0_3 = arith.constant 0 : index
    %2 = vector.load %arg4[%c0_2, %c0_3] : memref<3x128xf32, #tpu.memory_space<vmem>>, vector<3x128xf32>
    %3 = vector.extract_strided_slice %1 {offsets = [0, 0], sizes = [64, 1], strides = [1, 1]} : vector<64x3xf32> to vector<64x1xf32>
    %4 = vector.extract_strided_slice %2 {offsets = [0, 0], sizes = [1, 128], strides = [1, 1]} : vector<3x128xf32> to vector<1x128xf32>
    %5 = vector.broadcast %3 : vector<64x1xf32> to vector<64x128xf32>
    %6 = vector.broadcast %4 : vector<1x128xf32> to vector<64x128xf32>
    %7 = arith.mulf %5, %6 : vector<64x128xf32>
    %8 = vector.extract_strided_slice %1 {offsets = [0, 1], sizes = [64, 1], strides = [1, 1]} : vector<64x3xf32> to vector<64x1xf32>
    %9 = vector.extract_strided_slice %2 {offsets = [1, 0], sizes = [1, 128], strides = [1, 1]} : vector<3x128xf32> to vector<1x128xf32>
    %10 = vector.broadcast %8 : vector<64x1xf32> to vector<64x128xf32>
    %11 = vector.broadcast %9 : vector<1x128xf32> to vector<64x128xf32>
    %12 = arith.mulf %10, %11 : vector<64x128xf32>
    %13 = arith.addf %7, %12 : vector<64x128xf32>
    %14 = vector.extract_strided_slice %1 {offsets = [0, 2], sizes = [64, 1], strides = [1, 1]} : vector<64x3xf32> to vector<64x1xf32>
    %15 = vector.extract_strided_slice %2 {offsets = [2, 0], sizes = [1, 128], strides = [1, 1]} : vector<3x128xf32> to vector<1x128xf32>
    %16 = vector.broadcast %14 : vector<64x1xf32> to vector<64x128xf32>
    %17 = vector.broadcast %15 : vector<1x128xf32> to vector<64x128xf32>
    %18 = arith.mulf %16, %17 : vector<64x128xf32>
    %19 = arith.addf %13, %18 : vector<64x128xf32>
    %c0_4 = arith.constant 0 : index
    %c0_5 = arith.constant 0 : index
    %c0_6 = arith.constant 0 : index
    %20 = vector.load %arg3[%c0_4, %c0_5, %c0_6] : memref<1x1x128xf32, #tpu.memory_space<vmem>>, vector<1x1x128xf32>
    %21 = vector.shape_cast %20 : vector<1x1x128xf32> to vector<1x128xf32>
    %22 = vector.broadcast %21 : vector<1x128xf32> to vector<64x128xf32>
    %23 = arith.addf %19, %22 : vector<64x128xf32>
    %cst = arith.constant 0.000000e+00 : f32
    %24 = vector.broadcast %cst : f32 to vector<64x128xf32>
    %25 = arith.maximumf %23, %24 : vector<64x128xf32>
    %26 = arith.truncf %25 : vector<64x128xf32> to vector<64x128xbf16>
    %c0_7 = arith.constant 0 : index
    %c0_8 = arith.constant 0 : index
    %27 = vector.load %arg5[%c0_7, %c0_8] : memref<128x64xbf16, #tpu.memory_space<vmem>>, vector<128x64xbf16>
    %c0_9 = arith.constant 0 : index
    %c0_10 = arith.constant 0 : index
    %28 = vector.load %arg6[%c0_9, %c0_10] : memref<1x64xf32, #tpu.memory_space<vmem>>, vector<1x64xf32>
    %cst_11 = arith.constant dense<0.000000e+00> : vector<64x64xf32>
    %29 = tpu.matmul %26, %27, %cst_11 {dimension_numbers = #tpu.dot_dimension_numbers<[1], [0], [0], [1], [0, 0, 1, 1], [], []>} : vector<64x128xbf16>, vector<128x64xbf16>, vector<64x64xf32> -> vector<64x64xf32>
    %30 = vector.broadcast %28 : vector<1x64xf32> to vector<64x64xf32>
    %31 = arith.addf %29, %30 : vector<64x64xf32>
    %cst_12 = arith.constant 0.000000e+00 : f32
    %32 = vector.broadcast %cst_12 : f32 to vector<64x64xf32>
    %33 = arith.maximumf %31, %32 : vector<64x64xf32>
    %34 = arith.truncf %33 : vector<64x64xf32> to vector<64x64xbf16>
    %c0_13 = arith.constant 0 : index
    %c0_14 = arith.constant 0 : index
    %35 = vector.load %arg7[%c0_13, %c0_14] : memref<64x3xbf16, #tpu.memory_space<vmem>>, vector<64x3xbf16>
    %c0_15 = arith.constant 0 : index
    %c0_16 = arith.constant 0 : index
    %36 = vector.load %arg8[%c0_15, %c0_16] : memref<1x3xf32, #tpu.memory_space<vmem>>, vector<1x3xf32>
    %cst_17 = arith.constant dense<0.000000e+00> : vector<64x3xf32>
    %37 = tpu.matmul %34, %35, %cst_17 {dimension_numbers = #tpu.dot_dimension_numbers<[1], [0], [0], [1], [0, 0, 1, 1], [], []>} : vector<64x64xbf16>, vector<64x3xbf16>, vector<64x3xf32> -> vector<64x3xf32>
    %38 = vector.broadcast %36 : vector<1x3xf32> to vector<64x3xf32>
    %39 = arith.addf %37, %38 : vector<64x3xf32>
    %40 = arith.addf %1, %39 : vector<64x3xf32>
    %c0_18 = arith.constant 0 : index
    %c0_19 = arith.constant 0 : index
    %c0_20 = arith.constant 0 : index
    %41 = vector.load %arg9[%c0_18, %c0_19, %c0_20] : memref<1x64x3xf32, #tpu.memory_space<vmem>>, vector<1x64x3xf32>
    %42 = vector.shape_cast %41 : vector<1x64x3xf32> to vector<64x3xf32>
    %43 = vector.shape_cast %40 : vector<64x3xf32> to vector<1x64x3xf32>
    tpu.vector_store %arg9[%c0_18, %c0_19, %c0_20], %43 {strides = array<i32>} : memref<1x64x3xf32, #tpu.memory_space<vmem>>, vector<1x64x3xf32>,
    return
  }
  func.func @transform_0(%arg0: i32, %arg1: i32) -> (i32, i32, i32) {
    %c0_i32 = arith.constant 0 : i32
    %c0_i32_0 = arith.constant 0 : i32
    return %arg0, %arg1, %c0_i32 : i32, i32, i32
  }
  func.func @transform_1(%arg0: i32, %arg1: i32) -> (i32, i32, i32) {
    %c0_i32 = arith.constant 0 : i32
    %c0_i32_0 = arith.constant 0 : i32
    %c0_i32_1 = arith.constant 0 : i32
    return %arg0, %c0_i32, %c0_i32_0 : i32, i32, i32
  }
  func.func @transform_2(%arg0: i32, %arg1: i32) -> (i32, i32) {
    %c0_i32 = arith.constant 0 : i32
    %c0_i32_0 = arith.constant 0 : i32
    %c0_i32_1 = arith.constant 0 : i32
    return %c0_i32, %c0_i32_0 : i32, i32
  }
  func.func @transform_3(%arg0: i32, %arg1: i32) -> (i32, i32) {
    %c0_i32 = arith.constant 0 : i32
    %c0_i32_0 = arith.constant 0 : i32
    %c0_i32_1 = arith.constant 0 : i32
    return %c0_i32, %c0_i32_0 : i32, i32
  }
  func.func @transform_4(%arg0: i32, %arg1: i32) -> (i32, i32) {
    %c0_i32 = arith.constant 0 : i32
    %c0_i32_0 = arith.constant 0 : i32
    %c0_i32_1 = arith.constant 0 : i32
    return %c0_i32, %c0_i32_0 : i32, i32
  }
  func.func @transform_5(%arg0: i32, %arg1: i32) -> (i32, i32) {
    %c0_i32 = arith.constant 0 : i32
    %c0_i32_0 = arith.constant 0 : i32
    %c0_i32_1 = arith.constant 0 : i32
    return %c0_i32, %c0_i32_0 : i32, i32
  }
  func.func @transform_6(%arg0: i32, %arg1: i32) -> (i32, i32) {
    %c0_i32 = arith.constant 0 : i32
    %c0_i32_0 = arith.constant 0 : i32
    %c0_i32_1 = arith.constant 0 : i32
    return %c0_i32, %c0_i32_0 : i32, i32
  }
  func.func @transform_7(%arg0: i32, %arg1: i32) -> (i32, i32, i32) {
    %c0_i32 = arith.constant 0 : i32
    %c0_i32_0 = arith.constant 0 : i32
    return %arg0, %arg1, %c0_i32 : i32, i32, i32
  }
}

module attributes {stable_mosaic.version = 11 : i64} {
  func.func @_mlp_maxpool_kernel(%arg0: i32, %arg1: i32, %arg2: memref<1x192x3xf32, #tpu.memory_space<vmem>>, %arg3: memref<3x64xf32, #tpu.memory_space<vmem>>, %arg4: memref<1x64xf32, #tpu.memory_space<vmem>>, %arg5: memref<64x128xbf16, #tpu.memory_space<vmem>>, %arg6: memref<1x128xf32, #tpu.memory_space<vmem>>, %arg7: memref<1x1x128xf32, #tpu.memory_space<vmem>>, %arg8: memref<1x128xf32, #tpu.memory_space<vmem>>) attributes {dimension_semantics = [#tpu.dimension_semantics<parallel>, #tpu.dimension_semantics<arbitrary>], iteration_bounds = array<i64: 2, 1>, scalar_prefetch = 0 : i64, scratch_operands = 1 : i64, tpu.core_type = #tpu.core_type<tc>, window_params = [{transform_indices = @transform_0, window_bounds = array<i64: 1, 192, 3>}, {pipeline_mode = #tpu.pipeline_mode<synchronous>, transform_indices = @transform_1, window_bounds = array<i64: 3, 64>}, {pipeline_mode = #tpu.pipeline_mode<synchronous>, transform_indices = @transform_2, window_bounds = array<i64: 1, 64>}, {pipeline_mode = #tpu.pipeline_mode<synchronous>, transform_indices = @transform_3, window_bounds = array<i64: 64, 128>}, {pipeline_mode = #tpu.pipeline_mode<synchronous>, transform_indices = @transform_4, window_bounds = array<i64: 1, 128>}, {transform_indices = @transform_5, window_bounds = array<i64: 1, 1, 128>}]} {
    %c0 = arith.constant 0 : index
    %c0_0 = arith.constant 0 : index
    %c0_1 = arith.constant 0 : index
    %0 = vector.load %arg2[%c0, %c0_0, %c0_1] : memref<1x192x3xf32, #tpu.memory_space<vmem>>, vector<1x192x3xf32>
    %1 = vector.shape_cast %0 : vector<1x192x3xf32> to vector<192x3xf32>
    %c0_2 = arith.constant 0 : index
    %c0_3 = arith.constant 0 : index
    %2 = vector.load %arg3[%c0_2, %c0_3] : memref<3x64xf32, #tpu.memory_space<vmem>>, vector<3x64xf32>
    %3 = vector.extract_strided_slice %1 {offsets = [0, 0], sizes = [192, 1], strides = [1, 1]} : vector<192x3xf32> to vector<192x1xf32>
    %4 = vector.extract_strided_slice %2 {offsets = [0, 0], sizes = [1, 64], strides = [1, 1]} : vector<3x64xf32> to vector<1x64xf32>
    %5 = vector.broadcast %3 : vector<192x1xf32> to vector<192x64xf32>
    %6 = vector.broadcast %4 : vector<1x64xf32> to vector<192x64xf32>
    %7 = arith.mulf %5, %6 : vector<192x64xf32>
    %8 = vector.extract_strided_slice %1 {offsets = [0, 1], sizes = [192, 1], strides = [1, 1]} : vector<192x3xf32> to vector<192x1xf32>
    %9 = vector.extract_strided_slice %2 {offsets = [1, 0], sizes = [1, 64], strides = [1, 1]} : vector<3x64xf32> to vector<1x64xf32>
    %10 = vector.broadcast %8 : vector<192x1xf32> to vector<192x64xf32>
    %11 = vector.broadcast %9 : vector<1x64xf32> to vector<192x64xf32>
    %12 = arith.mulf %10, %11 : vector<192x64xf32>
    %13 = arith.addf %7, %12 : vector<192x64xf32>
    %14 = vector.extract_strided_slice %1 {offsets = [0, 2], sizes = [192, 1], strides = [1, 1]} : vector<192x3xf32> to vector<192x1xf32>
    %15 = vector.extract_strided_slice %2 {offsets = [2, 0], sizes = [1, 64], strides = [1, 1]} : vector<3x64xf32> to vector<1x64xf32>
    %16 = vector.broadcast %14 : vector<192x1xf32> to vector<192x64xf32>
    %17 = vector.broadcast %15 : vector<1x64xf32> to vector<192x64xf32>
    %18 = arith.mulf %16, %17 : vector<192x64xf32>
    %19 = arith.addf %13, %18 : vector<192x64xf32>
    %c0_4 = arith.constant 0 : index
    %c0_5 = arith.constant 0 : index
    %20 = vector.load %arg4[%c0_4, %c0_5] : memref<1x64xf32, #tpu.memory_space<vmem>>, vector<1x64xf32>
    %21 = vector.broadcast %20 : vector<1x64xf32> to vector<192x64xf32>
    %22 = arith.addf %19, %21 : vector<192x64xf32>
    %cst = arith.constant 0.000000e+00 : f32
    %23 = vector.broadcast %cst : f32 to vector<192x64xf32>
    %24 = arith.maximumf %22, %23 : vector<192x64xf32>
    %25 = arith.truncf %24 : vector<192x64xf32> to vector<192x64xbf16>
    %c0_6 = arith.constant 0 : index
    %c0_7 = arith.constant 0 : index
    %26 = vector.load %arg5[%c0_6, %c0_7] : memref<64x128xbf16, #tpu.memory_space<vmem>>, vector<64x128xbf16>
    %c0_8 = arith.constant 0 : index
    %c0_9 = arith.constant 0 : index
    %27 = vector.load %arg6[%c0_8, %c0_9] : memref<1x128xf32, #tpu.memory_space<vmem>>, vector<1x128xf32>
    %cst_10 = arith.constant dense<0.000000e+00> : vector<192x128xf32>
    %28 = tpu.matmul %25, %26, %cst_10 {dimension_numbers = #tpu.dot_dimension_numbers<[1], [0], [0], [1], [0, 0, 1, 1], [], []>} : vector<192x64xbf16>, vector<64x128xbf16>, vector<192x128xf32> -> vector<192x128xf32>
    %29 = vector.broadcast %27 : vector<1x128xf32> to vector<192x128xf32>
    %30 = arith.addf %28, %29 : vector<192x128xf32>
    %cst_11 = arith.constant dense<0xFF800000> : vector<128xf32>
    %31 = vector.multi_reduction <maximumf>, %30, %cst_11 [0] : vector<192x128xf32> to vector<128xf32>
    %32 = vector.shape_cast %31 : vector<128xf32> to vector<1x128xf32>
    %c0_i32 = arith.constant 0 : i32
    %33 = arith.cmpi eq, %arg1, %c0_i32 : i32
    %34 = arith.extui %33 : i1 to i32
    %c0_i32_12 = arith.constant 0 : i32
    %35 = arith.cmpi ne, %34, %c0_i32_12 : i32
    scf.if %35 {
      %cst_19 = arith.constant 0xFF800000 : f32
      %42 = vector.broadcast %cst_19 : f32 to vector<1x128xf32>
      %c0_20 = arith.constant 0 : index
      %c0_21 = arith.constant 0 : index
      %43 = vector.load %arg8[%c0_20, %c0_21] : memref<1x128xf32, #tpu.memory_space<vmem>>, vector<1x128xf32>
      tpu.vector_store %arg8[%c0_20, %c0_21], %42 {strides = array<i32>} : memref<1x128xf32, #tpu.memory_space<vmem>>, vector<1x128xf32>,
    } else {
    }
    %c0_13 = arith.constant 0 : index
    %c0_14 = arith.constant 0 : index
    %36 = vector.load %arg8[%c0_13, %c0_14] : memref<1x128xf32, #tpu.memory_space<vmem>>, vector<1x128xf32>
    %37 = arith.maximumf %36, %32 : vector<1x128xf32>
    %c0_15 = arith.constant 0 : index
    %c0_16 = arith.constant 0 : index
    %38 = vector.load %arg8[%c0_15, %c0_16] : memref<1x128xf32, #tpu.memory_space<vmem>>, vector<1x128xf32>
    tpu.vector_store %arg8[%c0_15, %c0_16], %37 {strides = array<i32>} : memref<1x128xf32, #tpu.memory_space<vmem>>, vector<1x128xf32>,
    %c0_i32_17 = arith.constant 0 : i32
    %39 = arith.cmpi eq, %arg1, %c0_i32_17 : i32
    %40 = arith.extui %39 : i1 to i32
    %c0_i32_18 = arith.constant 0 : i32
    %41 = arith.cmpi ne, %40, %c0_i32_18 : i32
    scf.if %41 {
      %c0_19 = arith.constant 0 : index
      %c0_20 = arith.constant 0 : index
      %42 = vector.load %arg8[%c0_19, %c0_20] : memref<1x128xf32, #tpu.memory_space<vmem>>, vector<1x128xf32>
      %c0_21 = arith.constant 0 : index
      %c0_22 = arith.constant 0 : index
      %c0_23 = arith.constant 0 : index
      %43 = vector.load %arg7[%c0_21, %c0_22, %c0_23] : memref<1x1x128xf32, #tpu.memory_space<vmem>>, vector<1x1x128xf32>
      %44 = vector.shape_cast %43 : vector<1x1x128xf32> to vector<1x128xf32>
      %45 = vector.shape_cast %42 : vector<1x128xf32> to vector<1x1x128xf32>
      tpu.vector_store %arg7[%c0_21, %c0_22, %c0_23], %45 {strides = array<i32>} : memref<1x1x128xf32, #tpu.memory_space<vmem>>, vector<1x1x128xf32>,
    } else {
    }
    return
  }
  func.func @transform_0(%arg0: i32, %arg1: i32) -> (i32, i32, i32) {
    %c0_i32 = arith.constant 0 : i32
    %c0_i32_0 = arith.constant 0 : i32
    return %arg0, %arg1, %c0_i32 : i32, i32, i32
  }
  func.func @transform_1(%arg0: i32, %arg1: i32) -> (i32, i32) {
    %c0_i32 = arith.constant 0 : i32
    %c0_i32_0 = arith.constant 0 : i32
    %c0_i32_1 = arith.constant 0 : i32
    return %c0_i32, %c0_i32_0 : i32, i32
  }
  func.func @transform_2(%arg0: i32, %arg1: i32) -> (i32, i32) {
    %c0_i32 = arith.constant 0 : i32
    %c0_i32_0 = arith.constant 0 : i32
    %c0_i32_1 = arith.constant 0 : i32
    return %c0_i32, %c0_i32_0 : i32, i32
  }
  func.func @transform_3(%arg0: i32, %arg1: i32) -> (i32, i32) {
    %c0_i32 = arith.constant 0 : i32
    %c0_i32_0 = arith.constant 0 : i32
    %c0_i32_1 = arith.constant 0 : i32
    return %c0_i32, %c0_i32_0 : i32, i32
  }
  func.func @transform_4(%arg0: i32, %arg1: i32) -> (i32, i32) {
    %c0_i32 = arith.constant 0 : i32
    %c0_i32_0 = arith.constant 0 : i32
    %c0_i32_1 = arith.constant 0 : i32
    return %c0_i32, %c0_i32_0 : i32, i32
  }
  func.func @transform_5(%arg0: i32, %arg1: i32) -> (i32, i32, i32) {
    %c0_i32 = arith.constant 0 : i32
    %c0_i32_0 = arith.constant 0 : i32
    %c0_i32_1 = arith.constant 0 : i32
    return %arg0, %c0_i32, %c0_i32_0 : i32, i32, i32
  }
}

module attributes {stable_mosaic.version = 11 : i64} {
  func.func @_cond_mlp_kernel(%arg0: i32, %arg1: i32, %arg2: memref<1x128x5xf32, #tpu.memory_space<vmem>>, %arg3: memref<1x1x128xf32, #tpu.memory_space<vmem>>, %arg4: memref<5x128xf32, #tpu.memory_space<vmem>>, %arg5: memref<128x64xbf16, #tpu.memory_space<vmem>>, %arg6: memref<1x64xf32, #tpu.memory_space<vmem>>, %arg7: memref<64x3xbf16, #tpu.memory_space<vmem>>, %arg8: memref<1x3xf32, #tpu.memory_space<vmem>>, %arg9: memref<1x128x3xf32, #tpu.memory_space<vmem>>) attributes {dimension_semantics = [#tpu.dimension_semantics<parallel>, #tpu.dimension_semantics<parallel>], iteration_bounds = array<i64: 2, 1>, scalar_prefetch = 0 : i64, scratch_operands = 0 : i64, tpu.core_type = #tpu.core_type<tc>, window_params = [{transform_indices = @transform_0, window_bounds = array<i64: 1, 128, 5>}, {transform_indices = @transform_1, window_bounds = array<i64: 1, 1, 128>}, {pipeline_mode = #tpu.pipeline_mode<synchronous>, transform_indices = @transform_2, window_bounds = array<i64: 5, 128>}, {pipeline_mode = #tpu.pipeline_mode<synchronous>, transform_indices = @transform_3, window_bounds = array<i64: 128, 64>}, {pipeline_mode = #tpu.pipeline_mode<synchronous>, transform_indices = @transform_4, window_bounds = array<i64: 1, 64>}, {pipeline_mode = #tpu.pipeline_mode<synchronous>, transform_indices = @transform_5, window_bounds = array<i64: 64, 3>}, {pipeline_mode = #tpu.pipeline_mode<synchronous>, transform_indices = @transform_6, window_bounds = array<i64: 1, 3>}, {transform_indices = @transform_7, window_bounds = array<i64: 1, 128, 3>}]} {
    %c0 = arith.constant 0 : index
    %c0_0 = arith.constant 0 : index
    %c0_1 = arith.constant 0 : index
    %0 = vector.load %arg2[%c0, %c0_0, %c0_1] : memref<1x128x5xf32, #tpu.memory_space<vmem>>, vector<1x128x5xf32>
    %1 = vector.shape_cast %0 : vector<1x128x5xf32> to vector<128x5xf32>
    %c0_2 = arith.constant 0 : index
    %c0_3 = arith.constant 0 : index
    %2 = vector.load %arg4[%c0_2, %c0_3] : memref<5x128xf32, #tpu.memory_space<vmem>>, vector<5x128xf32>
    %3 = vector.extract_strided_slice %1 {offsets = [0, 0], sizes = [128, 1], strides = [1, 1]} : vector<128x5xf32> to vector<128x1xf32>
    %4 = vector.extract_strided_slice %2 {offsets = [0, 0], sizes = [1, 128], strides = [1, 1]} : vector<5x128xf32> to vector<1x128xf32>
    %5 = vector.broadcast %3 : vector<128x1xf32> to vector<128x128xf32>
    %6 = vector.broadcast %4 : vector<1x128xf32> to vector<128x128xf32>
    %7 = arith.mulf %5, %6 : vector<128x128xf32>
    %8 = vector.extract_strided_slice %1 {offsets = [0, 1], sizes = [128, 1], strides = [1, 1]} : vector<128x5xf32> to vector<128x1xf32>
    %9 = vector.extract_strided_slice %2 {offsets = [1, 0], sizes = [1, 128], strides = [1, 1]} : vector<5x128xf32> to vector<1x128xf32>
    %10 = vector.broadcast %8 : vector<128x1xf32> to vector<128x128xf32>
    %11 = vector.broadcast %9 : vector<1x128xf32> to vector<128x128xf32>
    %12 = arith.mulf %10, %11 : vector<128x128xf32>
    %13 = arith.addf %7, %12 : vector<128x128xf32>
    %14 = vector.extract_strided_slice %1 {offsets = [0, 2], sizes = [128, 1], strides = [1, 1]} : vector<128x5xf32> to vector<128x1xf32>
    %15 = vector.extract_strided_slice %2 {offsets = [2, 0], sizes = [1, 128], strides = [1, 1]} : vector<5x128xf32> to vector<1x128xf32>
    %16 = vector.broadcast %14 : vector<128x1xf32> to vector<128x128xf32>
    %17 = vector.broadcast %15 : vector<1x128xf32> to vector<128x128xf32>
    %18 = arith.mulf %16, %17 : vector<128x128xf32>
    %19 = arith.addf %13, %18 : vector<128x128xf32>
    %20 = vector.extract_strided_slice %1 {offsets = [0, 3], sizes = [128, 1], strides = [1, 1]} : vector<128x5xf32> to vector<128x1xf32>
    %21 = vector.extract_strided_slice %2 {offsets = [3, 0], sizes = [1, 128], strides = [1, 1]} : vector<5x128xf32> to vector<1x128xf32>
    %22 = vector.broadcast %20 : vector<128x1xf32> to vector<128x128xf32>
    %23 = vector.broadcast %21 : vector<1x128xf32> to vector<128x128xf32>
    %24 = arith.mulf %22, %23 : vector<128x128xf32>
    %25 = arith.addf %19, %24 : vector<128x128xf32>
    %26 = vector.extract_strided_slice %1 {offsets = [0, 4], sizes = [128, 1], strides = [1, 1]} : vector<128x5xf32> to vector<128x1xf32>
    %27 = vector.extract_strided_slice %2 {offsets = [4, 0], sizes = [1, 128], strides = [1, 1]} : vector<5x128xf32> to vector<1x128xf32>
    %28 = vector.broadcast %26 : vector<128x1xf32> to vector<128x128xf32>
    %29 = vector.broadcast %27 : vector<1x128xf32> to vector<128x128xf32>
    %30 = arith.mulf %28, %29 : vector<128x128xf32>
    %31 = arith.addf %25, %30 : vector<128x128xf32>
    %c0_4 = arith.constant 0 : index
    %c0_5 = arith.constant 0 : index
    %c0_6 = arith.constant 0 : index
    %32 = vector.load %arg3[%c0_4, %c0_5, %c0_6] : memref<1x1x128xf32, #tpu.memory_space<vmem>>, vector<1x1x128xf32>
    %33 = vector.shape_cast %32 : vector<1x1x128xf32> to vector<1x128xf32>
    %34 = vector.broadcast %33 : vector<1x128xf32> to vector<128x128xf32>
    %35 = arith.addf %31, %34 : vector<128x128xf32>
    %cst = arith.constant 0.000000e+00 : f32
    %36 = vector.broadcast %cst : f32 to vector<128x128xf32>
    %37 = arith.maximumf %35, %36 : vector<128x128xf32>
    %38 = arith.truncf %37 : vector<128x128xf32> to vector<128x128xbf16>
    %c0_7 = arith.constant 0 : index
    %c0_8 = arith.constant 0 : index
    %39 = vector.load %arg5[%c0_7, %c0_8] : memref<128x64xbf16, #tpu.memory_space<vmem>>, vector<128x64xbf16>
    %c0_9 = arith.constant 0 : index
    %c0_10 = arith.constant 0 : index
    %40 = vector.load %arg6[%c0_9, %c0_10] : memref<1x64xf32, #tpu.memory_space<vmem>>, vector<1x64xf32>
    %cst_11 = arith.constant dense<0.000000e+00> : vector<128x64xf32>
    %41 = tpu.matmul %38, %39, %cst_11 {dimension_numbers = #tpu.dot_dimension_numbers<[1], [0], [0], [1], [0, 0, 1, 1], [], []>} : vector<128x128xbf16>, vector<128x64xbf16>, vector<128x64xf32> -> vector<128x64xf32>
    %42 = vector.broadcast %40 : vector<1x64xf32> to vector<128x64xf32>
    %43 = arith.addf %41, %42 : vector<128x64xf32>
    %cst_12 = arith.constant 0.000000e+00 : f32
    %44 = vector.broadcast %cst_12 : f32 to vector<128x64xf32>
    %45 = arith.maximumf %43, %44 : vector<128x64xf32>
    %46 = arith.truncf %45 : vector<128x64xf32> to vector<128x64xbf16>
    %c0_13 = arith.constant 0 : index
    %c0_14 = arith.constant 0 : index
    %47 = vector.load %arg7[%c0_13, %c0_14] : memref<64x3xbf16, #tpu.memory_space<vmem>>, vector<64x3xbf16>
    %c0_15 = arith.constant 0 : index
    %c0_16 = arith.constant 0 : index
    %48 = vector.load %arg8[%c0_15, %c0_16] : memref<1x3xf32, #tpu.memory_space<vmem>>, vector<1x3xf32>
    %cst_17 = arith.constant dense<0.000000e+00> : vector<128x3xf32>
    %49 = tpu.matmul %46, %47, %cst_17 {dimension_numbers = #tpu.dot_dimension_numbers<[1], [0], [0], [1], [0, 0, 1, 1], [], []>} : vector<128x64xbf16>, vector<64x3xbf16>, vector<128x3xf32> -> vector<128x3xf32>
    %50 = vector.broadcast %48 : vector<1x3xf32> to vector<128x3xf32>
    %51 = arith.addf %49, %50 : vector<128x3xf32>
    %52 = vector.extract_strided_slice %1 {offsets = [0, 0], sizes = [128, 3], strides = [1, 1]} : vector<128x5xf32> to vector<128x3xf32>
    %53 = arith.addf %52, %51 : vector<128x3xf32>
    %c0_18 = arith.constant 0 : index
    %c0_19 = arith.constant 0 : index
    %c0_20 = arith.constant 0 : index
    %54 = vector.load %arg9[%c0_18, %c0_19, %c0_20] : memref<1x128x3xf32, #tpu.memory_space<vmem>>, vector<1x128x3xf32>
    %55 = vector.shape_cast %54 : vector<1x128x3xf32> to vector<128x3xf32>
    %56 = vector.shape_cast %53 : vector<128x3xf32> to vector<1x128x3xf32>
    tpu.vector_store %arg9[%c0_18, %c0_19, %c0_20], %56 {strides = array<i32>} : memref<1x128x3xf32, #tpu.memory_space<vmem>>, vector<1x128x3xf32>,
    return
  }
  func.func @transform_0(%arg0: i32, %arg1: i32) -> (i32, i32, i32) {
    %c0_i32 = arith.constant 0 : i32
    %c0_i32_0 = arith.constant 0 : i32
    return %arg0, %arg1, %c0_i32 : i32, i32, i32
  }
  func.func @transform_1(%arg0: i32, %arg1: i32) -> (i32, i32, i32) {
    %c0_i32 = arith.constant 0 : i32
    %c0_i32_0 = arith.constant 0 : i32
    %c0_i32_1 = arith.constant 0 : i32
    return %arg0, %c0_i32, %c0_i32_0 : i32, i32, i32
  }
  func.func @transform_2(%arg0: i32, %arg1: i32) -> (i32, i32) {
    %c0_i32 = arith.constant 0 : i32
    %c0_i32_0 = arith.constant 0 : i32
    %c0_i32_1 = arith.constant 0 : i32
    return %c0_i32, %c0_i32_0 : i32, i32
  }
  func.func @transform_3(%arg0: i32, %arg1: i32) -> (i32, i32) {
    %c0_i32 = arith.constant 0 : i32
    %c0_i32_0 = arith.constant 0 : i32
    %c0_i32_1 = arith.constant 0 : i32
    return %c0_i32, %c0_i32_0 : i32, i32
  }
  func.func @transform_4(%arg0: i32, %arg1: i32) -> (i32, i32) {
    %c0_i32 = arith.constant 0 : i32
    %c0_i32_0 = arith.constant 0 : i32
    %c0_i32_1 = arith.constant 0 : i32
    return %c0_i32, %c0_i32_0 : i32, i32
  }
  func.func @transform_5(%arg0: i32, %arg1: i32) -> (i32, i32) {
    %c0_i32 = arith.constant 0 : i32
    %c0_i32_0 = arith.constant 0 : i32
    %c0_i32_1 = arith.constant 0 : i32
    return %c0_i32, %c0_i32_0 : i32, i32
  }
  func.func @transform_6(%arg0: i32, %arg1: i32) -> (i32, i32) {
    %c0_i32 = arith.constant 0 : i32
    %c0_i32_0 = arith.constant 0 : i32
    %c0_i32_1 = arith.constant 0 : i32
    return %c0_i32, %c0_i32_0 : i32, i32
  }
  func.func @transform_7(%arg0: i32, %arg1: i32) -> (i32, i32, i32) {
    %c0_i32 = arith.constant 0 : i32
    %c0_i32_0 = arith.constant 0 : i32
    return %arg0, %arg1, %c0_i32 : i32, i32, i32
  }
}

module attributes {stable_mosaic.version = 11 : i64} {
  func.func @_cond_mlp_kernel(%arg0: i32, %arg1: i32, %arg2: memref<1x256x5xf32, #tpu.memory_space<vmem>>, %arg3: memref<1x1x128xf32, #tpu.memory_space<vmem>>, %arg4: memref<5x128xf32, #tpu.memory_space<vmem>>, %arg5: memref<128x64xbf16, #tpu.memory_space<vmem>>, %arg6: memref<1x64xf32, #tpu.memory_space<vmem>>, %arg7: memref<64x3xbf16, #tpu.memory_space<vmem>>, %arg8: memref<1x3xf32, #tpu.memory_space<vmem>>, %arg9: memref<1x256x3xf32, #tpu.memory_space<vmem>>) attributes {dimension_semantics = [#tpu.dimension_semantics<parallel>, #tpu.dimension_semantics<parallel>], iteration_bounds = array<i64: 2, 1>, scalar_prefetch = 0 : i64, scratch_operands = 0 : i64, tpu.core_type = #tpu.core_type<tc>, window_params = [{transform_indices = @transform_0, window_bounds = array<i64: 1, 256, 5>}, {transform_indices = @transform_1, window_bounds = array<i64: 1, 1, 128>}, {pipeline_mode = #tpu.pipeline_mode<synchronous>, transform_indices = @transform_2, window_bounds = array<i64: 5, 128>}, {pipeline_mode = #tpu.pipeline_mode<synchronous>, transform_indices = @transform_3, window_bounds = array<i64: 128, 64>}, {pipeline_mode = #tpu.pipeline_mode<synchronous>, transform_indices = @transform_4, window_bounds = array<i64: 1, 64>}, {pipeline_mode = #tpu.pipeline_mode<synchronous>, transform_indices = @transform_5, window_bounds = array<i64: 64, 3>}, {pipeline_mode = #tpu.pipeline_mode<synchronous>, transform_indices = @transform_6, window_bounds = array<i64: 1, 3>}, {transform_indices = @transform_7, window_bounds = array<i64: 1, 256, 3>}]} {
    %c0 = arith.constant 0 : index
    %c0_0 = arith.constant 0 : index
    %c0_1 = arith.constant 0 : index
    %0 = vector.load %arg2[%c0, %c0_0, %c0_1] : memref<1x256x5xf32, #tpu.memory_space<vmem>>, vector<1x256x5xf32>
    %1 = vector.shape_cast %0 : vector<1x256x5xf32> to vector<256x5xf32>
    %c0_2 = arith.constant 0 : index
    %c0_3 = arith.constant 0 : index
    %2 = vector.load %arg4[%c0_2, %c0_3] : memref<5x128xf32, #tpu.memory_space<vmem>>, vector<5x128xf32>
    %3 = vector.extract_strided_slice %1 {offsets = [0, 0], sizes = [256, 1], strides = [1, 1]} : vector<256x5xf32> to vector<256x1xf32>
    %4 = vector.extract_strided_slice %2 {offsets = [0, 0], sizes = [1, 128], strides = [1, 1]} : vector<5x128xf32> to vector<1x128xf32>
    %5 = vector.broadcast %3 : vector<256x1xf32> to vector<256x128xf32>
    %6 = vector.broadcast %4 : vector<1x128xf32> to vector<256x128xf32>
    %7 = arith.mulf %5, %6 : vector<256x128xf32>
    %8 = vector.extract_strided_slice %1 {offsets = [0, 1], sizes = [256, 1], strides = [1, 1]} : vector<256x5xf32> to vector<256x1xf32>
    %9 = vector.extract_strided_slice %2 {offsets = [1, 0], sizes = [1, 128], strides = [1, 1]} : vector<5x128xf32> to vector<1x128xf32>
    %10 = vector.broadcast %8 : vector<256x1xf32> to vector<256x128xf32>
    %11 = vector.broadcast %9 : vector<1x128xf32> to vector<256x128xf32>
    %12 = arith.mulf %10, %11 : vector<256x128xf32>
    %13 = arith.addf %7, %12 : vector<256x128xf32>
    %14 = vector.extract_strided_slice %1 {offsets = [0, 2], sizes = [256, 1], strides = [1, 1]} : vector<256x5xf32> to vector<256x1xf32>
    %15 = vector.extract_strided_slice %2 {offsets = [2, 0], sizes = [1, 128], strides = [1, 1]} : vector<5x128xf32> to vector<1x128xf32>
    %16 = vector.broadcast %14 : vector<256x1xf32> to vector<256x128xf32>
    %17 = vector.broadcast %15 : vector<1x128xf32> to vector<256x128xf32>
    %18 = arith.mulf %16, %17 : vector<256x128xf32>
    %19 = arith.addf %13, %18 : vector<256x128xf32>
    %20 = vector.extract_strided_slice %1 {offsets = [0, 3], sizes = [256, 1], strides = [1, 1]} : vector<256x5xf32> to vector<256x1xf32>
    %21 = vector.extract_strided_slice %2 {offsets = [3, 0], sizes = [1, 128], strides = [1, 1]} : vector<5x128xf32> to vector<1x128xf32>
    %22 = vector.broadcast %20 : vector<256x1xf32> to vector<256x128xf32>
    %23 = vector.broadcast %21 : vector<1x128xf32> to vector<256x128xf32>
    %24 = arith.mulf %22, %23 : vector<256x128xf32>
    %25 = arith.addf %19, %24 : vector<256x128xf32>
    %26 = vector.extract_strided_slice %1 {offsets = [0, 4], sizes = [256, 1], strides = [1, 1]} : vector<256x5xf32> to vector<256x1xf32>
    %27 = vector.extract_strided_slice %2 {offsets = [4, 0], sizes = [1, 128], strides = [1, 1]} : vector<5x128xf32> to vector<1x128xf32>
    %28 = vector.broadcast %26 : vector<256x1xf32> to vector<256x128xf32>
    %29 = vector.broadcast %27 : vector<1x128xf32> to vector<256x128xf32>
    %30 = arith.mulf %28, %29 : vector<256x128xf32>
    %31 = arith.addf %25, %30 : vector<256x128xf32>
    %c0_4 = arith.constant 0 : index
    %c0_5 = arith.constant 0 : index
    %c0_6 = arith.constant 0 : index
    %32 = vector.load %arg3[%c0_4, %c0_5, %c0_6] : memref<1x1x128xf32, #tpu.memory_space<vmem>>, vector<1x1x128xf32>
    %33 = vector.shape_cast %32 : vector<1x1x128xf32> to vector<1x128xf32>
    %34 = vector.broadcast %33 : vector<1x128xf32> to vector<256x128xf32>
    %35 = arith.addf %31, %34 : vector<256x128xf32>
    %cst = arith.constant 0.000000e+00 : f32
    %36 = vector.broadcast %cst : f32 to vector<256x128xf32>
    %37 = arith.maximumf %35, %36 : vector<256x128xf32>
    %38 = arith.truncf %37 : vector<256x128xf32> to vector<256x128xbf16>
    %c0_7 = arith.constant 0 : index
    %c0_8 = arith.constant 0 : index
    %39 = vector.load %arg5[%c0_7, %c0_8] : memref<128x64xbf16, #tpu.memory_space<vmem>>, vector<128x64xbf16>
    %c0_9 = arith.constant 0 : index
    %c0_10 = arith.constant 0 : index
    %40 = vector.load %arg6[%c0_9, %c0_10] : memref<1x64xf32, #tpu.memory_space<vmem>>, vector<1x64xf32>
    %cst_11 = arith.constant dense<0.000000e+00> : vector<256x64xf32>
    %41 = tpu.matmul %38, %39, %cst_11 {dimension_numbers = #tpu.dot_dimension_numbers<[1], [0], [0], [1], [0, 0, 1, 1], [], []>} : vector<256x128xbf16>, vector<128x64xbf16>, vector<256x64xf32> -> vector<256x64xf32>
    %42 = vector.broadcast %40 : vector<1x64xf32> to vector<256x64xf32>
    %43 = arith.addf %41, %42 : vector<256x64xf32>
    %cst_12 = arith.constant 0.000000e+00 : f32
    %44 = vector.broadcast %cst_12 : f32 to vector<256x64xf32>
    %45 = arith.maximumf %43, %44 : vector<256x64xf32>
    %46 = arith.truncf %45 : vector<256x64xf32> to vector<256x64xbf16>
    %c0_13 = arith.constant 0 : index
    %c0_14 = arith.constant 0 : index
    %47 = vector.load %arg7[%c0_13, %c0_14] : memref<64x3xbf16, #tpu.memory_space<vmem>>, vector<64x3xbf16>
    %c0_15 = arith.constant 0 : index
    %c0_16 = arith.constant 0 : index
    %48 = vector.load %arg8[%c0_15, %c0_16] : memref<1x3xf32, #tpu.memory_space<vmem>>, vector<1x3xf32>
    %cst_17 = arith.constant dense<0.000000e+00> : vector<256x3xf32>
    %49 = tpu.matmul %46, %47, %cst_17 {dimension_numbers = #tpu.dot_dimension_numbers<[1], [0], [0], [1], [0, 0, 1, 1], [], []>} : vector<256x64xbf16>, vector<64x3xbf16>, vector<256x3xf32> -> vector<256x3xf32>
    %50 = vector.broadcast %48 : vector<1x3xf32> to vector<256x3xf32>
    %51 = arith.addf %49, %50 : vector<256x3xf32>
    %52 = vector.extract_strided_slice %1 {offsets = [0, 0], sizes = [256, 3], strides = [1, 1]} : vector<256x5xf32> to vector<256x3xf32>
    %53 = arith.addf %52, %51 : vector<256x3xf32>
    %c0_18 = arith.constant 0 : index
    %c0_19 = arith.constant 0 : index
    %c0_20 = arith.constant 0 : index
    %54 = vector.load %arg9[%c0_18, %c0_19, %c0_20] : memref<1x256x3xf32, #tpu.memory_space<vmem>>, vector<1x256x3xf32>
    %55 = vector.shape_cast %54 : vector<1x256x3xf32> to vector<256x3xf32>
    %56 = vector.shape_cast %53 : vector<256x3xf32> to vector<1x256x3xf32>
    tpu.vector_store %arg9[%c0_18, %c0_19, %c0_20], %56 {strides = array<i32>} : memref<1x256x3xf32, #tpu.memory_space<vmem>>, vector<1x256x3xf32>,
    return
  }
  func.func @transform_0(%arg0: i32, %arg1: i32) -> (i32, i32, i32) {
    %c0_i32 = arith.constant 0 : i32
    %c0_i32_0 = arith.constant 0 : i32
    return %arg0, %arg1, %c0_i32 : i32, i32, i32
  }
  func.func @transform_1(%arg0: i32, %arg1: i32) -> (i32, i32, i32) {
    %c0_i32 = arith.constant 0 : i32
    %c0_i32_0 = arith.constant 0 : i32
    %c0_i32_1 = arith.constant 0 : i32
    return %arg0, %c0_i32, %c0_i32_0 : i32, i32, i32
  }
  func.func @transform_2(%arg0: i32, %arg1: i32) -> (i32, i32) {
    %c0_i32 = arith.constant 0 : i32
    %c0_i32_0 = arith.constant 0 : i32
    %c0_i32_1 = arith.constant 0 : i32
    return %c0_i32, %c0_i32_0 : i32, i32
  }
  func.func @transform_3(%arg0: i32, %arg1: i32) -> (i32, i32) {
    %c0_i32 = arith.constant 0 : i32
    %c0_i32_0 = arith.constant 0 : i32
    %c0_i32_1 = arith.constant 0 : i32
    return %c0_i32, %c0_i32_0 : i32, i32
  }
  func.func @transform_4(%arg0: i32, %arg1: i32) -> (i32, i32) {
    %c0_i32 = arith.constant 0 : i32
    %c0_i32_0 = arith.constant 0 : i32
    %c0_i32_1 = arith.constant 0 : i32
    return %c0_i32, %c0_i32_0 : i32, i32
  }
  func.func @transform_5(%arg0: i32, %arg1: i32) -> (i32, i32) {
    %c0_i32 = arith.constant 0 : i32
    %c0_i32_0 = arith.constant 0 : i32
    %c0_i32_1 = arith.constant 0 : i32
    return %c0_i32, %c0_i32_0 : i32, i32
  }
  func.func @transform_6(%arg0: i32, %arg1: i32) -> (i32, i32) {
    %c0_i32 = arith.constant 0 : i32
    %c0_i32_0 = arith.constant 0 : i32
    %c0_i32_1 = arith.constant 0 : i32
    return %c0_i32, %c0_i32_0 : i32, i32
  }
  func.func @transform_7(%arg0: i32, %arg1: i32) -> (i32, i32, i32) {
    %c0_i32 = arith.constant 0 : i32
    %c0_i32_0 = arith.constant 0 : i32
    return %arg0, %arg1, %c0_i32 : i32, i32, i32
  }
}

module attributes {stable_mosaic.version = 11 : i64} {
  func.func @_chamfer_kernel(%arg0: i32, %arg1: i32, %arg2: i32, %arg3: memref<4xi32, #tpu.memory_space<smem>>, %arg4: memref<1x1x3x256xf32, #tpu.memory_space<vmem>>, %arg5: memref<1x128x3xf32, #tpu.memory_space<vmem>>, %arg6: memref<1x1x1x4xf32, #tpu.memory_space<vmem>>, %arg7: memref<5x256xf32, #tpu.memory_space<vmem>>, %arg8: memref<1x256xf32, #tpu.memory_space<vmem>>, %arg9: memref<1x2xf32, #tpu.memory_space<vmem>>) attributes {dimension_semantics = [#tpu.dimension_semantics<parallel>, #tpu.dimension_semantics<parallel>, #tpu.dimension_semantics<arbitrary>], iteration_bounds = array<i64: 4, 2, 2>, scalar_prefetch = 1 : i64, scratch_operands = 3 : i64, tpu.core_type = #tpu.core_type<tc>, window_params = [{transform_indices = @transform_0, window_bounds = array<i64: 1, 1, 3, 256>}, {transform_indices = @transform_1, window_bounds = array<i64: 1, 128, 3>}, {transform_indices = @transform_2, window_bounds = array<i64: 1, 1, 1, 4>}]} {
    %0 = tpu.iota {dimensions = array<i32: 1>} : vector<1x256xi32>
    %1 = arith.index_cast %arg0 : i32 to index
    %2 = memref.load %arg3[%1] : memref<4xi32, #tpu.memory_space<smem>>
    %3 = vector.broadcast %2 : i32 to vector<1x256xi32>
    %4 = arith.cmpi slt, %0, %3 : vector<1x256xi32>
    %c0_i32 = arith.constant 0 : i32
    %5 = arith.cmpi eq, %arg2, %c0_i32 : i32
    %6 = arith.extui %5 : i1 to i32
    %c0_i32_0 = arith.constant 0 : i32
    %7 = arith.cmpi ne, %6, %c0_i32_0 : i32
    scf.if %7 {
      %c0_24 = arith.constant 0 : index
      %c0_25 = arith.constant 0 : index
      %c0_26 = arith.constant 0 : index
      %c0_27 = arith.constant 0 : index
      %46 = vector.load %arg4[%c0_24, %c0_25, %c0_26, %c0_27] : memref<1x1x3x256xf32, #tpu.memory_space<vmem>>, vector<1x1x3x256xf32>
      %47 = vector.shape_cast %46 : vector<1x1x3x256xf32> to vector<3x256xf32>
      %48 = arith.mulf %47, %47 : vector<3x256xf32>
      %cst_28 = arith.constant dense<0.000000e+00> : vector<256xf32>
      %49 = vector.multi_reduction <add>, %48, %cst_28 [0] : vector<3x256xf32> to vector<256xf32>
      %50 = vector.shape_cast %49 : vector<256xf32> to vector<1x256xf32>
      %cst_29 = arith.constant 1.000000e+00 : f32
      %51 = vector.broadcast %cst_29 : f32 to vector<1x256xf32>
      %52 = tpu.concatenate %47, %51, %50 in 0 : vector<3x256xf32>, vector<1x256xf32>, vector<1x256xf32> -> vector<5x256xf32>
      %c0_30 = arith.constant 0 : index
      %c0_31 = arith.constant 0 : index
      %53 = vector.load %arg7[%c0_30, %c0_31] : memref<5x256xf32, #tpu.memory_space<vmem>>, vector<5x256xf32>
      tpu.vector_store %arg7[%c0_30, %c0_31], %52 {strides = array<i32>} : memref<5x256xf32, #tpu.memory_space<vmem>>, vector<5x256xf32>,
      %cst_32 = arith.constant 0x7F800000 : f32
      %54 = vector.broadcast %cst_32 : f32 to vector<1x256xf32>
      %c0_33 = arith.constant 0 : index
      %c0_34 = arith.constant 0 : index
      %55 = vector.load %arg8[%c0_33, %c0_34] : memref<1x256xf32, #tpu.memory_space<vmem>>, vector<1x256xf32>
      tpu.vector_store %arg8[%c0_33, %c0_34], %54 {strides = array<i32>} : memref<1x256xf32, #tpu.memory_space<vmem>>, vector<1x256xf32>,
      %cst_35 = arith.constant 0.000000e+00 : f32
      %56 = vector.broadcast %cst_35 : f32 to vector<1x2xf32>
      %c0_36 = arith.constant 0 : index
      %c0_37 = arith.constant 0 : index
      %57 = vector.load %arg9[%c0_36, %c0_37] : memref<1x2xf32, #tpu.memory_space<vmem>>, vector<1x2xf32>
      tpu.vector_store %arg9[%c0_36, %c0_37], %56 {strides = array<i32>} : memref<1x2xf32, #tpu.memory_space<vmem>>, vector<1x2xf32>,
    } else {
    }
    %c0 = arith.constant 0 : index
    %c0_1 = arith.constant 0 : index
    %c0_2 = arith.constant 0 : index
    %8 = vector.load %arg5[%c0, %c0_1, %c0_2] : memref<1x128x3xf32, #tpu.memory_space<vmem>>, vector<1x128x3xf32>
    %9 = vector.shape_cast %8 : vector<1x128x3xf32> to vector<128x3xf32>
    %10 = arith.mulf %9, %9 : vector<128x3xf32>
    %cst = arith.constant dense<0.000000e+00> : vector<128xf32>
    %11 = vector.multi_reduction <add>, %10, %cst [1] : vector<128x3xf32> to vector<128xf32>
    %12 = vector.shape_cast %11 : vector<128xf32> to vector<128x1xf32>
    %cst_3 = arith.constant -2.000000e+00 : f32
    %13 = vector.broadcast %cst_3 : f32 to vector<128x3xf32>
    %14 = arith.mulf %13, %9 : vector<128x3xf32>
    %cst_4 = arith.constant 1.000000e+00 : f32
    %15 = vector.broadcast %cst_4 : f32 to vector<128x1xf32>
    %16 = tpu.concatenate %14, %12, %15 in 1 : vector<128x3xf32>, vector<128x1xf32>, vector<128x1xf32> -> vector<128x5xf32>
    %c0_5 = arith.constant 0 : index
    %c0_6 = arith.constant 0 : index
    %17 = vector.load %arg7[%c0_5, %c0_6] : memref<5x256xf32, #tpu.memory_space<vmem>>, vector<5x256xf32>
    %cst_7 = arith.constant dense<0.000000e+00> : vector<128x256xf32>
    %18 = tpu.matmul %16, %17, %cst_7 {dimension_numbers = #tpu.dot_dimension_numbers<[1], [0], [0], [1], [0, 0, 1, 1], [], []>} : vector<128x5xf32>, vector<5x256xf32>, vector<128x256xf32> -> vector<128x256xf32>
    %cst_8 = arith.constant 0.000000e+00 : f32
    %19 = vector.broadcast %cst_8 : f32 to vector<128x256xf32>
    %20 = arith.maximumf %18, %19 : vector<128x256xf32>
    %c0_9 = arith.constant 0 : index
    %c0_10 = arith.constant 0 : index
    %21 = vector.load %arg8[%c0_9, %c0_10] : memref<1x256xf32, #tpu.memory_space<vmem>>, vector<1x256xf32>
    %cst_11 = arith.constant dense<0x7F800000> : vector<256xf32>
    %22 = vector.multi_reduction <minimumf>, %20, %cst_11 [0] : vector<128x256xf32> to vector<256xf32>
    %23 = vector.shape_cast %22 : vector<256xf32> to vector<1x256xf32>
    %24 = arith.minimumf %21, %23 : vector<1x256xf32>
    %c0_12 = arith.constant 0 : index
    %c0_13 = arith.constant 0 : index
    %25 = vector.load %arg8[%c0_12, %c0_13] : memref<1x256xf32, #tpu.memory_space<vmem>>, vector<1x256xf32>
    tpu.vector_store %arg8[%c0_12, %c0_13], %24 {strides = array<i32>} : memref<1x256xf32, #tpu.memory_space<vmem>>, vector<1x256xf32>,
    %cst_14 = arith.constant 0x7F800000 : f32
    %26 = vector.shape_cast %4 : vector<1x256xi1> to vector<1x256xi1>
    %27 = vector.broadcast %26 : vector<1x256xi1> to vector<128x256xi1>
    %28 = vector.broadcast %cst_14 : f32 to vector<128x256xf32>
    %29 = arith.select %27, %20, %28 : vector<128x256xi1>, vector<128x256xf32>
    %cst_15 = arith.constant dense<0x7F800000> : vector<128xf32>
    %30 = vector.multi_reduction <minimumf>, %29, %cst_15 [1] : vector<128x256xf32> to vector<128xf32>
    %31 = vector.shape_cast %30 : vector<128xf32> to vector<128x1xf32>
    %cst_16 = arith.constant dense<0.000000e+00> : vector<1xf32>
    %32 = vector.multi_reduction <add>, %31, %cst_16 [0] : vector<128x1xf32> to vector<1xf32>
    %33 = vector.shape_cast %32 : vector<1xf32> to vector<1x1xf32>
    %cst_17 = arith.constant 9.99999996E-13 : f32
    %34 = vector.broadcast %cst_17 : f32 to vector<128x1xf32>
    %35 = arith.addf %31, %34 : vector<128x1xf32>
    %36 = math.sqrt %35 : vector<128x1xf32>
    %cst_18 = arith.constant dense<0.000000e+00> : vector<1xf32>
    %37 = vector.multi_reduction <add>, %36, %cst_18 [0] : vector<128x1xf32> to vector<1xf32>
    %38 = vector.shape_cast %37 : vector<1xf32> to vector<1x1xf32>
    %c0_19 = arith.constant 0 : index
    %c0_20 = arith.constant 0 : index
    %39 = vector.load %arg9[%c0_19, %c0_20] : memref<1x2xf32, #tpu.memory_space<vmem>>, vector<1x2xf32>
    %40 = tpu.concatenate %33, %38 in 1 : vector<1x1xf32>, vector<1x1xf32> -> vector<1x2xf32>
    %41 = arith.addf %39, %40 : vector<1x2xf32>
    %c0_21 = arith.constant 0 : index
    %c0_22 = arith.constant 0 : index
    %42 = vector.load %arg9[%c0_21, %c0_22] : memref<1x2xf32, #tpu.memory_space<vmem>>, vector<1x2xf32>
    tpu.vector_store %arg9[%c0_21, %c0_22], %41 {strides = array<i32>} : memref<1x2xf32, #tpu.memory_space<vmem>>, vector<1x2xf32>,
    %c1_i32 = arith.constant 1 : i32
    %43 = arith.cmpi eq, %arg2, %c1_i32 : i32
    %44 = arith.extui %43 : i1 to i32
    %c0_i32_23 = arith.constant 0 : i32
    %45 = arith.cmpi ne, %44, %c0_i32_23 : i32
    scf.if %45 {
      %46 = arith.index_cast %arg0 : i32 to index
      %47 = memref.load %arg3[%46] : memref<4xi32, #tpu.memory_space<smem>>
      %48 = arith.sitofp %47 : i32 to f32
      %cst_24 = arith.constant 1.000000e+00 : f32
      %49 = arith.divf %cst_24, %48 : f32
      %c0_25 = arith.constant 0 : index
      %c0_26 = arith.constant 0 : index
      %50 = vector.load %arg8[%c0_25, %c0_26] : memref<1x256xf32, #tpu.memory_space<vmem>>, vector<1x256xf32>
      %cst_27 = arith.constant 0.000000e+00 : f32
      %51 = vector.broadcast %cst_27 : f32 to vector<1x256xf32>
      %52 = arith.select %4, %50, %51 : vector<1x256xi1>, vector<1x256xf32>
      %cst_28 = arith.constant dense<0.000000e+00> : vector<1xf32>
      %53 = vector.multi_reduction <add>, %52, %cst_28 [1] : vector<1x256xf32> to vector<1xf32>
      %54 = vector.shape_cast %53 : vector<1xf32> to vector<1x1xf32>
      %55 = vector.broadcast %49 : f32 to vector<1x1xf32>
      %56 = arith.mulf %54, %55 : vector<1x1xf32>
      %cst_29 = arith.constant 9.99999996E-13 : f32
      %57 = vector.broadcast %cst_29 : f32 to vector<1x256xf32>
      %58 = arith.addf %50, %57 : vector<1x256xf32>
      %59 = math.sqrt %58 : vector<1x256xf32>
      %cst_30 = arith.constant 0.000000e+00 : f32
      %60 = vector.broadcast %cst_30 : f32 to vector<1x256xf32>
      %61 = arith.select %4, %59, %60 : vector<1x256xi1>, vector<1x256xf32>
      %cst_31 = arith.constant dense<0.000000e+00> : vector<1xf32>
      %62 = vector.multi_reduction <add>, %61, %cst_31 [1] : vector<1x256xf32> to vector<1xf32>
      %63 = vector.shape_cast %62 : vector<1xf32> to vector<1x1xf32>
      %64 = vector.broadcast %49 : f32 to vector<1x1xf32>
      %65 = arith.mulf %63, %64 : vector<1x1xf32>
      %c0_32 = arith.constant 0 : index
      %c0_33 = arith.constant 0 : index
      %66 = vector.load %arg9[%c0_32, %c0_33] : memref<1x2xf32, #tpu.memory_space<vmem>>, vector<1x1xf32>
      %cst_34 = arith.constant 3.906250e-03 : f32
      %67 = vector.broadcast %cst_34 : f32 to vector<1x1xf32>
      %68 = arith.mulf %66, %67 : vector<1x1xf32>
      %c0_35 = arith.constant 0 : index
      %c1 = arith.constant 1 : index
      %69 = vector.load %arg9[%c0_35, %c1] : memref<1x2xf32, #tpu.memory_space<vmem>>, vector<1x1xf32>
      %cst_36 = arith.constant 3.906250e-03 : f32
      %70 = vector.broadcast %cst_36 : f32 to vector<1x1xf32>
      %71 = arith.mulf %69, %70 : vector<1x1xf32>
      %72 = tpu.concatenate %56, %68, %65, %71 in 1 : vector<1x1xf32>, vector<1x1xf32>, vector<1x1xf32>, vector<1x1xf32> -> vector<1x4xf32>
      %c0_37 = arith.constant 0 : index
      %c0_38 = arith.constant 0 : index
      %c0_39 = arith.constant 0 : index
      %c0_40 = arith.constant 0 : index
      %73 = vector.load %arg6[%c0_37, %c0_38, %c0_39, %c0_40] : memref<1x1x1x4xf32, #tpu.memory_space<vmem>>, vector<1x1x1x4xf32>
      %74 = vector.shape_cast %73 : vector<1x1x1x4xf32> to vector<1x4xf32>
      %75 = vector.shape_cast %72 : vector<1x4xf32> to vector<1x1x1x4xf32>
      tpu.vector_store %arg6[%c0_37, %c0_38, %c0_39, %c0_40], %75 {strides = array<i32>} : memref<1x1x1x4xf32, #tpu.memory_space<vmem>>, vector<1x1x1x4xf32>,
    } else {
    }
    return
  }
  func.func @transform_0(%arg0: i32, %arg1: i32, %arg2: i32, %arg3: memref<4xi32, #tpu.memory_space<smem>>) -> (i32, i32, i32, i32) {
    %c0_i32 = arith.constant 0 : i32
    %c0_i32_0 = arith.constant 0 : i32
    %c0_i32_1 = arith.constant 0 : i32
    return %arg0, %arg1, %c0_i32, %c0_i32_0 : i32, i32, i32, i32
  }
  func.func @transform_1(%arg0: i32, %arg1: i32, %arg2: i32, %arg3: memref<4xi32, #tpu.memory_space<smem>>) -> (i32, i32, i32) {
    %c0_i32 = arith.constant 0 : i32
    %c0_i32_0 = arith.constant 0 : i32
    return %arg1, %arg2, %c0_i32 : i32, i32, i32
  }
  func.func @transform_2(%arg0: i32, %arg1: i32, %arg2: i32, %arg3: memref<4xi32, #tpu.memory_space<smem>>) -> (i32, i32, i32, i32) {
    %c0_i32 = arith.constant 0 : i32
    %c0_i32_0 = arith.constant 0 : i32
    %c0_i32_1 = arith.constant 0 : i32
    return %arg0, %arg1, %c0_i32, %c0_i32_0 : i32, i32, i32, i32
  }
}

</mosaic_0001>

<bundles_post_ra>
// kernel: model_forward.9
= control target key start
LH: loop header
LB: loop body
LE: loop exit
PB: predicated region body
PF: predicated region fallthrough
CT: control target
= control target key end

     0   :  { %s1177_s18 = smov 0   ;;  %s1179_s19 = smov 0   ;;  %s1588_s0 = inlined_call_operand.vmem [shape: f32[2,192,3], index: 0, kind: input, shape index: {}]   ;;  %s1589_s1 = inlined_call_operand.vmem [shape: f32[3,64], index: 1, kind: input, shape index: {}]   ;;  %s1590_s2 = inlined_call_operand.vmem [shape: f32[1,64], index: 2, kind: input, shape index: {}]   ;;  %s1591_s3 = inlined_call_operand.vmem [shape: bf16[64,128], index: 3, kind: input, shape index: {}]   ;;  %s1592_s4 = inlined_call_operand.vmem [shape: f32[1,128], index: 4, kind: input, shape index: {}]   ;;  %s1593_s5 = inlined_call_operand.vmem [shape: f32[2,1,128], index: 5, kind: output, shape index: {}]  }
   0x1   :  { %s1181_s20 = smov 0  }
   0x2 LB: > { %s27_s21 = sadd.s32 1, %s1137_s19  ;;  %p1023_p0 = scmp.ge.s32.totalorder %s1141_s20, 1  ;;  %s1141_s20 = sphi %s1181_s20, %s15_s20   ;;  %s1137_s19 = sphi %s1179_s19, %s1595_s19   ;;  %s1133_s18 = sphi %s1177_s18, %s1594_s18  }
   0x3   : > { %p29_p1 = scmp.ge.s32.totalorder %s27_s21, 2  ;;  %p206_p2 = scmp.lt.s32.totalorder %s1141_s20, 3 }
   0x5   : > { %s1597_s21 = smov (%p29_p1, %s27_s21), 0  ;;  %p207_p3 = pnand %p1023_p0, %p206_p2 }
   0x6   : > { %p237_p4 = scmp.lt.s32.totalorder (!%p207_p3), %s1133_s18, 1 }
   0x7   : > { %210 = sbr.rel (%p207_p3) target bundleno = 521 (0x209), region = 40 }
   0xc   : > { %v1143_v0 = vmov 0   ;;  %s1599_s18 = smov (!%p237_p4, %s1133_s18), 1  ;;  %v1144_v25 = vmov 1   ;;  %v1145_v27 = vmov 2   ;;  %v1344_v45 = vld [vmem:[%s1589_s1] sm:$0x7] }
   0xd   : > { %1102 = vset.pattern.permute.xlu2 %v1143_v0  ;;  %1101 = vset.pattern.permute.xlu1 %v1143_v0  ;;  %s1071_s22 = smul.u32 192, %s1599_s18  ;;  %v1350_v46 = vperm.slane %v1344_v45, 0  ;;  %v1353_v47 = vperm.slane %v1344_v45, 1  ;;  %v1058_v63 = vld [vmem:[%s1591_s3 + $0x18] sm:$0xff]  ;;  %vm810_vm0 = vcmask 523264   ;;  %s248_s17 = scalar_lea.vmem %s1593_s5, %s1599_s18 }
   0xe   : > { %1100 = vset.pattern.permute.xlu0 %v1143_v0  ;;  %851 = vmatpush.bf16.msra.mxu0 %v1058_v63 }
   0xf   : > { %s1201_s25 = scalar_lea.vmem %s1588_s0, %s1071_s22  ;;  %1059 = vmatpush.bf16.msra.mxu1 %v1058_v63  ;;  %1060 = vmatpush.bf16.msra.mxu2 %v1058_v63 }
  0x10   : > { %v1204_v1 = vld [vmem:[%s1201_s25 + $0x20] sm:$0xff]  ;;  %v1207_v2 = vld [vmem:[%s1201_s25 + $0x10] sm:$0xff]  ;;  %v1216_v4 = vld [vmem:[%s1201_s25 + $0x28] sm:$0xff]  ;;  %1061 = vmatpush.bf16.msra.mxu3 %v1058_v63 }
  0x11   : > { %v1210_v3 = vld [vmem:[%s1201_s25] sm:$0xff]  ;;  %297 = vperm.xlu2 %1102, %v1204_v1   ;;  %287 = vperm.xlu1 %1101, %v1207_v2   ;;  %v1219_v5 = vld [vmem:[%s1201_s25 + $0x18] sm:$0xff]  ;;  %v251_v6 = vld [vmem:[%s1201_s25 + $0x8] sm:$0xff] }
  0x12   : > { %277 = vperm.xlu0 %1100, %v1210_v3   ;;  %v1225_v7 = vld [vmem:[%s1201_s25 + $0x40] sm:$0xff]  ;;  %v1228_v8 = vld [vmem:[%s1201_s25 + $0x38] sm:$0xff]  ;;  %v256_v9 = vld [vmem:[%s1201_s25 + $0x30] sm:$0xff] }
  0x13   : > { %v1234_v10 = vld [vmem:[%s1201_s25 + $0x58] sm:$0xff]  ;;  %v1237_v11 = vld [vmem:[%s1201_s25 + $0x50] sm:$0xff]  ;;  %v1240_v12 = vld [vmem:[%s1201_s25 + $0x48] sm:$0xff] }
  0x14   : > { %v1246_v13 = vld [vmem:[%s1201_s25 + $0x70] sm:$0xff]  ;;  %v263_v14 = vld [vmem:[%s1201_s25 + $0x68] sm:$0xff]  ;;  %v262_v15 = vld [vmem:[%s1201_s25 + $0x60] sm:$0xff] }
  0x15   : > { %v1252_v16 = vld [vmem:[%s1201_s25 + $0x88] sm:$0xff]  ;;  %v1255_v17 = vld [vmem:[%s1201_s25 + $0x80] sm:$0xff]  ;;  %v1258_v18 = vld [vmem:[%s1201_s25 + $0x78] sm:$0xff] }
  0x16   : > { %v1264_v19 = vld [vmem:[%s1201_s25 + $0xa0] sm:$0xff]  ;;  %v269_v20 = vld [vmem:[%s1201_s25 + $0x98] sm:$0xff]  ;;  %v268_v21 = vld [vmem:[%s1201_s25 + $0x90] sm:$0xff] }
  0x17   : > { %v1270_v22 = vld [vmem:[%s1201_s25 + $0xb8] sm:$0xff]  ;;  %v1273_v23 = vld [vmem:[%s1201_s25 + $0xb0] sm:$0xff]  ;;  %v1276_v24 = vld [vmem:[%s1201_s25 + $0xa8] sm:$0xff] }
  0x19   : > { %302 = vperm.xlu2 %1102, %v1216_v4   ;;  %292 = vperm.xlu1 %1101, %v1219_v5  }
  0x1a   : > { %282 = vperm.xlu0 %1100, %v251_v6  }
  0x21   : > { %317 = vperm.xlu2 %1102, %v1225_v7   ;;  %312 = vperm.xlu1 %1101, %v1228_v8  }
  0x22   : > { %307 = vperm.xlu0 %1100, %v256_v9  }
  0x29   : > { %332 = vperm.xlu2 %1102, %v1234_v10   ;;  %327 = vperm.xlu1 %1101, %v1237_v11  }
  0x2a   : > { %322 = vperm.xlu0 %1100, %v1240_v12  }
  0x31   : > { %347 = vperm.xlu2 %1102, %v1246_v13   ;;  %342 = vperm.xlu1 %1101, %v263_v14  }
  0x32   : > { %337 = vperm.xlu0 %1100, %v262_v15  }
  0x39   : > { %362 = vperm.xlu2 %1102, %v1252_v16   ;;  %357 = vperm.xlu1 %1101, %v1255_v17  }
  0x3a   : > { %352 = vperm.xlu0 %1100, %v1258_v18  }
  0x41   : > { %377 = vperm.xlu2 %1102, %v1264_v19   ;;  %372 = vperm.xlu1 %1101, %v269_v20  }
  0x42   : > { %367 = vperm.xlu0 %1100, %v268_v21  }
  0x49   : > { %392 = vperm.xlu2 %1102, %v1270_v22   ;;  %387 = vperm.xlu1 %1101, %v1273_v23  }
  0x4a   : > { %382 = vperm.xlu0 %1100, %v1276_v24  }
  0x51   : > { %1105 = vset.pattern.permute.xlu2 %v1144_v25  ;;  %1104 = vset.pattern.permute.xlu1 %v1144_v25 }
  0x52   : > { %1103 = vset.pattern.permute.xlu0 %v1144_v25  ;;  %429 = vperm.xlu2 %1105, %v1207_v2  }
  0x53   : > { %425 = vperm.xlu1 %1104, %v251_v6   ;;  %421 = vperm.xlu0 %1103, %v1210_v3  }
  0x5a   : > { %437 = vperm.xlu2 %1105, %v1204_v1  }
  0x5b   : > { %433 = vperm.xlu1 %1104, %v1219_v5   ;;  %441 = vperm.xlu0 %1103, %v1216_v4  }
  0x62   : > { %473 = vperm.xlu2 %1105, %v263_v14  }
  0x63   : > { %469 = vperm.xlu1 %1104, %v262_v15   ;;  %445 = vperm.xlu0 %1103, %v256_v9  }
  0x6a   : > { %493 = vperm.xlu2 %1105, %v268_v21  }
  0x6b   : > { %449 = vperm.xlu1 %1104, %v1228_v8   ;;  %497 = vperm.xlu0 %1103, %v269_v20   ;;  %v298_v26 = vpop.permute.xlu2 %297 }
  0x6c   : > { %v400_v57 = vmul.f32 %v1350_v46, %v298_v26 }
  0x72   : > { %1107 = vset.pattern.permute.xlu2 %v1145_v27 }
  0x73   : > { %1106 = vset.pattern.permute.xlu1 %v1145_v27  ;;  %453 = vperm.xlu0 %1103, %v1225_v7   ;;  %v1293_v28 = vpop.permute.xlu2 %302 }
  0x74   : > { %570 = vperm.xlu2 %1107, %v251_v6   ;;  %566 = vperm.xlu1 %1106, %v1210_v3   ;;  %v1057_v3 = vld [vmem:[%s1591_s3 + $0x10] sm:$0xff] }
  0x75   : > { %852 = vmatpush.bf16.msra.mxu0 %v1057_v3  ;;  %1062 = vmatpush.bf16.msra.mxu1 %v1057_v3 }
  0x76   : > { %1063 = vmatpush.bf16.msra.mxu2 %v1057_v3  ;;  %1064 = vmatpush.bf16.msra.mxu3 %v1057_v3 }
  0x7b   : > { %489 = vperm.xlu0 %1103, %v1252_v16   ;;  %v1297_v29 = vpop.permute.xlu2 %317 }
  0x7c   : > { %590 = vperm.xlu2 %1107, %v256_v9   ;;  %618 = vperm.xlu1 %1106, %v263_v14   ;;  %v401_v9 = vmul.f32 %v1350_v46, %v1293_v28 }
  0x83   : > { %1113 = vset.pattern.permute.xlu0 %v1145_v27  ;;  %v1300_v30 = vpop.permute.xlu2 %332  ;;  %v288_v31 = vpop.permute.xlu1 %287 }
  0x84   : > { %638 = vperm.xlu2 %1107, %v268_v21   ;;  %594 = vperm.xlu1 %1106, %v1228_v8   ;;  %v1303_v32 = vpop.permute.xlu0 %277  ;;  %v398_v51 = vmul.f32 %v1350_v46, %v288_v31  ;;  %v1055_v8 = vld [vmem:[%s1591_s3] sm:$0xff] }
  0x85   : > { %614 = vperm.xlu0 %1113, %v262_v15   ;;  %v396_v26 = vmul.f32 %v1350_v46, %v1303_v32 }
  0x8b   : > { %v1305_v33 = vpop.permute.xlu2 %347  ;;  %v1307_v34 = vpop.permute.xlu1 %292 }
  0x8c   : > { %1109 = vset.pattern.permute.xlu2 %v1144_v25  ;;  %1108 = vset.pattern.permute.xlu1 %v1144_v25  ;;  %v1311_v35 = vpop.permute.xlu0 %282 }
  0x8d   : > { %642 = vperm.xlu0 %1113, %v269_v20   ;;  %481 = vperm.xlu2 %1109, %v1258_v18  }
  0x8e   : > { %477 = vperm.xlu1 %1108, %v1246_v13  }
  0x93   : > { %v1315_v36 = vpop.permute.xlu2 %362  ;;  %v1317_v37 = vpop.permute.xlu1 %312 }
  0x94   : > { %v1319_v38 = vpop.permute.xlu0 %307  ;;  %v413_v63 = vmul.f32 %v1350_v46, %v1315_v36 }
  0x95   : > { %578 = vperm.xlu0 %1113, %v1219_v5   ;;  %501 = vperm.xlu2 %1109, %v1264_v19   ;;  %v1056_v5 = vld [vmem:[%s1591_s3 + $0x8] sm:$0xff]  ;;  %v402_v3 = vmul.f32 %v1350_v46, %v1319_v38 }
  0x96   : > { %457 = vperm.xlu1 %1108, %v1240_v12   ;;  %853 = vmatpush.bf16.msra.mxu0 %v1056_v5 }
  0x97   : > { %1065 = vmatpush.bf16.msra.mxu1 %v1056_v5  ;;  %1066 = vmatpush.bf16.msra.mxu2 %v1056_v5 }
  0x98   : > { %1067 = vmatpush.bf16.msra.mxu3 %v1056_v5 }
  0x9a   : > { %854 = vmatpush.bf16.msra.mxu0 %v1055_v8 }
  0x9b   : > { %v1324_v39 = vpop.permute.xlu2 %377  ;;  %v1326_v40 = vpop.permute.xlu1 %327  ;;  %1068 = vmatpush.bf16.msra.mxu1 %v1055_v8  ;;  %1069 = vmatpush.bf16.msra.mxu2 %v1055_v8 }
  0x9c   : > { %v1328_v41 = vpop.permute.xlu0 %322  ;;  %1070 = vmatpush.bf16.msra.mxu3 %v1055_v8 }
  0x9d   : > { %646 = vperm.xlu0 %1113, %v1264_v19   ;;  %1110 = vset.pattern.permute.xlu2 %v1145_v27  ;;  %v1416_v19 = vperm.slane %v1344_v45, 2 }
  0x9e   : > { %505 = vperm.xlu1 %1108, %v1276_v24   ;;  %574 = vperm.xlu2 %1110, %v1207_v2  }
  0xa3   : > { %v1334_v42 = vpop.permute.xlu2 %392  ;;  %v1336_v43 = vpop.permute.xlu1 %342 }
  0xa4   : > { %v1338_v44 = vpop.permute.xlu0 %337  ;;  %v409_v36 = vmul.f32 %v1350_v46, %v1336_v43 }
  0xa5   : > { %582 = vperm.xlu0 %1113, %v1204_v1  }
  0xa6   : > { %1111 = vset.pattern.permute.xlu1 %v1145_v27  ;;  %626 = vperm.xlu2 %1110, %v1258_v18  }
  0xa7   : > { %622 = vperm.xlu1 %1111, %v1246_v13  }
  0xab   : > { %v1355_v48 = vpop.permute.xlu1 %357 }
  0xac   : > { %v1357_v49 = vpop.permute.xlu0 %352  ;;  %v430_v50 = vpop.permute.xlu2 %429 }
  0xad   : > { %610 = vperm.xlu0 %1113, %v1234_v10   ;;  %v519_v52 = vmul.f32 %v1353_v47, %v430_v50 }
  0xae   : > { %602 = vperm.xlu2 %1110, %v1240_v12  }
  0xaf   : > { %v1363_v53 = vadd.f32 %v519_v52, %v398_v51  ;;  %598 = vperm.xlu1 %1111, %v1225_v7  }
  0xb3   : > { %v1366_v54 = vpop.permute.xlu1 %372 }
  0xb4   : > { %v1368_v55 = vpop.permute.xlu0 %367  ;;  %v438_v56 = vpop.permute.xlu2 %437 }
  0xb5   : > { %v521_v58 = vmul.f32 %v1353_v47, %v438_v56 }
  0xb6   : > { %1112 = vset.pattern.permute.xlu2 %v1144_v25 }
  0xb7   : > { %v1373_v59 = vadd.f32 %v521_v58, %v400_v57  ;;  %650 = vperm.xlu1 %1111, %v1276_v24   ;;  %485 = vperm.xlu2 %1112, %v1255_v17  }
  0xbb   : > { %v1377_v60 = vpop.permute.xlu1 %387 }
  0xbc   : > { %v1379_v61 = vpop.permute.xlu0 %382  ;;  %v1381_v62 = vpop.permute.xlu2 %473 }
  0xbd   : > { %v530_v8 = vmul.f32 %v1353_v47, %v1381_v62  ;;  %v403_v62 = vmul.f32 %v1350_v46, %v1317_v37 }
  0xbf   : > { %1114 = vset.pattern.permute.xlu1 %v1144_v25  ;;  %465 = vperm.xlu2 %1112, %v1234_v10  }
  0xc0   : > { %461 = vperm.xlu1 %1114, %v1237_v11  }
  0xc4   : > { %v1389_v0 = vpop.permute.xlu2 %493 }
  0xc5   : > { %v426_v1 = vpop.permute.xlu1 %425  ;;  %v422_v2 = vpop.permute.xlu0 %421 }
  0xc7   : > { %513 = vperm.xlu2 %1112, %v1270_v22  }
  0xc8   : > { %509 = vperm.xlu1 %1114, %v1273_v23  }
  0xcd   : > { %v1399_v6 = vpop.permute.xlu1 %433  ;;  %v442_v7 = vpop.permute.xlu0 %441 }
  0xce   : > { %v522_v10 = vmul.f32 %v1353_v47, %v442_v7  ;;  %v571_v12 = vpop.permute.xlu2 %570 }
  0xcf   : > { %1116 = vset.pattern.permute.xlu2 %v1145_v27  ;;  %v663_v25 = vmul.f32 %v1416_v19, %v571_v12 }
  0xd0   : > { %v1408_v13 = vadd.f32 %v522_v10, %v401_v9  ;;  %1115 = vset.pattern.permute.xlu1 %v1145_v27  ;;  %630 = vperm.xlu2 %1116, %v1255_v17   ;;  %v518_v17 = vmul.f32 %v1353_v47, %v426_v1  ;;  %v1430_v27 = vld [vmem:[%s1590_s2] ss:$0 sm:$0xff] }
  0xd1   : > { %586 = vperm.xlu1 %1115, %v1216_v4   ;;  %v397_v4 = vmul.f32 %v1350_v46, %v1311_v35 }
  0xd5   : > { %v470_v14 = vpop.permute.xlu1 %469  ;;  %v446_v15 = vpop.permute.xlu0 %445 }
  0xd6   : > { %v591_v18 = vpop.permute.xlu2 %590  ;;  %v523_v56 = vmul.f32 %v1353_v47, %v446_v15 }
  0xd7   : > { %v668_v12 = vmul.f32 %v1416_v19, %v591_v18 }
  0xd8   : > { %606 = vperm.xlu2 %1116, %v1237_v11   ;;  %v542_v11 = vadd.f32 %v518_v17, %v397_v4  ;;  %v547_v10 = vadd.f32 %v523_v56, %v402_v3  ;;  %v554_v17 = vadd.f32 %v530_v8, %v409_v36  ;;  %v529_v4 = vmul.f32 %v1353_v47, %v470_v14 }
  0xd9   : > { %634 = vperm.xlu1 %1115, %v1252_v16   ;;  %v517_v16 = vmul.f32 %v1353_v47, %v422_v2 }
  0xda   : > { %v687_v28 = vadd.f32 %v663_v25, %v542_v11  ;;  %v692_v25 = vadd.f32 %v668_v12, %v547_v10  ;;  %v408_v11 = vmul.f32 %v1350_v46, %v1338_v44 }
  0xdb   : > { %v541_v35 = vadd.f32 %v517_v16, %v396_v26 }
  0xdd   : > { %v450_v20 = vpop.permute.xlu1 %449  ;;  %v498_v21 = vpop.permute.xlu0 %497 }
  0xde   : > { %v639_v24 = vpop.permute.xlu2 %638  ;;  %v524_v38 = vmul.f32 %v1353_v47, %v450_v20  ;;  %v553_v20 = vadd.f32 %v529_v4, %v408_v11 }
  0xdf   : > { %v680_v44 = vmul.f32 %v1416_v19, %v639_v24 }
  0xe0   : > { %658 = vperm.xlu2 %1116, %v1270_v22   ;;  %v548_v26 = vadd.f32 %v524_v38, %v403_v62  ;;  %v399_v62 = vmul.f32 %v1350_v46, %v1307_v34 }
  0xe1   : > { %654 = vperm.xlu1 %1115, %v1273_v23   ;;  %v715_v23 = vadd.f32 %v1430_v27, %v687_v28 }
  0xe3   : > { %v739_v32 = vmax.f32 %v715_v23, 0.0  ;;  %v414_v23 = vmul.f32 %v1350_v46, %v1368_v55 }
  0xe5   : > { %v1432_v22 = vpop.permute.xlu0 %453 }
  0xe6   : > { %v567_v31 = vpop.permute.xlu1 %566 }
  0xe7   : > { %v662_v45 = vmul.f32 %v1416_v19, %v567_v31  ;;  %v1435_v50 = vpop.permute.xlu2 %481  ;;  %v535_v31 = vmul.f32 %v1353_v47, %v1389_v0  ;;  %v536_v0 = vmul.f32 %v1353_v47, %v498_v21 }
  0xe9   : > { %v686_v51 = vadd.f32 %v662_v45, %v541_v35  ;;  %v720_v45 = vadd.f32 %v1430_v27, %v692_v25  ;;  %v559_v56 = vadd.f32 %v535_v31, %v414_v23 }
  0xeb   : > { %v714_v52 = vadd.f32 %v1430_v27, %v686_v51 }
  0xed   : > { %v738_v57 = vmax.f32 %v714_v52, 0.0  ;;  %v490_v58 = vpop.permute.xlu0 %489 }
  0xee   : > { %v534_v1 = vmul.f32 %v1353_v47, %v490_v58  ;;  %v619_v2 = vpop.permute.xlu1 %618  ;;  %v744_v58 = vmax.f32 %v720_v45, 0.0 }
  0xef   : > { %v1445_v5 = vpop.permute.xlu2 %501  ;;  %v762_v7 = vpack.c.bf16 %v739_v32, %v738_v57  ;;  %v675_v15 = vmul.f32 %v1416_v19, %v619_v2  ;;  %v704_v2 = vadd.f32 %v680_v44, %v559_v56  ;;  %v532_v44 = vmul.f32 %v1353_v47, %v1435_v50 }
  0xf0   : > { %v1449_v9 = vadd.f32 %v534_v1, %v413_v63  ;;  %v415_v1 = vmul.f32 %v1350_v46, %v1366_v54  ;;  %v520_v54 = vmul.f32 %v1353_v47, %v1399_v6  ;;  %v405_v50 = vmul.f32 %v1350_v46, %v1328_v41 }
  0xf1   : > { %1041 = vmatmul.msk.bf16.vlgmr.msra.gmra.mxu0 %vm810_vm0, %v762_v7  ;;  %v699_v18 = vadd.f32 %v675_v15, %v554_v17  ;;  %v732_v21 = vadd.f32 %v1430_v27, %v704_v2 }
  0xf2   : > { %v560_v8 = vadd.f32 %v536_v0, %v415_v1  ;;  %v410_v0 = vmul.f32 %v1350_v46, %v1305_v33  ;;  %v525_v33 = vmul.f32 %v1353_v47, %v1432_v22  ;;  %v416_v22 = vmul.f32 %v1350_v46, %v1324_v39 }
  0xf3   : > { %v727_v51 = vadd.f32 %v1430_v27, %v699_v18  ;;  %v756_v25 = vmax.f32 %v732_v21, 0.0 }
  0xf5   : > { %v751_v3 = vmax.f32 %v727_v51, 0.0  ;;  %v411_v51 = vmul.f32 %v1350_v46, %v1357_v49 }
  0xf6   : > { %v595_v16 = vpop.permute.xlu1 %594 }
  0xf7   : > { %v669_v28 = vmul.f32 %v1416_v19, %v595_v16  ;;  %v615_v43 = vpop.permute.xlu0 %614 }
  0xf8   : > { %v674_v35 = vmul.f32 %v1416_v19, %v615_v43  ;;  %v575_v14 = vpop.permute.xlu2 %574 }
  0xf9   : > { %v693_v37 = vadd.f32 %v669_v28, %v548_v26  ;;  %v664_v38 = vmul.f32 %v1416_v19, %v575_v14  ;;  %v544_v26 = vadd.f32 %v520_v54, %v399_v62  ;;  %v537_v54 = vmul.f32 %v1353_v47, %v1445_v5 }
  0xfa   : > { %v698_v52 = vadd.f32 %v674_v35, %v553_v20  ;;  %v417_v5 = vmul.f32 %v1350_v46, %v1379_v61  ;;  %v407_v61 = vmul.f32 %v1350_v46, %v1300_v30 }
  0xfb   : > { %v721_v32 = vadd.f32 %v1430_v27, %v693_v37  ;;  %v688_v11 = vadd.f32 %v664_v38, %v1363_v53 }
  0xfc   : > { %v726_v57 = vadd.f32 %v1430_v27, %v698_v52 }
  0xfd   : > { %v745_v63 = vmax.f32 %v721_v32, 0.0  ;;  %v716_v35 = vadd.f32 %v1430_v27, %v688_v11  ;;  %v556_v32 = vadd.f32 %v532_v44, %v411_v51 }
  0xfe   : > { %v750_v55 = vmax.f32 %v726_v57, 0.0 }
  0xff   : > { %v643_v7 = vpop.permute.xlu0 %642  ;;  %v765_v24 = vpack.c.bf16 %v745_v63, %v744_v58  ;;  %v740_v45 = vmax.f32 %v716_v35, 0.0 }
 0x100   : > { %v681_v10 = vmul.f32 %v1416_v19, %v643_v7  ;;  %v478_v12 = vpop.permute.xlu1 %477  ;;  %v627_v36 = vpop.permute.xlu2 %626  ;;  %v768_v15 = vpack.c.bf16 %v751_v3, %v750_v55 }
 0x101   : > { %1044 = vmatmul.msk.bf16.vlgmr.msra.gmra.mxu1 %vm810_vm0, %v765_v24  ;;  %v677_v52 = vmul.f32 %v1416_v19, %v627_v36  ;;  %v531_v56 = vmul.f32 %v1353_v47, %v478_v12  ;;  %v404_v12 = vmul.f32 %v1350_v46, %v1297_v29 }
 0x102   : > { %v705_v17 = vadd.f32 %v681_v10, %v560_v8  ;;  %1047 = vmatmul.msk.bf16.vlgmr.msra.gmra.mxu2 %vm810_vm0, %v768_v15 }
 0x103   : > { %v701_v57 = vadd.f32 %v677_v52, %v556_v32  ;;  %v555_v3 = vadd.f32 %v531_v56, %v410_v0 }
 0x104   : > { %v733_v4 = vadd.f32 %v1430_v27, %v705_v17  ;;  %v549_v17 = vadd.f32 %v525_v33, %v404_v12 }
 0x105   : > { %v729_v55 = vadd.f32 %v1430_v27, %v701_v57 }
 0x106   : > { %v757_v18 = vmax.f32 %v733_v4, 0.0 }
 0x107   : > { %v579_v16 = vpop.permute.xlu0 %578  ;;  %v753_v36 = vmax.f32 %v729_v55, 0.0 }
 0x108   : > { %v665_v28 = vmul.f32 %v1416_v19, %v579_v16  ;;  %v458_v43 = vpop.permute.xlu1 %457  ;;  %v603_v31 = vpop.permute.xlu2 %602  ;;  %v771_v20 = vpack.c.bf16 %v757_v18, %v756_v25  ;;  %v561_v16 = vadd.f32 %v537_v54, %v416_v22 }
 0x109   : > { %v526_v58 = vmul.f32 %v1353_v47, %v458_v43  ;;  %v671_v24 = vmul.f32 %v1416_v19, %v603_v31 }
 0x10a   : > { %v689_v14 = vadd.f32 %v665_v28, %v544_v26  ;;  %1050 = vmatmul.msk.bf16.vlgmr.msra.gmra.mxu3 %vm810_vm0, %v771_v20 }
 0x10b   : > { %v550_v7 = vadd.f32 %v526_v58, %v405_v50 }
 0x10c   : > { %v717_v6 = vadd.f32 %v1430_v27, %v689_v14 }
 0x10d   : > { %v695_v15 = vadd.f32 %v671_v24, %v550_v7 }
 0x10e   : > { %v741_v34 = vmax.f32 %v717_v6, 0.0 }
 0x10f   : > { %v647_v63 = vpop.permute.xlu0 %646  ;;  %v723_v11 = vadd.f32 %v1430_v27, %v695_v15 }
 0x110   : > { %v506_v37 = vpop.permute.xlu1 %505  ;;  %v763_v23 = vpack.c.bf16 %v741_v34, %v740_v45  ;;  %v682_v29 = vmul.f32 %v1416_v19, %v647_v63 }
 0x111   : > { %v1491_v53 = vpop.permute.xlu2 %485  ;;  %v538_v26 = vmul.f32 %v1353_v47, %v506_v37  ;;  %v747_v43 = vmax.f32 %v723_v11, 0.0 }
 0x112   : > { %1042 = vmatmul.msk.bf16.gmra.mxu0 %vm810_vm0, %v763_v23  ;;  %v706_v31 = vadd.f32 %v682_v29, %v561_v16  ;;  %v533_v15 = vmul.f32 %v1353_v47, %v1491_v53 }
 0x113   : > { %v562_v39 = vadd.f32 %v538_v26, %v417_v5  ;;  %v419_v26 = vmul.f32 %v1350_v46, %v1334_v42 }
 0x114   : > { %v734_v34 = vadd.f32 %v1430_v27, %v706_v31 }
 0x116   : > { %v758_v32 = vmax.f32 %v734_v34, 0.0 }
 0x117   : > { %v583_v4 = vpop.permute.xlu0 %582 }
 0x118   : > { %v666_v12 = vmul.f32 %v1416_v19, %v583_v4 }
 0x119   : > { %v623_v1 = vpop.permute.xlu1 %622  ;;  %v466_v2 = vpop.permute.xlu2 %465 }
 0x11a   : > { %v676_v49 = vmul.f32 %v1416_v19, %v623_v1  ;;  %v528_v37 = vmul.f32 %v1353_v47, %v466_v2  ;;  %v406_v1 = vmul.f32 %v1350_v46, %v1326_v40  ;;  %v690_v40 = vadd.f32 %v666_v12, %v1373_v59 }
 0x11c   : > { %v700_v8 = vadd.f32 %v676_v49, %v555_v3  ;;  %v552_v0 = vadd.f32 %v528_v37, %v407_v61 }
 0x11e   : > { %v728_v10 = vadd.f32 %v1430_v27, %v700_v8 }
 0x11f   : > { %v611_v23 = vpop.permute.xlu0 %610 }
 0x120   : > { %v752_v41 = vmax.f32 %v728_v10, 0.0  ;;  %v673_v52 = vmul.f32 %v1416_v19, %v611_v23 }
 0x121   : > { %v599_v21 = vpop.permute.xlu1 %598  ;;  %v1513_v38 = vpop.permute.xlu2 %513 }
 0x122   : > { %v670_v62 = vmul.f32 %v1416_v19, %v599_v21  ;;  %v769_v25 = vpack.c.bf16 %v753_v36, %v752_v41  ;;  %v697_v50 = vadd.f32 %v673_v52, %v552_v0  ;;  %v412_v21 = vmul.f32 %v1350_v46, %v1355_v48 }
 0x123   : > { %v540_v53 = vmul.f32 %v1353_v47, %v1513_v38  ;;  %v418_v38 = vmul.f32 %v1350_v46, %v1377_v60 }
 0x124   : > { %v694_v18 = vadd.f32 %v670_v62, %v549_v17  ;;  %1048 = vmatmul.msk.bf16.gmra.mxu2 %vm810_vm0, %v769_v25  ;;  %v725_v30 = vadd.f32 %v1430_v27, %v697_v50  ;;  %v718_v17 = vadd.f32 %v1430_v27, %v690_v40  ;;  %v557_v4 = vadd.f32 %v533_v15, %v412_v21 }
 0x126   : > { %v722_v28 = vadd.f32 %v1430_v27, %v694_v18  ;;  %v749_v8 = vmax.f32 %v725_v30, 0.0  ;;  %v742_v22 = vmax.f32 %v718_v17, 0.0 }
 0x128   : > { %v746_v20 = vmax.f32 %v722_v28, 0.0 }
 0x129   : > { %v651_v35 = vpop.permute.xlu1 %650 }
 0x12a   : > { %v683_v14 = vmul.f32 %v1416_v19, %v651_v35  ;;  %v631_v6 = vpop.permute.xlu2 %630  ;;  %v766_v45 = vpack.c.bf16 %v747_v43, %v746_v20  ;;  %v564_v43 = vadd.f32 %v540_v53, %v419_v26 }
 0x12b   : > { %v678_v54 = vmul.f32 %v1416_v19, %v631_v6 }
 0x12c   : > { %v707_v44 = vadd.f32 %v683_v14, %v562_v39  ;;  %1045 = vmatmul.msk.bf16.gmra.mxu1 %vm810_vm0, %v766_v45 }
 0x12d   : > { %v702_v59 = vadd.f32 %v678_v54, %v557_v4 }
 0x12e   : > { %v735_v51 = vadd.f32 %v1430_v27, %v707_v44 }
 0x12f   : > { %v730_v28 = vadd.f32 %v1430_v27, %v702_v59 }
 0x130   : > { %v759_v56 = vmax.f32 %v735_v51, 0.0 }
 0x131   : > { %v754_v35 = vmax.f32 %v730_v28, 0.0 }
 0x132   : > { %v462_v57 = vpop.permute.xlu1 %461  ;;  %v607_v58 = vpop.permute.xlu2 %606  ;;  %v772_v63 = vpack.c.bf16 %v759_v56, %v758_v32 }
 0x133   : > { %v527_v3 = vmul.f32 %v1353_v47, %v462_v57  ;;  %v672_v2 = vmul.f32 %v1416_v19, %v607_v58 }
 0x134   : > { %1051 = vmatmul.msk.bf16.gmra.mxu3 %vm810_vm0, %v772_v63 }
 0x135   : > { %v551_v49 = vadd.f32 %v527_v3, %v406_v1 }
 0x137   : > { %v696_v55 = vadd.f32 %v672_v2, %v551_v49 }
 0x139   : > { %v724_v7 = vadd.f32 %v1430_v27, %v696_v55  ;;  %v1118_v55 = vld [vmem:[%s1592_s4] ss:$0 sm:$0xff] }
 0x13a   : > { %v510_v24 = vpop.permute.xlu1 %509  ;;  %v659_v29 = vpop.permute.xlu2 %658 }
 0x13b   : > { %v748_v33 = vmax.f32 %v724_v7, 0.0  ;;  %v539_v31 = vmul.f32 %v1353_v47, %v510_v24  ;;  %v1146_v7 = vmov -inf  }
 0x13c   : > { %949 = vst [vmem:[#allocation2] sm:$0x1] %v1146_v7 }
 0x13d   : > { %v767_v10 = vpack.c.bf16 %v749_v8, %v748_v33  ;;  %v563_v6 = vadd.f32 %v539_v31, %v418_v38 }
 0x13f   : > { %1046 = vmatmul.msk.bf16.gmra.mxu1 %vm810_vm0, %v767_v10 }
 0x143   : > { %v587_v36 = vpop.permute.xlu1 %586 }
 0x144   : > { %v667_v41 = vmul.f32 %v1416_v19, %v587_v36 }
 0x146   : > { %v691_v62 = vadd.f32 %v667_v41, %v1408_v13  ;;  %v685_v13 = vmul.f32 %v1416_v19, %v659_v29 }
 0x148   : > { %v719_v25 = vadd.f32 %v1430_v27, %v691_v62  ;;  %v709_v39 = vadd.f32 %v685_v13, %v564_v43 }
 0x14a   : > { %v743_v11 = vmax.f32 %v719_v25, 0.0 }
 0x14b   : > { %v635_v18 = vpop.permute.xlu1 %634 }
 0x14c   : > { %v679_v16 = vmul.f32 %v1416_v19, %v635_v18  ;;  %v764_v48 = vpack.c.bf16 %v743_v11, %v742_v22 }
 0x14e   : > { %v703_v5 = vadd.f32 %v679_v16, %v1449_v9  ;;  %1043 = vmatmul.msk.bf16.gmra.mxu0 %vm810_vm0, %v764_v48  ;;  %v737_v9 = vadd.f32 %v1430_v27, %v709_v39 }
 0x150   : > { %v731_v20 = vadd.f32 %v1430_v27, %v703_v5  ;;  %v761_v44 = vmax.f32 %v737_v9, 0.0 }
 0x152   : > { %v755_v14 = vmax.f32 %v731_v20, 0.0 }
 0x153   : > { %v655_v42 = vpop.permute.xlu1 %654 }
 0x154   : > { %v684_v45 = vmul.f32 %v1416_v19, %v655_v42  ;;  %v770_v34 = vpack.c.bf16 %v755_v14, %v754_v35 }
 0x156   : > { %v708_v23 = vadd.f32 %v684_v45, %v563_v6  ;;  %1049 = vmatmul.msk.bf16.gmra.mxu2 %vm810_vm0, %v770_v34 }
 0x158   : > { %v736_v47 = vadd.f32 %v1430_v27, %v708_v23 }
 0x15a   : > { %v760_v37 = vmax.f32 %v736_v47, 0.0 }
 0x15c   : > { %v773_v51 = vpack.c.bf16 %v761_v44, %v760_v37 }
 0x15e   : > { %1052 = vmatmul.msk.bf16.gmra.mxu3 %vm810_vm0, %v773_v51 }
 0x16e   : > { %v856_v46 = vpop.f32.mrf.mxu0 }
 0x16f   : > { %v857_v36 = vadd.f32 %v1118_v55, %v856_v46 }
 0x176   : > { %v858_v61 = vpop.f32.mrf.mxu0 }
 0x177   : > { %v859_v10 = vadd.f32 %v1118_v55, %v858_v61 }
 0x17e   : > { %v871_v60 = vpop.f32.mrf.mxu1 }
 0x17f   : > { %v872_v17 = vadd.f32 %v1118_v55, %v871_v60 }
 0x185   : > { %v886_v52 = vpop.f32.mrf.mxu2 }
 0x186   : > { %v873_v32 = vpop.f32.mrf.mxu1  ;;  %v887_v43 = vadd.f32 %v1118_v55, %v886_v52 }
 0x187   : > { %v874_v54 = vadd.f32 %v1118_v55, %v873_v32 }
 0x18d   : > { %v901_v19 = vpop.f32.mrf.mxu3  ;;  %v888_v0 = vpop.f32.mrf.mxu2 }
 0x18e   : > { %v889_v53 = vadd.f32 %v1118_v55, %v888_v0  ;;  %v902_v45 = vadd.f32 %v1118_v55, %v901_v19 }
 0x18f   : > { %v861_v56 = vpop.f32.mrf.mxu0 }
 0x190   : > { %v862_v15 = vadd.f32 %v1118_v55, %v861_v56 }
 0x192   : > { %v918_v59 = vmax.f32 %v862_v15, %v872_v17 }
 0x195   : > { %v903_v63 = vpop.f32.mrf.mxu3 }
 0x196   : > { %v904_v34 = vadd.f32 %v1118_v55, %v903_v63 }
 0x197   : > { %v863_v58 = vpop.f32.mrf.mxu0 }
 0x198   : > { %v864_v41 = vadd.f32 %v1118_v55, %v863_v58 }
 0x19a   : > { %v919_v11 = vmax.f32 %v864_v41, %v874_v54 }
 0x1a7   : > { %v891_v1 = vpop.f32.mrf.mxu2 }
 0x1a8   : > { %v892_v31 = vadd.f32 %v1118_v55, %v891_v1 }
 0x1a9   : > { %v876_v57 = vpop.f32.mrf.mxu1 }
 0x1aa   : > { %v877_v29 = vadd.f32 %v1118_v55, %v876_v57 }
 0x1af   : > { %v893_v2 = vpop.f32.mrf.mxu2 }
 0x1b0   : > { %v894_v20 = vadd.f32 %v1118_v55, %v893_v2  ;;  %v950_v2 = vld [vmem:[#allocation2] sm:$0x1] }
 0x1b1   : > { %v878_v50 = vpop.f32.mrf.mxu1 }
 0x1b2   : > { %v879_v62 = vadd.f32 %v1118_v55, %v878_v50 }
 0x1b7   : > { %v906_v27 = vpop.f32.mrf.mxu3 }
 0x1b8   : > { %v907_v44 = vadd.f32 %v1118_v55, %v906_v27 }
 0x1bc   : > { %v881_v49 = vpop.f32.mrf.mxu1 }
 0x1bd   : > { %v882_v4 = vadd.f32 %v1118_v55, %v881_v49 }
 0x1bf   : > { %v908_v8 = vpop.f32.mrf.mxu3  ;;  %v922_v26 = vmax.f32 %v918_v59, %v882_v4 }
 0x1c0   : > { %v909_v9 = vadd.f32 %v1118_v55, %v908_v8 }
 0x1c1   : > { %v926_v39 = vmax.f32 %v922_v26, %v892_v31 }
 0x1c3   : > { %v930_v46 = vmax.f32 %v926_v39, %v902_v45 }
 0x1c4   : > { %v883_v40 = vpop.f32.mrf.mxu1 }
 0x1c5   : > { %v884_v25 = vadd.f32 %v1118_v55, %v883_v40 }
 0x1c7   : > { %v923_v28 = vmax.f32 %v919_v11, %v884_v25 }
 0x1c9   : > { %v927_v14 = vmax.f32 %v923_v28, %v894_v20 }
 0x1cb   : > { %v866_v3 = vpop.f32.mrf.mxu0  ;;  %v931_v61 = vmax.f32 %v927_v14, %v904_v34 }
 0x1cc   : > { %v867_v12 = vadd.f32 %v1118_v55, %v866_v3 }
 0x1ce   : > { %v916_v22 = vmax.f32 %v857_v36, %v867_v12 }
 0x1d0   : > { %v920_v13 = vmax.f32 %v916_v22, %v877_v29 }
 0x1d2   : > { %v924_v42 = vmax.f32 %v920_v13, %v887_v43 }
 0x1d3   : > { %v868_v30 = vpop.f32.mrf.mxu0 }
 0x1d4   : > { %v869_v24 = vadd.f32 %v1118_v55, %v868_v30 }
 0x1d6   : > { %v917_v21 = vmax.f32 %v859_v10, %v869_v24 }
 0x1d8   : > { %v921_v18 = vmax.f32 %v917_v21, %v879_v62 }
 0x1d9   : > { %v896_v33 = vpop.f32.mrf.mxu2 }
 0x1da   : > { %v897_v38 = vadd.f32 %v1118_v55, %v896_v33  ;;  %v925_v35 = vmax.f32 %v921_v18, %v889_v53 }
 0x1dc   : > { %v928_v23 = vmax.f32 %v924_v42, %v897_v38 }
 0x1de   : > { %v932_v52 = vmax.f32 %v928_v23, %v907_v44 }
 0x1e1   : > { %v898_v16 = vpop.f32.mrf.mxu2  ;;  %v911_v48 = vpop.f32.mrf.mxu3 }
 0x1e2   : > { %v899_v5 = vadd.f32 %v1118_v55, %v898_v16  ;;  %v912_v47 = vadd.f32 %v1118_v55, %v911_v48 }
 0x1e4   : > { %v929_v6 = vmax.f32 %v925_v35, %v899_v5  ;;  %v934_v32 = vmax.f32 %v930_v46, %v912_v47 }
 0x1e6   : > { %v933_v51 = vmax.f32 %v929_v6, %v909_v9 }
 0x1e8   : > { %v936_v0 = vmax.f32 %v932_v52, %v933_v51 }
 0x1e9   : > { %v913_v37 = vpop.f32.mrf.mxu3 }
 0x1ea   : > { %v914_v60 = vadd.f32 %v1118_v55, %v913_v37 }
 0x1ec   : > { %v935_v56 = vmax.f32 %v931_v61, %v914_v60 }
 0x1ee   : > { %v937_v57 = vmax.f32 %v934_v32, %v935_v56 }
 0x1f0   : > { %v938_v58 = vmax.f32 %v936_v0, %v937_v57 }
 0x1f2   : > { %v939_v1 = vrot.slane %v938_v58, 4 }
 0x1f4   : > { %v940_v50 = vmax.f32 %v938_v58, %v939_v1 }
 0x1f6   : > { %v941_v19 = vrot.slane %v940_v50, 2 }
 0x1f8   : > { %v942_v63 = vmax.f32 %v940_v50, %v941_v19 }
 0x1fa   : > { %v943_v3 = vrot.slane %v942_v63, 1 }
 0x1fc   : > { %v944_v49 = vmax.f32 %v942_v63, %v943_v3 }
 0x1fe   : > { %v951_v27 = vmax.f32 %v950_v2, %v944_v49 }
 0x200   : > { %952 = vst [vmem:[#allocation2] sm:$0x1] %v951_v27 }
 0x207   : > { %v956_v30 = vld [vmem:[#allocation2] sm:$0x1] }
 0x208   : > { %957 = vst [vmem:[%s248_s17] sm:$0x1] %v956_v30 }
 0x209 PF: > { %s15_s20 = sadd.s32 1, %s1141_s20   ;;  %s1594_s18 = smov %s1137_s19 }
 0x20a   : > { %p12_p5 = scmp.ge.s32.totalorder %s15_s20, 4   ;;  %s1595_s19 = smov %s1597_s21 }
 0x20c   :  { %14 = sbr.rel (!%p12_p5) target bundleno = 2 (0x2), region = 78 }

// kernel: model_forward.8
= control target key start
LH: loop header
LB: loop body
LE: loop exit
PB: predicated region body
PF: predicated region fallthrough
CT: control target
= control target key end

     0   :  { %s1017_s24 = smov 0   ;;  %s1019_s25 = smov 0   ;;  %s1231_s0 = inlined_call_operand.vmem [shape: f32[2,64,3], index: 0, kind: input, shape index: {}]   ;;  %s1232_s1 = inlined_call_operand.vmem [shape: f32[2,1,128], index: 1, kind: input, shape index: {}]   ;;  %s1233_s2 = inlined_call_operand.vmem [shape: f32[3,128], index: 2, kind: input, shape index: {}]   ;;  %s1234_s3 = inlined_call_operand.vmem [shape: bf16[128,64], index: 3, kind: input, shape index: {}]   ;;  %s1235_s4 = inlined_call_operand.vmem [shape: f32[1,64], index: 4, kind: input, shape index: {}]   ;;  %s1236_s5 = inlined_call_operand.vmem [shape: bf16[64,3], index: 5, kind: input, shape index: {}]   ;;  %s1237_s6 = inlined_call_operand.vmem [shape: f32[1,3], index: 6, kind: input, shape index: {}]   ;;  %s1238_s7 = inlined_call_operand.vmem [shape: f32[2,64,3], index: 7, kind: output, shape index: {}]  }
   0x1   :  { %s1021_s26 = smov 0  }
   0x2 LB: > { %s29_s27 = sadd.s32 1, %s968_s25  ;;  %p817_p0 = scmp.ge.s32.totalorder %s972_s26, 1  ;;  %s972_s26 = sphi %s1021_s26, %s17_s26   ;;  %s968_s25 = sphi %s1019_s25, %s1240_s25   ;;  %s964_s24 = sphi %s1017_s24, %s1239_s24  }
   0x3   : > { %p31_p1 = scmp.ge.s32.totalorder %s29_s27, 2  ;;  %p266_p2 = scmp.lt.s32.totalorder %s972_s26, 3 }
   0x5   : > { %s1242_s27 = smov (%p31_p1, %s29_s27), 0  ;;  %p267_p3 = pnand %p817_p0, %p266_p2 }
   0x6   : > { %p310_p4 = scmp.lt.s32.totalorder (!%p267_p3), %s964_s24, 1 }
   0x7   : > { %270 = sbr.rel (%p267_p3) target bundleno = 503 (0x1f7), region = 48 }
   0xc   : > { %v974_v0 = vmov 1   ;;  %v975_v1 = vmov 0   ;;  %s1244_s24 = smov (!%p310_p4, %s964_s24), 1  ;;  %v976_v2 = vmov 2   ;;  %v885_v9 = vld [vmem:[%s1234_s3 + $0x38] sm:$0xff]  ;;  %v884_v10 = vld [vmem:[%s1234_s3 + $0x30] sm:$0xff] }
   0xd   : > { %930 = vset.pattern.permute.xlu1 %v974_v0  ;;  %929 = vset.pattern.permute.xlu0 %v975_v1  ;;  %s876_s28 = sshll.u32 %s1244_s24, 6  ;;  %s321_s8 = scalar_lea.vmem %s1232_s1, %s1244_s24  ;;  %v883_v13 = vld [vmem:[%s1234_s3 + $0x28] sm:$0xff]  ;;  %v882_v14 = vld [vmem:[%s1234_s3 + $0x20] sm:$0xff]  ;;  %v881_v15 = vld [vmem:[%s1234_s3 + $0x18] sm:$0xff]  ;;  %vm658_vm0 = vcmask 523264   ;;  %vm708_vm1 = vcmask 23552  }
   0xe   : > { %931 = vset.pattern.permute.xlu2 %v976_v2  ;;  %s1047_s11 = scalar_lea.vmem %s1231_s0, %s876_s28  ;;  %581 = vmatpush.bf16.msra.mxu0 %v885_v9  ;;  %v880_v16 = vld [vmem:[%s1234_s3 + $0x10] sm:$0xff]  ;;  %v879_v17 = vld [vmem:[%s1234_s3 + $0x8] sm:$0xff]  ;;  %v878_v18 = vld [vmem:[%s1234_s3] sm:$0xff] }
   0xf   : > { %v1050_v3 = vld [vmem:[%s1047_s11] sm:$0xff]  ;;  %v1056_v4 = vld [vmem:[%s1047_s11 + $0x8] sm:$0xff]  ;;  %v1062_v5 = vld [vmem:[%s1047_s11 + $0x10] sm:$0xff]  ;;  %890 = vmatpush.bf16.msra.mxu2 %v885_v9 }
  0x10   : > { %392 = vperm.xlu1 %930, %v1050_v3   ;;  %344 = vperm.xlu0 %929, %v1050_v3   ;;  %v1065_v6 = vld [vmem:[%s1047_s11 + $0x18] sm:$0xff]  ;;  %v1074_v7 = vld [vmem:[%s1047_s11 + $0x20] sm:$0xff]  ;;  %v1079_v8 = vld [vmem:[%s1047_s11 + $0x28] sm:$0xff] }
  0x11   : > { %441 = vperm.xlu2 %931, %v1050_v3   ;;  %v1092_v11 = vld [vmem:[%s1047_s11 + $0x30] sm:$0xff]  ;;  %v1097_v12 = vld [vmem:[%s1047_s11 + $0x38] sm:$0xff]  ;;  %v341_v20 = vld [vmem:[%s1233_s2] sm:$0x7]  ;;  %s1196_s11 = scalar_lea.vmem %s1238_s7, %s876_s28 }
  0x12   : > { %582 = vmatpush.bf16.msra.mxu0 %v884_v10  ;;  %v1124_v21 = vperm.slane %v341_v20, 1  ;;  %v1126_v22 = vperm.slane %v341_v20, 0  ;;  %v1128_v26 = vperm.slane %v341_v20, 2  ;;  %v1138_v34 = vld [vmem:[%s321_s8] ss:$0 sm:$0xff] }
  0x13   : > { %891 = vmatpush.bf16.msra.mxu2 %v884_v10 }
  0x16   : > { %583 = vmatpush.bf16.msra.mxu0 %v883_v13 }
  0x17   : > { %892 = vmatpush.bf16.msra.mxu2 %v883_v13 }
  0x18   : > { %396 = vperm.xlu1 %930, %v1056_v4   ;;  %349 = vperm.xlu0 %929, %v1056_v4  }
  0x19   : > { %445 = vperm.xlu2 %931, %v1056_v4  }
  0x1a   : > { %584 = vmatpush.bf16.msra.mxu0 %v882_v14 }
  0x1b   : > { %893 = vmatpush.bf16.msra.mxu2 %v882_v14 }
  0x1e   : > { %585 = vmatpush.bf16.msra.mxu0 %v881_v15 }
  0x1f   : > { %894 = vmatpush.bf16.msra.mxu2 %v881_v15 }
  0x20   : > { %932 = vset.pattern.permute.xlu1 %v975_v1  ;;  %354 = vperm.xlu0 %929, %v1062_v5  }
  0x21   : > { %359 = vperm.xlu1 %932, %v1065_v6   ;;  %933 = vset.pattern.permute.xlu2 %v974_v0 }
  0x22   : > { %400 = vperm.xlu2 %933, %v1062_v5   ;;  %586 = vmatpush.bf16.msra.mxu0 %v880_v16 }
  0x23   : > { %895 = vmatpush.bf16.msra.mxu2 %v880_v16 }
  0x26   : > { %587 = vmatpush.bf16.msra.mxu0 %v879_v17 }
  0x27   : > { %896 = vmatpush.bf16.msra.mxu2 %v879_v17 }
  0x28   : > { %934 = vset.pattern.permute.xlu0 %v974_v0 }
  0x29   : > { %935 = vset.pattern.permute.xlu1 %v976_v2  ;;  %404 = vperm.xlu0 %934, %v1065_v6  }
  0x2a   : > { %449 = vperm.xlu1 %935, %v1062_v5   ;;  %936 = vset.pattern.permute.xlu2 %v976_v2 }
  0x2b   : > { %453 = vperm.xlu2 %936, %v1065_v6   ;;  %588 = vmatpush.bf16.msra.mxu0 %v878_v18 }
  0x2c   : > { %897 = vmatpush.bf16.msra.mxu2 %v878_v18 }
  0x31   : > { %408 = vperm.xlu0 %934, %v1074_v7  }
  0x32   : > { %937 = vset.pattern.permute.xlu1 %v975_v1 }
  0x33   : > { %364 = vperm.xlu1 %937, %v1074_v7   ;;  %938 = vset.pattern.permute.xlu2 %v975_v1 }
  0x34   : > { %369 = vperm.xlu2 %938, %v1079_v8  }
  0x39   : > { %941 = vset.pattern.permute.xlu0 %v976_v2 }
  0x3a   : > { %461 = vperm.xlu0 %941, %v1079_v8  }
  0x3b   : > { %939 = vset.pattern.permute.xlu1 %v974_v0 }
  0x3c   : > { %412 = vperm.xlu1 %939, %v1079_v8   ;;  %940 = vset.pattern.permute.xlu2 %v976_v2 }
  0x3d   : > { %457 = vperm.xlu2 %940, %v1074_v7  }
  0x42   : > { %465 = vperm.xlu0 %941, %v1092_v11  }
  0x44   : > { %942 = vset.pattern.permute.xlu1 %v975_v1 }
  0x45   : > { %374 = vperm.xlu1 %942, %v1092_v11   ;;  %943 = vset.pattern.permute.xlu2 %v975_v1 }
  0x46   : > { %379 = vperm.xlu2 %943, %v1097_v12  }
  0x4d   : > { %944 = vset.pattern.permute.xlu1 %v974_v0 }
  0x4e   : > { %416 = vperm.xlu1 %944, %v1092_v11   ;;  %945 = vset.pattern.permute.xlu2 %v974_v0 }
  0x4f   : > { %420 = vperm.xlu2 %945, %v1097_v12  }
  0x56   : > { %946 = vset.pattern.permute.xlu1 %v976_v2 }
  0x57   : > { %469 = vperm.xlu1 %946, %v1097_v12  }
  0x6b   : > { %v442_v19 = vpop.permute.xlu2 %441 }
  0x6c   : > { %v473_v29 = vmul.f32 %v1128_v26, %v442_v19 }
  0x73   : > { %v446_v23 = vpop.permute.xlu2 %445 }
  0x74   : > { %v474_v38 = vmul.f32 %v1128_v26, %v446_v23 }
  0x7c   : > { %v401_v31 = vpop.permute.xlu2 %400 }
  0x7d   : > { %v426_v49 = vmul.f32 %v1124_v21, %v401_v31 }
  0x82   : > { %v393_v24 = vpop.permute.xlu1 %392  ;;  %v345_v25 = vpop.permute.xlu0 %344 }
  0x83   : > { %v424_v27 = vmul.f32 %v1124_v21, %v393_v24  ;;  %v383_v28 = vmul.f32 %v1126_v22, %v345_v25 }
  0x85   : > { %v432_v30 = vadd.f32 %v424_v27, %v383_v28  ;;  %v454_v47 = vpop.permute.xlu2 %453 }
  0x86   : > { %v476_v53 = vmul.f32 %v1128_v26, %v454_v47 }
  0x87   : > { %v481_v35 = vadd.f32 %v473_v29, %v432_v30 }
  0x89   : > { %v493_v41 = vadd.f32 %v1138_v34, %v481_v35 }
  0x8a   : > { %v397_v32 = vpop.permute.xlu1 %396  ;;  %v350_v33 = vpop.permute.xlu0 %349 }
  0x8b   : > { %v425_v36 = vmul.f32 %v1124_v21, %v397_v32  ;;  %v384_v37 = vmul.f32 %v1126_v22, %v350_v33  ;;  %v501_v45 = vmax.f32 %v493_v41, 0.0 }
  0x8d   : > { %v433_v39 = vadd.f32 %v425_v36, %v384_v37 }
  0x8e   : > { %v370_v59 = vpop.permute.xlu2 %369 }
  0x8f   : > { %v482_v40 = vadd.f32 %v474_v38, %v433_v39  ;;  %v388_v20 = vmul.f32 %v1126_v22, %v370_v59 }
  0x91   : > { %v494_v42 = vadd.f32 %v1138_v34, %v482_v40 }
  0x92   : > { %v355_v43 = vpop.permute.xlu0 %354 }
  0x93   : > { %v360_v44 = vpop.permute.xlu1 %359  ;;  %v502_v46 = vmax.f32 %v494_v42, 0.0  ;;  %v385_v50 = vmul.f32 %v1126_v22, %v355_v43 }
  0x94   : > { %v386_v52 = vmul.f32 %v1126_v22, %v360_v44 }
  0x95   : > { %v509_v48 = vpack.c.bf16 %v502_v46, %v501_v45  ;;  %v434_v56 = vadd.f32 %v426_v49, %v385_v50 }
  0x97   : > { %589 = vmatmul.bf16.vlgmr.msra.gmra.mxu0 %v509_v48  ;;  %v458_v15 = vpop.permute.xlu2 %457 }
  0x98   : > { %v477_v17 = vmul.f32 %v1128_v26, %v458_v15 }
  0x9b   : > { %v405_v51 = vpop.permute.xlu0 %404 }
  0x9c   : > { %v427_v54 = vmul.f32 %v1124_v21, %v405_v51  ;;  %v450_v55 = vpop.permute.xlu1 %449 }
  0x9d   : > { %v475_v57 = vmul.f32 %v1128_v26, %v450_v55 }
  0x9e   : > { %v435_v58 = vadd.f32 %v427_v54, %v386_v52 }
  0x9f   : > { %v483_v60 = vadd.f32 %v475_v57, %v434_v56  ;;  %v948_v57 = vld [vmem:[%s1235_s4] ss:$0 sm:$0xff] }
  0xa0   : > { %v484_v61 = vadd.f32 %v476_v53, %v435_v58  ;;  %v380_v35 = vpop.permute.xlu2 %379 }
  0xa1   : > { %v495_v62 = vadd.f32 %v1138_v34, %v483_v60  ;;  %v390_v43 = vmul.f32 %v1126_v22, %v380_v35 }
  0xa2   : > { %v496_v63 = vadd.f32 %v1138_v34, %v484_v61 }
  0xa3   : > { %v503_v0 = vmax.f32 %v495_v62, 0.0  ;;  %v409_v1 = vpop.permute.xlu0 %408 }
  0xa4   : > { %v504_v2 = vmax.f32 %v496_v63, 0.0  ;;  %v428_v14 = vmul.f32 %v1124_v21, %v409_v1 }
  0xa5   : > { %v365_v9 = vpop.permute.xlu1 %364 }
  0xa6   : > { %v510_v10 = vpack.c.bf16 %v504_v2, %v503_v0  ;;  %v387_v13 = vmul.f32 %v1126_v22, %v365_v9 }
  0xa8   : > { %594 = vmatmul.bf16.gmra.mxu0 %v510_v10  ;;  %v436_v16 = vadd.f32 %v428_v14, %v387_v13 }
  0xa9   : > { %v421_v41 = vpop.permute.xlu2 %420 }
  0xaa   : > { %v485_v23 = vadd.f32 %v477_v17, %v436_v16  ;;  %v431_v45 = vmul.f32 %v1124_v21, %v421_v41 }
  0xac   : > { %v462_v18 = vpop.permute.xlu0 %461  ;;  %v497_v29 = vadd.f32 %v1138_v34, %v485_v23  ;;  %v439_v48 = vadd.f32 %v431_v45, %v390_v43 }
  0xad   : > { %v478_v25 = vmul.f32 %v1128_v26, %v462_v18 }
  0xae   : > { %v413_v19 = vpop.permute.xlu1 %412  ;;  %v505_v32 = vmax.f32 %v497_v29, 0.0 }
  0xaf   : > { %v429_v24 = vmul.f32 %v1124_v21, %v413_v19 }
  0xb1   : > { %v437_v27 = vadd.f32 %v429_v24, %v388_v20 }
  0xb3   : > { %v486_v28 = vadd.f32 %v478_v25, %v437_v27 }
  0xb4   : > { %v466_v40 = vpop.permute.xlu0 %465 }
  0xb5   : > { %v498_v30 = vadd.f32 %v1138_v34, %v486_v28  ;;  %v479_v44 = vmul.f32 %v1128_v26, %v466_v40 }
  0xb7   : > { %v375_v31 = vpop.permute.xlu1 %374  ;;  %v506_v33 = vmax.f32 %v498_v30, 0.0 }
  0xb8   : > { %v389_v39 = vmul.f32 %v1126_v22, %v375_v31  ;;  %v889_v22 = vld [vmem:[%s1236_s5 + $0x18] sm:$0xff] }
  0xb9   : > { %v511_v36 = vpack.c.bf16 %v506_v33, %v505_v32  ;;  %675 = vmatpush.bf16.msra.mxu1 %v889_v22  ;;  %898 = vmatpush.bf16.msra.mxu3 %v889_v22  ;;  %v949_v32 = vld [vmem:[%s1237_s6] ss:$0 sm:$0xff] }
  0xbb   : > { %599 = vmatmul.bf16.vlgmr.msra.gmra.mxu2 %v511_v36 }
  0xc0   : > { %v417_v37 = vpop.permute.xlu1 %416 }
  0xc1   : > { %v430_v38 = vmul.f32 %v1124_v21, %v417_v37  ;;  %v888_v21 = vld [vmem:[%s1236_s5 + $0x10] sm:$0xff] }
  0xc2   : > { %676 = vmatpush.bf16.msra.mxu1 %v888_v21  ;;  %899 = vmatpush.bf16.msra.mxu3 %v888_v21 }
  0xc3   : > { %v438_v42 = vadd.f32 %v430_v38, %v389_v39 }
  0xc5   : > { %v487_v46 = vadd.f32 %v479_v44, %v438_v42 }
  0xc7   : > { %v499_v51 = vadd.f32 %v1138_v34, %v487_v46 }
  0xc9   : > { %v470_v47 = vpop.permute.xlu1 %469  ;;  %v507_v53 = vmax.f32 %v499_v51, 0.0 }
  0xca   : > { %v480_v49 = vmul.f32 %v1128_v26, %v470_v47  ;;  %v887_v26 = vld [vmem:[%s1236_s5 + $0x8] sm:$0xff] }
  0xcb   : > { %677 = vmatpush.bf16.msra.mxu1 %v887_v26  ;;  %900 = vmatpush.bf16.msra.mxu3 %v887_v26 }
  0xcc   : > { %v488_v50 = vadd.f32 %v480_v49, %v439_v48 }
  0xce   : > { %v500_v52 = vadd.f32 %v1138_v34, %v488_v50  ;;  %v886_v34 = vld [vmem:[%s1236_s5] sm:$0xff] }
  0xcf   : > { %678 = vmatpush.bf16.msra.mxu1 %v886_v34  ;;  %901 = vmatpush.bf16.msra.mxu3 %v886_v34 }
  0xd0   : > { %v508_v54 = vmax.f32 %v500_v52, 0.0 }
  0xd2   : > { %v512_v55 = vpack.c.bf16 %v508_v54, %v507_v53 }
  0xd4   : > { %604 = vmatmul.bf16.gmra.mxu2 %v512_v55 }
 0x114   : > { %v590_v56 = vpop.f32.mrf.mxu0 }
 0x115   : > { %v591_v58 = vadd.f32 %v948_v57, %v590_v56 }
 0x117   : > { %v610_v61 = vmax.f32 %v591_v58, 0.0 }
 0x11c   : > { %v592_v59 = vpop.f32.mrf.mxu0 }
 0x11d   : > { %v593_v60 = vadd.f32 %v948_v57, %v592_v59 }
 0x11f   : > { %v611_v62 = vmax.f32 %v593_v60, 0.0 }
 0x121   : > { %v618_v63 = vpack.c.bf16 %v611_v62, %v610_v61 }
 0x123   : > { %870 = vmatmul.msk.bf16.vlgmr.msra.gmra.mxu1 %vm658_vm0, %v618_v63 }
 0x125   : > { %v595_v0 = vpop.f32.mrf.mxu0 }
 0x126   : > { %v596_v1 = vadd.f32 %v948_v57, %v595_v0 }
 0x128   : > { %v612_v10 = vmax.f32 %v596_v1, 0.0 }
 0x12d   : > { %v597_v2 = vpop.f32.mrf.mxu0 }
 0x12e   : > { %v598_v9 = vadd.f32 %v948_v57, %v597_v2 }
 0x130   : > { %v613_v13 = vmax.f32 %v598_v9, 0.0 }
 0x132   : > { %v619_v14 = vpack.c.bf16 %v613_v13, %v612_v10 }
 0x134   : > { %871 = vmatmul.msk.bf16.vlgmr.msra.gmra.mxu3 %vm658_vm0, %v619_v14 }
 0x13e   : > { %v600_v15 = vpop.f32.mrf.mxu2 }
 0x13f   : > { %v601_v16 = vadd.f32 %v948_v57, %v600_v15 }
 0x141   : > { %v614_v19 = vmax.f32 %v601_v16, 0.0 }
 0x146   : > { %v602_v17 = vpop.f32.mrf.mxu2 }
 0x147   : > { %v603_v18 = vadd.f32 %v948_v57, %v602_v17 }
 0x149   : > { %v615_v20 = vmax.f32 %v603_v18, 0.0 }
 0x14b   : > { %v620_v23 = vpack.c.bf16 %v615_v20, %v614_v19 }
 0x14d   : > { %872 = vmatmul.msk.bf16.gmra.mxu3 %vm658_vm0, %v620_v23 }
 0x157   : > { %v605_v24 = vpop.f32.mrf.mxu2 }
 0x158   : > { %v606_v25 = vadd.f32 %v948_v57, %v605_v24 }
 0x15a   : > { %v616_v29 = vmax.f32 %v606_v25, 0.0 }
 0x15f   : > { %v607_v27 = vpop.f32.mrf.mxu2 }
 0x160   : > { %v608_v28 = vadd.f32 %v948_v57, %v607_v27 }
 0x162   : > { %v617_v30 = vmax.f32 %v608_v28, 0.0 }
 0x164   : > { %v621_v31 = vpack.c.bf16 %v617_v30, %v616_v29 }
 0x166   : > { %873 = vmatmul.msk.bf16.gmra.mxu3 %vm658_vm0, %v621_v31 }
 0x1a0   : > { %v680_v33 = vpop.f32.mrf.mxu1 }
 0x1a1   : > { %v681_v35 = vadd.f32 %v949_v32, %v680_v33 }
 0x1a3   : > { %v700_v36 = vadd.f32 %v681_v35, %v1050_v3 }
 0x1a5   : > { %709 = vst.msk [vmem:[%s1196_s11] sm:$0xff] %vm708_vm1, %v700_v36 }
 0x1a8   : > { %v682_v37 = vpop.f32.mrf.mxu1 }
 0x1a9   : > { %v683_v38 = vadd.f32 %v949_v32, %v682_v37 }
 0x1ab   : > { %v701_v39 = vadd.f32 %v683_v38, %v1056_v4 }
 0x1ad   : > { %710 = vst.msk [vmem:[%s1196_s11 + $0x8] sm:$0xff] %vm708_vm1, %v701_v39 }
 0x1b7   : > { %v685_v40 = vpop.f32.mrf.mxu3 }
 0x1b8   : > { %v686_v41 = vadd.f32 %v949_v32, %v685_v40 }
 0x1ba   : > { %v702_v42 = vadd.f32 %v686_v41, %v1062_v5 }
 0x1bc   : > { %711 = vst.msk [vmem:[%s1196_s11 + $0x10] sm:$0xff] %vm708_vm1, %v702_v42 }
 0x1bf   : > { %v687_v43 = vpop.f32.mrf.mxu3 }
 0x1c0   : > { %v688_v44 = vadd.f32 %v949_v32, %v687_v43 }
 0x1c2   : > { %v703_v3 = vadd.f32 %v688_v44, %v1065_v6 }
 0x1c4   : > { %712 = vst.msk [vmem:[%s1196_s11 + $0x18] sm:$0xff] %vm708_vm1, %v703_v3 }
 0x1d0   : > { %v690_v45 = vpop.f32.mrf.mxu3 }
 0x1d1   : > { %v691_v46 = vadd.f32 %v949_v32, %v690_v45 }
 0x1d3   : > { %v704_v4 = vadd.f32 %v691_v46, %v1074_v7 }
 0x1d5   : > { %713 = vst.msk [vmem:[%s1196_s11 + $0x20] sm:$0xff] %vm708_vm1, %v704_v4 }
 0x1d8   : > { %v692_v47 = vpop.f32.mrf.mxu3 }
 0x1d9   : > { %v693_v48 = vadd.f32 %v949_v32, %v692_v47 }
 0x1db   : > { %v705_v5 = vadd.f32 %v693_v48, %v1079_v8 }
 0x1dd   : > { %714 = vst.msk [vmem:[%s1196_s11 + $0x28] sm:$0xff] %vm708_vm1, %v705_v5 }
 0x1e9   : > { %v695_v49 = vpop.f32.mrf.mxu3 }
 0x1ea   : > { %v696_v50 = vadd.f32 %v949_v32, %v695_v49 }
 0x1ec   : > { %v706_v51 = vadd.f32 %v696_v50, %v1092_v11 }
 0x1ee   : > { %715 = vst.msk [vmem:[%s1196_s11 + $0x30] sm:$0xff] %vm708_vm1, %v706_v51 }
 0x1f1   : > { %v697_v6 = vpop.f32.mrf.mxu3 }
 0x1f2   : > { %v698_v52 = vadd.f32 %v949_v32, %v697_v6 }
 0x1f4   : > { %v707_v53 = vadd.f32 %v698_v52, %v1097_v12 }
 0x1f6   : > { %716 = vst.msk [vmem:[%s1196_s11 + $0x38] sm:$0xff] %vm708_vm1, %v707_v53 }
 0x1f7 PF: > { %s17_s26 = sadd.s32 1, %s972_s26   ;;  %s1239_s24 = smov %s968_s25 }
 0x1f8   : > { %p14_p5 = scmp.ge.s32.totalorder %s17_s26, 4   ;;  %s1240_s25 = smov %s1242_s27 }
 0x1fa   :  { %16 = sbr.rel (!%p14_p5) target bundleno = 2 (0x2), region = 81 }

// kernel: model_forward.7
= control target key start
LH: loop header
LB: loop body
LE: loop exit
PB: predicated region body
PF: predicated region fallthrough
CT: control target
= control target key end

     0   :  { %s1400_s24 = smov 0   ;;  %s1402_s25 = smov 0   ;;  %s1777_s0 = inlined_call_operand.vmem [shape: f32[2,128,3], index: 0, kind: input, shape index: {}]   ;;  %s1778_s1 = inlined_call_operand.vmem [shape: f32[3,64], index: 1, kind: input, shape index: {}]   ;;  %s1779_s2 = inlined_call_operand.vmem [shape: f32[1,64], index: 2, kind: input, shape index: {}]   ;;  %s1780_s3 = inlined_call_operand.vmem [shape: bf16[64,128], index: 3, kind: input, shape index: {}]   ;;  %s1781_s4 = inlined_call_operand.vmem [shape: f32[1,128], index: 4, kind: input, shape index: {}]   ;;  %s1782_s5 = inlined_call_operand.vmem [shape: bf16[128,256], index: 5, kind: input, shape index: {}]   ;;  %s1783_s6 = inlined_call_operand.vmem [shape: f32[1,256], index: 6, kind: input, shape index: {}]   ;;  %s1784_s7 = inlined_call_operand.vmem [shape: f32[2,1,256], index: 7, kind: output, shape index: {}]  }
   0x1   :  { %s1404_s26 = smov 0  }
   0x2 LB: > { %s29_s27 = sadd.s32 1, %s1350_s25  ;;  %p1132_p0 = scmp.ge.s32.totalorder %s1354_s26, 1  ;;  %s1354_s26 = sphi %s1404_s26, %s17_s26   ;;  %s1350_s25 = sphi %s1402_s25, %s1788_s25   ;;  %s1346_s24 = sphi %s1400_s24, %s1787_s24  }
   0x3   : > { %p31_p1 = scmp.ge.s32.totalorder %s29_s27, 2  ;;  %p256_p2 = scmp.lt.s32.totalorder %s1354_s26, 3 }
   0x5   : > { %s1790_s27 = smov (%p31_p1, %s29_s27), 0  ;;  %p257_p3 = pnand %p1132_p0, %p256_p2 }
   0x6   : > { %p292_p4 = scmp.lt.s32.totalorder (!%p257_p3), %s1346_s24, 1 }
   0x7   : > { %260 = sbr.rel (%p257_p3) target bundleno = 637 (0x27d), region = 48 }
   0xc   : > { %v1356_v0 = vmov 1   ;;  %v1357_v1 = vmov 0   ;;  %s1792_s24 = smov (!%p292_p4, %s1346_s24), 1  ;;  %v1358_v2 = vmov 2   ;;  %v1230_v16 = vld [vmem:[%s1780_s3 + $0x18] sm:$0xff]  ;;  %v1229_v17 = vld [vmem:[%s1780_s3 + $0x10] sm:$0xff] }
   0xd   : > { %1292 = vset.pattern.permute.xlu1 %v1356_v0  ;;  %1291 = vset.pattern.permute.xlu0 %v1357_v1  ;;  %s1226_s28 = sshll.u32 %s1792_s24, 7  ;;  %v1228_v19 = vld [vmem:[%s1780_s3 + $0x8] sm:$0xff]  ;;  %v1227_v21 = vld [vmem:[%s1780_s3] sm:$0xff]  ;;  %vm694_vm0 = vcmask 523264   ;;  %vm1047_vm2 = vcmask 1040384   ;;  %s1135_s13 = sshll.u32 %s1792_s24, 1 }
   0xe   : > { %1293 = vset.pattern.permute.xlu2 %v1358_v2  ;;  %s1427_s8 = scalar_lea.vmem %s1777_s0, %s1226_s28  ;;  %723 = vmatpush.bf16.msra.mxu0 %v1230_v16  ;;  %v322_v24 = vld [vmem:[%s1778_s1] sm:$0x7]  ;;  %s304_s16 = scalar_lea.vmem %s1784_s7, %s1135_s13 }
   0xf   : > { %v306_v3 = vld [vmem:[%s1427_s8] sm:$0xff]  ;;  %v307_v4 = vld [vmem:[%s1427_s8 + $0x8] sm:$0xff]  ;;  %v308_v5 = vld [vmem:[%s1427_s8 + $0x10] sm:$0xff]  ;;  %v1489_v25 = vperm.slane %v322_v24, 1  ;;  %v1491_v26 = vperm.slane %v322_v24, 0  ;;  %v1493_v29 = vperm.slane %v322_v24, 2 }
  0x10   : > { %421 = vperm.xlu1 %1292, %v306_v3   ;;  %325 = vperm.xlu0 %1291, %v306_v3   ;;  %v309_v6 = vld [vmem:[%s1427_s8 + $0x18] sm:$0xff]  ;;  %v310_v7 = vld [vmem:[%s1427_s8 + $0x20] sm:$0xff]  ;;  %v311_v8 = vld [vmem:[%s1427_s8 + $0x28] sm:$0xff] }
  0x11   : > { %518 = vperm.xlu2 %1293, %v306_v3   ;;  %v312_v9 = vld [vmem:[%s1427_s8 + $0x30] sm:$0xff]  ;;  %v313_v10 = vld [vmem:[%s1427_s8 + $0x38] sm:$0xff]  ;;  %v315_v11 = vld [vmem:[%s1427_s8 + $0x48] sm:$0xff] }
  0x12   : > { %v316_v12 = vld [vmem:[%s1427_s8 + $0x50] sm:$0xff]  ;;  %v314_v13 = vld [vmem:[%s1427_s8 + $0x40] sm:$0xff]  ;;  %v317_v14 = vld [vmem:[%s1427_s8 + $0x58] sm:$0xff]  ;;  %724 = vmatpush.bf16.msra.mxu0 %v1229_v17 }
  0x13   : > { %v318_v15 = vld [vmem:[%s1427_s8 + $0x60] sm:$0xff]  ;;  %v319_v18 = vld [vmem:[%s1427_s8 + $0x68] sm:$0xff]  ;;  %v1481_v22 = vld [vmem:[%s1427_s8 + $0x70] sm:$0xff] }
  0x14   : > { %v1505_v40 = vld [vmem:[%s1779_s2] ss:$0 sm:$0xff]  ;;  %v321_v52 = vld [vmem:[%s1427_s8 + $0x78] sm:$0xff] }
  0x16   : > { %725 = vmatpush.bf16.msra.mxu0 %v1228_v19 }
  0x18   : > { %425 = vperm.xlu1 %1292, %v307_v4   ;;  %330 = vperm.xlu0 %1291, %v307_v4  }
  0x19   : > { %522 = vperm.xlu2 %1293, %v307_v4  }
  0x1a   : > { %726 = vmatpush.bf16.msra.mxu0 %v1227_v21 }
  0x20   : > { %1294 = vset.pattern.permute.xlu1 %v1357_v1  ;;  %335 = vperm.xlu0 %1291, %v308_v5  }
  0x21   : > { %340 = vperm.xlu1 %1294, %v309_v6   ;;  %1295 = vset.pattern.permute.xlu2 %v1356_v0 }
  0x22   : > { %429 = vperm.xlu2 %1295, %v308_v5  }
  0x28   : > { %1296 = vset.pattern.permute.xlu0 %v1356_v0 }
  0x29   : > { %1297 = vset.pattern.permute.xlu1 %v1358_v2  ;;  %433 = vperm.xlu0 %1296, %v309_v6  }
  0x2a   : > { %526 = vperm.xlu1 %1297, %v308_v5   ;;  %1298 = vset.pattern.permute.xlu2 %v1358_v2 }
  0x2b   : > { %530 = vperm.xlu2 %1298, %v309_v6  }
  0x31   : > { %437 = vperm.xlu0 %1296, %v310_v7  }
  0x32   : > { %1299 = vset.pattern.permute.xlu1 %v1357_v1 }
  0x33   : > { %345 = vperm.xlu1 %1299, %v310_v7   ;;  %1300 = vset.pattern.permute.xlu2 %v1357_v1 }
  0x34   : > { %350 = vperm.xlu2 %1300, %v311_v8  }
  0x39   : > { %1303 = vset.pattern.permute.xlu0 %v1358_v2 }
  0x3a   : > { %538 = vperm.xlu0 %1303, %v311_v8  }
  0x3b   : > { %1301 = vset.pattern.permute.xlu1 %v1356_v0 }
  0x3c   : > { %441 = vperm.xlu1 %1301, %v311_v8   ;;  %1302 = vset.pattern.permute.xlu2 %v1358_v2 }
  0x3d   : > { %534 = vperm.xlu2 %1302, %v310_v7  }
  0x42   : > { %542 = vperm.xlu0 %1303, %v312_v9  }
  0x44   : > { %1304 = vset.pattern.permute.xlu1 %v1357_v1 }
  0x45   : > { %355 = vperm.xlu1 %1304, %v312_v9   ;;  %1305 = vset.pattern.permute.xlu2 %v1357_v1 }
  0x46   : > { %360 = vperm.xlu2 %1305, %v313_v10  }
  0x4a   : > { %1310 = vset.pattern.permute.xlu0 %v1357_v1 }
  0x4b   : > { %370 = vperm.xlu0 %1310, %v315_v11  }
  0x4d   : > { %1306 = vset.pattern.permute.xlu1 %v1356_v0 }
  0x4e   : > { %445 = vperm.xlu1 %1306, %v312_v9   ;;  %1307 = vset.pattern.permute.xlu2 %v1356_v0 }
  0x4f   : > { %449 = vperm.xlu2 %1307, %v313_v10  }
  0x53   : > { %375 = vperm.xlu0 %1310, %v316_v12  }
  0x56   : > { %1308 = vset.pattern.permute.xlu1 %v1358_v2 }
  0x57   : > { %546 = vperm.xlu1 %1308, %v313_v10   ;;  %1309 = vset.pattern.permute.xlu2 %v1357_v1 }
  0x58   : > { %365 = vperm.xlu2 %1309, %v314_v13  }
  0x5b   : > { %1317 = vset.pattern.permute.xlu0 %v1356_v0 }
  0x5c   : > { %465 = vperm.xlu0 %1317, %v317_v14  }
  0x5f   : > { %1311 = vset.pattern.permute.xlu1 %v1356_v0 }
  0x60   : > { %453 = vperm.xlu1 %1311, %v314_v13   ;;  %1312 = vset.pattern.permute.xlu2 %v1356_v0 }
  0x61   : > { %457 = vperm.xlu2 %1312, %v315_v11  }
  0x64   : > { %469 = vperm.xlu0 %1317, %v318_v15  }
  0x68   : > { %1313 = vset.pattern.permute.xlu1 %v1358_v2 }
  0x69   : > { %550 = vperm.xlu1 %1313, %v314_v13   ;;  %1314 = vset.pattern.permute.xlu2 %v1358_v2 }
  0x6a   : > { %554 = vperm.xlu2 %1314, %v315_v11  }
  0x6b   : > { %v519_v20 = vpop.permute.xlu2 %518 }
  0x6c   : > { %1324 = vset.pattern.permute.xlu0 %v1358_v2  ;;  %v582_v33 = vmul.f32 %v1493_v29, %v519_v20 }
  0x6d   : > { %570 = vperm.xlu0 %1324, %v319_v18  }
  0x71   : > { %1315 = vset.pattern.permute.xlu1 %v1357_v1 }
  0x72   : > { %380 = vperm.xlu1 %1315, %v317_v14   ;;  %1316 = vset.pattern.permute.xlu2 %v1356_v0 }
  0x73   : > { %461 = vperm.xlu2 %1316, %v316_v12   ;;  %v523_v23 = vpop.permute.xlu2 %522 }
  0x74   : > { %v583_v41 = vmul.f32 %v1493_v29, %v523_v23 }
  0x75   : > { %574 = vperm.xlu0 %1324, %v1481_v22  }
  0x7a   : > { %1318 = vset.pattern.permute.xlu1 %v1358_v2 }
  0x7b   : > { %558 = vperm.xlu1 %1318, %v316_v12   ;;  %1319 = vset.pattern.permute.xlu2 %v1358_v2 }
  0x7c   : > { %562 = vperm.xlu2 %1319, %v317_v14   ;;  %v430_v32 = vpop.permute.xlu2 %429 }
  0x7d   : > { %v487_v53 = vmul.f32 %v1489_v25, %v430_v32 }
  0x82   : > { %v422_v27 = vpop.permute.xlu1 %421  ;;  %v326_v28 = vpop.permute.xlu0 %325 }
  0x83   : > { %v485_v30 = vmul.f32 %v1489_v25, %v422_v27  ;;  %v404_v31 = vmul.f32 %v1491_v26, %v326_v28  ;;  %1320 = vset.pattern.permute.xlu1 %v1357_v1 }
  0x84   : > { %385 = vperm.xlu1 %1320, %v318_v15   ;;  %1321 = vset.pattern.permute.xlu2 %v1357_v1 }
  0x85   : > { %390 = vperm.xlu2 %1321, %v319_v18   ;;  %v501_v34 = vadd.f32 %v485_v30, %v404_v31  ;;  %v531_v43 = vpop.permute.xlu2 %530 }
  0x86   : > { %v585_v59 = vmul.f32 %v1493_v29, %v531_v43 }
  0x87   : > { %v598_v37 = vadd.f32 %v582_v33, %v501_v34 }
  0x89   : > { %v618_v45 = vadd.f32 %v1505_v40, %v598_v37 }
  0x8a   : > { %v426_v35 = vpop.permute.xlu1 %425  ;;  %v331_v36 = vpop.permute.xlu0 %330 }
  0x8b   : > { %v486_v38 = vmul.f32 %v1489_v25, %v426_v35  ;;  %v405_v39 = vmul.f32 %v1491_v26, %v331_v36  ;;  %v634_v49 = vmax.f32 %v618_v45, 0.0 }
  0x8c   : > { %1322 = vset.pattern.permute.xlu1 %v1356_v0 }
  0x8d   : > { %v502_v42 = vadd.f32 %v486_v38, %v405_v39  ;;  %473 = vperm.xlu1 %1322, %v319_v18   ;;  %1323 = vset.pattern.permute.xlu2 %v1358_v2 }
  0x8e   : > { %566 = vperm.xlu2 %1323, %v318_v15   ;;  %v351_v55 = vpop.permute.xlu2 %350 }
  0x8f   : > { %v599_v44 = vadd.f32 %v583_v41, %v502_v42  ;;  %v409_v18 = vmul.f32 %v1491_v26, %v351_v55 }
  0x91   : > { %v619_v46 = vadd.f32 %v1505_v40, %v599_v44 }
  0x92   : > { %v336_v47 = vpop.permute.xlu0 %335 }
  0x93   : > { %v341_v48 = vpop.permute.xlu1 %340  ;;  %v635_v50 = vmax.f32 %v619_v46, 0.0  ;;  %v406_v54 = vmul.f32 %v1491_v26, %v336_v47 }
  0x94   : > { %v407_v58 = vmul.f32 %v1491_v26, %v341_v48 }
  0x95   : > { %1325 = vset.pattern.permute.xlu1 %v1357_v1  ;;  %v650_v51 = vpack.c.bf16 %v635_v50, %v634_v49  ;;  %v503_v56 = vadd.f32 %v487_v53, %v406_v54 }
  0x96   : > { %395 = vperm.xlu1 %1325, %v1481_v22   ;;  %1326 = vset.pattern.permute.xlu2 %v1357_v1 }
  0x97   : > { %1152 = vmatmul.msk.bf16.vlgmr.msra.gmra.mxu0 %vm694_vm0, %v650_v51  ;;  %400 = vperm.xlu2 %1326, %v321_v52   ;;  %v535_v5 = vpop.permute.xlu2 %534 }
  0x98   : > { %v586_v15 = vmul.f32 %v1493_v29, %v535_v5 }
  0x9b   : > { %v434_v57 = vpop.permute.xlu0 %433 }
  0x9c   : > { %v488_v60 = vmul.f32 %v1489_v25, %v434_v57  ;;  %v527_v61 = vpop.permute.xlu1 %526 }
  0x9d   : > { %v584_v62 = vmul.f32 %v1493_v29, %v527_v61 }
  0x9e   : > { %v504_v63 = vadd.f32 %v488_v60, %v407_v58  ;;  %1327 = vset.pattern.permute.xlu1 %v1356_v0 }
  0x9f   : > { %v600_v1 = vadd.f32 %v584_v62, %v503_v56  ;;  %477 = vperm.xlu1 %1327, %v1481_v22   ;;  %1328 = vset.pattern.permute.xlu2 %v1356_v0 }
  0xa0   : > { %v601_v3 = vadd.f32 %v585_v59, %v504_v63  ;;  %481 = vperm.xlu2 %1328, %v321_v52   ;;  %v361_v0 = vpop.permute.xlu2 %360 }
  0xa1   : > { %v620_v4 = vadd.f32 %v1505_v40, %v600_v1  ;;  %v411_v41 = vmul.f32 %v1491_v26, %v361_v0  ;;  %v1245_v0 = vld [vmem:[%s1782_s5 + $0x74] sm:$0xf] }
  0xa2   : > { %v621_v6 = vadd.f32 %v1505_v40, %v601_v3 }
  0xa3   : > { %v636_v7 = vmax.f32 %v620_v4, 0.0  ;;  %v438_v8 = vpop.permute.xlu0 %437 }
  0xa4   : > { %v637_v9 = vmax.f32 %v621_v6, 0.0  ;;  %v489_v13 = vmul.f32 %v1489_v25, %v438_v8 }
  0xa5   : > { %v346_v10 = vpop.permute.xlu1 %345 }
  0xa6   : > { %v651_v11 = vpack.c.bf16 %v637_v9, %v636_v7  ;;  %v408_v12 = vmul.f32 %v1491_v26, %v346_v10 }
  0xa7   : > { %1329 = vset.pattern.permute.xlu1 %v1358_v2 }
  0xa8   : > { %578 = vperm.xlu1 %1329, %v321_v52   ;;  %1153 = vmatmul.msk.bf16.gmra.mxu0 %vm694_vm0, %v651_v11  ;;  %v505_v14 = vadd.f32 %v489_v13, %v408_v12  ;;  %v1218_v12 = vld [vmem:[%s1782_s5 + $0x70] sm:$0xf]  ;;  %v1246_v13 = vld [vmem:[%s1782_s5 + $0x74] sm:$0xf0] }
  0xa9   : > { %v450_v24 = vpop.permute.xlu2 %449 }
  0xaa   : > { %v602_v19 = vadd.f32 %v586_v15, %v505_v14  ;;  %v492_v42 = vmul.f32 %v1489_v25, %v450_v24  ;;  %v1219_v15 = vor.u32 %v1246_v13, %v1218_v12  ;;  %v1243_v24 = vld [vmem:[%s1782_s5 + $0x64] sm:$0xf] }
  0xac   : > { %v539_v16 = vpop.permute.xlu0 %538  ;;  %v622_v23 = vadd.f32 %v1505_v40, %v602_v19  ;;  %v508_v46 = vadd.f32 %v492_v42, %v411_v41  ;;  %894 = vmatpush.bf16.msra.mxu1 %v1219_v15  ;;  %1247 = vmatpush.bf16.msra.mxu3 %v1219_v15  ;;  %v1233_v15 = vld [vmem:[%s1782_s5 + $0x14] sm:$0xf] }
  0xad   : > { %v587_v21 = vmul.f32 %v1493_v29, %v539_v16  ;;  %v1220_v16 = vld [vmem:[%s1782_s5 + $0x78] sm:$0xf0] }
  0xae   : > { %v442_v17 = vpop.permute.xlu1 %441  ;;  %v638_v28 = vmax.f32 %v622_v23, 0.0  ;;  %v1210_v23 = vld [vmem:[%s1782_s5 + $0x60] sm:$0xf] }
  0xaf   : > { %v490_v20 = vmul.f32 %v1489_v25, %v442_v17  ;;  %v1568_v17 = vor.u32 %v1245_v0, %v1220_v16  ;;  %v1170_v0 = vld [vmem:[%s1782_s5 + $0x10] sm:$0xf] }
  0xb1   : > { %v506_v22 = vadd.f32 %v490_v20, %v409_v18  ;;  %943 = vmatpush.bf16.msra.mxu2 %v1568_v17 }
  0xb2   : > { %v366_v33 = vpop.permute.xlu2 %365 }
  0xb3   : > { %v603_v2 = vadd.f32 %v587_v21, %v506_v22  ;;  %v412_v1 = vmul.f32 %v1491_v26, %v366_v33  ;;  %v1202_v33 = vld [vmem:[%s1782_s5 + $0x50] sm:$0xf] }
  0xb4   : > { %v543_v36 = vpop.permute.xlu0 %542 }
  0xb5   : > { %v623_v27 = vadd.f32 %v1505_v40, %v603_v2  ;;  %v588_v39 = vmul.f32 %v1493_v29, %v543_v36  ;;  %v1244_v2 = vld [vmem:[%s1782_s5 + $0x64] sm:$0xf0] }
  0xb7   : > { %v639_v30 = vmax.f32 %v623_v27, 0.0  ;;  %v356_v31 = vpop.permute.xlu1 %355  ;;  %v1211_v27 = vor.u32 %v1244_v2, %v1210_v23  ;;  %v1162_v23 = vld [vmem:[%s1782_s5] sm:$0xf]  ;;  %v1232_v2 = vld [vmem:[%s1782_s5 + $0x4] sm:$0xf0] }
  0xb8   : > { %v410_v37 = vmul.f32 %v1491_v26, %v356_v31 }
  0xb9   : > { %v652_v32 = vpack.c.bf16 %v639_v30, %v638_v28  ;;  %v1212_v28 = vld [vmem:[%s1782_s5 + $0x68] sm:$0xf0]  ;;  %895 = vmatpush.bf16.msra.mxu1 %v1211_v27  ;;  %1248 = vmatpush.bf16.msra.mxu3 %v1211_v27  ;;  %v1163_v27 = vor.u32 %v1232_v2, %v1162_v23 }
  0xba   : > { %v1586_v30 = vor.u32 %v1243_v24, %v1212_v28  ;;  %v1231_v24 = vld [vmem:[%s1782_s5 + $0x4] sm:$0xf]  ;;  %v1164_v28 = vld [vmem:[%s1782_s5 + $0x8] sm:$0xf0] }
  0xbb   : > { %1154 = vmatmul.msk.bf16.gmra.mxu0 %vm694_vm0, %v652_v32  ;;  %v458_v43 = vpop.permute.xlu2 %457 }
  0xbc   : > { %v494_v54 = vmul.f32 %v1489_v25, %v458_v43  ;;  %944 = vmatpush.bf16.msra.mxu2 %v1586_v30  ;;  %v1194_v43 = vld [vmem:[%s1782_s5 + $0x40] sm:$0xf] }
  0xbd   : > { %v371_v50 = vpop.permute.xlu0 %370 }
  0xbe   : > { %v413_v55 = vmul.f32 %v1491_v26, %v371_v50 }
  0xc0   : > { %v446_v34 = vpop.permute.xlu1 %445  ;;  %v510_v59 = vadd.f32 %v494_v54, %v413_v55  ;;  %v1186_v55 = vld [vmem:[%s1782_s5 + $0x30] sm:$0xf] }
  0xc1   : > { %v491_v35 = vmul.f32 %v1489_v25, %v446_v34  ;;  %v1242_v34 = vld [vmem:[%s1782_s5 + $0x54] sm:$0xf0] }
  0xc3   : > { %v507_v38 = vadd.f32 %v491_v35, %v410_v37  ;;  %v1241_v35 = vld [vmem:[%s1782_s5 + $0x54] sm:$0xf] }
  0xc4   : > { %v555_v56 = vpop.permute.xlu2 %554 }
  0xc5   : > { %v604_v44 = vadd.f32 %v588_v39, %v507_v38  ;;  %v591_v60 = vmul.f32 %v1493_v29, %v555_v56  ;;  %v376_v61 = vpop.permute.xlu0 %375  ;;  %v1203_v38 = vor.u32 %v1242_v34, %v1202_v33  ;;  %v1204_v39 = vld [vmem:[%s1782_s5 + $0x58] sm:$0xf0]  ;;  %v1238_v56 = vld [vmem:[%s1782_s5 + $0x34] sm:$0xf0] }
  0xc6   : > { %v414_v36 = vmul.f32 %v1491_v26, %v376_v61  ;;  %v1604_v41 = vor.u32 %v1241_v35, %v1204_v39 }
  0xc7   : > { %v624_v48 = vadd.f32 %v1505_v40, %v604_v44  ;;  %v607_v63 = vadd.f32 %v591_v60, %v510_v59  ;;  %896 = vmatpush.bf16.msra.mxu1 %v1203_v38  ;;  %v1240_v44 = vld [vmem:[%s1782_s5 + $0x44] sm:$0xf0]  ;;  %1249 = vmatpush.bf16.msra.mxu3 %v1203_v38  ;;  %v1187_v59 = vor.u32 %v1238_v56, %v1186_v55  ;;  %v1188_v60 = vld [vmem:[%s1782_s5 + $0x38] sm:$0xf0] }
  0xc8   : > { %945 = vmatpush.bf16.msra.mxu2 %v1604_v41 }
  0xc9   : > { %v547_v45 = vpop.permute.xlu1 %546  ;;  %v640_v52 = vmax.f32 %v624_v48, 0.0  ;;  %v627_v6 = vadd.f32 %v1505_v40, %v607_v63  ;;  %v1196_v48 = vld [vmem:[%s1782_s5 + $0x48] sm:$0xf0] }
  0xca   : > { %v589_v47 = vmul.f32 %v1493_v29, %v547_v45  ;;  %v1239_v45 = vld [vmem:[%s1782_s5 + $0x44] sm:$0xf] }
  0xcb   : > { %v643_v9 = vmax.f32 %v627_v6, 0.0 }
  0xcc   : > { %v605_v49 = vadd.f32 %v589_v47, %v508_v46  ;;  %v1195_v47 = vor.u32 %v1240_v44, %v1194_v43 }
  0xcd   : > { %v462_v4 = vpop.permute.xlu2 %461 }
  0xce   : > { %v625_v51 = vadd.f32 %v1505_v40, %v605_v49  ;;  %v466_v11 = vpop.permute.xlu0 %465  ;;  %v495_v37 = vmul.f32 %v1489_v25, %v462_v4  ;;  %897 = vmatpush.bf16.msra.mxu1 %v1195_v47  ;;  %1250 = vmatpush.bf16.msra.mxu3 %v1195_v47  ;;  %v1236_v4 = vld [vmem:[%s1782_s5 + $0x24] sm:$0xf0] }
  0xcf   : > { %v496_v19 = vmul.f32 %v1489_v25, %v466_v11 }
  0xd0   : > { %v641_v53 = vmax.f32 %v625_v51, 0.0  ;;  %v511_v49 = vadd.f32 %v495_v37, %v414_v36  ;;  %v1620_v51 = vor.u32 %v1239_v45, %v1196_v48 }
  0xd2   : > { %v454_v57 = vpop.permute.xlu1 %453  ;;  %v653_v58 = vpack.c.bf16 %v641_v53, %v640_v52  ;;  %946 = vmatpush.bf16.msra.mxu2 %v1620_v51  ;;  %898 = vmatpush.bf16.msra.mxu1 %v1187_v59 }
  0xd3   : > { %v493_v62 = vmul.f32 %v1489_v25, %v454_v57  ;;  %v1237_v57 = vld [vmem:[%s1782_s5 + $0x34] sm:$0xf]  ;;  %1251 = vmatpush.bf16.msra.mxu3 %v1187_v59 }
  0xd4   : > { %1155 = vmatmul.msk.bf16.gmra.mxu0 %vm694_vm0, %v653_v58  ;;  %v1637_v61 = vor.u32 %v1237_v57, %v1188_v60 }
  0xd5   : > { %v509_v5 = vadd.f32 %v493_v62, %v412_v1 }
  0xd6   : > { %v563_v22 = vpop.permute.xlu2 %562  ;;  %v470_v1 = vpop.permute.xlu0 %469  ;;  %947 = vmatpush.bf16.msra.mxu2 %v1637_v61 }
  0xd7   : > { %v593_v32 = vmul.f32 %v1493_v29, %v563_v22  ;;  %v497_v12 = vmul.f32 %v1489_v25, %v470_v1 }
  0xdb   : > { %v551_v3 = vpop.permute.xlu1 %550 }
  0xdc   : > { %v590_v7 = vmul.f32 %v1493_v29, %v551_v3  ;;  %v1178_v3 = vld [vmem:[%s1782_s5 + $0x20] sm:$0xf] }
  0xde   : > { %v606_v8 = vadd.f32 %v590_v7, %v509_v5  ;;  %v1235_v5 = vld [vmem:[%s1782_s5 + $0x24] sm:$0xf] }
  0xdf   : > { %v391_v52 = vpop.permute.xlu2 %390  ;;  %v571_v22 = vpop.permute.xlu0 %570 }
  0xe0   : > { %v626_v10 = vadd.f32 %v1505_v40, %v606_v8  ;;  %v1179_v8 = vor.u32 %v1236_v4, %v1178_v3  ;;  %v417_v33 = vmul.f32 %v1491_v26, %v391_v52  ;;  %v595_v36 = vmul.f32 %v1493_v29, %v571_v22 }
  0xe2   : > { %v642_v14 = vmax.f32 %v626_v10, 0.0  ;;  %899 = vmatpush.bf16.msra.mxu1 %v1179_v8  ;;  %1252 = vmatpush.bf16.msra.mxu3 %v1179_v8 }
  0xe4   : > { %v381_v18 = vpop.permute.xlu1 %380  ;;  %v654_v20 = vpack.c.bf16 %v643_v9, %v642_v14  ;;  %v1180_v9 = vld [vmem:[%s1782_s5 + $0x28] sm:$0xf0]  ;;  %v1234_v14 = vld [vmem:[%s1782_s5 + $0x14] sm:$0xf0] }
  0xe5   : > { %v415_v21 = vmul.f32 %v1491_v26, %v381_v18  ;;  %v1183_v10 = vor.u32 %v1235_v5, %v1180_v9  ;;  %v1171_v16 = vor.u32 %v1234_v14, %v1170_v0  ;;  %v1172_v18 = vld [vmem:[%s1782_s5 + $0x18] sm:$0xf0] }
  0xe6   : > { %1156 = vmatmul.msk.bf16.gmra.mxu0 %vm694_vm0, %v654_v20 }
  0xe7   : > { %v512_v31 = vadd.f32 %v496_v19, %v415_v21  ;;  %948 = vmatpush.bf16.msra.mxu2 %v1183_v10  ;;  %v1175_v19 = vor.u32 %v1233_v15, %v1172_v18  ;;  %900 = vmatpush.bf16.msra.mxu1 %v1171_v16 }
  0xe8   : > { %v567_v13 = vpop.permute.xlu2 %566  ;;  %1253 = vmatpush.bf16.msra.mxu3 %v1171_v16 }
  0xe9   : > { %v609_v42 = vadd.f32 %v593_v32, %v512_v31  ;;  %v594_v21 = vmul.f32 %v1493_v29, %v567_v13  ;;  %v1167_v32 = vor.u32 %v1231_v24, %v1164_v28 }
  0xeb   : > { %v629_v53 = vadd.f32 %v1505_v40, %v609_v42  ;;  %949 = vmatpush.bf16.msra.mxu2 %v1175_v19  ;;  %901 = vmatpush.bf16.msra.mxu1 %v1163_v27 }
  0xec   : > { %1254 = vmatpush.bf16.msra.mxu3 %v1163_v27 }
  0xed   : > { %v559_v46 = vpop.permute.xlu1 %558  ;;  %v645_v62 = vmax.f32 %v629_v53, 0.0 }
  0xee   : > { %v592_v50 = vmul.f32 %v1493_v29, %v559_v46 }
  0xef   : > { %950 = vmatpush.bf16.msra.mxu2 %v1167_v32 }
  0xf0   : > { %v608_v54 = vadd.f32 %v592_v50, %v511_v49  ;;  %1255 = vmatpush.bf16.msrb.mxu3 %v1568_v17  ;;  %v575_v50 = vpop.permute.xlu0 %574 }
  0xf1   : > { %v401_v46 = vpop.permute.xlu2 %400 }
  0xf2   : > { %v628_v58 = vadd.f32 %v1505_v40, %v608_v54  ;;  %v419_v54 = vmul.f32 %v1491_v26, %v401_v46 }
  0xf4   : > { %v644_v63 = vmax.f32 %v628_v58, 0.0  ;;  %1256 = vmatpush.bf16.msrb.mxu3 %v1586_v30 }
  0xf6   : > { %v386_v6 = vpop.permute.xlu1 %385  ;;  %v655_v7 = vpack.c.bf16 %v645_v62, %v644_v63 }
  0xf7   : > { %v416_v11 = vmul.f32 %v1491_v26, %v386_v6 }
  0xf8   : > { %1157 = vmatmul.msk.bf16.gmra.mxu0 %vm694_vm0, %v655_v7  ;;  %1257 = vmatpush.bf16.msrb.mxu3 %v1604_v41  ;;  %v596_v41 = vmul.f32 %v1493_v29, %v575_v50 }
  0xf9   : > { %v513_v20 = vadd.f32 %v497_v12, %v416_v11 }
  0xfa   : > { %v482_v30 = vpop.permute.xlu2 %481 }
  0xfb   : > { %v610_v34 = vadd.f32 %v594_v21, %v513_v20  ;;  %v500_v55 = vmul.f32 %v1489_v25, %v482_v30 }
  0xfc   : > { %1258 = vmatpush.bf16.msrb.mxu3 %v1620_v51  ;;  %v1699_v51 = vld [vmem:[%s1781_s4] ss:$0 sm:$0xff] }
  0xfd   : > { %v630_v38 = vadd.f32 %v1505_v40, %v610_v34  ;;  %v516_v58 = vadd.f32 %v500_v55, %v419_v54 }
  0xff   : > { %v474_v31 = vpop.permute.xlu1 %473  ;;  %v646_v43 = vmax.f32 %v630_v38, 0.0 }
 0x100   : > { %v498_v35 = vmul.f32 %v1489_v25, %v474_v31  ;;  %1259 = vmatpush.bf16.msrb.mxu3 %v1637_v61 }
 0x102   : > { %v514_v37 = vadd.f32 %v498_v35, %v417_v33 }
 0x104   : > { %v611_v39 = vadd.f32 %v595_v36, %v514_v37  ;;  %1260 = vmatpush.bf16.msrb.mxu3 %v1183_v10 }
 0x106   : > { %v631_v42 = vadd.f32 %v1505_v40, %v611_v39 }
 0x108   : > { %v647_v44 = vmax.f32 %v631_v42, 0.0  ;;  %v396_v45 = vpop.permute.xlu1 %395  ;;  %1261 = vmatpush.bf16.msrb.mxu3 %v1175_v19 }
 0x109   : > { %v418_v49 = vmul.f32 %v1491_v26, %v396_v45 }
 0x10a   : > { %v656_v47 = vpack.c.bf16 %v647_v44, %v646_v43 }
 0x10c   : > { %1158 = vmatmul.msk.bf16.gmra.mxu0 %vm694_vm0, %v656_v47  ;;  %1262 = vmatpush.bf16.msrb.mxu3 %v1167_v32 }
 0x111   : > { %v478_v48 = vpop.permute.xlu1 %477 }
 0x112   : > { %v499_v17 = vmul.f32 %v1489_v25, %v478_v48 }
 0x114   : > { %v728_v52 = vpop.f32.mrf.mxu0  ;;  %v515_v53 = vadd.f32 %v499_v17, %v418_v49 }
 0x115   : > { %v729_v59 = vadd.f32 %v1699_v51, %v728_v52 }
 0x116   : > { %v612_v56 = vadd.f32 %v596_v41, %v515_v53 }
 0x117   : > { %v768_v25 = vmax.f32 %v729_v59, 0.0 }
 0x118   : > { %v632_v63 = vadd.f32 %v1505_v40, %v612_v56 }
 0x11a   : > { %v579_v57 = vpop.permute.xlu1 %578  ;;  %v648_v6 = vmax.f32 %v632_v63, 0.0 }
 0x11b   : > { %v597_v60 = vmul.f32 %v1493_v29, %v579_v57  ;;  %v808_v57 = vld [vmem:[%s1783_s6] sm:$0x3] }
 0x11c   : > { %v730_v61 = vpop.f32.mrf.mxu0 }
 0x11d   : > { %v613_v62 = vadd.f32 %v597_v60, %v516_v58  ;;  %v731_v26 = vadd.f32 %v1699_v51, %v730_v61  ;;  %v810_v61 = vperm.slane %v808_v57, 0 }
 0x11f   : > { %v633_v1 = vadd.f32 %v1505_v40, %v613_v62  ;;  %v769_v3 = vmax.f32 %v731_v26, 0.0 }
 0x121   : > { %v649_v4 = vmax.f32 %v633_v1, 0.0  ;;  %v784_v5 = vpack.c.bf16 %v769_v3, %v768_v25  ;;  %v1726_v3 = vperm.slane %v808_v57, 1 }
 0x123   : > { %902 = vmatmul.bf16.vlgmr.msra.gmra.mxu1 %v784_v5  ;;  %951 = vmatmul.bf16.vlgmr.msra.gmra.mxu2 %v784_v5  ;;  %v657_v7 = vpack.c.bf16 %v649_v4, %v648_v6 }
 0x125   : > { %v733_v8 = vpop.f32.mrf.mxu0  ;;  %1159 = vmatmul.msk.bf16.gmra.mxu0 %vm694_vm0, %v657_v7 }
 0x126   : > { %v734_v29 = vadd.f32 %v1699_v51, %v733_v8 }
 0x128   : > { %v770_v11 = vmax.f32 %v734_v29, 0.0 }
 0x12d   : > { %v735_v9 = vpop.f32.mrf.mxu0 }
 0x12e   : > { %v736_v10 = vadd.f32 %v1699_v51, %v735_v9 }
 0x130   : > { %v771_v12 = vmax.f32 %v736_v10, 0.0 }
 0x132   : > { %v785_v13 = vpack.c.bf16 %v771_v12, %v770_v11 }
 0x134   : > { %907 = vmatmul.bf16.gmra.mxu1 %v785_v13  ;;  %956 = vmatmul.bf16.gmra.mxu2 %v785_v13 }
 0x138   : > { %v738_v40 = vpop.f32.mrf.mxu0 }
 0x139   : > { %v739_v0 = vadd.f32 %v1699_v51, %v738_v40 }
 0x13b   : > { %v772_v16 = vmax.f32 %v739_v0, 0.0 }
 0x140   : > { %v740_v14 = vpop.f32.mrf.mxu0 }
 0x141   : > { %v741_v15 = vadd.f32 %v1699_v51, %v740_v14 }
 0x143   : > { %v773_v18 = vmax.f32 %v741_v15, 0.0 }
 0x145   : > { %v786_v19 = vpack.c.bf16 %v773_v18, %v772_v16 }
 0x147   : > { %912 = vmatmul.bf16.gmra.mxu1 %v786_v19  ;;  %961 = vmatmul.bf16.gmra.mxu2 %v786_v19 }
 0x151   : > { %v743_v20 = vpop.f32.mrf.mxu0 }
 0x152   : > { %v744_v21 = vadd.f32 %v1699_v51, %v743_v20 }
 0x154   : > { %v774_v2 = vmax.f32 %v744_v21, 0.0 }
 0x159   : > { %v745_v22 = vpop.f32.mrf.mxu0 }
 0x15a   : > { %v746_v23 = vadd.f32 %v1699_v51, %v745_v22 }
 0x15c   : > { %v775_v24 = vmax.f32 %v746_v23, 0.0 }
 0x15e   : > { %v787_v27 = vpack.c.bf16 %v775_v24, %v774_v2 }
 0x160   : > { %917 = vmatmul.bf16.gmra.mxu1 %v787_v27  ;;  %966 = vmatmul.bf16.gmra.mxu2 %v787_v27 }
 0x163   : > { %v748_v28 = vpop.f32.mrf.mxu0 }
 0x164   : > { %v749_v31 = vadd.f32 %v1699_v51, %v748_v28 }
 0x166   : > { %v776_v34 = vmax.f32 %v749_v31, 0.0 }
 0x16b   : > { %v750_v32 = vpop.f32.mrf.mxu0 }
 0x16c   : > { %v751_v33 = vadd.f32 %v1699_v51, %v750_v32 }
 0x16e   : > { %v777_v35 = vmax.f32 %v751_v33, 0.0 }
 0x170   : > { %v788_v36 = vpack.c.bf16 %v777_v35, %v776_v34 }
 0x172   : > { %922 = vmatmul.bf16.gmra.mxu1 %v788_v36  ;;  %971 = vmatmul.bf16.gmra.mxu2 %v788_v36 }
 0x175   : > { %v753_v37 = vpop.f32.mrf.mxu0 }
 0x176   : > { %v754_v38 = vadd.f32 %v1699_v51, %v753_v37 }
 0x178   : > { %v778_v43 = vmax.f32 %v754_v38, 0.0 }
 0x17d   : > { %v755_v39 = vpop.f32.mrf.mxu0 }
 0x17e   : > { %v756_v42 = vadd.f32 %v1699_v51, %v755_v39 }
 0x180   : > { %v779_v44 = vmax.f32 %v756_v42, 0.0 }
 0x182   : > { %v789_v45 = vpack.c.bf16 %v779_v44, %v778_v43 }
 0x184   : > { %927 = vmatmul.bf16.gmra.mxu1 %v789_v45  ;;  %976 = vmatmul.bf16.gmra.mxu2 %v789_v45 }
 0x189   : > { %v758_v46 = vpop.f32.mrf.mxu0 }
 0x18a   : > { %v759_v47 = vadd.f32 %v1699_v51, %v758_v46 }
 0x18c   : > { %v780_v49 = vmax.f32 %v759_v47, 0.0 }
 0x191   : > { %v760_v48 = vpop.f32.mrf.mxu0 }
 0x192   : > { %v761_v17 = vadd.f32 %v1699_v51, %v760_v48 }
 0x194   : > { %v781_v50 = vmax.f32 %v761_v17, 0.0 }
 0x196   : > { %v790_v30 = vpack.c.bf16 %v781_v50, %v780_v49 }
 0x198   : > { %932 = vmatmul.bf16.vlgmr.msra.gmra.mxu3 %v790_v30 }
 0x1a0   : > { %v903_v52 = vpop.f32.mrf.mxu1 }
 0x1a1   : > { %v904_v25 = vadd.f32 %v903_v52, %v810_v61 }
 0x1a2   : > { %v763_v53 = vpop.f32.mrf.mxu0 }
 0x1a3   : > { %v764_v55 = vadd.f32 %v1699_v51, %v763_v53 }
 0x1a5   : > { %v782_v59 = vmax.f32 %v764_v55, 0.0 }
 0x1a6   : > { %v952_v54 = vpop.f32.mrf.mxu2 }
 0x1a7   : > { %v1729_v6 = vadd.f32 %v952_v54, %v1726_v3 }
 0x1a8   : > { %v905_v41 = vpop.f32.mrf.mxu1 }
 0x1a9   : > { %v906_v22 = vadd.f32 %v905_v41, %v810_v61 }
 0x1aa   : > { %v765_v56 = vpop.f32.mrf.mxu0 }
 0x1ab   : > { %v766_v58 = vadd.f32 %v1699_v51, %v765_v56 }
 0x1ad   : > { %v783_v60 = vmax.f32 %v766_v58, 0.0  ;;  %v1038_v58 = vlaneseq }
 0x1ae   : > { %v1724_v62 = vpop.f32.mrf.mxu2 }
 0x1af   : > { %v791_v26 = vpack.c.bf16 %v783_v60, %v782_v59  ;;  %vm1736_vm1 = vcmp.lt.s32.totalorder %v1038_v58, 256 }
 0x1b1   : > { %v908_v63 = vpop.f32.mrf.mxu1  ;;  %937 = vmatmul.bf16.gmra.mxu3 %v791_v26 }
 0x1b2   : > { %v909_v1 = vadd.f32 %v908_v63, %v810_v61 }
 0x1b4   : > { %v992_v4 = vmax.f32 %v904_v25, %v909_v1 }
 0x1b7   : > { %v957_v5 = vpop.f32.mrf.mxu2 }
 0x1b8   : > { %v1732_v7 = vadd.f32 %v957_v5, %v1726_v3 }
 0x1b9   : > { %v910_v8 = vpop.f32.mrf.mxu1 }
 0x1ba   : > { %v1013_v51 = vmax.f32 %v1729_v6, %v1732_v7  ;;  %v911_v20 = vadd.f32 %v910_v8, %v810_v61 }
 0x1bc   : > { %v993_v24 = vmax.f32 %v906_v22, %v911_v20 }
 0x1bf   : > { %v959_v11 = vpop.f32.mrf.mxu2 }
 0x1c0   : > { %v960_v25 = vadd.f32 %v959_v11, %v1726_v3 }
 0x1c1   : > { %981 = vmatmul.bf16.vlgmr.msrb.gmra.mxu3 %v790_v30 }
 0x1c4   : > { %v913_v29 = vpop.f32.mrf.mxu1 }
 0x1c5   : > { %v914_v23 = vadd.f32 %v913_v29, %v810_v61 }
 0x1c7   : > { %v994_v33 = vmax.f32 %v992_v4, %v914_v23 }
 0x1ca   : > { %v962_v13 = vpop.f32.mrf.mxu2 }
 0x1cb   : > { %v963_v1 = vadd.f32 %v962_v13, %v1726_v3 }
 0x1cc   : > { %v915_v9 = vpop.f32.mrf.mxu1 }
 0x1cd   : > { %v916_v2 = vadd.f32 %v915_v9, %v810_v61 }
 0x1cf   : > { %v995_v34 = vmax.f32 %v993_v24, %v916_v2 }
 0x1d1   : > { %986 = vmatmul.bf16.gmra.mxu3 %v791_v26  ;;  %v1359_v26 = vmov -inf  }
 0x1d2   : > { %v964_v0 = vpop.f32.mrf.mxu2  ;;  %1042 = vst.msk [vmem:[#allocation2] sm:$0x3] %vm1736_vm1, %v1359_v26 }
 0x1d3   : > { %v965_v4 = vadd.f32 %v964_v0, %v1726_v3 }
 0x1dd   : > { %v918_v10 = vpop.f32.mrf.mxu1 }
 0x1de   : > { %v919_v27 = vadd.f32 %v918_v10, %v810_v61 }
 0x1e0   : > { %v996_v37 = vmax.f32 %v994_v33, %v919_v27 }
 0x1e3   : > { %v967_v16 = vpop.f32.mrf.mxu2 }
 0x1e4   : > { %v968_v8 = vadd.f32 %v967_v16, %v1726_v3 }
 0x1e5   : > { %v920_v12 = vpop.f32.mrf.mxu1 }
 0x1e6   : > { %v921_v28 = vadd.f32 %v920_v12, %v810_v61  ;;  %v1015_v12 = vmax.f32 %v1013_v51, %v963_v1 }
 0x1e8   : > { %v997_v38 = vmax.f32 %v995_v34, %v921_v28 }
 0x1eb   : > { %v969_v21 = vpop.f32.mrf.mxu2 }
 0x1ec   : > { %v970_v29 = vadd.f32 %v969_v21, %v1726_v3 }
 0x1ef   : > { %v923_v40 = vpop.f32.mrf.mxu1 }
 0x1f0   : > { %v924_v35 = vadd.f32 %v923_v40, %v810_v61 }
 0x1f2   : > { %v998_v44 = vmax.f32 %v996_v37, %v924_v35 }
 0x1f5   : > { %v972_v43 = vpop.f32.mrf.mxu2 }
 0x1f6   : > { %v973_v11 = vadd.f32 %v972_v43, %v1726_v3 }
 0x1f7   : > { %v925_v14 = vpop.f32.mrf.mxu1 }
 0x1f8   : > { %v926_v36 = vadd.f32 %v925_v14, %v810_v61  ;;  %v1017_v14 = vmax.f32 %v1015_v12, %v968_v8 }
 0x1fa   : > { %v999_v45 = vmax.f32 %v997_v38, %v926_v36  ;;  %v1019_v16 = vmax.f32 %v1017_v14, %v973_v11 }
 0x1fd   : > { %v974_v56 = vpop.f32.mrf.mxu2 }
 0x201   : > { %v928_v18 = vpop.f32.mrf.mxu1 }
 0x202   : > { %v929_v39 = vadd.f32 %v928_v18, %v810_v61 }
 0x204   : > { %v1000_v48 = vmax.f32 %v998_v44, %v929_v39 }
 0x207   : > { %v977_v60 = vpop.f32.mrf.mxu2 }
 0x208   : > { %v978_v0 = vadd.f32 %v977_v60, %v1726_v3 }
 0x209   : > { %v930_v31 = vpop.f32.mrf.mxu1 }
 0x20a   : > { %v931_v42 = vadd.f32 %v930_v31, %v810_v61  ;;  %v1021_v21 = vmax.f32 %v1019_v16, %v978_v0 }
 0x20c   : > { %v1001_v17 = vmax.f32 %v999_v45, %v931_v42  ;;  %v1043_v45 = vld [vmem:[#allocation2] sm:$0x3] }
 0x20f   : > { %v979_v9 = vpop.f32.mrf.mxu2 }
 0x21b   : > { %v933_v15 = vpop.f32.mrf.mxu3 }
 0x21c   : > { %v934_v46 = vadd.f32 %v933_v15, %v810_v61  ;;  %v980_v15 = vadd.f32 %v979_v9, %v1726_v3 }
 0x21e   : > { %v1002_v30 = vmax.f32 %v1000_v48, %v934_v46 }
 0x223   : > { %v935_v19 = vpop.f32.mrf.mxu3 }
 0x224   : > { %v936_v47 = vadd.f32 %v935_v19, %v810_v61 }
 0x226   : > { %v1003_v52 = vmax.f32 %v1001_v17, %v936_v47 }
 0x234   : > { %v938_v32 = vpop.f32.mrf.mxu3 }
 0x235   : > { %v939_v49 = vadd.f32 %v938_v32, %v810_v61 }
 0x237   : > { %v1004_v54 = vmax.f32 %v1002_v30, %v939_v49 }
 0x23c   : > { %v940_v50 = vpop.f32.mrf.mxu3 }
 0x23d   : > { %v941_v53 = vadd.f32 %v940_v50, %v810_v61  ;;  %v955_v61 = vadd.f32 %v1724_v62, %v1726_v3  ;;  %v975_v62 = vadd.f32 %v974_v56, %v1726_v3 }
 0x23f   : > { %v1005_v41 = vmax.f32 %v1003_v52, %v941_v53  ;;  %v1014_v5 = vmax.f32 %v955_v61, %v960_v25 }
 0x241   : > { %v1006_v55 = vmax.f32 %v1004_v54, %v1005_v41  ;;  %v1016_v40 = vmax.f32 %v1014_v5, %v965_v4 }
 0x243   : > { %v1018_v13 = vmax.f32 %v1016_v40, %v970_v29  ;;  %v1007_v7 = vrot.slane %v1006_v55, 4 }
 0x244   : > { %v982_v57 = vpop.f32.mrf.mxu3 }
 0x245   : > { %v1020_v18 = vmax.f32 %v1018_v13, %v975_v62  ;;  %v983_v19 = vadd.f32 %v982_v57, %v1726_v3  ;;  %v1008_v27 = vmax.f32 %v1006_v55, %v1007_v7 }
 0x247   : > { %v1022_v6 = vmax.f32 %v1020_v18, %v980_v15  ;;  %v1023_v23 = vmax.f32 %v1021_v21, %v983_v19  ;;  %v1009_v33 = vrot.slane %v1008_v27, 2 }
 0x249   : > { %v1010_v36 = vmax.f32 %v1008_v27, %v1009_v33 }
 0x24b   : > { %v1011_v39 = vrot.slane %v1010_v36, 1 }
 0x24c   : > { %v984_v63 = vpop.f32.mrf.mxu3 }
 0x24d   : > { %v985_v20 = vadd.f32 %v984_v63, %v1726_v3  ;;  %v1012_v44 = vmax.f32 %v1010_v36, %v1011_v39 }
 0x24f   : > { %v1024_v2 = vmax.f32 %v1022_v6, %v985_v20 }
 0x254   : > { %v987_v10 = vpop.f32.mrf.mxu3 }
 0x255   : > { %v988_v51 = vadd.f32 %v987_v10, %v1726_v3 }
 0x257   : > { %v1025_v28 = vmax.f32 %v1023_v23, %v988_v51 }
 0x25c   : > { %v989_v22 = vpop.f32.mrf.mxu3 }
 0x25d   : > { %v990_v24 = vadd.f32 %v989_v22, %v1726_v3 }
 0x25f   : > { %v1026_v31 = vmax.f32 %v1024_v2, %v990_v24 }
 0x261   : > { %v1027_v32 = vmax.f32 %v1025_v28, %v1026_v31 }
 0x263   : > { %v1028_v34 = vrot.slane %v1027_v32, 4 }
 0x265   : > { %v1029_v35 = vmax.f32 %v1027_v32, %v1028_v34 }
 0x267   : > { %v1030_v37 = vrot.slane %v1029_v35, 2 }
 0x269   : > { %v1031_v38 = vmax.f32 %v1029_v35, %v1030_v37 }
 0x26b   : > { %v1032_v42 = vrot.slane %v1031_v38, 1 }
 0x26d   : > { %v1033_v43 = vmax.f32 %v1031_v38, %v1032_v42 }
 0x26f   : > { %v1046_v46 = vrot.slane %v1033_v43, 7 }
 0x271   : > { %v1048_v47 = vsel %vm1047_vm2, %v1012_v44, %v1046_v46 }
 0x272   : > { %v1050_v3 = vmax.f32 %v1043_v45, %v1048_v47 }
 0x274   : > { %1055 = vst.msk [vmem:[#allocation2] sm:$0x3] %vm1736_vm1, %v1050_v3 }
 0x27b   : > { %v1059_v48 = vld [vmem:[#allocation2] sm:$0x3] }
 0x27c   : > { %1060 = vst.msk [vmem:[%s304_s16] sm:$0x3] %vm1736_vm1, %v1059_v48 }
 0x27d PF: > { %s17_s26 = sadd.s32 1, %s1354_s26   ;;  %s1787_s24 = smov %s1350_s25 }
 0x27e   : > { %p14_p5 = scmp.ge.s32.totalorder %s17_s26, 4   ;;  %s1788_s25 = smov %s1790_s27 }
 0x280   :  { %16 = sbr.rel (!%p14_p5) target bundleno = 2 (0x2), region = 86 }

// kernel: model_forward.10
= control target key start
LH: loop header
LB: loop body
LE: loop exit
PB: predicated region body
PF: predicated region fallthrough
CT: control target
= control target key end

     0   :  { %s1521_s24 = smov 0   ;;  %s1523_s25 = smov 0   ;;  %s2072_s0 = inlined_call_operand.vmem [shape: f32[2,128,5], index: 0, kind: input, shape index: {}]   ;;  %s2073_s1 = inlined_call_operand.vmem [shape: f32[2,1,128], index: 1, kind: input, shape index: {}]   ;;  %s2074_s2 = inlined_call_operand.vmem [shape: f32[5,128], index: 2, kind: input, shape index: {}]   ;;  %s2075_s3 = inlined_call_operand.vmem [shape: bf16[128,64], index: 3, kind: input, shape index: {}]   ;;  %s2076_s4 = inlined_call_operand.vmem [shape: f32[1,64], index: 4, kind: input, shape index: {}]   ;;  %s2077_s5 = inlined_call_operand.vmem [shape: bf16[64,3], index: 5, kind: input, shape index: {}]   ;;  %s2078_s6 = inlined_call_operand.vmem [shape: f32[1,3], index: 6, kind: input, shape index: {}]   ;;  %s2079_s7 = inlined_call_operand.vmem [shape: f32[2,128,3], index: 7, kind: output, shape index: {}]  }
   0x1   :  { %s1525_s26 = smov 0  }
   0x2 LB: > { %s29_s27 = sadd.s32 1, %s1470_s25  ;;  %p1263_p0 = scmp.ge.s32.totalorder %s1474_s26, 1  ;;  %s1474_s26 = sphi %s1525_s26, %s17_s26   ;;  %s1470_s25 = sphi %s1523_s25, %s2081_s25   ;;  %s1466_s24 = sphi %s1521_s24, %s2080_s24  }
   0x3   : > { %p31_p1 = scmp.ge.s32.totalorder %s29_s27, 2  ;;  %p266_p2 = scmp.lt.s32.totalorder %s1474_s26, 3 }
   0x5   : > { %s2083_s27 = smov (%p31_p1, %s29_s27), 0  ;;  %p267_p3 = pnand %p1263_p0, %p266_p2 }
   0x6   : > { %p310_p4 = scmp.lt.s32.totalorder (!%p267_p3), %s1466_s24, 1 }
   0x7   : > { %270 = sbr.rel (%p267_p3) target bundleno = 690 (0x2b2), region = 48 }
   0xc   : > { %v1476_v0 = vmov 1   ;;  %v1477_v1 = vmov 0   ;;  %s2085_s24 = smov (!%p310_p4, %s1466_s24), 1  ;;  %v1478_v11 = vmov 2   ;;  %v1479_v14 = vmov 4   ;;  %v1335_v46 = vld [vmem:[%s2075_s3 + $0x38] sm:$0xff] }
   0xd   : > { %1384 = vset.pattern.permute.xlu0 %v1476_v0  ;;  %1382 = vset.pattern.permute.xlu2 %v1477_v1  ;;  %s1326_s28 = sshll.u32 %s2085_s24, 7  ;;  %s321_s8 = scalar_lea.vmem %s2073_s1, %s2085_s24  ;;  %v1480_v16 = vmov 3   ;;  %v1656_v26 = vld [vmem:[%s2074_s2] sm:$0x1f]  ;;  %v1334_v48 = vld [vmem:[%s2075_s3 + $0x30] sm:$0xff]  ;;  %v1333_v51 = vld [vmem:[%s2075_s3 + $0x28] sm:$0xff] }
   0xe   : > { %1381 = vset.pattern.permute.xlu1 %v1477_v1  ;;  %s1554_s11 = scalar_lea.vmem %s2072_s0, %s1326_s28  ;;  %v1660_v27 = vperm.slane %v1656_v26, 0  ;;  %v1663_v28 = vperm.slane %v1656_v26, 1  ;;  %1340 = vmatpush.bf16.msra.mxu2 %v1335_v46  ;;  %v1332_v53 = vld [vmem:[%s2075_s3 + $0x20] sm:$0xff]  ;;  %v1331_v56 = vld [vmem:[%s2075_s3 + $0x18] sm:$0xff]  ;;  %v1330_v58 = vld [vmem:[%s2075_s3 + $0x10] sm:$0xff]  ;;  %vm1056_vm0 = vcmask 523264   ;;  %s1990_s13 = scalar_lea.vmem %s2079_s7, %s1326_s28 }
   0xf   : > { %v1557_v2 = vld [vmem:[%s1554_s11 + $0x20] sm:$0xff]  ;;  %v1560_v3 = vld [vmem:[%s1554_s11 + $0x10] sm:$0xff]  ;;  %v334_v4 = vld [vmem:[%s1554_s11 + $0x8] sm:$0xff]  ;;  %947 = vmatpush.bf16.msra.mxu0 %v1335_v46  ;;  %vm1146_vm1 = vcmask 23552  }
  0x10   : > { %372 = vperm.xlu2 %1382, %v1557_v2   ;;  %362 = vperm.xlu1 %1381, %v1560_v3   ;;  %v1566_v5 = vld [vmem:[%s1554_s11 + $0x28] sm:$0xff]  ;;  %v1569_v6 = vld [vmem:[%s1554_s11 + $0x18] sm:$0xff]  ;;  %v341_v7 = vld [vmem:[%s1554_s11 + $0x40] sm:$0xff] }
  0x11   : > { %452 = vperm.xlu0 %1384, %v334_v4   ;;  %v1576_v8 = vld [vmem:[%s1554_s11 + $0x38] sm:$0xff]  ;;  %v1584_v10 = vld [vmem:[%s1554_s11 + $0x50] sm:$0xff]  ;;  %v1591_v12 = vld [vmem:[%s1554_s11 + $0x68] sm:$0xff] }
  0x12   : > { %v1579_v9 = vld [vmem:[%s1554_s11 + $0x58] sm:$0xff]  ;;  %v1594_v13 = vld [vmem:[%s1554_s11] sm:$0xff]  ;;  %v342_v15 = vld [vmem:[%s1554_s11 + $0x48] sm:$0xff]  ;;  %1341 = vmatpush.bf16.msra.mxu2 %v1334_v48 }
  0x13   : > { %v1616_v17 = vld [vmem:[%s1554_s11 + $0x30] sm:$0xff]  ;;  %v1624_v18 = vld [vmem:[%s1554_s11 + $0x60] sm:$0xff]  ;;  %948 = vmatpush.bf16.msra.mxu0 %v1334_v48  ;;  %v1329_v61 = vld [vmem:[%s2075_s3 + $0x8] sm:$0xff] }
  0x14   : > { %v1634_v20 = vld [vmem:[%s1554_s11 + $0x70] sm:$0xff]  ;;  %v1328_v63 = vld [vmem:[%s2075_s3] sm:$0xff] }
  0x16   : > { %1342 = vmatpush.bf16.msra.mxu2 %v1333_v51 }
  0x17   : > { %949 = vmatpush.bf16.msra.mxu0 %v1333_v51 }
  0x18   : > { %377 = vperm.xlu2 %1382, %v1566_v5   ;;  %367 = vperm.xlu1 %1381, %v1569_v6  }
  0x19   : > { %456 = vperm.xlu0 %1384, %v1560_v3  }
  0x1a   : > { %1343 = vmatpush.bf16.msra.mxu2 %v1332_v53 }
  0x1b   : > { %950 = vmatpush.bf16.msra.mxu0 %v1332_v53 }
  0x1e   : > { %1344 = vmatpush.bf16.msra.mxu2 %v1331_v56 }
  0x1f   : > { %951 = vmatpush.bf16.msra.mxu0 %v1331_v56 }
  0x20   : > { %392 = vperm.xlu2 %1382, %v341_v7   ;;  %387 = vperm.xlu1 %1381, %v1576_v8  }
  0x21   : > { %492 = vperm.xlu0 %1384, %v1579_v9  }
  0x22   : > { %1345 = vmatpush.bf16.msra.mxu2 %v1330_v58 }
  0x23   : > { %952 = vmatpush.bf16.msra.mxu0 %v1330_v58 }
  0x26   : > { %1346 = vmatpush.bf16.msra.mxu2 %v1329_v61 }
  0x27   : > { %953 = vmatpush.bf16.msra.mxu0 %v1329_v61 }
  0x28   : > { %407 = vperm.xlu2 %1382, %v1579_v9   ;;  %402 = vperm.xlu1 %1381, %v1584_v10  }
  0x29   : > { %1403 = vset.pattern.permute.xlu0 %v1478_v11 }
  0x2a   : > { %585 = vperm.xlu0 %1403, %v1584_v10   ;;  %1347 = vmatpush.bf16.msra.mxu2 %v1328_v63 }
  0x2b   : > { %954 = vmatpush.bf16.msra.mxu0 %v1328_v63 }
  0x30   : > { %1383 = vset.pattern.permute.xlu2 %v1476_v0  ;;  %417 = vperm.xlu1 %1381, %v1591_v12  }
  0x31   : > { %448 = vperm.xlu2 %1383, %v1594_v13  }
  0x32   : > { %561 = vperm.xlu0 %1403, %v1557_v2  }
  0x38   : > { %1385 = vset.pattern.permute.xlu1 %v1478_v11 }
  0x39   : > { %545 = vperm.xlu1 %1385, %v1594_v13   ;;  %1386 = vset.pattern.permute.xlu2 %v1478_v11 }
  0x3a   : > { %1411 = vset.pattern.permute.xlu0 %v1479_v14  ;;  %549 = vperm.xlu2 %1386, %v334_v4  }
  0x3b   : > { %743 = vperm.xlu0 %1411, %v334_v4  }
  0x41   : > { %1387 = vset.pattern.permute.xlu1 %v1476_v0 }
  0x42   : > { %480 = vperm.xlu1 %1387, %v341_v7   ;;  %1388 = vset.pattern.permute.xlu2 %v1476_v0 }
  0x43   : > { %791 = vperm.xlu0 %1411, %v1591_v12   ;;  %484 = vperm.xlu2 %1388, %v342_v15  }
  0x4a   : > { %1389 = vset.pattern.permute.xlu1 %v1480_v16 }
  0x4b   : > { %1420 = vset.pattern.permute.xlu0 %v1477_v1  ;;  %646 = vperm.xlu1 %1389, %v334_v4  }
  0x4c   : > { %352 = vperm.xlu0 %1420, %v1594_v13   ;;  %1390 = vset.pattern.permute.xlu2 %v1478_v11 }
  0x4d   : > { %577 = vperm.xlu2 %1390, %v341_v7  }
  0x53   : > { %1391 = vset.pattern.permute.xlu1 %v1478_v11 }
  0x54   : > { %357 = vperm.xlu0 %1420, %v334_v4   ;;  %581 = vperm.xlu1 %1391, %v342_v15  }
  0x55   : > { %1392 = vset.pattern.permute.xlu2 %v1479_v14 }
  0x56   : > { %739 = vperm.xlu2 %1392, %v1594_v13  }
  0x5c   : > { %382 = vperm.xlu0 %1420, %v1616_v17   ;;  %1393 = vset.pattern.permute.xlu1 %v1480_v16 }
  0x5d   : > { %674 = vperm.xlu1 %1393, %v341_v7  }
  0x5e   : > { %1394 = vset.pattern.permute.xlu2 %v1480_v16 }
  0x5f   : > { %678 = vperm.xlu2 %1394, %v342_v15  }
  0x64   : > { %397 = vperm.xlu0 %1420, %v342_v15  }
  0x65   : > { %1395 = vset.pattern.permute.xlu1 %v1479_v14 }
  0x66   : > { %771 = vperm.xlu1 %1395, %v341_v7   ;;  %v1761_v7 = vperm.slane %v1656_v26, 2 }
  0x67   : > { %1396 = vset.pattern.permute.xlu2 %v1479_v14 }
  0x68   : > { %775 = vperm.xlu2 %1396, %v342_v15  }
  0x6a   : > { %v1626_v19 = vpop.permute.xlu2 %372 }
  0x6c   : > { %412 = vperm.xlu0 %1420, %v1624_v18  }
  0x6e   : > { %1397 = vset.pattern.permute.xlu1 %v1476_v0 }
  0x6f   : > { %460 = vperm.xlu1 %1397, %v1569_v6  }
  0x70   : > { %1398 = vset.pattern.permute.xlu2 %v1478_v11 }
  0x71   : > { %553 = vperm.xlu2 %1398, %v1560_v3  }
  0x72   : > { %v1636_v21 = vpop.permute.xlu2 %377 }
  0x74   : > { %422 = vperm.xlu0 %1420, %v1634_v20  }
  0x77   : > { %1399 = vset.pattern.permute.xlu1 %v1478_v11 }
  0x78   : > { %557 = vperm.xlu1 %1399, %v1569_v6  }
  0x79   : > { %1400 = vset.pattern.permute.xlu2 %v1476_v0 }
  0x7a   : > { %488 = vperm.xlu2 %1400, %v1584_v10   ;;  %v1643_v22 = vpop.permute.xlu2 %392 }
  0x7c   : > { %1425 = vset.pattern.permute.xlu0 %v1480_v16 }
  0x7d   : > { %642 = vperm.xlu0 %1425, %v1594_v13  }
  0x80   : > { %1401 = vset.pattern.permute.xlu1 %v1480_v16 }
  0x81   : > { %650 = vperm.xlu1 %1401, %v1560_v3  }
  0x82   : > { %1402 = vset.pattern.permute.xlu2 %v1480_v16  ;;  %v363_v23 = vpop.permute.xlu1 %362  ;;  %v408_v25 = vpop.permute.xlu2 %407 }
  0x83   : > { %v1650_v24 = vpop.permute.xlu0 %452  ;;  %654 = vperm.xlu2 %1402, %v1569_v6   ;;  %v433_v32 = vmul.f32 %v1660_v27, %v363_v23  ;;  %v442_v37 = vmul.f32 %v1660_v27, %v408_v25 }
  0x85   : > { %686 = vperm.xlu0 %1425, %v1579_v9  }
  0x89   : > { %1404 = vset.pattern.permute.xlu1 %v1478_v11 }
  0x8a   : > { %v1666_v29 = vpop.permute.xlu1 %367  ;;  %589 = vperm.xlu1 %1404, %v1579_v9  }
  0x8b   : > { %v457_v30 = vpop.permute.xlu0 %456  ;;  %1405 = vset.pattern.permute.xlu2 %v1479_v14  ;;  %v1670_v31 = vpop.permute.xlu2 %448 }
  0x8c   : > { %v514_v33 = vmul.f32 %v1663_v28, %v457_v30  ;;  %747 = vperm.xlu2 %1405, %v1560_v3   ;;  %v513_v3 = vmul.f32 %v1663_v28, %v1650_v24 }
  0x8d   : > { %662 = vperm.xlu0 %1425, %v1566_v5  }
  0x8e   : > { %v1676_v34 = vadd.f32 %v514_v33, %v433_v32  ;;  %v1781_v33 = vld [vmem:[%s1554_s11 + $0x78] sm:$0xff] }
  0x92   : > { %v1678_v35 = vpop.permute.xlu1 %387  ;;  %1406 = vset.pattern.permute.xlu1 %v1479_v14 }
  0x93   : > { %v493_v36 = vpop.permute.xlu0 %492  ;;  %751 = vperm.xlu1 %1406, %v1569_v6  }
  0x94   : > { %v523_v38 = vmul.f32 %v1663_v28, %v493_v36  ;;  %1407 = vset.pattern.permute.xlu2 %v1480_v16  ;;  %v1685_v39 = vpop.permute.xlu2 %549 }
  0x95   : > { %682 = vperm.xlu2 %1407, %v1584_v10   ;;  %690 = vperm.xlu0 %1425, %v1624_v18   ;;  %v610_v23 = vmul.f32 %v1761_v7, %v1685_v39 }
  0x96   : > { %v1689_v40 = vadd.f32 %v523_v38, %v442_v37 }
  0x9a   : > { %v1691_v41 = vpop.permute.xlu1 %402 }
  0x9b   : > { %779 = vperm.xlu1 %1406, %v1584_v10   ;;  %v1767_v10 = vperm.slane %v1656_v26, 3  ;;  %v441_v51 = vmul.f32 %v1660_v27, %v1691_v41 }
  0x9c   : > { %v1694_v42 = vpop.permute.xlu0 %585 }
  0x9d   : > { %1408 = vset.pattern.permute.xlu2 %v1479_v14  ;;  %v1697_v43 = vpop.permute.xlu2 %484  ;;  %670 = vperm.xlu0 %1425, %v1576_v8   ;;  %v619_v53 = vmul.f32 %v1761_v7, %v1694_v42 }
  0x9e   : > { %783 = vperm.xlu2 %1408, %v1579_v9   ;;  %v1764_v9 = vperm.slane %v1656_v26, 4 }
  0xa2   : > { %v1701_v44 = vpop.permute.xlu1 %417 }
  0xa3   : > { %1409 = vset.pattern.permute.xlu1 %v1476_v0 }
  0xa4   : > { %464 = vperm.xlu1 %1409, %v1557_v2   ;;  %v1705_v45 = vpop.permute.xlu0 %561 }
  0xa5   : > { %698 = vperm.xlu0 %1425, %v1634_v20  }
  0xa6   : > { %1410 = vset.pattern.permute.xlu2 %v1476_v0 }
  0xa7   : > { %468 = vperm.xlu2 %1410, %v1566_v5   ;;  %v1713_v47 = vpop.permute.xlu2 %577 }
  0xa8   : > { %v617_v46 = vmul.f32 %v1761_v7, %v1713_v47 }
  0xab   : > { %v1718_v49 = vpop.permute.xlu1 %545 }
  0xac   : > { %1412 = vset.pattern.permute.xlu1 %v1478_v11 }
  0xad   : > { %v744_v50 = vpop.permute.xlu0 %743  ;;  %565 = vperm.xlu1 %1412, %v1566_v5   ;;  %1435 = vset.pattern.permute.xlu0 %v1479_v14 }
  0xae   : > { %v804_v25 = vmul.f32 %v1764_v9, %v744_v50  ;;  %799 = vperm.xlu0 %1435, %v1781_v33  }
  0xaf   : > { %496 = vperm.xlu2 %1410, %v1624_v18  }
  0xb0   : > { %v1727_v52 = vpop.permute.xlu2 %739 }
  0xb4   : > { %v481_v54 = vpop.permute.xlu1 %480 }
  0xb5   : > { %v1732_v55 = vpop.permute.xlu0 %791  ;;  %1413 = vset.pattern.permute.xlu1 %v1476_v0  ;;  %v520_v37 = vmul.f32 %v1663_v28, %v481_v54 }
  0xb6   : > { %500 = vperm.xlu1 %1413, %v1591_v12  }
  0xb7   : > { %1414 = vset.pattern.permute.xlu2 %v1480_v16 }
  0xb8   : > { %658 = vperm.xlu2 %1414, %v1557_v2  }
  0xb9   : > { %v1741_v57 = vpop.permute.xlu2 %678 }
  0xbd   : > { %v647_v59 = vpop.permute.xlu1 %646 }
  0xbe   : > { %v1746_v60 = vpop.permute.xlu0 %352  ;;  %1415 = vset.pattern.permute.xlu1 %v1478_v11  ;;  %v707_v30 = vmul.f32 %v1767_v10, %v647_v59 }
  0xbf   : > { %593 = vperm.xlu1 %1415, %v1624_v18  }
  0xc0   : > { %1416 = vset.pattern.permute.xlu2 %v1478_v11 }
  0xc1   : > { %597 = vperm.xlu2 %1416, %v1591_v12  }
  0xc2   : > { %v776_v62 = vpop.permute.xlu2 %775 }
  0xc6   : > { %v358_v4 = vpop.permute.xlu0 %357  ;;  %v582_v6 = vpop.permute.xlu1 %581 }
  0xc7   : > { %v432_v15 = vmul.f32 %v1660_v27, %v358_v4  ;;  %1417 = vset.pattern.permute.xlu1 %v1479_v14  ;;  %v618_v61 = vmul.f32 %v1761_v7, %v582_v6 }
  0xc8   : > { %755 = vperm.xlu1 %1417, %v1557_v2  }
  0xc9   : > { %v529_v24 = vadd.f32 %v513_v3, %v432_v15  ;;  %1418 = vset.pattern.permute.xlu2 %v1479_v14  ;;  %v812_v15 = vmul.f32 %v1764_v9, %v776_v62 }
  0xca   : > { %759 = vperm.xlu2 %1418, %v1566_v5   ;;  %v439_v5 = vmul.f32 %v1660_v27, %v1643_v22 }
  0xcb   : > { %v626_v26 = vadd.f32 %v610_v23, %v529_v24  ;;  %v1778_v32 = vpop.permute.xlu2 %553  ;;  %v1821_v24 = vld [vmem:[%s321_s8] ss:$0 sm:$0xff] }
  0xcc   : > { %v536_v48 = vadd.f32 %v520_v37, %v439_v5 }
  0xcd   : > { %v723_v36 = vadd.f32 %v707_v30, %v626_v26 }
  0xce   : > { %v1784_v2 = vpop.permute.xlu0 %382  ;;  %v633_v58 = vadd.f32 %v617_v46, %v536_v48 }
  0xcf   : > { %v675_v38 = vpop.permute.xlu1 %674  ;;  %v1787_v39 = vadd.f32 %v804_v25, %v723_v36 }
  0xd0   : > { %1419 = vset.pattern.permute.xlu1 %v1480_v16  ;;  %v714_v54 = vmul.f32 %v1767_v10, %v675_v38 }
  0xd1   : > { %694 = vperm.xlu1 %1419, %v1591_v12   ;;  %v521_v12 = vmul.f32 %v1663_v28, %v1697_v43  ;;  %v715_v43 = vmul.f32 %v1767_v10, %v1741_v57 }
  0xd2   : > { %787 = vperm.xlu2 %1418, %v1624_v18   ;;  %v730_v41 = vadd.f32 %v714_v54, %v633_v58 }
  0xd4   : > { %v489_v50 = vpop.permute.xlu2 %488 }
  0xd5   : > { %v522_v56 = vmul.f32 %v1663_v28, %v489_v50  ;;  %v431_v50 = vmul.f32 %v1660_v27, %v1746_v60 }
  0xd6   : > { %v398_v22 = vpop.permute.xlu0 %397 }
  0xd7   : > { %v538_v59 = vadd.f32 %v522_v56, %v441_v51  ;;  %v440_v47 = vmul.f32 %v1660_v27, %v398_v22  ;;  %v512_v51 = vmul.f32 %v1663_v28, %v1670_v31  ;;  %v609_v22 = vmul.f32 %v1761_v7, %v1718_v49 }
  0xd8   : > { %v772_v63 = vpop.permute.xlu1 %771  ;;  %v803_v31 = vmul.f32 %v1764_v9, %v1727_v52  ;;  %v611_v52 = vmul.f32 %v1761_v7, %v1778_v32 }
  0xd9   : > { %v537_v3 = vadd.f32 %v521_v12, %v440_v47  ;;  %v811_v42 = vmul.f32 %v1764_v9, %v772_v63  ;;  %1421 = vset.pattern.permute.xlu1 %v1476_v0  ;;  %v1808_v4 = vadd.f32 %v619_v53, %v538_v59  ;;  %v528_v56 = vadd.f32 %v512_v51, %v431_v50 }
  0xda   : > { %1422 = vset.pattern.permute.xlu2 %v1476_v0  ;;  %472 = vperm.xlu1 %1421, %v1616_v17  }
  0xdb   : > { %v634_v23 = vadd.f32 %v618_v61, %v537_v3  ;;  %v827_v6 = vadd.f32 %v811_v42, %v730_v41  ;;  %476 = vperm.xlu2 %1422, %v1576_v8   ;;  %v625_v58 = vadd.f32 %v609_v22, %v528_v56  ;;  %v840_v61 = vadd.f32 %v1821_v24, %v1787_v39 }
  0xdd   : > { %v731_v25 = vadd.f32 %v715_v43, %v634_v23  ;;  %v847_v36 = vadd.f32 %v1821_v24, %v827_v6  ;;  %v655_v37 = vpop.permute.xlu2 %654  ;;  %v856_v3 = vmax.f32 %v840_v61, 0.0  ;;  %v434_v23 = vmul.f32 %v1660_v27, %v1666_v29 }
  0xde   : > { %v1823_v30 = vpop.permute.xlu0 %412  ;;  %v627_v6 = vadd.f32 %v611_v52, %v1676_v34  ;;  %v435_v52 = vmul.f32 %v1660_v27, %v1626_v19 }
  0xdf   : > { %v828_v26 = vadd.f32 %v812_v15, %v731_v25  ;;  %v863_v38 = vmax.f32 %v847_v36, 0.0 }
  0xe1   : > { %v461_v57 = vpop.permute.xlu1 %460  ;;  %v848_v62 = vadd.f32 %v1821_v24, %v828_v26 }
  0xe2   : > { %1423 = vset.pattern.permute.xlu1 %v1478_v11 }
  0xe3   : > { %1424 = vset.pattern.permute.xlu2 %v1478_v11  ;;  %569 = vperm.xlu1 %1423, %v1616_v17   ;;  %v864_v5 = vmax.f32 %v848_v62, 0.0 }
  0xe4   : > { %573 = vperm.xlu2 %1424, %v1576_v8  }
  0xe5   : > { %v875_v46 = vpack.c.bf16 %v864_v5, %v863_v38  ;;  %v709_v38 = vmul.f32 %v1767_v10, %v655_v37 }
  0xe6   : > { %v1831_v48 = vpop.permute.xlu0 %422  ;;  %v748_v54 = vpop.permute.xlu2 %747 }
  0xe7   : > { %975 = vmatmul.bf16.vlgmr.msra.gmra.mxu2 %v875_v46  ;;  %v805_v26 = vmul.f32 %v1764_v9, %v748_v54 }
  0xea   : > { %v558_v53 = vpop.permute.xlu1 %557 }
  0xeb   : > { %1426 = vset.pattern.permute.xlu1 %v1477_v1  ;;  %v612_v25 = vmul.f32 %v1761_v7, %v558_v53 }
  0xec   : > { %1427 = vset.pattern.permute.xlu2 %v1476_v0  ;;  %427 = vperm.xlu1 %1426, %v1781_v33  }
  0xed   : > { %504 = vperm.xlu2 %1427, %v1634_v20  }
  0xef   : > { %v643_v12 = vpop.permute.xlu0 %642  ;;  %v683_v63 = vpop.permute.xlu2 %682 }
  0xf0   : > { %v706_v60 = vmul.f32 %v1767_v10, %v643_v12  ;;  %v716_v22 = vmul.f32 %v1767_v10, %v683_v63 }
  0xf2   : > { %v722_v59 = vadd.f32 %v706_v60, %v625_v58 }
  0xf3   : > { %v651_v47 = vpop.permute.xlu1 %650 }
  0xf4   : > { %v819_v1 = vadd.f32 %v803_v31, %v722_v59  ;;  %1428 = vset.pattern.permute.xlu1 %v1476_v0  ;;  %v515_v0 = vmul.f32 %v1663_v28, %v461_v57  ;;  %v708_v43 = vmul.f32 %v1767_v10, %v651_v47 }
  0xf5   : > { %1429 = vset.pattern.permute.xlu2 %v1480_v16  ;;  %508 = vperm.xlu1 %1428, %v1781_v33  }
  0xf6   : > { %666 = vperm.xlu2 %1429, %v1616_v17   ;;  %v839_v49 = vadd.f32 %v1821_v24, %v819_v1  ;;  %v531_v32 = vadd.f32 %v515_v0, %v434_v23  ;;  %v724_v36 = vadd.f32 %v708_v43, %v627_v6 }
  0xf7   : > { %v687_v62 = vpop.permute.xlu0 %686 }
  0xf8   : > { %v855_v41 = vmax.f32 %v839_v49, 0.0  ;;  %v784_v15 = vpop.permute.xlu2 %783  ;;  %v628_v29 = vadd.f32 %v612_v25, %v531_v32  ;;  %v821_v5 = vadd.f32 %v805_v26, %v724_v36  ;;  %v717_v46 = vmul.f32 %v1767_v10, %v687_v62 }
  0xf9   : > { %v814_v54 = vmul.f32 %v1764_v9, %v784_v15  ;;  %v436_v25 = vmul.f32 %v1660_v27, %v1636_v21 }
  0xfa   : > { %v871_v42 = vpack.c.bf16 %v856_v3, %v855_v41  ;;  %v725_v50 = vadd.f32 %v709_v38, %v628_v29 }
  0xfc   : > { %955 = vmatmul.bf16.vlgmr.msra.gmra.mxu0 %v871_v42  ;;  %v590_v39 = vpop.permute.xlu1 %589 }
  0xfd   : > { %1430 = vset.pattern.permute.xlu1 %v1478_v11  ;;  %v620_v57 = vmul.f32 %v1761_v7, %v590_v39 }
  0xfe   : > { %1431 = vset.pattern.permute.xlu2 %v1478_v11  ;;  %601 = vperm.xlu1 %1430, %v1634_v20  }
  0xff   : > { %605 = vperm.xlu2 %1431, %v1781_v33   ;;  %v636_v34 = vadd.f32 %v620_v57, %v1689_v40  ;;  %v841_v40 = vadd.f32 %v1821_v24, %v821_v5  ;;  %v663_v26 = vpop.permute.xlu0 %662  ;;  %v443_v5 = vmul.f32 %v1660_v27, %v1823_v30 }
 0x100   : > { %v711_v62 = vmul.f32 %v1767_v10, %v663_v26 }
 0x101   : > { %v469_v53 = vpop.permute.xlu2 %468  ;;  %v733_v37 = vadd.f32 %v717_v46, %v636_v34  ;;  %v857_v60 = vmax.f32 %v841_v40, 0.0 }
 0x102   : > { %v517_v6 = vmul.f32 %v1663_v28, %v469_v53 }
 0x103   : > { %v830_v58 = vadd.f32 %v814_v54, %v733_v37 }
 0x104   : > { %v533_v36 = vadd.f32 %v517_v6, %v436_v25 }
 0x105   : > { %v752_v11 = vpop.permute.xlu1 %751 }
 0x106   : > { %v806_v51 = vmul.f32 %v1764_v9, %v752_v11  ;;  %1432 = vset.pattern.permute.xlu1 %v1479_v14 }
 0x107   : > { %1433 = vset.pattern.permute.xlu2 %v1479_v14  ;;  %763 = vperm.xlu1 %1432, %v1616_v17   ;;  %v732_v14 = vadd.f32 %v716_v22, %v1808_v4 }
 0x108   : > { %v822_v56 = vadd.f32 %v806_v51, %v725_v50  ;;  %767 = vperm.xlu2 %1433, %v1576_v8   ;;  %v850_v8 = vadd.f32 %v1821_v24, %v830_v58  ;;  %v691_v51 = vpop.permute.xlu0 %690 }
 0x109   : > { %v497_v1 = vpop.permute.xlu2 %496 }
 0x10a   : > { %v842_v12 = vadd.f32 %v1821_v24, %v822_v56  ;;  %v866_v41 = vmax.f32 %v850_v8, 0.0  ;;  %v524_v34 = vmul.f32 %v1663_v28, %v497_v1 }
 0x10c   : > { %v858_v31 = vmax.f32 %v842_v12, 0.0  ;;  %v540_v53 = vadd.f32 %v524_v34, %v443_v5  ;;  %v718_v12 = vmul.f32 %v1767_v10, %v691_v51  ;;  %v1932_v5 = vld [vmem:[%s2076_s4] ss:$0 sm:$0xff]  ;;  %v438_v34 = vmul.f32 %v1660_v27, %v1678_v35 }
 0x10d   : > { %v780_v59 = vpop.permute.xlu1 %779 }
 0x10e   : > { %v813_v17 = vmul.f32 %v1764_v9, %v780_v59  ;;  %v872_v47 = vpack.c.bf16 %v858_v31, %v857_v60  ;;  %v444_v60 = vmul.f32 %v1660_v27, %v1701_v44  ;;  %v816_v44 = vmul.f32 %v1764_v9, %v1732_v55  ;;  %v1338_v55 = vld [vmem:[%s2077_s5 + $0x10] sm:$0xff] }
 0x10f   : > { %1434 = vset.pattern.permute.xlu1 %v1480_v16  ;;  %v613_v16 = vmul.f32 %v1761_v7, %v1705_v45 }
 0x110   : > { %v829_v61 = vadd.f32 %v813_v17, %v732_v14  ;;  %702 = vperm.xlu1 %1434, %v1781_v33   ;;  %960 = vmatmul.bf16.gmra.mxu0 %v872_v47 }
 0x111   : > { %795 = vperm.xlu2 %1433, %v1634_v20  }
 0x112   : > { %v849_v63 = vadd.f32 %v1821_v24, %v829_v61  ;;  %v659_v0 = vpop.permute.xlu2 %658 }
 0x113   : > { %v710_v46 = vmul.f32 %v1767_v10, %v659_v0 }
 0x114   : > { %v865_v49 = vmax.f32 %v849_v63, 0.0 }
 0x116   : > { %v465_v3 = vpop.permute.xlu1 %464  ;;  %v876_v4 = vpack.c.bf16 %v866_v41, %v865_v49 }
 0x117   : > { %v516_v42 = vmul.f32 %v1663_v28, %v465_v3 }
 0x118   : > { %980 = vmatmul.bf16.gmra.mxu2 %v876_v4 }
 0x119   : > { %v532_v43 = vadd.f32 %v516_v42, %v435_v52 }
 0x11b   : > { %v629_v39 = vadd.f32 %v613_v16, %v532_v43  ;;  %v598_v20 = vpop.permute.xlu2 %597 }
 0x11c   : > { %v622_v59 = vmul.f32 %v1761_v7, %v598_v20 }
 0x11d   : > { %v726_v37 = vadd.f32 %v710_v46, %v629_v39 }
 0x11f   : > { %v566_v15 = vpop.permute.xlu1 %565 }
 0x120   : > { %v614_v32 = vmul.f32 %v1761_v7, %v566_v15 }
 0x122   : > { %v630_v57 = vadd.f32 %v614_v32, %v533_v36  ;;  %v1339_v32 = vld [vmem:[%s2077_s5 + $0x18] sm:$0xff]  ;;  %v1337_v36 = vld [vmem:[%s2077_s5 + $0x8] sm:$0xff] }
 0x123   : > { %1085 = vmatpush.bf16.msra.mxu1 %v1339_v32  ;;  %1348 = vmatpush.bf16.msra.mxu3 %v1339_v32 }
 0x124   : > { %v760_v19 = vpop.permute.xlu2 %759  ;;  %v727_v38 = vadd.f32 %v711_v62, %v630_v57  ;;  %v1336_v57 = vld [vmem:[%s2077_s5] sm:$0xff] }
 0x125   : > { %v808_v29 = vmul.f32 %v1764_v9, %v760_v19 }
 0x127   : > { %v824_v50 = vadd.f32 %v808_v29, %v727_v38  ;;  %1086 = vmatpush.bf16.msra.mxu1 %v1338_v55  ;;  %1349 = vmatpush.bf16.msra.mxu3 %v1338_v55 }
 0x128   : > { %v501_v23 = vpop.permute.xlu1 %500 }
 0x129   : > { %v525_v40 = vmul.f32 %v1663_v28, %v501_v23  ;;  %v844_v58 = vadd.f32 %v1821_v24, %v824_v50 }
 0x12b   : > { %v541_v14 = vadd.f32 %v525_v40, %v444_v60  ;;  %v860_v8 = vmax.f32 %v844_v58, 0.0  ;;  %1087 = vmatpush.bf16.msra.mxu1 %v1337_v36  ;;  %1350 = vmatpush.bf16.msra.mxu3 %v1337_v36 }
 0x12c   : > { %v788_v21 = vpop.permute.xlu2 %787 }
 0x12d   : > { %v815_v17 = vmul.f32 %v1764_v9, %v788_v21  ;;  %v638_v3 = vadd.f32 %v622_v59, %v541_v14  ;;  %v671_v21 = vpop.permute.xlu0 %670 }
 0x12e   : > { %v713_v40 = vmul.f32 %v1767_v10, %v671_v21 }
 0x12f   : > { %1088 = vmatpush.bf16.msra.mxu1 %v1336_v57  ;;  %1351 = vmatpush.bf16.msra.mxu3 %v1336_v57 }
 0x131   : > { %v594_v45 = vpop.permute.xlu1 %593 }
 0x132   : > { %v621_v11 = vmul.f32 %v1761_v7, %v594_v45 }
 0x134   : > { %v637_v22 = vadd.f32 %v621_v11, %v540_v53 }
 0x135   : > { %v477_v1 = vpop.permute.xlu2 %476 }
 0x136   : > { %v734_v47 = vadd.f32 %v718_v12, %v637_v22  ;;  %v519_v29 = vmul.f32 %v1663_v28, %v477_v1 }
 0x138   : > { %v831_v41 = vadd.f32 %v815_v17, %v734_v47  ;;  %v535_v11 = vadd.f32 %v519_v29, %v438_v34 }
 0x13a   : > { %v756_v54 = vpop.permute.xlu1 %755  ;;  %v851_v16 = vadd.f32 %v1821_v24, %v831_v41 }
 0x13b   : > { %v807_v56 = vmul.f32 %v1764_v9, %v756_v54 }
 0x13c   : > { %v867_v15 = vmax.f32 %v851_v16, 0.0 }
 0x13d   : > { %v823_v30 = vadd.f32 %v807_v56, %v726_v37  ;;  %v437_v37 = vmul.f32 %v1660_v27, %v1784_v2  ;;  %v445_v2 = vmul.f32 %v1660_v27, %v1831_v48 }
 0x13e   : > { %v574_v43 = vpop.permute.xlu2 %573 }
 0x13f   : > { %v843_v31 = vadd.f32 %v1821_v24, %v823_v30  ;;  %v616_v46 = vmul.f32 %v1761_v7, %v574_v43 }
 0x141   : > { %v859_v61 = vmax.f32 %v843_v31, 0.0  ;;  %v632_v56 = vadd.f32 %v616_v46, %v535_v11 }
 0x143   : > { %v695_v63 = vpop.permute.xlu1 %694  ;;  %v873_v49 = vpack.c.bf16 %v860_v8, %v859_v61  ;;  %v729_v14 = vadd.f32 %v713_v40, %v632_v56  ;;  %v699_v8 = vpop.permute.xlu0 %698 }
 0x144   : > { %v719_v4 = vmul.f32 %v1767_v10, %v695_v63  ;;  %v720_v48 = vmul.f32 %v1767_v10, %v699_v8 }
 0x145   : > { %965 = vmatmul.bf16.gmra.mxu0 %v873_v49 }
 0x146   : > { %v735_v52 = vadd.f32 %v719_v4, %v638_v3 }
 0x147   : > { %v505_v6 = vpop.permute.xlu2 %504 }
 0x148   : > { %v832_v42 = vadd.f32 %v816_v44, %v735_v52  ;;  %v526_v60 = vmul.f32 %v1663_v28, %v505_v6 }
 0x14a   : > { %v852_v0 = vadd.f32 %v1821_v24, %v832_v42  ;;  %v542_v49 = vadd.f32 %v526_v60, %v445_v2 }
 0x14c   : > { %v473_v39 = vpop.permute.xlu1 %472  ;;  %v868_v20 = vmax.f32 %v852_v0, 0.0 }
 0x14d   : > { %v518_v50 = vmul.f32 %v1663_v28, %v473_v39 }
 0x14e   : > { %v877_v23 = vpack.c.bf16 %v868_v20, %v867_v15 }
 0x14f   : > { %v534_v30 = vadd.f32 %v518_v50, %v437_v37 }
 0x150   : > { %985 = vmatmul.bf16.gmra.mxu2 %v877_v23  ;;  %v667_v19 = vpop.permute.xlu2 %666 }
 0x151   : > { %v712_v17 = vmul.f32 %v1767_v10, %v667_v19 }
 0x155   : > { %v570_v25 = vpop.permute.xlu1 %569 }
 0x156   : > { %v615_v22 = vmul.f32 %v1761_v7, %v570_v25 }
 0x158   : > { %v631_v47 = vadd.f32 %v615_v22, %v534_v30 }
 0x159   : > { %v606_v62 = vpop.permute.xlu2 %605 }
 0x15a   : > { %v728_v4 = vadd.f32 %v712_v17, %v631_v47  ;;  %v624_v20 = vmul.f32 %v1761_v7, %v606_v62 }
 0x15e   : > { %v428_v26 = vpop.permute.xlu1 %427 }
 0x15f   : > { %v446_v39 = vmul.f32 %v1660_v27, %v428_v26 }
 0x162   : > { %v768_v53 = vpop.permute.xlu2 %767 }
 0x163   : > { %v810_v58 = vmul.f32 %v1764_v9, %v768_v53 }
 0x165   : > { %v826_v63 = vadd.f32 %v810_v58, %v729_v14 }
 0x167   : > { %v509_v45 = vpop.permute.xlu1 %508  ;;  %v846_v43 = vadd.f32 %v1821_v24, %v826_v63 }
 0x168   : > { %v527_v52 = vmul.f32 %v1663_v28, %v509_v45  ;;  %v800_v28 = vpop.permute.xlu0 %799 }
 0x169   : > { %v862_v19 = vmax.f32 %v846_v43, 0.0  ;;  %v1982_v43 = vld [vmem:[%s2078_s6] ss:$0 sm:$0xff] }
 0x16a   : > { %v976_v38 = vpop.f32.mrf.mxu2  ;;  %v543_v23 = vadd.f32 %v527_v52, %v446_v39 }
 0x16b   : > { %v977_v54 = vadd.f32 %v1932_v5, %v976_v38  ;;  %v796_v16 = vpop.permute.xlu2 %795 }
 0x16c   : > { %v817_v25 = vmul.f32 %v1764_v9, %v796_v16  ;;  %v640_v27 = vadd.f32 %v624_v20, %v543_v23 }
 0x16d   : > { %v1004_v31 = vmax.f32 %v977_v54, 0.0 }
 0x170   : > { %v602_v51 = vpop.permute.xlu1 %601 }
 0x171   : > { %v623_v1 = vmul.f32 %v1761_v7, %v602_v51  ;;  %v818_v7 = vmul.f32 %v1764_v9, %v800_v28 }
 0x172   : > { %v978_v12 = vpop.f32.mrf.mxu2 }
 0x173   : > { %v979_v35 = vadd.f32 %v1932_v5, %v978_v12  ;;  %v639_v42 = vadd.f32 %v623_v1, %v542_v49 }
 0x175   : > { %v1005_v59 = vmax.f32 %v979_v35, 0.0  ;;  %v736_v6 = vadd.f32 %v720_v48, %v639_v42 }
 0x177   : > { %v1950_v61 = vpack.c.bf16 %v1005_v59, %v1004_v31  ;;  %v833_v29 = vadd.f32 %v817_v25, %v736_v6 }
 0x179   : > { %v956_v41 = vpop.f32.mrf.mxu0  ;;  %v764_v3 = vpop.permute.xlu1 %763  ;;  %v853_v50 = vadd.f32 %v1821_v24, %v833_v29 }
 0x17a   : > { %v809_v44 = vmul.f32 %v1764_v9, %v764_v3  ;;  %v957_v32 = vadd.f32 %v1932_v5, %v956_v41 }
 0x17b   : > { %v869_v53 = vmax.f32 %v853_v50, 0.0 }
 0x17c   : > { %v825_v0 = vadd.f32 %v809_v44, %v728_v4  ;;  %v996_v62 = vmax.f32 %v957_v32, 0.0 }
 0x17e   : > { %v845_v15 = vadd.f32 %v1821_v24, %v825_v0 }
 0x180   : > { %v861_v55 = vmax.f32 %v845_v15, 0.0 }
 0x181   : > { %v958_v36 = vpop.f32.mrf.mxu0 }
 0x182   : > { %v959_v57 = vadd.f32 %v1932_v5, %v958_v36  ;;  %v703_v45 = vpop.permute.xlu1 %702  ;;  %v874_v38 = vpack.c.bf16 %v862_v19, %v861_v55  ;;  %v1439_v36 = vld [vmem:[%s1554_s11 + $0x8] sm:$0xff] }
 0x183   : > { %v721_v26 = vmul.f32 %v1767_v10, %v703_v45 }
 0x184   : > { %v997_v34 = vmax.f32 %v959_v57, 0.0  ;;  %970 = vmatmul.bf16.gmra.mxu0 %v874_v38 }
 0x185   : > { %v737_v46 = vadd.f32 %v721_v26, %v640_v27 }
 0x186   : > { %v1012_v21 = vpack.c.bf16 %v997_v34, %v996_v62 }
 0x187   : > { %v834_v11 = vadd.f32 %v818_v7, %v737_v46  ;;  %v1440_v7 = vld [vmem:[%s1554_s11 + $0x10] sm:$0xff] }
 0x188   : > { %1316 = vmatmul.msk.bf16.vlgmr.msra.gmra.mxu1 %vm1056_vm0, %v1012_v21 }
 0x189   : > { %v854_v51 = vadd.f32 %v1821_v24, %v834_v11 }
 0x18b   : > { %v870_v54 = vmax.f32 %v854_v51, 0.0 }
 0x18d   : > { %v961_v37 = vpop.f32.mrf.mxu0  ;;  %v878_v56 = vpack.c.bf16 %v870_v54, %v869_v53 }
 0x18e   : > { %v962_v9 = vadd.f32 %v1932_v5, %v961_v37  ;;  %v1442_v37 = vld [vmem:[%s1554_s11 + $0x50] sm:$0xff] }
 0x18f   : > { %990 = vmatmul.bf16.gmra.mxu2 %v878_v56 }
 0x190   : > { %v998_v22 = vmax.f32 %v962_v9, 0.0 }
 0x195   : > { %v963_v10 = vpop.f32.mrf.mxu0 }
 0x196   : > { %v964_v40 = vadd.f32 %v1932_v5, %v963_v10  ;;  %v1443_v10 = vld [vmem:[%s1554_s11 + $0x58] sm:$0xff] }
 0x198   : > { %v999_v12 = vmax.f32 %v964_v40, 0.0 }
 0x19a   : > { %v1013_v35 = vpack.c.bf16 %v999_v12, %v998_v22 }
 0x19b   : > { %v981_v30 = vpop.f32.mrf.mxu2 }
 0x19c   : > { %1317 = vmatmul.msk.bf16.gmra.mxu1 %vm1056_vm0, %v1013_v35  ;;  %v982_v58 = vadd.f32 %v1932_v5, %v981_v30  ;;  %v1444_v35 = vld [vmem:[%s1554_s11 + $0x20] sm:$0xff] }
 0x19e   : > { %v1006_v31 = vmax.f32 %v982_v58, 0.0 }
 0x1a3   : > { %v983_v60 = vpop.f32.mrf.mxu2 }
 0x1a4   : > { %v984_v24 = vadd.f32 %v1932_v5, %v983_v60 }
 0x1a6   : > { %v1007_v59 = vmax.f32 %v984_v24, 0.0  ;;  %v1445_v24 = vld [vmem:[%s1554_s11 + $0x28] sm:$0xff] }
 0x1a8   : > { %v1017_v14 = vpack.c.bf16 %v1007_v59, %v1006_v31 }
 0x1aa   : > { %1321 = vmatmul.msk.bf16.vlgmr.msra.gmra.mxu3 %vm1056_vm0, %v1017_v14 }
 0x1c2   : > { %v966_v17 = vpop.f32.mrf.mxu0 }
 0x1c3   : > { %v967_v47 = vadd.f32 %v1932_v5, %v966_v17 }
 0x1c5   : > { %v1000_v8 = vmax.f32 %v967_v47, 0.0 }
 0x1ca   : > { %v968_v2 = vpop.f32.mrf.mxu0 }
 0x1cb   : > { %v969_v1 = vadd.f32 %v1932_v5, %v968_v2 }
 0x1cd   : > { %v1001_v63 = vmax.f32 %v969_v1, 0.0  ;;  %v1446_v1 = vld [vmem:[%s1554_s11 + $0x68] sm:$0xff] }
 0x1cf   : > { %v1014_v49 = vpack.c.bf16 %v1001_v63, %v1000_v8 }
 0x1d1   : > { %1318 = vmatmul.msk.bf16.gmra.mxu1 %vm1056_vm0, %v1014_v49 }
 0x1d3   : > { %v986_v41 = vpop.f32.mrf.mxu2 }
 0x1d4   : > { %v987_v3 = vadd.f32 %v1932_v5, %v986_v41  ;;  %v1447_v41 = vld [vmem:[%s1554_s11 + $0x30] sm:$0xff] }
 0x1d6   : > { %v1008_v52 = vmax.f32 %v987_v3, 0.0 }
 0x1db   : > { %v988_v4 = vpop.f32.mrf.mxu2 }
 0x1dc   : > { %v989_v44 = vadd.f32 %v1932_v5, %v988_v4 }
 0x1de   : > { %v1009_v42 = vmax.f32 %v989_v44, 0.0  ;;  %v1448_v44 = vld [vmem:[%s1554_s11 + $0x38] sm:$0xff] }
 0x1e0   : > { %v1018_v16 = vpack.c.bf16 %v1009_v42, %v1008_v52 }
 0x1e2   : > { %1322 = vmatmul.msk.bf16.gmra.mxu3 %vm1056_vm0, %v1018_v16 }
 0x201   : > { %v971_v0 = vpop.f32.mrf.mxu0 }
 0x202   : > { %v972_v15 = vadd.f32 %v1932_v5, %v971_v0  ;;  %v1449_v0 = vld [vmem:[%s1554_s11 + $0x40] sm:$0xff] }
 0x204   : > { %v1002_v25 = vmax.f32 %v972_v15, 0.0 }
 0x205   : > { %v1090_v48 = vpop.f32.mrf.mxu1 }
 0x206   : > { %v1091_v39 = vadd.f32 %v1982_v43, %v1090_v48 }
 0x208   : > { %v1130_v20 = vadd.f32 %v1091_v39, %v1594_v13 }
 0x209   : > { %v973_v23 = vpop.f32.mrf.mxu0 }
 0x20a   : > { %1147 = vst.msk [vmem:[%s1990_s13] sm:$0xff] %vm1146_vm1, %v1130_v20  ;;  %v974_v6 = vadd.f32 %v1932_v5, %v973_v23 }
 0x20c   : > { %v1003_v32 = vmax.f32 %v974_v6, 0.0  ;;  %v1450_v6 = vld [vmem:[%s1554_s11 + $0x70] sm:$0xff] }
 0x20d   : > { %v1092_v28 = vpop.f32.mrf.mxu1 }
 0x20e   : > { %v1015_v55 = vpack.c.bf16 %v1003_v32, %v1002_v25  ;;  %v1093_v19 = vadd.f32 %v1982_v43, %v1092_v28  ;;  %v1451_v32 = vld [vmem:[%s1554_s11 + $0x48] sm:$0xff] }
 0x210   : > { %v1131_v57 = vadd.f32 %v1439_v36, %v1093_v19  ;;  %1319 = vmatmul.msk.bf16.gmra.mxu1 %vm1056_vm0, %v1015_v55 }
 0x212   : > { %1148 = vst.msk [vmem:[%s1990_s13 + $0x8] sm:$0xff] %vm1146_vm1, %v1131_v57  ;;  %v991_v13 = vpop.f32.mrf.mxu2 }
 0x213   : > { %v992_v45 = vadd.f32 %v1932_v5, %v991_v13 }
 0x215   : > { %v1010_v34 = vmax.f32 %v992_v45, 0.0 }
 0x219   : > { %v1095_v38 = vpop.f32.mrf.mxu1 }
 0x21a   : > { %v1096_v29 = vadd.f32 %v1982_v43, %v1095_v38  ;;  %v993_v27 = vpop.f32.mrf.mxu2 }
 0x21b   : > { %v994_v26 = vadd.f32 %v1932_v5, %v993_v27  ;;  %v1441_v5 = vld [vmem:[%s1554_s11 + $0x18] sm:$0xff] }
 0x21c   : > { %v1132_v62 = vadd.f32 %v1440_v7, %v1096_v29 }
 0x21d   : > { %v1011_v46 = vmax.f32 %v994_v26, 0.0 }
 0x21e   : > { %1149 = vst.msk [vmem:[%s1990_s13 + $0x10] sm:$0xff] %vm1146_vm1, %v1132_v62 }
 0x21f   : > { %v1019_v21 = vpack.c.bf16 %v1011_v46, %v1010_v34 }
 0x220   : > { %1320 = vmatmul.msk.bf16.gmra.mxu1 %vm1056_vm0, %v1950_v61 }
 0x221   : > { %v1097_v11 = vpop.f32.mrf.mxu1  ;;  %1323 = vmatmul.msk.bf16.gmra.mxu3 %vm1056_vm0, %v1019_v21 }
 0x222   : > { %v1098_v50 = vadd.f32 %v1982_v43, %v1097_v11 }
 0x224   : > { %v1133_v51 = vadd.f32 %v1441_v5, %v1098_v50 }
 0x226   : > { %1150 = vst.msk [vmem:[%s1990_s13 + $0x18] sm:$0xff] %vm1146_vm1, %v1133_v51 }
 0x22d   : > { %v1115_v53 = vpop.f32.mrf.mxu3 }
 0x22e   : > { %v1116_v54 = vadd.f32 %v1982_v43, %v1115_v53 }
 0x230   : > { %v1140_v56 = vadd.f32 %v1442_v37, %v1116_v54 }
 0x232   : > { %1157 = vst.msk [vmem:[%s1990_s13 + $0x50] sm:$0xff] %vm1146_vm1, %v1140_v56 }
 0x235   : > { %v1117_v61 = vpop.f32.mrf.mxu3 }
 0x236   : > { %v1118_v9 = vadd.f32 %v1982_v43, %v1117_v61 }
 0x238   : > { %v1141_v40 = vadd.f32 %v1443_v10, %v1118_v9 }
 0x23a   : > { %1158 = vst.msk [vmem:[%s1990_s13 + $0x58] sm:$0xff] %vm1146_vm1, %v1141_v40 }
 0x24e   : > { %v1100_v22 = vpop.f32.mrf.mxu1 }
 0x24f   : > { %v1101_v12 = vadd.f32 %v1982_v43, %v1100_v22 }
 0x251   : > { %v1134_v30 = vadd.f32 %v1444_v35, %v1101_v12 }
 0x253   : > { %1151 = vst.msk [vmem:[%s1990_s13 + $0x20] sm:$0xff] %vm1146_vm1, %v1134_v30 }
 0x256   : > { %v1102_v58 = vpop.f32.mrf.mxu1 }
 0x257   : > { %v1103_v60 = vadd.f32 %v1982_v43, %v1102_v58 }
 0x259   : > { %v1135_v31 = vadd.f32 %v1445_v24, %v1103_v60 }
 0x25b   : > { %1152 = vst.msk [vmem:[%s1990_s13 + $0x28] sm:$0xff] %vm1146_vm1, %v1135_v31 }
 0x265   : > { %v1120_v59 = vpop.f32.mrf.mxu3 }
 0x266   : > { %v1121_v14 = vadd.f32 %v1982_v43, %v1120_v59 }
 0x268   : > { %v1142_v17 = vadd.f32 %v1121_v14, %v1624_v18 }
 0x26a   : > { %1159 = vst.msk [vmem:[%s1990_s13 + $0x60] sm:$0xff] %vm1146_vm1, %v1142_v17 }
 0x26d   : > { %v1122_v47 = vpop.f32.mrf.mxu3 }
 0x26e   : > { %v1123_v2 = vadd.f32 %v1982_v43, %v1122_v47 }
 0x270   : > { %v1143_v8 = vadd.f32 %v1446_v1, %v1123_v2 }
 0x272   : > { %1160 = vst.msk [vmem:[%s1990_s13 + $0x68] sm:$0xff] %vm1146_vm1, %v1143_v8 }
 0x28d   : > { %v1105_v63 = vpop.f32.mrf.mxu1 }
 0x28e   : > { %v1106_v49 = vadd.f32 %v1982_v43, %v1105_v63 }
 0x290   : > { %v1136_v3 = vadd.f32 %v1447_v41, %v1106_v49 }
 0x292   : > { %1153 = vst.msk [vmem:[%s1990_s13 + $0x30] sm:$0xff] %vm1146_vm1, %v1136_v3 }
 0x295   : > { %v1107_v18 = vpop.f32.mrf.mxu1 }
 0x296   : > { %v1108_v4 = vadd.f32 %v1982_v43, %v1107_v18 }
 0x298   : > { %v1137_v52 = vadd.f32 %v1448_v44, %v1108_v4 }
 0x29a   : > { %1154 = vst.msk [vmem:[%s1990_s13 + $0x38] sm:$0xff] %vm1146_vm1, %v1137_v52 }
 0x29d   : > { %v1110_v42 = vpop.f32.mrf.mxu1 }
 0x29e   : > { %v1111_v16 = vadd.f32 %v1982_v43, %v1110_v42 }
 0x2a0   : > { %v1138_v48 = vadd.f32 %v1449_v0, %v1111_v16 }
 0x2a2   : > { %1155 = vst.msk [vmem:[%s1990_s13 + $0x40] sm:$0xff] %vm1146_vm1, %v1138_v48 }
 0x2a4   : > { %v1125_v39 = vpop.f32.mrf.mxu3 }
 0x2a5   : > { %v1126_v15 = vadd.f32 %v1982_v43, %v1125_v39  ;;  %v1112_v20 = vpop.f32.mrf.mxu1 }
 0x2a6   : > { %v1113_v23 = vadd.f32 %v1982_v43, %v1112_v20 }
 0x2a7   : > { %v1144_v25 = vadd.f32 %v1450_v6, %v1126_v15 }
 0x2a8   : > { %v1139_v28 = vadd.f32 %v1451_v32, %v1113_v23 }
 0x2a9   : > { %1161 = vst.msk [vmem:[%s1990_s13 + $0x70] sm:$0xff] %vm1146_vm1, %v1144_v25 }
 0x2aa   : > { %1156 = vst.msk [vmem:[%s1990_s13 + $0x48] sm:$0xff] %vm1146_vm1, %v1139_v28 }
 0x2ac   : > { %v1127_v55 = vpop.f32.mrf.mxu3 }
 0x2ad   : > { %v1128_v19 = vadd.f32 %v1982_v43, %v1127_v55 }
 0x2af   : > { %v1145_v36 = vadd.f32 %v1128_v19, %v1781_v33 }
 0x2b1   : > { %1162 = vst.msk [vmem:[%s1990_s13 + $0x78] sm:$0xff] %vm1146_vm1, %v1145_v36 }
 0x2b2 PF: > { %s17_s26 = sadd.s32 1, %s1474_s26   ;;  %s2080_s24 = smov %s1470_s25 }
 0x2b3   : > { %p14_p5 = scmp.ge.s32.totalorder %s17_s26, 4   ;;  %s2081_s25 = smov %s2083_s27 }
 0x2b5   :  { %16 = sbr.rel (!%p14_p5) target bundleno = 2 (0x2), region = 81 }

// kernel: model_forward.12
= control target key start
LH: loop header
LB: loop body
LE: loop exit
PB: predicated region body
PF: predicated region fallthrough
CT: control target
= control target key end

     0   :  { %s2255_s24 = smov 0   ;;  %s2257_s25 = smov 0   ;;  %s3356_s0 = inlined_call_operand.vmem [shape: f32[2,256,5], index: 0, kind: input, shape index: {}]   ;;  %s3357_s1 = inlined_call_operand.vmem [shape: f32[2,1,128], index: 1, kind: input, shape index: {}]   ;;  %s3358_s2 = inlined_call_operand.vmem [shape: f32[5,128], index: 2, kind: input, shape index: {}]   ;;  %s3359_s3 = inlined_call_operand.vmem [shape: bf16[128,64], index: 3, kind: input, shape index: {}]   ;;  %s3360_s4 = inlined_call_operand.vmem [shape: f32[1,64], index: 4, kind: input, shape index: {}]   ;;  %s3361_s5 = inlined_call_operand.vmem [shape: bf16[64,3], index: 5, kind: input, shape index: {}]   ;;  %s3362_s6 = inlined_call_operand.vmem [shape: f32[1,3], index: 6, kind: input, shape index: {}]   ;;  %s3363_s7 = inlined_call_operand.vmem [shape: f32[2,256,3], index: 7, kind: output, shape index: {}]  }
   0x1   :  { %s2259_s26 = smov 0  }
   0x2 LB: > { %s29_s27 = sadd.s32 1, %s2204_s25  ;;  %p1959_p0 = scmp.ge.s32.totalorder %s2208_s26, 1  ;;  %s2208_s26 = sphi %s2259_s26, %s17_s26   ;;  %s2204_s25 = sphi %s2257_s25, %s3432_s25   ;;  %s2200_s24 = sphi %s2255_s24, %s3431_s24  }
   0x3   : > { %p31_p1 = scmp.ge.s32.totalorder %s29_s27, 2  ;;  %p266_p2 = scmp.lt.s32.totalorder %s2208_s26, 3 }
   0x5   : > { %s3434_s27 = smov (%p31_p1, %s29_s27), 0  ;;  %p267_p3 = pnand %p1959_p0, %p266_p2 }
   0x7   : > { %270 = sbr.rel (%p267_p3) target bundleno = 914 (0x392), region = 48 }
   0xc   : > { %p310_p4 = scmp.lt.s32.totalorder %s2200_s24, 1  ;;  %v2210_v0 = vmov 0   ;;  %v2211_v33 = vmov 1   ;;  %v2495_v58 = vld [vmem:[%s3358_s2] sm:$0x1f]  ;;  %v3364_v61 = vmov 2  }
   0xd   : > { %2087 = vset.pattern.permute.xlu2 %v2210_v0  ;;  %2086 = vset.pattern.permute.xlu1 %v2210_v0  ;;  %v2498_v59 = vperm.slane %v2495_v58, 0  ;;  %v2507_v63 = vperm.slane %v2495_v58, 1  ;;  %vm1656_vm0 = vcmask 523264   ;;  %vm1826_vm1 = vcmask 23552  }
   0xe   : > { %2085 = vset.pattern.permute.xlu0 %v2210_v0  ;;  %s3436_s24 = smov (!%p310_p4, %s2200_s24), 1 }
   0xf   : > { %s2030_s28 = sshll.u32 %s3436_s24, 8  ;;  %s321_s8 = scalar_lea.vmem %s3357_s1, %s3436_s24 }
  0x10   : > { %s2285_s11 = scalar_lea.vmem %s3356_s0, %s2030_s28  ;;  %s3194_s13 = scalar_lea.vmem %s3363_s7, %s2030_s28 }
  0x11   : > { %v2288_v1 = vld [vmem:[%s2285_s11 + $0x20] sm:$0xff]  ;;  %v2291_v2 = vld [vmem:[%s2285_s11 + $0x10] sm:$0xff]  ;;  %v2300_v4 = vld [vmem:[%s2285_s11 + $0x28] sm:$0xff] }
  0x12   : > { %v2294_v3 = vld [vmem:[%s2285_s11] sm:$0xff]  ;;  %388 = vperm.xlu2 %2087, %v2288_v1   ;;  %378 = vperm.xlu1 %2086, %v2291_v2   ;;  %v2303_v5 = vld [vmem:[%s2285_s11 + $0x18] sm:$0xff]  ;;  %v2306_v6 = vld [vmem:[%s2285_s11 + $0x8] sm:$0xff] }
  0x13   : > { %368 = vperm.xlu0 %2085, %v2294_v3   ;;  %v2312_v7 = vld [vmem:[%s2285_s11 + $0x40] sm:$0xff]  ;;  %v2315_v8 = vld [vmem:[%s2285_s11 + $0x38] sm:$0xff]  ;;  %v2318_v9 = vld [vmem:[%s2285_s11 + $0x30] sm:$0xff] }
  0x14   : > { %3380 = vst [vmem:[#allocation2_spill] sm:$0xff] %v2312_v7  ;;  %v2324_v10 = vld [vmem:[%s2285_s11 + $0x58] sm:$0xff]  ;;  %v2327_v11 = vld [vmem:[%s2285_s11 + $0x50] sm:$0xff]  ;;  %v2330_v12 = vld [vmem:[%s2285_s11 + $0x48] sm:$0xff] }
  0x15   : > { %3381 = vst [vmem:[#allocation3_spill] sm:$0xff] %v2324_v10  ;;  %v2336_v13 = vld [vmem:[%s2285_s11 + $0x70] sm:$0xff]  ;;  %v2339_v14 = vld [vmem:[%s2285_s11 + $0x68] sm:$0xff]  ;;  %v2342_v15 = vld [vmem:[%s2285_s11 + $0x60] sm:$0xff] }
  0x16   : > { %3382 = vst [vmem:[#allocation4_spill] sm:$0xff] %v2327_v11  ;;  %v2348_v16 = vld [vmem:[%s2285_s11 + $0x88] sm:$0xff]  ;;  %v2351_v17 = vld [vmem:[%s2285_s11 + $0x80] sm:$0xff]  ;;  %v2354_v18 = vld [vmem:[%s2285_s11 + $0x78] sm:$0xff] }
  0x17   : > { %3383 = vst [vmem:[#allocation5_spill] sm:$0xff] %v2330_v12  ;;  %v2360_v19 = vld [vmem:[%s2285_s11 + $0xa0] sm:$0xff]  ;;  %v2363_v20 = vld [vmem:[%s2285_s11 + $0x98] sm:$0xff]  ;;  %v2366_v21 = vld [vmem:[%s2285_s11 + $0x90] sm:$0xff] }
  0x18   : > { %v2372_v22 = vld [vmem:[%s2285_s11 + $0xb8] sm:$0xff]  ;;  %v2375_v23 = vld [vmem:[%s2285_s11 + $0xb0] sm:$0xff]  ;;  %v2378_v24 = vld [vmem:[%s2285_s11 + $0xa8] sm:$0xff] }
  0x19   : > { %v2384_v25 = vld [vmem:[%s2285_s11 + $0xd0] sm:$0xff]  ;;  %v2387_v26 = vld [vmem:[%s2285_s11 + $0xc8] sm:$0xff]  ;;  %v2390_v27 = vld [vmem:[%s2285_s11 + $0xc0] sm:$0xff] }
  0x1a   : > { %393 = vperm.xlu2 %2087, %v2300_v4   ;;  %383 = vperm.xlu1 %2086, %v2303_v5   ;;  %v2396_v28 = vld [vmem:[%s2285_s11 + $0xe8] sm:$0xff]  ;;  %v2399_v29 = vld [vmem:[%s2285_s11 + $0xe0] sm:$0xff]  ;;  %v2402_v30 = vld [vmem:[%s2285_s11 + $0xd8] sm:$0xff] }
  0x1b   : > { %373 = vperm.xlu0 %2085, %v2306_v6   ;;  %3384 = vst [vmem:[#allocation6_spill] sm:$0xff] %v2399_v29  ;;  %v2408_v31 = vld [vmem:[%s2285_s11 + $0xf8] sm:$0xff]  ;;  %v2411_v32 = vld [vmem:[%s2285_s11 + $0xf0] sm:$0xff] }
  0x1c   : > { %3385 = vst [vmem:[#allocation7_spill] sm:$0xff] %v2408_v31 }
  0x1d   : > { %3386 = vst [vmem:[#allocation8_spill] sm:$0xff] %v2411_v32 }
  0x22   : > { %408 = vperm.xlu2 %2087, %v2312_v7   ;;  %403 = vperm.xlu1 %2086, %v2315_v8  }
  0x23   : > { %398 = vperm.xlu0 %2085, %v2318_v9  }
  0x2a   : > { %423 = vperm.xlu2 %2087, %v2324_v10   ;;  %418 = vperm.xlu1 %2086, %v2327_v11  }
  0x2b   : > { %413 = vperm.xlu0 %2085, %v2330_v12  }
  0x32   : > { %438 = vperm.xlu2 %2087, %v2336_v13   ;;  %433 = vperm.xlu1 %2086, %v2339_v14  }
  0x33   : > { %428 = vperm.xlu0 %2085, %v2342_v15  }
  0x3a   : > { %453 = vperm.xlu2 %2087, %v2348_v16   ;;  %448 = vperm.xlu1 %2086, %v2351_v17  }
  0x3b   : > { %443 = vperm.xlu0 %2085, %v2354_v18  }
  0x42   : > { %468 = vperm.xlu2 %2087, %v2360_v19   ;;  %463 = vperm.xlu1 %2086, %v2363_v20  }
  0x43   : > { %458 = vperm.xlu0 %2085, %v2366_v21  }
  0x4a   : > { %483 = vperm.xlu2 %2087, %v2372_v22   ;;  %478 = vperm.xlu1 %2086, %v2375_v23  }
  0x4b   : > { %473 = vperm.xlu0 %2085, %v2378_v24  }
  0x52   : > { %498 = vperm.xlu2 %2087, %v2384_v25   ;;  %493 = vperm.xlu1 %2086, %v2387_v26  }
  0x53   : > { %488 = vperm.xlu0 %2085, %v2390_v27  }
  0x5a   : > { %513 = vperm.xlu2 %2087, %v2396_v28   ;;  %508 = vperm.xlu1 %2086, %v2399_v29  }
  0x5b   : > { %503 = vperm.xlu0 %2085, %v2402_v30  }
  0x62   : > { %2088 = vset.pattern.permute.xlu2 %v2211_v33  ;;  %523 = vperm.xlu1 %2086, %v2408_v31  }
  0x63   : > { %518 = vperm.xlu0 %2085, %v2411_v32   ;;  %560 = vperm.xlu2 %2088, %v2294_v3  }
  0x6a   : > { %2090 = vset.pattern.permute.xlu1 %v2211_v33 }
  0x6b   : > { %2089 = vset.pattern.permute.xlu0 %v2211_v33  ;;  %568 = vperm.xlu1 %2090, %v2291_v2  }
  0x6c   : > { %572 = vperm.xlu2 %2088, %v2303_v5   ;;  %564 = vperm.xlu0 %2089, %v2306_v6   ;;  %v2419_v34 = vpop.permute.xlu2 %388 }
  0x73   : > { %576 = vperm.xlu1 %2090, %v2288_v1  }
  0x74   : > { %580 = vperm.xlu2 %2088, %v2300_v4   ;;  %584 = vperm.xlu0 %2089, %v2318_v9   ;;  %v2424_v35 = vpop.permute.xlu2 %393 }
  0x7b   : > { %588 = vperm.xlu1 %2090, %v2315_v8  }
  0x7c   : > { %592 = vperm.xlu2 %2088, %v2312_v7   ;;  %596 = vperm.xlu0 %2089, %v2330_v12   ;;  %v2429_v36 = vpop.permute.xlu2 %408 }
  0x83   : > { %600 = vperm.xlu1 %2090, %v2327_v11  }
  0x84   : > { %604 = vperm.xlu2 %2088, %v2324_v10   ;;  %608 = vperm.xlu0 %2089, %v2342_v15   ;;  %v2434_v37 = vpop.permute.xlu2 %423  ;;  %v2436_v38 = vpop.permute.xlu1 %378 }
  0x85   : > { %v369_v39 = vpop.permute.xlu0 %368 }
  0x86   : > { %v527_v60 = vmul.f32 %v2498_v59, %v369_v39 }
  0x8b   : > { %612 = vperm.xlu1 %2090, %v2339_v14  }
  0x8c   : > { %616 = vperm.xlu2 %2088, %v2336_v13   ;;  %620 = vperm.xlu0 %2089, %v2354_v18   ;;  %v2441_v40 = vpop.permute.xlu2 %438  ;;  %v2443_v41 = vpop.permute.xlu1 %383 }
  0x8d   : > { %v2445_v42 = vpop.permute.xlu0 %373 }
  0x93   : > { %624 = vperm.xlu1 %2090, %v2351_v17  }
  0x94   : > { %628 = vperm.xlu2 %2088, %v2348_v16   ;;  %632 = vperm.xlu0 %2089, %v2366_v21   ;;  %v2450_v43 = vpop.permute.xlu2 %453  ;;  %v2452_v44 = vpop.permute.xlu1 %403 }
  0x95   : > { %3387 = vst [vmem:[#allocation9_spill] sm:$0xff] %v2450_v43  ;;  %v2454_v45 = vpop.permute.xlu0 %398  ;;  %v528_v43 = vmul.f32 %v2498_v59, %v2445_v42 }
  0x9b   : > { %636 = vperm.xlu1 %2090, %v2363_v20  }
  0x9c   : > { %640 = vperm.xlu2 %2088, %v2360_v19   ;;  %644 = vperm.xlu0 %2089, %v2378_v24   ;;  %v2459_v46 = vpop.permute.xlu2 %468  ;;  %v2461_v47 = vpop.permute.xlu1 %418 }
  0x9d   : > { %3388 = vst [vmem:[#allocation10_spill] sm:$0xff] %v2459_v46  ;;  %v2463_v48 = vpop.permute.xlu0 %413 }
  0xa3   : > { %648 = vperm.xlu1 %2090, %v2375_v23  }
  0xa4   : > { %652 = vperm.xlu2 %2088, %v2372_v22   ;;  %656 = vperm.xlu0 %2089, %v2390_v27   ;;  %v2468_v49 = vpop.permute.xlu2 %483  ;;  %v2470_v50 = vpop.permute.xlu1 %433 }
  0xa5   : > { %3389 = vst [vmem:[#allocation11_spill] sm:$0xff] %v2468_v49  ;;  %v2472_v51 = vpop.permute.xlu0 %428 }
  0xab   : > { %660 = vperm.xlu1 %2090, %v2387_v26  }
  0xac   : > { %664 = vperm.xlu2 %2088, %v2384_v25   ;;  %668 = vperm.xlu0 %2089, %v2402_v30   ;;  %v2477_v52 = vpop.permute.xlu2 %498  ;;  %v2479_v53 = vpop.permute.xlu1 %448 }
  0xad   : > { %3390 = vst [vmem:[#allocation12_spill] sm:$0xff] %v2477_v52  ;;  %v2481_v54 = vpop.permute.xlu0 %443 }
  0xae   : > { %3391 = vst [vmem:[#allocation13_spill] sm:$0xff] %v2479_v53 }
  0xb3   : > { %672 = vperm.xlu1 %2090, %v2399_v29   ;;  %v3401_v29 = vmov 3  }
  0xb4   : > { %676 = vperm.xlu2 %2088, %v2396_v28   ;;  %680 = vperm.xlu0 %2089, %v2411_v32   ;;  %v2486_v55 = vpop.permute.xlu2 %513  ;;  %v2488_v56 = vpop.permute.xlu1 %463 }
  0xb5   : > { %3392 = vst [vmem:[#allocation14_spill] sm:$0xff] %v2488_v56  ;;  %v2490_v57 = vpop.permute.xlu0 %458 }
  0xbb   : > { %684 = vperm.xlu1 %2090, %v2408_v31  }
  0xbc   : > { %2091 = vset.pattern.permute.xlu2 %v3364_v61  ;;  %2092 = vset.pattern.permute.xlu0 %v3364_v61  ;;  %v2504_v62 = vpop.permute.xlu1 %478 }
  0xbd   : > { %3393 = vst [vmem:[#allocation15_spill] sm:$0xff] %v2504_v62  ;;  %753 = vperm.xlu2 %2091, %v2294_v3   ;;  %757 = vperm.xlu0 %2092, %v2306_v6   ;;  %v561_v0 = vpop.permute.xlu2 %560  ;;  %v2511_v33 = vpop.permute.xlu0 %473 }
  0xbe   : > { %v688_v49 = vmul.f32 %v2507_v63, %v561_v0 }
  0xc0   : > { %v2514_v39 = vadd.f32 %v688_v49, %v527_v60 }
  0xc2   : > { %3394 = vst [vmem:[#allocation16_spill] sm:$0xff] %v2514_v39 }
  0xc3   : > { %2093 = vset.pattern.permute.xlu1 %v3364_v61 }
  0xc4   : > { %761 = vperm.xlu1 %2093, %v2291_v2   ;;  %v2518_v46 = vpop.permute.xlu1 %493 }
  0xc5   : > { %3395 = vst [vmem:[#allocation17_spill] sm:$0xff] %v2518_v46  ;;  %765 = vperm.xlu2 %2091, %v2303_v5   ;;  %777 = vperm.xlu0 %2092, %v2318_v9   ;;  %v2522_v62 = vpop.permute.xlu0 %488 }
  0xc6   : > { %v2524_v52 = vpop.permute.xlu2 %572 }
  0xcc   : > { %769 = vperm.xlu1 %2093, %v2288_v1   ;;  %v2527_v56 = vpop.permute.xlu1 %508 }
  0xcd   : > { %773 = vperm.xlu2 %2091, %v2300_v4   ;;  %789 = vperm.xlu0 %2092, %v2330_v12   ;;  %v2531_v49 = vpop.permute.xlu0 %503 }
  0xce   : > { %v2533_v60 = vpop.permute.xlu2 %580 }
  0xd4   : > { %781 = vperm.xlu1 %2093, %v2315_v8   ;;  %v2536_v0 = vpop.permute.xlu1 %523 }
  0xd5   : > { %785 = vperm.xlu2 %2091, %v2312_v7   ;;  %801 = vperm.xlu0 %2092, %v2342_v15   ;;  %v2540_v61 = vpop.permute.xlu0 %518 }
  0xd6   : > { %v2542_v46 = vpop.permute.xlu2 %592 }
  0xdc   : > { %793 = vperm.xlu1 %2093, %v2327_v11   ;;  %v533_v11 = vmul.f32 %v2498_v59, %v2454_v45 }
  0xdd   : > { %797 = vperm.xlu2 %2091, %v2324_v10   ;;  %813 = vperm.xlu0 %2092, %v2354_v18   ;;  %v2549_v53 = vpop.permute.xlu1 %568 }
  0xde   : > { %v2551_v31 = vpop.permute.xlu2 %604  ;;  %v565_v12 = vpop.permute.xlu0 %564 }
  0xdf   : > { %v689_v15 = vmul.f32 %v2507_v63, %v565_v12  ;;  %v536_v12 = vmul.f32 %v2498_v59, %v2463_v48  ;;  %v539_v48 = vmul.f32 %v2498_v59, %v2472_v51 }
  0xe1   : > { %v2554_v7 = vadd.f32 %v689_v15, %v528_v43 }
  0xe3   : > { %3396 = vst [vmem:[#allocation18_spill] sm:$0xff] %v2554_v7 }
  0xe4   : > { %805 = vperm.xlu1 %2093, %v2339_v14   ;;  %v3375_v14 = vmov 3  }
  0xe5   : > { %809 = vperm.xlu2 %2091, %v2336_v13   ;;  %825 = vperm.xlu0 %2092, %v2366_v21   ;;  %v2561_v42 = vpop.permute.xlu1 %576 }
  0xe6   : > { %v2563_v18 = vpop.permute.xlu2 %616  ;;  %v585_v10 = vpop.permute.xlu0 %584 }
  0xe7   : > { %v694_v39 = vmul.f32 %v2507_v63, %v585_v10 }
  0xe9   : > { %v2566_v32 = vadd.f32 %v694_v39, %v533_v11 }
  0xec   : > { %817 = vperm.xlu1 %2093, %v2351_v17  }
  0xed   : > { %821 = vperm.xlu2 %2091, %v2348_v16   ;;  %2095 = vset.pattern.permute.xlu0 %v3375_v14  ;;  %v2573_v13 = vpop.permute.xlu1 %588 }
  0xee   : > { %v2575_v43 = vpop.permute.xlu2 %628  ;;  %950 = vperm.xlu0 %2095, %v2306_v6   ;;  %v597_v45 = vpop.permute.xlu0 %596 }
  0xef   : > { %3397 = vst [vmem:[#allocation19_spill] sm:$0xff] %v2575_v43  ;;  %v697_v10 = vmul.f32 %v2507_v63, %v597_v45 }
  0xf1   : > { %v2579_v11 = vadd.f32 %v697_v10, %v536_v12  ;;  %v3378_v10 = vmov 4  }
  0xf4   : > { %829 = vperm.xlu1 %2093, %v2363_v20  }
  0xf5   : > { %2094 = vset.pattern.permute.xlu2 %v3375_v14  ;;  %v2585_v39 = vpop.permute.xlu1 %600 }
  0xf6   : > { %946 = vperm.xlu2 %2094, %v2294_v3   ;;  %v2588_v15 = vpop.permute.xlu2 %640  ;;  %966 = vperm.xlu0 %2095, %v2300_v4   ;;  %v609_v43 = vpop.permute.xlu0 %608 }
  0xf7   : > { %3398 = vst [vmem:[#allocation20_spill] sm:$0xff] %v2588_v15  ;;  %v700_v45 = vmul.f32 %v2507_v63, %v609_v43  ;;  %v542_v15 = vmul.f32 %v2498_v59, %v2481_v54  ;;  %v545_v54 = vmul.f32 %v2498_v59, %v2490_v57  ;;  %v548_v57 = vmul.f32 %v2498_v59, %v2511_v33 }
  0xf8   : > { %v551_v33 = vmul.f32 %v2498_v59, %v2522_v62 }
  0xf9   : > { %v2592_v12 = vadd.f32 %v700_v45, %v539_v48 }
  0xfc   : > { %2096 = vset.pattern.permute.xlu1 %v3378_v10 }
  0xfd   : > { %v2595_v7 = vpop.permute.xlu1 %612  ;;  %1139 = vperm.xlu1 %2096, %v2294_v3  }
  0xfe   : > { %2097 = vset.pattern.permute.xlu2 %v3378_v10  ;;  %v2599_v51 = vpop.permute.xlu2 %652  ;;  %1026 = vperm.xlu0 %2095, %v2360_v19   ;;  %v621_v14 = vpop.permute.xlu0 %620 }
  0xff   : > { %3399 = vst [vmem:[#allocation21_spill] sm:$0xff] %v2599_v51  ;;  %v703_v43 = vmul.f32 %v2507_v63, %v621_v14  ;;  %1143 = vperm.xlu2 %2097, %v2306_v6  }
 0x101   : > { %v2606_v48 = vadd.f32 %v703_v43, %v542_v15  ;;  %v556_v43 = vmul.f32 %v2498_v59, %v2486_v55 }
 0x105   : > { %v2608_v45 = vpop.permute.xlu1 %624  ;;  %2098 = vset.pattern.permute.xlu1 %v3401_v29 }
 0x106   : > { %3400 = vst [vmem:[#allocation22_spill] sm:$0xff] %v2608_v45  ;;  %v2611_v3 = vpop.permute.xlu2 %664  ;;  %2109 = vset.pattern.permute.xlu0 %v3378_v10  ;;  %v633_v51 = vpop.permute.xlu0 %632  ;;  %1010 = vperm.xlu1 %2098, %v2351_v17   ;;  %v3405_v45 = vmov 4  }
 0x107   : > { %3402 = vst [vmem:[#allocation23_spill] sm:$0xff] %v2611_v3  ;;  %v706_v14 = vmul.f32 %v2507_v63, %v633_v51  ;;  %2099 = vset.pattern.permute.xlu2 %v3401_v29  ;;  %1203 = vperm.xlu0 %2109, %v2351_v17  }
 0x108   : > { %1014 = vperm.xlu2 %2099, %v2348_v16  }
 0x109   : > { %v2621_v6 = vadd.f32 %v706_v14, %v545_v54 }
 0x10b   : > { %3403 = vst [vmem:[#allocation24_spill] sm:$0xff] %v2621_v6 }
 0x10d   : > { %v2623_v15 = vpop.permute.xlu1 %636 }
 0x10e   : > { %3404 = vst [vmem:[#allocation25_spill] sm:$0xff] %v2623_v15  ;;  %v677_v10 = vpop.permute.xlu2 %676  ;;  %v645_v3 = vpop.permute.xlu0 %644  ;;  %2100 = vset.pattern.permute.xlu1 %v3405_v45 }
 0x10f   : > { %v717_v51 = vmul.f32 %v2507_v63, %v677_v10  ;;  %v709_v17 = vmul.f32 %v2507_v63, %v645_v3  ;;  %1151 = vperm.xlu0 %2109, %v2303_v5   ;;  %1207 = vperm.xlu1 %2100, %v2348_v16   ;;  %v691_v3 = vmul.f32 %v2507_v63, %v2524_v52 }
 0x110   : > { %954 = vperm.xlu2 %2099, %v2291_v2  }
 0x111   : > { %v2635_v54 = vadd.f32 %v717_v51, %v556_v43  ;;  %v2637_v55 = vadd.f32 %v709_v17, %v548_v57  ;;  %v2660_v43 = vperm.slane %v2495_v58, 2  ;;  %v554_v51 = vmul.f32 %v2498_v59, %v2531_v49 }
 0x112   : > { %v693_v49 = vmul.f32 %v2507_v63, %v2533_v60 }
 0x115   : > { %v2639_v14 = vpop.permute.xlu1 %648 }
 0x116   : > { %v657_v6 = vpop.permute.xlu0 %656 }
 0x117   : > { %v712_v10 = vmul.f32 %v2507_v63, %v657_v6  ;;  %v2644_v15 = vpop.permute.xlu2 %753  ;;  %1211 = vperm.xlu0 %2109, %v2366_v21   ;;  %2101 = vset.pattern.permute.xlu1 %v3401_v29  ;;  %v530_v6 = vmul.f32 %v2498_v59, %v2443_v41 }
 0x118   : > { %2102 = vset.pattern.permute.xlu2 %v3405_v45  ;;  %958 = vperm.xlu1 %2101, %v2303_v5  }
 0x119   : > { %v2650_v16 = vadd.f32 %v712_v10, %v551_v33  ;;  %1147 = vperm.xlu2 %2102, %v2291_v2   ;;  %v723_v2 = vadd.f32 %v691_v3, %v530_v6  ;;  %v555_v3 = vmul.f32 %v2498_v59, %v2527_v56 }
 0x11d   : > { %v2655_v62 = vpop.permute.xlu1 %660 }
 0x11e   : > { %v669_v57 = vpop.permute.xlu0 %668 }
 0x11f   : > { %v715_v5 = vmul.f32 %v2507_v63, %v669_v57  ;;  %v766_v17 = vpop.permute.xlu2 %765  ;;  %1223 = vperm.xlu0 %2109, %v2378_v24   ;;  %v532_v57 = vmul.f32 %v2498_v59, %v2424_v35 }
 0x120   : > { %v884_v52 = vmul.f32 %v2660_v43, %v766_v17  ;;  %1018 = vperm.xlu1 %2101, %v2366_v21  }
 0x121   : > { %v2668_v33 = vadd.f32 %v715_v5, %v554_v51  ;;  %2103 = vset.pattern.permute.xlu2 %v3401_v29  ;;  %v557_v51 = vmul.f32 %v2498_v59, %v2540_v61  ;;  %v696_v61 = vmul.f32 %v2507_v63, %v2542_v46  ;;  %v690_v46 = vmul.f32 %v2507_v63, %v2549_v53 }
 0x122   : > { %v2671_v41 = vadd.f32 %v884_v52, %v723_v2  ;;  %1022 = vperm.xlu2 %2103, %v2363_v20   ;;  %v725_v2 = vadd.f32 %v693_v49, %v532_v57  ;;  %v535_v49 = vmul.f32 %v2498_v59, %v2429_v36  ;;  %v558_v57 = vmul.f32 %v2498_v59, %v2536_v0 }
 0x123   : > { %v699_v0 = vmul.f32 %v2507_v63, %v2551_v31 }
 0x125   : > { %v673_v10 = vpop.permute.xlu1 %672 }
 0x126   : > { %v716_v21 = vmul.f32 %v2507_v63, %v673_v10  ;;  %v681_v6 = vpop.permute.xlu0 %680 }
 0x127   : > { %v718_v5 = vmul.f32 %v2507_v63, %v681_v6  ;;  %v774_v17 = vpop.permute.xlu2 %773  ;;  %1163 = vperm.xlu0 %2109, %v2318_v9   ;;  %v3406_v6 = vmov 2  }
 0x128   : > { %v2685_v60 = vadd.f32 %v716_v21, %v555_v3  ;;  %v886_v52 = vmul.f32 %v2660_v43, %v774_v17  ;;  %2104 = vset.pattern.permute.xlu1 %v3405_v45 }
 0x129   : > { %v2689_v35 = vadd.f32 %v718_v5, %v557_v51  ;;  %1215 = vperm.xlu1 %2104, %v2363_v20   ;;  %v728_v51 = vadd.f32 %v696_v61, %v535_v49 }
 0x12a   : > { %v2692_v56 = vadd.f32 %v886_v52, %v725_v2  ;;  %962 = vperm.xlu2 %2103, %v2288_v1   ;;  %v529_v2 = vmul.f32 %v2498_v59, %v2436_v38  ;;  %v538_v52 = vmul.f32 %v2498_v59, %v2434_v37  ;;  %v2039_v37 = vld [vmem:[%s3359_s3 + $0x38] sm:$0xff] }
 0x12b   : > { %1483 = vmatpush.bf16.msra.mxu0 %v2039_v37  ;;  %2044 = vmatpush.bf16.msra.mxu2 %v2039_v37  ;;  %v2036_v37 = vld [vmem:[%s3359_s3 + $0x20] sm:$0xff] }
 0x12d   : > { %v685_v10 = vpop.permute.xlu1 %684 }
 0x12e   : > { %v719_v3 = vmul.f32 %v2507_v63, %v685_v10  ;;  %v722_v10 = vadd.f32 %v690_v46, %v529_v2  ;;  %v692_v46 = vmul.f32 %v2507_v63, %v2561_v42  ;;  %v541_v2 = vmul.f32 %v2498_v59, %v2441_v40  ;;  %v2038_v42 = vld [vmem:[%s3359_s3 + $0x30] sm:$0xff] }
 0x12f   : > { %v786_v21 = vpop.permute.xlu2 %785  ;;  %2119 = vset.pattern.permute.xlu0 %v3406_v6  ;;  %v2703_v20 = vpop.permute.xlu0 %757  ;;  %1484 = vmatpush.bf16.msra.mxu0 %v2038_v42 }
 0x130   : > { %v2705_v5 = vadd.f32 %v719_v3, %v558_v57  ;;  %v889_v17 = vmul.f32 %v2660_v43, %v786_v21  ;;  %849 = vperm.xlu0 %2119, %v2390_v27   ;;  %v731_v21 = vadd.f32 %v699_v0, %v538_v52  ;;  %v702_v0 = vmul.f32 %v2507_v63, %v2563_v18 }
 0x131   : > { %2105 = vset.pattern.permute.xlu1 %v3406_v6  ;;  %2045 = vmatpush.bf16.msra.mxu2 %v2038_v42  ;;  %v537_v42 = vmul.f32 %v2498_v59, %v2461_v47 }
 0x132   : > { %v2710_v36 = vadd.f32 %v889_v17, %v728_v51  ;;  %2106 = vset.pattern.permute.xlu2 %v3406_v6  ;;  %833 = vperm.xlu1 %2105, %v2360_v19  }
 0x133   : > { %837 = vperm.xlu2 %2106, %v2378_v24  }
 0x136   : > { %v762_v61 = vpop.permute.xlu1 %761 }
 0x137   : > { %v883_v49 = vmul.f32 %v2660_v43, %v762_v61  ;;  %v798_v57 = vpop.permute.xlu2 %797  ;;  %v778_v3 = vpop.permute.xlu0 %777 }
 0x138   : > { %v892_v53 = vmul.f32 %v2660_v43, %v798_v57  ;;  %v887_v51 = vmul.f32 %v2660_v43, %v778_v3  ;;  %857 = vperm.xlu0 %2119, %v2384_v25  }
 0x139   : > { %v2727_v31 = vadd.f32 %v883_v49, %v722_v10  ;;  %v734_v49 = vadd.f32 %v702_v0, %v541_v2 }
 0x13a   : > { %v2729_v17 = vadd.f32 %v892_v53, %v731_v21  ;;  %v2732_v38 = vadd.f32 %v887_v51, %v2566_v32  ;;  %2107 = vset.pattern.permute.xlu1 %v3405_v45  ;;  %v531_v32 = vmul.f32 %v2498_v59, %v2419_v34  ;;  %v2037_v21 = vld [vmem:[%s3359_s3 + $0x28] sm:$0xff]  ;;  %v695_v53 = vmul.f32 %v2507_v63, %v2573_v13 }
 0x13b   : > { %2108 = vset.pattern.permute.xlu2 %v3405_v45  ;;  %1155 = vperm.xlu1 %2107, %v2288_v1   ;;  %v534_v51 = vmul.f32 %v2498_v59, %v2452_v44  ;;  %v2035_v44 = vld [vmem:[%s3359_s3 + $0x18] sm:$0xff] }
 0x13c   : > { %1159 = vperm.xlu2 %2108, %v2300_v4   ;;  %v724_v61 = vadd.f32 %v692_v46, %v531_v32  ;;  %1485 = vmatpush.bf16.msra.mxu0 %v2037_v21 }
 0x13d   : > { %2046 = vmatpush.bf16.msra.mxu2 %v2037_v21  ;;  %v727_v46 = vadd.f32 %v695_v53, %v534_v51  ;;  %v540_v21 = vmul.f32 %v2498_v59, %v2470_v50  ;;  %v2032_v53 = vld [vmem:[%s3359_s3] sm:$0xff] }
 0x13e   : > { %v770_v52 = vpop.permute.xlu1 %769 }
 0x13f   : > { %v885_v1 = vmul.f32 %v2660_v43, %v770_v52  ;;  %v810_v10 = vpop.permute.xlu2 %809  ;;  %v790_v18 = vpop.permute.xlu0 %789  ;;  %v698_v52 = vmul.f32 %v2507_v63, %v2585_v39 }
 0x140   : > { %v895_v4 = vmul.f32 %v2660_v43, %v810_v10  ;;  %v890_v57 = vmul.f32 %v2660_v43, %v790_v18  ;;  %2127 = vset.pattern.permute.xlu0 %v3401_v29  ;;  %1486 = vmatpush.bf16.msra.mxu0 %v2036_v37 }
 0x141   : > { %v2756_v34 = vadd.f32 %v885_v1, %v724_v61  ;;  %1038 = vperm.xlu0 %2127, %v2372_v22   ;;  %2047 = vmatpush.bf16.msra.mxu2 %v2036_v37  ;;  %v2034_v61 = vld [vmem:[%s3359_s3 + $0x10] sm:$0xff]  ;;  %v730_v1 = vadd.f32 %v698_v52, %v537_v42  ;;  %v2840_v52 = vperm.slane %v2495_v58, 4 }
 0x142   : > { %v2759_v40 = vadd.f32 %v895_v4, %v734_v49  ;;  %v2762_v3 = vadd.f32 %v890_v57, %v2579_v11  ;;  %v2033_v4 = vld [vmem:[%s3359_s3 + $0x8] sm:$0xff]  ;;  %v701_v57 = vmul.f32 %v2507_v63, %v2595_v7 }
 0x143   : > { %2110 = vset.pattern.permute.xlu1 %v3401_v29 }
 0x144   : > { %1219 = vperm.xlu2 %2108, %v2360_v19   ;;  %1030 = vperm.xlu1 %2110, %v2378_v24   ;;  %v733_v51 = vadd.f32 %v701_v57, %v540_v21 }
 0x145   : > { %1487 = vmatpush.bf16.msra.mxu0 %v2035_v44  ;;  %2048 = vmatpush.bf16.msra.mxu2 %v2035_v44  ;;  %v2837_v44 = vperm.slane %v2495_v58, 3 }
 0x146   : > { %v782_v11 = vpop.permute.xlu1 %781 }
 0x147   : > { %v888_v0 = vmul.f32 %v2660_v43, %v782_v11  ;;  %v2778_v13 = vpop.permute.xlu2 %821  ;;  %v802_v32 = vpop.permute.xlu0 %801 }
 0x148   : > { %v893_v19 = vmul.f32 %v2660_v43, %v802_v32 }
 0x149   : > { %v2781_v2 = vadd.f32 %v888_v0, %v727_v46  ;;  %1046 = vperm.xlu0 %2127, %v2387_v26   ;;  %1488 = vmatpush.bf16.msra.mxu0 %v2034_v61 }
 0x14a   : > { %v2785_v24 = vadd.f32 %v893_v19, %v2592_v12  ;;  %2049 = vmatpush.bf16.msra.mxu2 %v2034_v61  ;;  %v3407_v19 = vld [vmem:[#allocation6_spill] sm:$0xff] }
 0x14c   : > { %2111 = vset.pattern.permute.xlu2 %v3401_v29  ;;  %970 = vperm.xlu1 %2110, %v2318_v9  }
 0x14d   : > { %974 = vperm.xlu2 %2111, %v2315_v8   ;;  %1489 = vmatpush.bf16.msra.mxu0 %v2033_v4 }
 0x14e   : > { %v794_v12 = vpop.permute.xlu1 %793  ;;  %2050 = vmatpush.bf16.msra.mxu2 %v2033_v4 }
 0x14f   : > { %v891_v10 = vmul.f32 %v2660_v43, %v794_v12  ;;  %v814_v39 = vpop.permute.xlu0 %813  ;;  %v3408_v12 = vld [vmem:[#allocation18_spill] sm:$0xff] }
 0x150   : > { %v896_v18 = vmul.f32 %v2660_v43, %v814_v39  ;;  %v947_v9 = vpop.permute.xlu2 %946 }
 0x151   : > { %v2802_v49 = vadd.f32 %v891_v10, %v730_v1  ;;  %1054 = vperm.xlu0 %2127, %v2402_v30   ;;  %1490 = vmatpush.bf16.msra.mxu0 %v2032_v53  ;;  %v881_v1 = vmul.f32 %v2660_v43, %v2644_v15  ;;  %v1074_v4 = vmul.f32 %v2837_v44, %v947_v9  ;;  %v3411_v15 = vld [vmem:[#allocation2_spill] sm:$0xff] }
 0x152   : > { %v2806_v47 = vadd.f32 %v896_v18, %v2606_v48  ;;  %2051 = vmatpush.bf16.msra.mxu2 %v2032_v53  ;;  %v3409_v18 = vld [vmem:[#allocation8_spill] sm:$0xff] }
 0x154   : > { %2112 = vset.pattern.permute.xlu1 %v3406_v6 }
 0x155   : > { %2113 = vset.pattern.permute.xlu2 %v3406_v6  ;;  %841 = vperm.xlu1 %2112, %v2375_v23  }
 0x156   : > { %845 = vperm.xlu2 %2113, %v2372_v22   ;;  %v806_v48 = vpop.permute.xlu1 %805 }
 0x157   : > { %v894_v7 = vmul.f32 %v2660_v43, %v806_v48  ;;  %v2823_v11 = vpop.permute.xlu0 %825 }
 0x159   : > { %v2825_v37 = vadd.f32 %v894_v7, %v733_v51  ;;  %1062 = vperm.xlu0 %2127, %v2396_v28   ;;  %v1144_v50 = vpop.permute.xlu2 %1143  ;;  %v882_v28 = vmul.f32 %v2660_v43, %v2703_v20  ;;  %v3412_v7 = vld [vmem:[#allocation5_spill] sm:$0xff] }
 0x15a   : > { %v1268_v58 = vmul.f32 %v2840_v52, %v1144_v50 }
 0x15b   : > { %v914_v61 = vadd.f32 %v882_v28, %v3408_v12  ;;  %v3414_v28 = vld [vmem:[#allocation22_spill] sm:$0xff] }
 0x15d   : > { %2114 = vset.pattern.permute.xlu1 %v3405_v45 }
 0x15e   : > { %2115 = vset.pattern.permute.xlu2 %v3401_v29  ;;  %v818_v46 = vpop.permute.xlu1 %817  ;;  %1167 = vperm.xlu1 %2114, %v2315_v8  }
 0x15f   : > { %1034 = vperm.xlu2 %2115, %v2375_v23  }
 0x160   : > { %v951_v0 = vpop.permute.xlu0 %950 }
 0x161   : > { %2139 = vset.pattern.permute.xlu0 %v3406_v6  ;;  %v1075_v8 = vmul.f32 %v2837_v44, %v951_v0 }
 0x162   : > { %v1015_v32 = vpop.permute.xlu2 %1014  ;;  %865 = vperm.xlu0 %2139, %v3407_v19   ;;  %v3413_v19 = vld [vmem:[#allocation7_spill] sm:$0xff] }
 0x163   : > { %v1107_v10 = vadd.f32 %v1075_v8, %v914_v61  ;;  %v704_v8 = vmul.f32 %v2507_v63, %v3414_v28  ;;  %v898_v28 = vmul.f32 %v2660_v43, %v2778_v13 }
 0x165   : > { %v1300_v21 = vadd.f32 %v1268_v58, %v1107_v10  ;;  %v897_v10 = vmul.f32 %v2660_v43, %v818_v46  ;;  %v3417_v46 = vld [vmem:[#allocation9_spill] sm:$0xff] }
 0x166   : > { %v2843_v42 = vpop.permute.xlu1 %829  ;;  %1227 = vperm.xlu1 %2114, %v2375_v23   ;;  %v2861_v23 = vld [vmem:[%s321_s8] ss:$0 sm:$0xff] }
 0x167   : > { %2116 = vset.pattern.permute.xlu2 %v3405_v45  ;;  %v1336_v0 = vadd.f32 %v2861_v23, %v1300_v21 }
 0x168   : > { %1231 = vperm.xlu2 %2116, %v2372_v22   ;;  %v2849_v20 = vpop.permute.xlu0 %966  ;;  %v3410_v22 = vld [vmem:[#allocation16_spill] sm:$0xff] }
 0x169   : > { %v913_v57 = vadd.f32 %v881_v1, %v3410_v22  ;;  %v3415_v1 = vld [vmem:[#allocation13_spill] sm:$0xff] }
 0x16a   : > { %v955_v39 = vpop.permute.xlu2 %954  ;;  %873 = vperm.xlu0 %2139, %v3409_v18   ;;  %v543_v58 = vmul.f32 %v2498_v59, %v3415_v1 }
 0x16b   : > { %v1106_v53 = vadd.f32 %v1074_v4, %v913_v57  ;;  %v1368_v4 = vmax.f32 %v1336_v0, 0.0  ;;  %v544_v0 = vmul.f32 %v2498_v59, %v3417_v46 }
 0x16c   : > { %v736_v22 = vadd.f32 %v704_v8, %v543_v58  ;;  %v1091_v58 = vmul.f32 %v2837_v44, %v1015_v32  ;;  %v1076_v32 = vmul.f32 %v2837_v44, %v955_v39 }
 0x16e   : > { %2117 = vset.pattern.permute.xlu1 %v3401_v29  ;;  %v1108_v46 = vadd.f32 %v1076_v32, %v2727_v31  ;;  %v3420_v32 = vld [vmem:[#allocation24_spill] sm:$0xff] }
 0x16f   : > { %978 = vperm.xlu1 %2117, %v3411_v15   ;;  %v1140_v48 = vpop.permute.xlu1 %1139 }
 0x170   : > { %v1267_v51 = vmul.f32 %v2840_v52, %v1140_v48  ;;  %2118 = vset.pattern.permute.xlu2 %v3401_v29  ;;  %v2868_v9 = vpop.permute.xlu0 %1026 }
 0x171   : > { %982 = vperm.xlu2 %2118, %v3412_v7  }
 0x172   : > { %v1299_v50 = vadd.f32 %v1267_v51, %v1106_v53  ;;  %2147 = vset.pattern.permute.xlu0 %v3401_v29  ;;  %v3416_v51 = vld [vmem:[#allocation19_spill] sm:$0xff] }
 0x173   : > { %1070 = vperm.xlu0 %2147, %v3413_v19   ;;  %v1148_v12 = vpop.permute.xlu2 %1147  ;;  %v929_v19 = vadd.f32 %v897_v10, %v736_v22 }
 0x174   : > { %v1335_v61 = vadd.f32 %v2861_v23, %v1299_v50  ;;  %v705_v50 = vmul.f32 %v2507_v63, %v3416_v51  ;;  %v1269_v51 = vmul.f32 %v2840_v52, %v1148_v12 }
 0x176   : > { %v1367_v18 = vmax.f32 %v1335_v61, 0.0  ;;  %v737_v1 = vadd.f32 %v705_v50, %v544_v0 }
 0x177   : > { %2120 = vset.pattern.permute.xlu1 %v3406_v6 }
 0x178   : > { %853 = vperm.xlu1 %2120, %v2387_v26   ;;  %v1011_v57 = vpop.permute.xlu1 %1010  ;;  %v1399_v21 = vpack.c.bf16 %v1368_v4, %v1367_v18  ;;  %v930_v4 = vadd.f32 %v898_v28, %v737_v1 }
 0x179   : > { %v1090_v48 = vmul.f32 %v2837_v44, %v1011_v57  ;;  %2121 = vset.pattern.permute.xlu2 %v3405_v45  ;;  %v1204_v53 = vpop.permute.xlu0 %1203 }
 0x17a   : > { %1171 = vperm.xlu2 %2121, %v3411_v15   ;;  %1491 = vmatmul.bf16.vlgmr.msra.gmra.mxu0 %v1399_v21  ;;  %v1283_v61 = vmul.f32 %v2840_v52, %v1204_v53  ;;  %v1123_v57 = vadd.f32 %v1091_v58, %v930_v4 }
 0x17b   : > { %2149 = vset.pattern.permute.xlu0 %v3405_v45  ;;  %v1122_v8 = vadd.f32 %v1090_v48, %v929_v19 }
 0x17c   : > { %v1023_v18 = vpop.permute.xlu2 %1022 }
 0x17d   : > { %v1315_v10 = vadd.f32 %v1283_v61, %v1122_v8  ;;  %v1301_v61 = vadd.f32 %v1269_v51, %v1108_v46  ;;  %v900_v46 = vmul.f32 %v2660_v43, %v2843_v42 }
 0x17f   : > { %v1351_v48 = vadd.f32 %v2861_v23, %v1315_v10  ;;  %v1337_v31 = vadd.f32 %v2861_v23, %v1301_v61 }
 0x180   : > { %2122 = vset.pattern.permute.xlu1 %v3405_v45 }
 0x181   : > { %1175 = vperm.xlu1 %2122, %v3412_v7   ;;  %v1208_v15 = vpop.permute.xlu1 %1207  ;;  %v1152_v22 = vpop.permute.xlu0 %1151  ;;  %v1383_v7 = vmax.f32 %v1351_v48, 0.0 }
 0x182   : > { %v1284_v21 = vmul.f32 %v2840_v52, %v1208_v15  ;;  %2123 = vset.pattern.permute.xlu2 %v3401_v29  ;;  %v1270_v1 = vmul.f32 %v2840_v52, %v1152_v22  ;;  %v3418_v22 = vld [vmem:[#allocation4_spill] sm:$0xff] }
 0x183   : > { %1042 = vperm.xlu2 %2123, %v2390_v27  }
 0x184   : > { %v1316_v13 = vadd.f32 %v1284_v21, %v1123_v57  ;;  %v2903_v50 = vpop.permute.xlu2 %962 }
 0x186   : > { %v1352_v53 = vadd.f32 %v2861_v23, %v1316_v13  ;;  %v3419_v13 = vld [vmem:[#allocation25_spill] sm:$0xff] }
 0x187   : > { %v707_v48 = vmul.f32 %v2507_v63, %v3419_v13  ;;  %v2153_v13 = vld [vmem:[%s2285_s11 + $0x58] sm:$0xff] }
 0x188   : > { %v1384_v19 = vmax.f32 %v1352_v53, 0.0  ;;  %v3421_v53 = vld [vmem:[#allocation3_spill] sm:$0xff] }
 0x189   : > { %1235 = vperm.xlu1 %2122, %v2390_v27   ;;  %v1212_v0 = vpop.permute.xlu0 %1211  ;;  %v899_v27 = vmul.f32 %v2660_v43, %v2823_v11 }
 0x18a   : > { %v959_v28 = vpop.permute.xlu1 %958  ;;  %v1407_v8 = vpack.c.bf16 %v1384_v19, %v1383_v7  ;;  %v3422_v7 = vld [vmem:[#allocation14_spill] sm:$0xff] }
 0x18b   : > { %v1077_v39 = vmul.f32 %v2837_v44, %v959_v28  ;;  %2124 = vset.pattern.permute.xlu2 %v3405_v45  ;;  %v931_v11 = vadd.f32 %v899_v27, %v3420_v32  ;;  %v546_v19 = vmul.f32 %v2498_v59, %v3422_v7  ;;  %v1285_v28 = vmul.f32 %v2840_v52, %v1212_v0 }
 0x18c   : > { %1239 = vperm.xlu2 %2124, %v2387_v26   ;;  %1531 = vmatmul.bf16.vlgmr.msra.gmra.mxu2 %v1407_v8 }
 0x18d   : > { %v1109_v12 = vadd.f32 %v1077_v39, %v2671_v41  ;;  %v2919_v15 = vpop.permute.xlu2 %837  ;;  %v1369_v41 = vmax.f32 %v1337_v31, 0.0  ;;  %v739_v61 = vadd.f32 %v707_v48, %v546_v19  ;;  %v3424_v19 = vld [vmem:[#allocation12_spill] sm:$0xff] }
 0x18f   : > { %v1302_v58 = vadd.f32 %v1270_v1, %v1109_v12  ;;  %v1093_v1 = vmul.f32 %v2837_v44, %v1023_v18  ;;  %v932_v12 = vadd.f32 %v900_v46, %v739_v61  ;;  %v553_v46 = vmul.f32 %v2498_v59, %v3424_v19 }
 0x191   : > { %2125 = vset.pattern.permute.xlu1 %v3401_v29  ;;  %v2916_v4 = vpop.permute.xlu0 %1223  ;;  %v1338_v10 = vadd.f32 %v2861_v23, %v1302_v58  ;;  %v1125_v27 = vadd.f32 %v1093_v1, %v932_v12  ;;  %v3426_v12 = vld [vmem:[#allocation10_spill] sm:$0xff] }
 0x192   : > { %986 = vperm.xlu1 %2125, %v3418_v22   ;;  %v1019_v26 = vpop.permute.xlu1 %1018 }
 0x193   : > { %v1092_v57 = vmul.f32 %v2837_v44, %v1019_v26  ;;  %v1370_v21 = vmax.f32 %v1338_v10, 0.0 }
 0x194   : > { %2126 = vset.pattern.permute.xlu2 %v3401_v29 }
 0x195   : > { %990 = vperm.xlu2 %2126, %v3421_v53   ;;  %v1400_v51 = vpack.c.bf16 %v1370_v21, %v1369_v41  ;;  %v1124_v8 = vadd.f32 %v1092_v57, %v931_v11  ;;  %v1079_v11 = vmul.f32 %v2837_v44, %v2849_v20  ;;  %v1078_v20 = vmul.f32 %v2837_v44, %v2903_v50 }
 0x196   : > { %v1160_v10 = vpop.permute.xlu2 %1159 }
 0x197   : > { %1496 = vmatmul.bf16.gmra.mxu0 %v1400_v51  ;;  %v1317_v58 = vadd.f32 %v1285_v28, %v1124_v8  ;;  %v1272_v7 = vmul.f32 %v2840_v52, %v1160_v10  ;;  %v3425_v28 = vld [vmem:[#allocation20_spill] sm:$0xff]  ;;  %v1111_v61 = vadd.f32 %v1079_v11, %v2692_v56  ;;  %v1110_v56 = vadd.f32 %v1078_v20, %v2756_v34 }
 0x198   : > { %v708_v8 = vmul.f32 %v2507_v63, %v3425_v28  ;;  %v902_v34 = vmul.f32 %v2660_v43, %v2919_v15  ;;  %v1288_v15 = vmul.f32 %v2840_v52, %v2916_v4  ;;  %v2997_v4 = vld [vmem:[%s2285_s11 + $0xe8] sm:$0xff] }
 0x199   : > { %v2934_v39 = vpop.permute.xlu0 %1163  ;;  %v1353_v18 = vadd.f32 %v2861_v23, %v1317_v58  ;;  %v547_v58 = vmul.f32 %v2498_v59, %v3426_v12 }
 0x19a   : > { %2128 = vset.pattern.permute.xlu1 %v3406_v6 }
 0x19b   : > { %861 = vperm.xlu1 %2128, %v2402_v30   ;;  %v1216_v31 = vpop.permute.xlu1 %1215  ;;  %v1385_v41 = vmax.f32 %v1353_v18, 0.0 }
 0x19c   : > { %v1286_v42 = vmul.f32 %v2840_v52, %v1216_v31 }
 0x19d   : > { %2129 = vset.pattern.permute.xlu2 %v3405_v45 }
 0x19e   : > { %v1318_v0 = vadd.f32 %v1286_v42, %v1125_v27  ;;  %1179 = vperm.xlu2 %2129, %v3418_v22   ;;  %v1220_v53 = vpop.permute.xlu2 %1219  ;;  %v3423_v22 = vld [vmem:[#allocation23_spill] sm:$0xff]  ;;  %v1304_v42 = vadd.f32 %v1272_v7, %v1111_v61  ;;  %v2981_v7 = vld [vmem:[%s2285_s11 + $0x60] sm:$0xff] }
 0x19f   : > { %v714_v51 = vmul.f32 %v2507_v63, %v3423_v22  ;;  %v1287_v11 = vmul.f32 %v2840_v52, %v1220_v53  ;;  %v2990_v61 = vld [vmem:[%s2285_s11 + $0x68] sm:$0xff] }
 0x1a0   : > { %v1354_v26 = vadd.f32 %v2861_v23, %v1318_v0  ;;  %v740_v0 = vadd.f32 %v708_v8, %v547_v58 }
 0x1a1   : > { %v746_v31 = vadd.f32 %v714_v51, %v553_v46  ;;  %v934_v46 = vadd.f32 %v902_v34, %v2637_v55  ;;  %v3428_v34 = vld [vmem:[#allocation11_spill] sm:$0xff] }
 0x1a2   : > { %v2943_v57 = vpop.permute.xlu0 %849  ;;  %v1386_v21 = vmax.f32 %v1354_v26, 0.0 }
 0x1a3   : > { %2130 = vset.pattern.permute.xlu1 %v3405_v45 }
 0x1a4   : > { %1183 = vperm.xlu1 %2130, %v2153_v13   ;;  %v834_v48 = vpop.permute.xlu1 %833  ;;  %v1408_v32 = vpack.c.bf16 %v1386_v21, %v1385_v41  ;;  %v1094_v41 = vmul.f32 %v2837_v44, %v2868_v9 }
 0x1a5   : > { %v901_v27 = vmul.f32 %v2660_v43, %v834_v48 }
 0x1a6   : > { %2131 = vset.pattern.permute.xlu2 %v3401_v29  ;;  %1536 = vmatmul.bf16.gmra.mxu2 %v1408_v32 }
 0x1a7   : > { %1050 = vperm.xlu2 %2131, %v2384_v25   ;;  %v933_v21 = vadd.f32 %v901_v27, %v740_v0  ;;  %v975_v13 = vpop.permute.xlu2 %974 }
 0x1a9   : > { %v1126_v22 = vadd.f32 %v1094_v41, %v933_v21  ;;  %v1273_v41 = vmul.f32 %v2840_v52, %v2934_v39 }
 0x1aa   : > { %v858_v1 = vpop.permute.xlu0 %857 }
 0x1ab   : > { %v907_v10 = vmul.f32 %v2660_v43, %v858_v1  ;;  %v1319_v28 = vadd.f32 %v1287_v11, %v1126_v22  ;;  %v550_v11 = vmul.f32 %v2498_v59, %v3428_v34 }
 0x1ac   : > { %1243 = vperm.xlu1 %2130, %v2384_v25   ;;  %v1340_v25 = vadd.f32 %v2861_v23, %v1304_v42 }
 0x1ad   : > { %v2966_v18 = vadd.f32 %v907_v10, %v746_v31  ;;  %v1156_v26 = vpop.permute.xlu1 %1155  ;;  %v1355_v12 = vadd.f32 %v2861_v23, %v1319_v28 }
 0x1ae   : > { %v1271_v50 = vmul.f32 %v2840_v52, %v1156_v26  ;;  %v1372_v51 = vmax.f32 %v1340_v25, 0.0  ;;  %v1081_v25 = vmul.f32 %v2837_v44, %v975_v13 }
 0x1af   : > { %2132 = vset.pattern.permute.xlu2 %v3405_v45  ;;  %v1387_v31 = vmax.f32 %v1355_v12, 0.0 }
 0x1b0   : > { %v1303_v48 = vadd.f32 %v1271_v50, %v1110_v56  ;;  %1247 = vperm.xlu2 %2132, %v2402_v30   ;;  %v846_v20 = vpop.permute.xlu2 %845  ;;  %v3427_v56 = vld [vmem:[#allocation21_spill] sm:$0xff] }
 0x1b1   : > { %v711_v50 = vmul.f32 %v2507_v63, %v3427_v56  ;;  %v904_v22 = vmul.f32 %v2660_v43, %v846_v20 }
 0x1b2   : > { %v1339_v32 = vadd.f32 %v2861_v23, %v1303_v48  ;;  %v3012_v48 = vld [vmem:[%s2285_s11 + $0xe0] sm:$0xff] }
 0x1b4   : > { %2133 = vset.pattern.permute.xlu1 %v3401_v29  ;;  %v1371_v9 = vmax.f32 %v1339_v32, 0.0 }
 0x1b5   : > { %994 = vperm.xlu1 %2133, %v2981_v7  }
 0x1b6   : > { %v1031_v30 = vpop.permute.xlu1 %1030  ;;  %v1401_v19 = vpack.c.bf16 %v1372_v51, %v1371_v9  ;;  %v1039_v9 = vpop.permute.xlu0 %1038  ;;  %v743_v51 = vadd.f32 %v711_v50, %v550_v11  ;;  %v3039_v50 = vld [vmem:[%s2285_s11 + $0x70] sm:$0xff] }
 0x1b7   : > { %v1095_v53 = vmul.f32 %v2837_v44, %v1031_v30  ;;  %v710_v30 = vmul.f32 %v2507_v63, %v2639_v14 }
 0x1b8   : > { %2134 = vset.pattern.permute.xlu2 %v3401_v29  ;;  %1501 = vmatmul.bf16.gmra.mxu0 %v1401_v19 }
 0x1b9   : > { %v1127_v8 = vadd.f32 %v1095_v53, %v934_v46  ;;  %998 = vperm.xlu2 %2134, %v2990_v61   ;;  %v1035_v42 = vpop.permute.xlu2 %1034  ;;  %v1113_v46 = vadd.f32 %v1081_v25, %v2781_v2  ;;  %v1097_v53 = vmul.f32 %v2837_v44, %v1039_v9 }
 0x1bb   : > { %v1320_v1 = vadd.f32 %v1288_v15, %v1127_v8  ;;  %v936_v15 = vadd.f32 %v904_v22, %v743_v51  ;;  %v3049_v22 = vld [vmem:[%s2285_s11 + $0x78] sm:$0xff] }
 0x1bd   : > { %2135 = vset.pattern.permute.xlu1 %v3406_v6  ;;  %v1356_v55 = vadd.f32 %v2861_v23, %v1320_v1  ;;  %v1129_v2 = vadd.f32 %v1097_v53, %v936_v15  ;;  %v2040_v15 = vld [vmem:[%s3361_s5] sm:$0xff] }
 0x1be   : > { %869 = vperm.xlu1 %2135, %v2997_v4   ;;  %v971_v58 = vpop.permute.xlu1 %970 }
 0x1bf   : > { %v1388_v27 = vmax.f32 %v1356_v55, 0.0  ;;  %v1080_v0 = vmul.f32 %v2837_v44, %v971_v58  ;;  %v1096_v55 = vmul.f32 %v2837_v44, %v1035_v42 }
 0x1c1   : > { %2136 = vset.pattern.permute.xlu2 %v3405_v45  ;;  %v1409_v10 = vpack.c.bf16 %v1388_v27, %v1387_v31  ;;  %v1112_v21 = vadd.f32 %v1080_v0, %v2732_v38  ;;  %v3429_v38 = vld [vmem:[#allocation15_spill] sm:$0xff] }
 0x1c2   : > { %1187 = vperm.xlu2 %2136, %v2981_v7   ;;  %v1232_v32 = vpop.permute.xlu2 %1231  ;;  %v549_v19 = vmul.f32 %v2498_v59, %v3429_v38 }
 0x1c3   : > { %1541 = vmatmul.bf16.gmra.mxu2 %v1409_v10  ;;  %v1305_v39 = vadd.f32 %v1273_v41, %v1112_v21  ;;  %v1290_v14 = vmul.f32 %v2840_v52, %v1232_v32  ;;  %v2043_v10 = vld [vmem:[%s3361_s5 + $0x18] sm:$0xff]  ;;  %v2042_v32 = vld [vmem:[%s3361_s5 + $0x10] sm:$0xff] }
 0x1c4   : > { %v742_v20 = vadd.f32 %v710_v30, %v549_v19  ;;  %1709 = vmatpush.bf16.msra.mxu1 %v2043_v10  ;;  %2052 = vmatpush.bf16.msra.mxu3 %v2043_v10  ;;  %v2041_v30 = vld [vmem:[%s3361_s5 + $0x8] sm:$0xff]  ;;  %v3058_v19 = vld [vmem:[%s2285_s11 + $0xf8] sm:$0xff] }
 0x1c5   : > { %v1341_v12 = vadd.f32 %v2861_v23, %v1305_v39  ;;  %v1322_v0 = vadd.f32 %v1290_v14, %v1129_v2 }
 0x1c6   : > { %2137 = vset.pattern.permute.xlu1 %v3405_v45 }
 0x1c7   : > { %1191 = vperm.xlu1 %2137, %v2990_v61   ;;  %v842_v26 = vpop.permute.xlu1 %841  ;;  %v1358_v11 = vadd.f32 %v2861_v23, %v1322_v0 }
 0x1c8   : > { %v903_v28 = vmul.f32 %v2660_v43, %v842_v26  ;;  %v1373_v26 = vmax.f32 %v1341_v12, 0.0  ;;  %1710 = vmatpush.bf16.msra.mxu1 %v2042_v32  ;;  %2053 = vmatpush.bf16.msra.mxu3 %v2042_v32 }
 0x1c9   : > { %v1390_v38 = vmax.f32 %v1358_v11, 0.0 }
 0x1ca   : > { %2138 = vset.pattern.permute.xlu2 %v3401_v29  ;;  %v935_v58 = vadd.f32 %v903_v28, %v742_v20  ;;  %v3430_v20 = vld [vmem:[#allocation17_spill] sm:$0xff] }
 0x1cb   : > { %1058 = vperm.xlu2 %2138, %v3012_v48   ;;  %v983_v27 = vpop.permute.xlu2 %982  ;;  %v552_v14 = vmul.f32 %v2498_v59, %v3430_v20 }
 0x1cc   : > { %v1128_v42 = vadd.f32 %v1096_v55, %v935_v58  ;;  %1711 = vmatpush.bf16.msra.mxu1 %v2041_v30  ;;  %2054 = vmatpush.bf16.msra.mxu3 %v2041_v30  ;;  %v3078_v55 = vld [vmem:[%s2285_s11 + $0xf0] sm:$0xff] }
 0x1cf   : > { %1251 = vperm.xlu1 %2137, %v3012_v48  }
 0x1d0   : > { %v1168_v13 = vpop.permute.xlu1 %1167  ;;  %1712 = vmatpush.bf16.msra.mxu1 %v2040_v15  ;;  %2055 = vmatpush.bf16.msra.mxu3 %v2040_v15 }
 0x1d1   : > { %v1274_v8 = vmul.f32 %v2840_v52, %v1168_v13 }
 0x1d3   : > { %v1306_v1 = vadd.f32 %v1274_v8, %v1113_v46  ;;  %2140 = vset.pattern.permute.xlu2 %v3405_v45  ;;  %v713_v8 = vmul.f32 %v2507_v63, %v2655_v62  ;;  %v1047_v63 = vpop.permute.xlu0 %1046 }
 0x1d4   : > { %1255 = vperm.xlu2 %2140, %v2997_v4   ;;  %v1172_v51 = vpop.permute.xlu2 %1171  ;;  %v1099_v62 = vmul.f32 %v2837_v44, %v1047_v63 }
 0x1d5   : > { %v1342_v31 = vadd.f32 %v2861_v23, %v1306_v1  ;;  %v1275_v1 = vmul.f32 %v2840_v52, %v1172_v51  ;;  %v745_v58 = vadd.f32 %v713_v8, %v552_v14 }
 0x1d7   : > { %2141 = vset.pattern.permute.xlu1 %v3401_v29  ;;  %v1374_v56 = vmax.f32 %v1342_v31, 0.0  ;;  %v1083_v31 = vmul.f32 %v2837_v44, %v983_v27 }
 0x1d8   : > { %1002 = vperm.xlu1 %2141, %v3039_v50   ;;  %v1228_v41 = vpop.permute.xlu1 %1227 }
 0x1d9   : > { %v1289_v21 = vmul.f32 %v2840_v52, %v1228_v41  ;;  %v1402_v25 = vpack.c.bf16 %v1374_v56, %v1373_v26  ;;  %v1115_v26 = vadd.f32 %v1083_v31, %v2762_v3  ;;  %v905_v56 = vmul.f32 %v2660_v43, %v2943_v57  ;;  %v3098_v57 = vld [vmem:[%s3360_s4] ss:$0 sm:$0xff] }
 0x1db   : > { %v1321_v34 = vadd.f32 %v1289_v21, %v1128_v42  ;;  %1506 = vmatmul.bf16.gmra.mxu0 %v1402_v25 }
 0x1dc   : > { %2142 = vset.pattern.permute.xlu2 %v3401_v29 }
 0x1dd   : > { %1006 = vperm.xlu2 %2142, %v3049_v22   ;;  %v1357_v9 = vadd.f32 %v2861_v23, %v1321_v34  ;;  %v937_v34 = vadd.f32 %v905_v56, %v2650_v16 }
 0x1df   : > { %v1389_v39 = vmax.f32 %v1357_v9, 0.0 }
 0x1e0   : > { %2143 = vset.pattern.permute.xlu1 %v3406_v6  ;;  %v1043_v6 = vpop.permute.xlu2 %1042 }
 0x1e1   : > { %877 = vperm.xlu1 %2143, %v3058_v19   ;;  %v979_v46 = vpop.permute.xlu1 %978  ;;  %v1410_v13 = vpack.c.bf16 %v1390_v38, %v1389_v39  ;;  %v1098_v32 = vmul.f32 %v2837_v44, %v1043_v6 }
 0x1e2   : > { %v1082_v53 = vmul.f32 %v2837_v44, %v979_v46 }
 0x1e3   : > { %1546 = vmatmul.bf16.gmra.mxu2 %v1410_v13  ;;  %v1130_v38 = vadd.f32 %v1098_v32, %v937_v34 }
 0x1e4   : > { %v1114_v12 = vadd.f32 %v1082_v53, %v2710_v36 }
 0x1e5   : > { %2144 = vset.pattern.permute.xlu2 %v3405_v45 }
 0x1e6   : > { %1195 = vperm.xlu2 %2144, %v3039_v50   ;;  %v1307_v59 = vadd.f32 %v1275_v1, %v1114_v12 }
 0x1e8   : > { %v1240_v10 = vpop.permute.xlu2 %1239  ;;  %v1343_v21 = vadd.f32 %v2861_v23, %v1307_v59 }
 0x1e9   : > { %2145 = vset.pattern.permute.xlu1 %v3405_v45  ;;  %v1292_v41 = vmul.f32 %v2840_v52, %v1240_v10 }
 0x1ea   : > { %1199 = vperm.xlu1 %2145, %v3049_v22   ;;  %v854_v28 = vpop.permute.xlu1 %853  ;;  %v1375_v9 = vmax.f32 %v1343_v21, 0.0 }
 0x1eb   : > { %v906_v2 = vmul.f32 %v2660_v43, %v854_v28 }
 0x1ed   : > { %v938_v0 = vadd.f32 %v906_v2, %v745_v58 }
 0x1ee   : > { %2146 = vset.pattern.permute.xlu2 %v3401_v29 }
 0x1ef   : > { %1066 = vperm.xlu2 %2146, %v3078_v55   ;;  %v1131_v42 = vadd.f32 %v1099_v62, %v938_v0 }
 0x1f0   : > { %v991_v11 = vpop.permute.xlu2 %990 }
 0x1f1   : > { %v1324_v30 = vadd.f32 %v1292_v41, %v1131_v42  ;;  %v1085_v56 = vmul.f32 %v2837_v44, %v991_v11 }
 0x1f2   : > { %1259 = vperm.xlu1 %2145, %v3078_v55  }
 0x1f3   : > { %v1176_v36 = vpop.permute.xlu1 %1175  ;;  %v1360_v16 = vadd.f32 %v2861_v23, %v1324_v30  ;;  %v1117_v34 = vadd.f32 %v1085_v56, %v2729_v17 }
 0x1f4   : > { %v1276_v29 = vmul.f32 %v2840_v52, %v1176_v36 }
 0x1f5   : > { %v1392_v12 = vmax.f32 %v1360_v16, 0.0 }
 0x1f6   : > { %v1308_v27 = vadd.f32 %v1276_v29, %v1115_v26  ;;  %v1055_v29 = vpop.permute.xlu0 %1054 }
 0x1f7   : > { %v1492_v25 = vpop.f32.mrf.mxu0  ;;  %2148 = vset.pattern.permute.xlu2 %v3405_v45 }
 0x1f8   : > { %1263 = vperm.xlu2 %2148, %v3058_v19   ;;  %v1344_v3 = vadd.f32 %v2861_v23, %v1308_v27  ;;  %v1493_v13 = vadd.f32 %v3098_v57, %v1492_v25  ;;  %v1180_v20 = vpop.permute.xlu2 %1179  ;;  %v1101_v27 = vmul.f32 %v2837_v44, %v1055_v29 }
 0x1f9   : > { %v1277_v0 = vmul.f32 %v2840_v52, %v1180_v20 }
 0x1fa   : > { %v1376_v51 = vmax.f32 %v1344_v3, 0.0  ;;  %v1572_v8 = vmax.f32 %v1493_v13, 0.0 }
 0x1fb   : > { %v1236_v39 = vpop.permute.xlu1 %1235 }
 0x1fc   : > { %v1291_v45 = vmul.f32 %v2840_v52, %v1236_v39  ;;  %v1403_v46 = vpack.c.bf16 %v1376_v51, %v1375_v9 }
 0x1fe   : > { %v1323_v15 = vadd.f32 %v1291_v45, %v1130_v38  ;;  %1511 = vmatmul.bf16.gmra.mxu0 %v1403_v46 }
 0x1ff   : > { %v1494_v6 = vpop.f32.mrf.mxu0 }
 0x200   : > { %v1495_v53 = vadd.f32 %v3098_v57, %v1494_v6  ;;  %v1359_v28 = vadd.f32 %v2861_v23, %v1323_v15 }
 0x201   : > { %v1051_v10 = vpop.permute.xlu2 %1050 }
 0x202   : > { %v1573_v14 = vmax.f32 %v1495_v53, 0.0  ;;  %v1391_v1 = vmax.f32 %v1359_v28, 0.0  ;;  %v1100_v45 = vmul.f32 %v2837_v44, %v1051_v10 }
 0x204   : > { %v1604_v2 = vpack.c.bf16 %v1573_v14, %v1572_v8  ;;  %v987_v58 = vpop.permute.xlu1 %986  ;;  %v1411_v31 = vpack.c.bf16 %v1392_v12, %v1391_v1  ;;  %v1132_v20 = vadd.f32 %v1100_v45, %v2966_v18 }
 0x205   : > { %v1084_v63 = vmul.f32 %v2837_v44, %v987_v58 }
 0x206   : > { %1551 = vmatmul.bf16.gmra.mxu2 %v1411_v31  ;;  %2012 = vmatmul.msk.bf16.vlgmr.msra.gmra.mxu1 %vm1656_vm0, %v1604_v2 }
 0x207   : > { %v1116_v36 = vadd.f32 %v1084_v63, %v2802_v49 }
 0x209   : > { %v1309_v21 = vadd.f32 %v1277_v0, %v1116_v36 }
 0x20a   : > { %v1248_v41 = vpop.permute.xlu2 %1247 }
 0x20b   : > { %v1294_v30 = vmul.f32 %v2840_v52, %v1248_v41  ;;  %v1345_v38 = vadd.f32 %v2861_v23, %v1309_v21  ;;  %v1063_v41 = vpop.permute.xlu0 %1062 }
 0x20d   : > { %v862_v62 = vpop.permute.xlu1 %861  ;;  %v1377_v53 = vmax.f32 %v1345_v38, 0.0 }
 0x20e   : > { %v908_v26 = vmul.f32 %v2660_v43, %v862_v62 }
 0x20f   : > { %v1532_v59 = vpop.f32.mrf.mxu2 }
 0x210   : > { %v940_v25 = vadd.f32 %v908_v26, %v2668_v33  ;;  %v1533_v32 = vadd.f32 %v3098_v57, %v1532_v59 }
 0x212   : > { %v1133_v11 = vadd.f32 %v1101_v27, %v940_v25  ;;  %v1588_v46 = vmax.f32 %v1533_v32, 0.0 }
 0x213   : > { %v999_v14 = vpop.permute.xlu2 %998 }
 0x214   : > { %v1497_v42 = vpop.f32.mrf.mxu0  ;;  %v1326_v8 = vadd.f32 %v1294_v30, %v1133_v11 }
 0x215   : > { %v1498_v13 = vadd.f32 %v3098_v57, %v1497_v42 }
 0x216   : > { %v1184_v3 = vpop.permute.xlu1 %1183  ;;  %v1362_v62 = vadd.f32 %v2861_v23, %v1326_v8 }
 0x217   : > { %v1278_v9 = vmul.f32 %v2840_v52, %v1184_v3  ;;  %v1534_v49 = vpop.f32.mrf.mxu2  ;;  %v1574_v12 = vmax.f32 %v1498_v13, 0.0 }
 0x218   : > { %v1535_v51 = vadd.f32 %v3098_v57, %v1534_v49  ;;  %v1394_v36 = vmax.f32 %v1362_v62, 0.0 }
 0x219   : > { %v1310_v39 = vadd.f32 %v1278_v9, %v1117_v34 }
 0x21a   : > { %v1589_v33 = vmax.f32 %v1535_v51, 0.0 }
 0x21b   : > { %v1346_v15 = vadd.f32 %v2861_v23, %v1310_v39  ;;  %v1087_v39 = vmul.f32 %v2837_v44, %v999_v14 }
 0x21c   : > { %v3122_v17 = vpack.c.bf16 %v1589_v33, %v1588_v46  ;;  %v1499_v16 = vpop.f32.mrf.mxu0  ;;  %v1188_v26 = vpop.permute.xlu2 %1187 }
 0x21d   : > { %v1500_v6 = vadd.f32 %v3098_v57, %v1499_v16  ;;  %v1378_v28 = vmax.f32 %v1346_v15, 0.0  ;;  %v1279_v34 = vmul.f32 %v2840_v52, %v1188_v26  ;;  %v866_v46 = vpop.permute.xlu0 %865  ;;  %v1103_v16 = vmul.f32 %v2837_v44, %v1063_v41 }
 0x21e   : > { %v1244_v1 = vpop.permute.xlu1 %1243 }
 0x21f   : > { %v1575_v2 = vmax.f32 %v1500_v6, 0.0  ;;  %v1293_v58 = vmul.f32 %v2840_v52, %v1244_v1  ;;  %v1404_v31 = vpack.c.bf16 %v1378_v28, %v1377_v53  ;;  %v909_v53 = vmul.f32 %v2660_v43, %v866_v46 }
 0x221   : > { %v1605_v10 = vpack.c.bf16 %v1575_v2, %v1574_v12  ;;  %v1325_v63 = vadd.f32 %v1293_v58, %v1132_v20  ;;  %1516 = vmatmul.bf16.gmra.mxu0 %v1404_v31 }
 0x223   : > { %2013 = vmatmul.msk.bf16.gmra.mxu1 %vm1656_vm0, %v1605_v10  ;;  %v1361_v59 = vadd.f32 %v2861_v23, %v1325_v63 }
 0x225   : > { %v1393_v0 = vmax.f32 %v1361_v59, 0.0  ;;  %v1059_v27 = vpop.permute.xlu2 %1058 }
 0x226   : > { %v1102_v12 = vmul.f32 %v2837_v44, %v1059_v27 }
 0x227   : > { %v995_v18 = vpop.permute.xlu1 %994  ;;  %v1412_v29 = vpack.c.bf16 %v1394_v36, %v1393_v0 }
 0x228   : > { %v1086_v42 = vmul.f32 %v2837_v44, %v995_v18 }
 0x229   : > { %v1537_v56 = vpop.f32.mrf.mxu2  ;;  %1556 = vmatmul.bf16.gmra.mxu2 %v1412_v29 }
 0x22a   : > { %v1538_v21 = vadd.f32 %v3098_v57, %v1537_v56  ;;  %v1118_v9 = vadd.f32 %v1086_v42, %v2785_v24  ;;  %v1119_v24 = vadd.f32 %v1087_v39, %v2825_v37  ;;  %v941_v37 = vadd.f32 %v909_v53, %v2685_v60 }
 0x22c   : > { %v1590_v49 = vmax.f32 %v1538_v21, 0.0  ;;  %v1311_v45 = vadd.f32 %v1279_v34, %v1118_v9  ;;  %v1134_v36 = vadd.f32 %v1102_v12, %v941_v37 }
 0x22e   : > { %v1256_v33 = vpop.permute.xlu2 %1255  ;;  %v1347_v28 = vadd.f32 %v2861_v23, %v1311_v45 }
 0x22f   : > { %v1296_v8 = vmul.f32 %v2840_v52, %v1256_v33 }
 0x230   : > { %v870_v25 = vpop.permute.xlu1 %869  ;;  %v1379_v31 = vmax.f32 %v1347_v28, 0.0 }
 0x231   : > { %v1539_v32 = vpop.f32.mrf.mxu2  ;;  %v910_v51 = vmul.f32 %v2660_v43, %v870_v25 }
 0x232   : > { %v1540_v3 = vadd.f32 %v3098_v57, %v1539_v32 }
 0x233   : > { %v942_v13 = vadd.f32 %v910_v51, %v2635_v54 }
 0x234   : > { %v1591_v30 = vmax.f32 %v1540_v3, 0.0 }
 0x235   : > { %v1502_v11 = vpop.f32.mrf.mxu0  ;;  %v1135_v20 = vadd.f32 %v1103_v16, %v942_v13 }
 0x236   : > { %v1613_v38 = vpack.c.bf16 %v1591_v30, %v1590_v49  ;;  %v1503_v14 = vadd.f32 %v3098_v57, %v1502_v11  ;;  %v874_v30 = vpop.permute.xlu0 %873 }
 0x237   : > { %v1328_v59 = vadd.f32 %v1296_v8, %v1135_v20  ;;  %v1007_v26 = vpop.permute.xlu2 %1006 }
 0x238   : > { %2021 = vmatmul.msk.bf16.vlgmr.msra.gmra.mxu3 %vm1656_vm0, %v1613_v38  ;;  %v1576_v10 = vmax.f32 %v1503_v14, 0.0  ;;  %v1089_v53 = vmul.f32 %v2837_v44, %v1007_v26 }
 0x239   : > { %v1192_v15 = vpop.permute.xlu1 %1191  ;;  %v1364_v42 = vadd.f32 %v2861_v23, %v1328_v59 }
 0x23a   : > { %v1280_v6 = vmul.f32 %v2840_v52, %v1192_v15 }
 0x23b   : > { %v1396_v25 = vmax.f32 %v1364_v42, 0.0 }
 0x23c   : > { %v1312_v1 = vadd.f32 %v1280_v6, %v1119_v24 }
 0x23d   : > { %v1504_v54 = vpop.f32.mrf.mxu0 }
 0x23e   : > { %v1505_v2 = vadd.f32 %v3098_v57, %v1504_v54  ;;  %v1348_v58 = vadd.f32 %v2861_v23, %v1312_v1  ;;  %v1071_v24 = vpop.permute.xlu0 %1070  ;;  %v1121_v54 = vadd.f32 %v1089_v53, %v2806_v47 }
 0x23f   : > { %v1105_v20 = vmul.f32 %v2837_v44, %v1071_v24 }
 0x240   : > { %v1577_v63 = vmax.f32 %v1505_v2, 0.0  ;;  %v1380_v62 = vmax.f32 %v1348_v58, 0.0  ;;  %v1196_v32 = vpop.permute.xlu2 %1195  ;;  %v911_v2 = vmul.f32 %v2660_v43, %v874_v30 }
 0x241   : > { %v1252_v0 = vpop.permute.xlu1 %1251  ;;  %v1281_v13 = vmul.f32 %v2840_v52, %v1196_v32 }
 0x242   : > { %v1606_v18 = vpack.c.bf16 %v1577_v63, %v1576_v10  ;;  %v1295_v29 = vmul.f32 %v2840_v52, %v1252_v0  ;;  %v1405_v56 = vpack.c.bf16 %v1380_v62, %v1379_v31  ;;  %v943_v47 = vadd.f32 %v911_v2, %v2689_v35 }
 0x244   : > { %v1327_v41 = vadd.f32 %v1295_v29, %v1134_v36  ;;  %1521 = vmatmul.bf16.gmra.mxu0 %v1405_v56  ;;  %2014 = vmatmul.msk.bf16.gmra.mxu1 %vm1656_vm0, %v1606_v18 }
 0x246   : > { %v1542_v27 = vpop.f32.mrf.mxu2  ;;  %v1363_v60 = vadd.f32 %v2861_v23, %v1327_v41 }
 0x247   : > { %v1543_v9 = vadd.f32 %v3098_v57, %v1542_v27 }
 0x248   : > { %v1395_v21 = vmax.f32 %v1363_v60, 0.0 }
 0x249   : > { %v1592_v11 = vmax.f32 %v1543_v9, 0.0  ;;  %v1067_v33 = vpop.permute.xlu2 %1066 }
 0x24a   : > { %v1003_v3 = vpop.permute.xlu1 %1002  ;;  %v1413_v34 = vpack.c.bf16 %v1396_v25, %v1395_v21 }
 0x24b   : > { %v1088_v38 = vmul.f32 %v2837_v44, %v1003_v3 }
 0x24c   : > { %1561 = vmatmul.bf16.gmra.mxu2 %v1413_v34 }
 0x24d   : > { %v1120_v15 = vadd.f32 %v1088_v38, %v2759_v40 }
 0x24e   : > { %v1544_v49 = vpop.f32.mrf.mxu2 }
 0x24f   : > { %v1545_v51 = vadd.f32 %v3098_v57, %v1544_v49  ;;  %v1313_v28 = vadd.f32 %v1281_v13, %v1120_v15 }
 0x251   : > { %v1593_v39 = vmax.f32 %v1545_v51, 0.0  ;;  %v1349_v40 = vadd.f32 %v2861_v23, %v1313_v28 }
 0x252   : > { %v1264_v14 = vpop.permute.xlu2 %1263 }
 0x253   : > { %v1614_v45 = vpack.c.bf16 %v1593_v39, %v1592_v11  ;;  %v878_v46 = vpop.permute.xlu1 %877  ;;  %v1298_v37 = vmul.f32 %v2840_v52, %v1264_v14  ;;  %v1381_v0 = vmax.f32 %v1349_v40, 0.0 }
 0x254   : > { %v912_v16 = vmul.f32 %v2660_v43, %v878_v46 }
 0x255   : > { %2022 = vmatmul.msk.bf16.gmra.mxu3 %vm1656_vm0, %v1614_v45 }
 0x256   : > { %v944_v8 = vadd.f32 %v912_v16, %v2705_v5  ;;  %v1104_v5 = vmul.f32 %v2837_v44, %v1067_v33  ;;  %v2162_v16 = vld [vmem:[%s2285_s11] sm:$0xff] }
 0x258   : > { %v1507_v6 = vpop.f32.mrf.mxu0  ;;  %v1137_v58 = vadd.f32 %v1105_v20, %v944_v8  ;;  %v1136_v56 = vadd.f32 %v1104_v5, %v943_v47  ;;  %v2163_v20 = vld [vmem:[%s2285_s11 + $0x8] sm:$0xff] }
 0x259   : > { %v1508_v31 = vadd.f32 %v3098_v57, %v1507_v6 }
 0x25a   : > { %v1330_v36 = vadd.f32 %v1298_v37, %v1137_v58 }
 0x25b   : > { %v1578_v43 = vmax.f32 %v1508_v31, 0.0 }
 0x25c   : > { %v1200_v1 = vpop.permute.xlu1 %1199  ;;  %v1366_v44 = vadd.f32 %v2861_v23, %v1330_v36 }
 0x25d   : > { %v1282_v12 = vmul.f32 %v2840_v52, %v1200_v1 }
 0x25e   : > { %v1398_v32 = vmax.f32 %v1366_v44, 0.0 }
 0x25f   : > { %v1314_v10 = vadd.f32 %v1282_v12, %v1121_v54 }
 0x260   : > { %v1509_v63 = vpop.f32.mrf.mxu0 }
 0x261   : > { %v1510_v62 = vadd.f32 %v3098_v57, %v1509_v63  ;;  %v1350_v59 = vadd.f32 %v2861_v23, %v1314_v10  ;;  %v2164_v63 = vld [vmem:[%s2285_s11 + $0x10] sm:$0xff] }
 0x263   : > { %v1579_v26 = vmax.f32 %v1510_v62, 0.0  ;;  %v1382_v18 = vmax.f32 %v1350_v59, 0.0 }
 0x264   : > { %v1260_v29 = vpop.permute.xlu1 %1259 }
 0x265   : > { %v1607_v41 = vpack.c.bf16 %v1579_v26, %v1578_v43  ;;  %v1297_v42 = vmul.f32 %v2840_v52, %v1260_v29  ;;  %v1406_v27 = vpack.c.bf16 %v1382_v18, %v1381_v0  ;;  %v2165_v29 = vld [vmem:[%s2285_s11 + $0x18] sm:$0xff] }
 0x266   : > { %v1547_v60 = vpop.f32.mrf.mxu2 }
 0x267   : > { %v1329_v21 = vadd.f32 %v1297_v42, %v1136_v56  ;;  %1526 = vmatmul.bf16.gmra.mxu0 %v1406_v27  ;;  %2015 = vmatmul.msk.bf16.gmra.mxu1 %vm1656_vm0, %v1607_v41  ;;  %v1548_v3 = vadd.f32 %v3098_v57, %v1547_v60 }
 0x269   : > { %v1365_v35 = vadd.f32 %v2861_v23, %v1329_v21  ;;  %v1594_v52 = vmax.f32 %v1548_v3, 0.0  ;;  %v3184_v23 = vld [vmem:[%s3362_s6] ss:$0 sm:$0xff]  ;;  %v2166_v3 = vld [vmem:[%s2285_s11 + $0x90] sm:$0xff] }
 0x26b   : > { %v1397_v25 = vmax.f32 %v1365_v35, 0.0 }
 0x26d   : > { %v1414_v34 = vpack.c.bf16 %v1398_v32, %v1397_v25 }
 0x26e   : > { %v1549_v9 = vpop.f32.mrf.mxu2 }
 0x26f   : > { %v1550_v49 = vadd.f32 %v3098_v57, %v1549_v9  ;;  %1566 = vmatmul.bf16.gmra.mxu2 %v1414_v34 }
 0x271   : > { %v1595_v51 = vmax.f32 %v1550_v49, 0.0 }
 0x273   : > { %v1615_v30 = vpack.c.bf16 %v1595_v51, %v1594_v52 }
 0x275   : > { %2023 = vmatmul.msk.bf16.gmra.mxu3 %vm1656_vm0, %v1615_v30  ;;  %v2167_v30 = vld [vmem:[%s2285_s11 + $0x20] sm:$0xff] }
 0x27b   : > { %v1512_v11 = vpop.f32.mrf.mxu0 }
 0x27c   : > { %v1513_v39 = vadd.f32 %v3098_v57, %v1512_v11 }
 0x27e   : > { %v1580_v13 = vmax.f32 %v1513_v39, 0.0 }
 0x283   : > { %v1514_v38 = vpop.f32.mrf.mxu0  ;;  %v1714_v45 = vpop.f32.mrf.mxu1 }
 0x284   : > { %v1515_v46 = vadd.f32 %v3098_v57, %v1514_v38  ;;  %v1715_v33 = vadd.f32 %v3184_v23, %v1714_v45  ;;  %v2168_v38 = vld [vmem:[%s2285_s11 + $0x98] sm:$0xff] }
 0x286   : > { %v1581_v15 = vmax.f32 %v1515_v46, 0.0  ;;  %v1794_v24 = vadd.f32 %v2162_v16, %v1715_v33 }
 0x288   : > { %v1608_v6 = vpack.c.bf16 %v1581_v15, %v1580_v13  ;;  %1827 = vst.msk [vmem:[%s3194_s13] sm:$0xff] %vm1826_vm1, %v1794_v24 }
 0x289   : > { %v1552_v53 = vpop.f32.mrf.mxu2 }
 0x28a   : > { %2016 = vmatmul.msk.bf16.gmra.mxu1 %vm1656_vm0, %v1608_v6  ;;  %v1553_v1 = vadd.f32 %v3098_v57, %v1552_v53  ;;  %v2169_v53 = vld [vmem:[%s2285_s11 + $0x28] sm:$0xff] }
 0x28b   : > { %v1716_v28 = vpop.f32.mrf.mxu1 }
 0x28c   : > { %v1717_v8 = vadd.f32 %v3184_v23, %v1716_v28  ;;  %v1596_v2 = vmax.f32 %v1553_v1, 0.0 }
 0x28e   : > { %v1795_v14 = vadd.f32 %v2163_v20, %v1717_v8 }
 0x290   : > { %1828 = vst.msk [vmem:[%s3194_s13 + $0x8] sm:$0xff] %vm1826_vm1, %v1795_v14 }
 0x291   : > { %v1554_v54 = vpop.f32.mrf.mxu2 }
 0x292   : > { %v1555_v12 = vadd.f32 %v3098_v57, %v1554_v54 }
 0x294   : > { %v1597_v40 = vmax.f32 %v1555_v12, 0.0 }
 0x296   : > { %v1616_v58 = vpack.c.bf16 %v1597_v40, %v1596_v2 }
 0x298   : > { %2024 = vmatmul.msk.bf16.gmra.mxu3 %vm1656_vm0, %v1616_v58 }
 0x29e   : > { %v1517_v37 = vpop.f32.mrf.mxu0 }
 0x29f   : > { %v1518_v62 = vadd.f32 %v3098_v57, %v1517_v37  ;;  %v2170_v37 = vld [vmem:[%s2285_s11 + $0xa0] sm:$0xff] }
 0x2a0   : > { %v1719_v31 = vpop.f32.mrf.mxu1 }
 0x2a1   : > { %v1720_v10 = vadd.f32 %v3184_v23, %v1719_v31  ;;  %v1582_v36 = vmax.f32 %v1518_v62, 0.0  ;;  %v2171_v62 = vld [vmem:[%s2285_s11 + $0xa8] sm:$0xff] }
 0x2a3   : > { %v1796_v5 = vadd.f32 %v2164_v63, %v1720_v10 }
 0x2a5   : > { %1829 = vst.msk [vmem:[%s3194_s13 + $0x10] sm:$0xff] %vm1826_vm1, %v1796_v5 }
 0x2a6   : > { %v1519_v59 = vpop.f32.mrf.mxu0 }
 0x2a7   : > { %v1520_v47 = vadd.f32 %v3098_v57, %v1519_v59 }
 0x2a8   : > { %v1721_v0 = vpop.f32.mrf.mxu1 }
 0x2a9   : > { %v1583_v43 = vmax.f32 %v1520_v47, 0.0  ;;  %v1722_v26 = vadd.f32 %v3184_v23, %v1721_v0 }
 0x2ab   : > { %v1609_v18 = vpack.c.bf16 %v1583_v43, %v1582_v36  ;;  %v1797_v56 = vadd.f32 %v2165_v29, %v1722_v26  ;;  %v2172_v43 = vld [vmem:[%s2285_s11 + $0x30] sm:$0xff] }
 0x2ac   : > { %v1557_v41 = vpop.f32.mrf.mxu2 }
 0x2ad   : > { %1830 = vst.msk [vmem:[%s3194_s13 + $0x18] sm:$0xff] %vm1826_vm1, %v1797_v56  ;;  %2017 = vmatmul.msk.bf16.gmra.mxu1 %vm1656_vm0, %v1609_v18  ;;  %v1558_v42 = vadd.f32 %v3098_v57, %v1557_v41 }
 0x2af   : > { %v1598_v21 = vmax.f32 %v1558_v42, 0.0 }
 0x2b4   : > { %v1559_v27 = vpop.f32.mrf.mxu2 }
 0x2b5   : > { %v1560_v60 = vadd.f32 %v3098_v57, %v1559_v27 }
 0x2b7   : > { %v1599_v44 = vmax.f32 %v1560_v60, 0.0 }
 0x2b9   : > { %v1617_v35 = vpack.c.bf16 %v1599_v44, %v1598_v21  ;;  %v2173_v21 = vld [vmem:[%s2285_s11 + $0x38] sm:$0xff] }
 0x2bb   : > { %v1759_v25 = vpop.f32.mrf.mxu3  ;;  %2025 = vmatmul.msk.bf16.gmra.mxu3 %vm1656_vm0, %v1617_v35 }
 0x2bc   : > { %v1760_v32 = vadd.f32 %v3184_v23, %v1759_v25 }
 0x2be   : > { %v1812_v34 = vadd.f32 %v2166_v3, %v1760_v32 }
 0x2c0   : > { %1845 = vst.msk [vmem:[%s3194_s13 + $0x90] sm:$0xff] %vm1826_vm1, %v1812_v34 }
 0x2c1   : > { %v1522_v9 = vpop.f32.mrf.mxu0  ;;  %v1724_v49 = vpop.f32.mrf.mxu1 }
 0x2c2   : > { %v1725_v52 = vadd.f32 %v3184_v23, %v1724_v49  ;;  %v1523_v46 = vadd.f32 %v3098_v57, %v1522_v9  ;;  %v2174_v49 = vld [vmem:[%s2285_s11 + $0xb0] sm:$0xff] }
 0x2c3   : > { %v1761_v51 = vpop.f32.mrf.mxu3 }
 0x2c4   : > { %v1798_v11 = vadd.f32 %v2167_v30, %v1725_v52  ;;  %v1762_v39 = vadd.f32 %v3184_v23, %v1761_v51  ;;  %v1584_v24 = vmax.f32 %v1523_v46, 0.0  ;;  %v2175_v46 = vld [vmem:[%s2285_s11 + $0xb8] sm:$0xff] }
 0x2c6   : > { %1831 = vst.msk [vmem:[%s3194_s13 + $0x20] sm:$0xff] %vm1826_vm1, %v1798_v11  ;;  %v1813_v45 = vadd.f32 %v2168_v38, %v1762_v39 }
 0x2c8   : > { %1846 = vst.msk [vmem:[%s3194_s13 + $0x98] sm:$0xff] %vm1826_vm1, %v1813_v45 }
 0x2c9   : > { %v1524_v33 = vpop.f32.mrf.mxu0  ;;  %v1726_v13 = vpop.f32.mrf.mxu1 }
 0x2ca   : > { %v1525_v15 = vadd.f32 %v3098_v57, %v1524_v33  ;;  %v1727_v16 = vadd.f32 %v3184_v23, %v1726_v13 }
 0x2cc   : > { %v1585_v6 = vmax.f32 %v1525_v15, 0.0  ;;  %v1799_v28 = vadd.f32 %v2169_v53, %v1727_v16  ;;  %v2176_v15 = vld [vmem:[%s2285_s11 + $0x40] sm:$0xff]  ;;  %v2177_v53 = vld [vmem:[%s2285_s11 + $0x48] sm:$0xff] }
 0x2ce   : > { %v1610_v8 = vpack.c.bf16 %v1585_v6, %v1584_v24  ;;  %1832 = vst.msk [vmem:[%s3194_s13 + $0x28] sm:$0xff] %vm1826_vm1, %v1799_v28 }
 0x2cf   : > { %v1562_v20 = vpop.f32.mrf.mxu2 }
 0x2d0   : > { %2018 = vmatmul.msk.bf16.gmra.mxu1 %vm1656_vm0, %v1610_v8  ;;  %v1563_v14 = vadd.f32 %v3098_v57, %v1562_v20  ;;  %v2178_v20 = vld [vmem:[%s2285_s11 + $0xc0] sm:$0xff] }
 0x2d2   : > { %v1600_v40 = vmax.f32 %v1563_v14, 0.0 }
 0x2d7   : > { %v1564_v1 = vpop.f32.mrf.mxu2 }
 0x2d8   : > { %v1565_v54 = vadd.f32 %v3098_v57, %v1564_v1  ;;  %v1764_v12 = vpop.f32.mrf.mxu3 }
 0x2d9   : > { %v1765_v2 = vadd.f32 %v3184_v23, %v1764_v12  ;;  %v2179_v12 = vld [vmem:[%s2285_s11 + $0xc8] sm:$0xff] }
 0x2da   : > { %v1601_v58 = vmax.f32 %v1565_v54, 0.0 }
 0x2db   : > { %v1814_v31 = vadd.f32 %v2170_v37, %v1765_v2  ;;  %v2180_v37 = vld [vmem:[%s2285_s11 + $0x50] sm:$0xff] }
 0x2dc   : > { %v1618_v10 = vpack.c.bf16 %v1601_v58, %v1600_v40 }
 0x2dd   : > { %1847 = vst.msk [vmem:[%s3194_s13 + $0xa0] sm:$0xff] %vm1826_vm1, %v1814_v31 }
 0x2de   : > { %2026 = vmatmul.msk.bf16.gmra.mxu3 %vm1656_vm0, %v1618_v10 }
 0x2e0   : > { %v1766_v63 = vpop.f32.mrf.mxu3 }
 0x2e1   : > { %v1767_v5 = vadd.f32 %v3184_v23, %v1766_v63 }
 0x2e3   : > { %v1815_v59 = vadd.f32 %v2171_v62, %v1767_v5  ;;  %v2181_v5 = vld [vmem:[%s2285_s11 + $0x58] sm:$0xff] }
 0x2e4   : > { %v1527_v47 = vpop.f32.mrf.mxu0  ;;  %v1729_v0 = vpop.f32.mrf.mxu1 }
 0x2e5   : > { %1848 = vst.msk [vmem:[%s3194_s13 + $0xa8] sm:$0xff] %vm1826_vm1, %v1815_v59  ;;  %v1730_v36 = vadd.f32 %v3184_v23, %v1729_v0  ;;  %v1528_v18 = vadd.f32 %v3098_v57, %v1527_v47  ;;  %v2182_v0 = vld [vmem:[%s2285_s11 + $0xd0] sm:$0xff] }
 0x2e7   : > { %v1800_v26 = vadd.f32 %v2172_v43, %v1730_v36  ;;  %v1586_v27 = vmax.f32 %v1528_v18, 0.0  ;;  %v2183_v18 = vld [vmem:[%s2285_s11 + $0xd8] sm:$0xff] }
 0x2e9   : > { %1833 = vst.msk [vmem:[%s3194_s13 + $0x30] sm:$0xff] %vm1826_vm1, %v1800_v26 }
 0x2ec   : > { %v1529_v29 = vpop.f32.mrf.mxu0  ;;  %v1731_v56 = vpop.f32.mrf.mxu1 }
 0x2ed   : > { %v1530_v41 = vadd.f32 %v3098_v57, %v1529_v29  ;;  %v1732_v42 = vadd.f32 %v3184_v23, %v1731_v56 }
 0x2ef   : > { %v1587_v60 = vmax.f32 %v1530_v41, 0.0  ;;  %v1801_v44 = vadd.f32 %v2173_v21, %v1732_v42 }
 0x2f1   : > { %v1611_v35 = vpack.c.bf16 %v1587_v60, %v1586_v27  ;;  %1834 = vst.msk [vmem:[%s3194_s13 + $0x38] sm:$0xff] %vm1826_vm1, %v1801_v44 }
 0x2f2   : > { %v1567_v25 = vpop.f32.mrf.mxu2 }
 0x2f3   : > { %2019 = vmatmul.msk.bf16.gmra.mxu1 %vm1656_vm0, %v1611_v35  ;;  %v1568_v3 = vadd.f32 %v3098_v57, %v1567_v25 }
 0x2f5   : > { %v1602_v30 = vmax.f32 %v1568_v3, 0.0 }
 0x2f8   : > { %v1769_v32 = vpop.f32.mrf.mxu3 }
 0x2f9   : > { %v1770_v34 = vadd.f32 %v3184_v23, %v1769_v32 }
 0x2fa   : > { %v1569_v9 = vpop.f32.mrf.mxu2 }
 0x2fb   : > { %v1816_v52 = vadd.f32 %v2174_v49, %v1770_v34  ;;  %v1570_v51 = vadd.f32 %v3098_v57, %v1569_v9 }
 0x2fd   : > { %1849 = vst.msk [vmem:[%s3194_s13 + $0xb0] sm:$0xff] %vm1826_vm1, %v1816_v52  ;;  %v1603_v11 = vmax.f32 %v1570_v51, 0.0 }
 0x2ff   : > { %v1619_v39 = vpack.c.bf16 %v1603_v11, %v1602_v30  ;;  %v2184_v30 = vld [vmem:[%s2285_s11 + $0x80] sm:$0xff] }
 0x300   : > { %v1771_v38 = vpop.f32.mrf.mxu3 }
 0x301   : > { %v1772_v45 = vadd.f32 %v3184_v23, %v1771_v38  ;;  %2027 = vmatmul.msk.bf16.gmra.mxu3 %vm1656_vm0, %v1619_v39 }
 0x303   : > { %v1817_v33 = vadd.f32 %v2175_v46, %v1772_v45  ;;  %2020 = vmatmul.msk.bf16.gmra.mxu1 %vm1656_vm0, %v3122_v17  ;;  %v2185_v46 = vld [vmem:[%s2285_s11 + $0x88] sm:$0xff] }
 0x305   : > { %1850 = vst.msk [vmem:[%s3194_s13 + $0xb8] sm:$0xff] %vm1826_vm1, %v1817_v33 }
 0x307   : > { %v1734_v57 = vpop.f32.mrf.mxu1 }
 0x308   : > { %v1735_v13 = vadd.f32 %v3184_v23, %v1734_v57 }
 0x30a   : > { %v1802_v16 = vadd.f32 %v2176_v15, %v1735_v13 }
 0x30c   : > { %1835 = vst.msk [vmem:[%s3194_s13 + $0x40] sm:$0xff] %vm1826_vm1, %v1802_v16 }
 0x30f   : > { %v1736_v24 = vpop.f32.mrf.mxu1 }
 0x310   : > { %v1737_v6 = vadd.f32 %v3184_v23, %v1736_v24 }
 0x312   : > { %v1803_v28 = vadd.f32 %v2177_v53, %v1737_v6 }
 0x314   : > { %1836 = vst.msk [vmem:[%s3194_s13 + $0x48] sm:$0xff] %vm1826_vm1, %v1803_v28 }
 0x31b   : > { %v1774_v17 = vpop.f32.mrf.mxu3 }
 0x31c   : > { %v1775_v8 = vadd.f32 %v3184_v23, %v1774_v17 }
 0x31e   : > { %v1818_v14 = vadd.f32 %v2178_v20, %v1775_v8 }
 0x320   : > { %1851 = vst.msk [vmem:[%s3194_s13 + $0xc0] sm:$0xff] %vm1826_vm1, %v1818_v14 }
 0x323   : > { %v1776_v1 = vpop.f32.mrf.mxu3 }
 0x324   : > { %v1777_v54 = vadd.f32 %v3184_v23, %v1776_v1 }
 0x326   : > { %v1819_v2 = vadd.f32 %v2179_v12, %v1777_v54 }
 0x328   : > { %1852 = vst.msk [vmem:[%s3194_s13 + $0xc8] sm:$0xff] %vm1826_vm1, %v1819_v2 }
 0x32a   : > { %v1739_v40 = vpop.f32.mrf.mxu1 }
 0x32b   : > { %v1740_v58 = vadd.f32 %v3184_v23, %v1739_v40 }
 0x32d   : > { %v1804_v31 = vadd.f32 %v2180_v37, %v1740_v58 }
 0x32f   : > { %1837 = vst.msk [vmem:[%s3194_s13 + $0x50] sm:$0xff] %vm1826_vm1, %v1804_v31 }
 0x332   : > { %v1741_v10 = vpop.f32.mrf.mxu1 }
 0x333   : > { %v1742_v63 = vadd.f32 %v3184_v23, %v1741_v10 }
 0x335   : > { %v1805_v62 = vadd.f32 %v2181_v5, %v1742_v63 }
 0x337   : > { %1838 = vst.msk [vmem:[%s3194_s13 + $0x58] sm:$0xff] %vm1826_vm1, %v1805_v62 }
 0x33e   : > { %v1779_v59 = vpop.f32.mrf.mxu3 }
 0x33f   : > { %v1780_v47 = vadd.f32 %v3184_v23, %v1779_v59 }
 0x341   : > { %v1820_v36 = vadd.f32 %v2182_v0, %v1780_v47 }
 0x343   : > { %1853 = vst.msk [vmem:[%s3194_s13 + $0xd0] sm:$0xff] %vm1826_vm1, %v1820_v36 }
 0x346   : > { %v1781_v43 = vpop.f32.mrf.mxu3 }
 0x347   : > { %v1782_v26 = vadd.f32 %v3184_v23, %v1781_v43 }
 0x349   : > { %v1821_v29 = vadd.f32 %v2183_v18, %v1782_v26 }
 0x34b   : > { %1854 = vst.msk [vmem:[%s3194_s13 + $0xd8] sm:$0xff] %vm1826_vm1, %v1821_v29 }
 0x34d   : > { %v1744_v56 = vpop.f32.mrf.mxu1 }
 0x34e   : > { %v1745_v41 = vadd.f32 %v3184_v23, %v1744_v56 }
 0x350   : > { %v1806_v42 = vadd.f32 %v2981_v7, %v1745_v41 }
 0x352   : > { %1839 = vst.msk [vmem:[%s3194_s13 + $0x60] sm:$0xff] %vm1826_vm1, %v1806_v42 }
 0x355   : > { %v1746_v27 = vpop.f32.mrf.mxu1 }
 0x356   : > { %v1747_v60 = vadd.f32 %v3184_v23, %v1746_v27 }
 0x358   : > { %v1807_v21 = vadd.f32 %v2990_v61, %v1747_v60 }
 0x35a   : > { %1840 = vst.msk [vmem:[%s3194_s13 + $0x68] sm:$0xff] %vm1826_vm1, %v1807_v21 }
 0x361   : > { %v1784_v44 = vpop.f32.mrf.mxu3 }
 0x362   : > { %v1785_v35 = vadd.f32 %v3184_v23, %v1784_v44 }
 0x364   : > { %v1822_v25 = vadd.f32 %v3012_v48, %v1785_v35 }
 0x366   : > { %1855 = vst.msk [vmem:[%s3194_s13 + $0xe0] sm:$0xff] %vm1826_vm1, %v1822_v25 }
 0x369   : > { %v1786_v7 = vpop.f32.mrf.mxu3 }
 0x36a   : > { %v1787_v32 = vadd.f32 %v3184_v23, %v1786_v7 }
 0x36c   : > { %v1823_v3 = vadd.f32 %v2997_v4, %v1787_v32 }
 0x36e   : > { %1856 = vst.msk [vmem:[%s3194_s13 + $0xe8] sm:$0xff] %vm1826_vm1, %v1823_v3 }
 0x370   : > { %v1749_v61 = vpop.f32.mrf.mxu1 }
 0x371   : > { %v1750_v34 = vadd.f32 %v3184_v23, %v1749_v61 }
 0x373   : > { %v1808_v9 = vadd.f32 %v3039_v50, %v1750_v34 }
 0x375   : > { %1841 = vst.msk [vmem:[%s3194_s13 + $0x70] sm:$0xff] %vm1826_vm1, %v1808_v9 }
 0x378   : > { %v1751_v48 = vpop.f32.mrf.mxu1 }
 0x379   : > { %v1752_v49 = vadd.f32 %v3184_v23, %v1751_v48 }
 0x37b   : > { %v1809_v52 = vadd.f32 %v3049_v22, %v1752_v49 }
 0x37d   : > { %1842 = vst.msk [vmem:[%s3194_s13 + $0x78] sm:$0xff] %vm1826_vm1, %v1809_v52 }
 0x380   : > { %v1754_v4 = vpop.f32.mrf.mxu1 }
 0x381   : > { %v1755_v51 = vadd.f32 %v3184_v23, %v1754_v4 }
 0x383   : > { %v1810_v11 = vadd.f32 %v2184_v30, %v1755_v51 }
 0x384   : > { %v1789_v39 = vpop.f32.mrf.mxu3 }
 0x385   : > { %1843 = vst.msk [vmem:[%s3194_s13 + $0x80] sm:$0xff] %vm1826_vm1, %v1810_v11  ;;  %v1790_v50 = vadd.f32 %v3184_v23, %v1789_v39 }
 0x387   : > { %v1824_v38 = vadd.f32 %v3078_v55, %v1790_v50 }
 0x388   : > { %v1756_v45 = vpop.f32.mrf.mxu1 }
 0x389   : > { %1857 = vst.msk [vmem:[%s3194_s13 + $0xf0] sm:$0xff] %vm1826_vm1, %v1824_v38  ;;  %v1757_v22 = vadd.f32 %v3184_v23, %v1756_v45 }
 0x38b   : > { %v1811_v33 = vadd.f32 %v2185_v46, %v1757_v22 }
 0x38c   : > { %v1791_v57 = vpop.f32.mrf.mxu3 }
 0x38d   : > { %1844 = vst.msk [vmem:[%s3194_s13 + $0x88] sm:$0xff] %vm1826_vm1, %v1811_v33  ;;  %v1792_v13 = vadd.f32 %v3184_v23, %v1791_v57 }
 0x38f   : > { %v1825_v15 = vadd.f32 %v3058_v19, %v1792_v13 }
 0x391   : > { %1858 = vst.msk [vmem:[%s3194_s13 + $0xf8] sm:$0xff] %vm1826_vm1, %v1825_v15 }
 0x392 PF: > { %s17_s26 = sadd.s32 1, %s2208_s26   ;;  %s3431_s24 = smov %s2204_s25 }
 0x393   : > { %p14_p5 = scmp.ge.s32.totalorder %s17_s26, 4   ;;  %s3432_s25 = smov %s3434_s27 }
 0x395   :  { %16 = sbr.rel (!%p14_p5) target bundleno = 2 (0x2), region = 81 }

// kernel: model_forward.13
= control target key start
LH: loop header
LB: loop body
LE: loop exit
PB: predicated region body
PF: predicated region fallthrough
CT: control target
= control target key end

     0   :  { %s1434_s15 = smov [#allocation6]   ;;  %s2093_s0 = inlined_call_operand.vmem [shape: s32[4], index: 0, kind: input, shape index: {}]   ;;  %s2094_s1 = inlined_call_operand.vmem [shape: f32[4,2,3,256], index: 1, kind: input, shape index: {}]   ;;  %s2095_s2 = inlined_call_operand.vmem [shape: f32[2,256,3], index: 2, kind: input, shape index: {}]   ;;  %s2096_s3 = inlined_call_operand.vmem [shape: f32[4,2,1,4], index: 3, kind: output, shape index: {}]  }
   0x1   :  { %s9_s14 = sshll.u32 %s2093_s0, 4  ;;  %s10_s14 = int_to_ptr.vmem [resolvable:$true] %s9_s14 }
   0x2   :  { %12 = dma.vmem_to_smem %s10_s14, 16, %s1434_s15, [#allocation5] }
   0x3   :  { %1404 = dma.done.wait [#allocation5], 16 }
   0x4   :  { %1405 = vsyncadd [#allocation5], 4294967280 }
   0x5   :  { %15 = sfence }
   0x6   :  { %s1462_s16 = smov 0   ;;  %s1464_s17 = smov 0  }
   0x7   :  { %s1466_s18 = smov 0   ;;  %s1468_s19 = smov 0  }
   0x8   :  { %s1470_s20 = smov 0   ;;  %s1472_s21 = smov 0  }
   0x9   :  { %s1474_s22 = smov 0  }
   0xa LB: > { %s33_s0 = sadd.s32 1, %s1420_s19  ;;  %s36_s23 = sadd.s32 1, %s1424_s20  ;;  %s1432_s22 = sphi %s1474_s22, %s21_s22   ;;  %s1428_s21 = sphi %s1472_s21, %s2106_s21   ;;  %s1424_s20 = sphi %s1470_s20, %s2105_s20   ;;  %s1420_s19 = sphi %s1468_s19, %s2104_s19   ;;  %s1416_s18 = sphi %s1466_s18, %s2103_s18   ;;  %s1412_s17 = sphi %s1464_s17, %s2102_s17   ;;  %s1408_s16 = sphi %s1462_s16, %s2101_s16  }
   0xb   : > { %p34_p0 = scmp.ge.s32.totalorder %s33_s0, 2  ;;  %p1217_p1 = scmp.ge.s32.totalorder %s1432_s22, 1 }
   0xc   : > { %p165_p2 = scmp.lt.s32.totalorder %s1432_s22, 17  ;;  %s40_s24 = sadd.s32 1, %s1428_s21 }
   0xd   : > { %s2108_s0 = smov (%p34_p0, %s33_s0), 0  ;;  %s2110_s23 = smov (!%p34_p0, %s36_s23), %s1424_s20 }
   0xe   : > { %p166_p3 = pnand %p1217_p1, %p165_p2  ;;  %p38_p4 = scmp.ge.s32.totalorder %s2110_s23, 2 }
   0xf   : > { %p202_p6 = scmp.lt.s32.totalorder (!%p166_p3), %s1416_s18, 3  ;;  %p204_p7 = scmp.lt.s32.totalorder (!%p166_p3), %s1412_s17, 1 }
  0x10   : > { %s2112_s23 = smov (%p38_p4, %s2110_s23), 0  ;;  %s2114_s24 = smov (!%p38_p4, %s40_s24), %s1428_s21 }
  0x11   : > { %p42_p5 = scmp.ge.s32.totalorder %s2114_s24, 4  ;;  %169 = sbr.rel (%p166_p3) target bundleno = 699 (0x2bb), region = 28 }
  0x12   : > { %s1221_s25 = sshll.u32 (!%p166_p3), %s1408_s16, 4  ;;  %s231_s26 = sld [smem:[#allocation6 + %s1416_s18]] (!%p166_p3) }
  0x13   : > { %s2116_s24 = smov (%p42_p5, %s2114_s24), 0  ;;  %p214_p8 = scmp.lt.s32.totalorder (!%p166_p3), %s1221_s25, 31 }
  0x14   : > { %p1225_p9 = scmp.ne.s32.totalorder (!%p166_p3), %s1408_s16, 0 }
  0x16   : > { %v228_v0 = vlaneseq  ;;  %s203_s27 = scalar_select %p202_p6, %s1416_s18, 3 }
  0x17   : > { %s2118_s17 = smov (!%p204_p7, %s1412_s17), 1  ;;  %s2120_s25 = smov (!%p214_p8, %s1221_s25), 31 }
  0x18   : > { %v229_v1 = vand.u32 127, %v228_v0  ;;  %s1219_s28 = sshll.u32 %s203_s27, 2  ;;  %s1218_s29 = sshll.u32 %s2118_s17, 1  ;;  %v232_v3 = vstv %s231_s26 }
  0x19   : > { %s1222_s30 = sshll.u32 %s2118_s17, 5  ;;  %s208_s4 = sadd.s32 %s1219_s28, %s1218_s29 }
  0x1a   : > { %v230_v2 = vadd.s32 128, %v229_v1  ;;  %s1224_s5 = sshll.u32 %s203_s27, 1  ;;  %s1220_s6 = sshll.u32 %s208_s4, 2  ;;  %vm1522_vm0 = vcmp.lt.s32.totalorder %v229_v1, %v232_v3 }
  0x1b   : > { %s1513_s7 = sadd.s32 %s1224_s5, %s2118_s17  ;;  %s210_s10 = scalar_lea.vmem %s2094_s1, %s1220_s6 }
  0x1c   : > { %s227_s13 = scalar_lea.vmem %s2096_s3, %s1513_s7  ;;  %vm1526_vm1 = vcmp.lt.s32.totalorder %v230_v2, %v232_v3  ;;  %s217_s14 = sadd.s32 %s1222_s30, %s2120_s25 }
  0x1d   : > { %s1223_s15 = sshll.u32 %s217_s14, 3  ;;  %238 = sbr.rel (%p1225_p9) target bundleno = 61 (0x3d), region = 32 }
  0x1e   : > { %s1533_s27 = scalar_lea.vmem %s2095_s2, %s1223_s15 }
  0x22   : > { %v239_v6 = vld [vmem:[%s210_s10] sm:$0x77]  ;;  %vm277_vm2 = vcmp.lt.s32.totalorder %v228_v0, 256  ;;  %v1435_v8 = vmov inf   ;;  %vm280_vm3 = vcmask 8192   ;;  %v1436_v9 = vmov 0.0  }
  0x23   : > { %v240_v7 = vmul.f32 %v239_v6, %v239_v6  ;;  %279 = vst.msk [vmem:[#allocation3] sm:$0x3] %vm277_vm2, %v1435_v8  ;;  %vm247_vm4 = vcmask 1042432   ;;  %vm270_vm5 = vcmask 1043456  }
  0x24   : > { %281 = vst.msk [vmem:[#allocation4] sm:$0x1] %vm280_vm3, %v1436_v9 }
  0x25   : > { %242 = vst [vmem:[#allocation1] ss:$2 sm:$0xff] %v240_v7 }
  0x2c   : > { %v243_v10 = vld.sshfl [vmem:[#allocation1] sm:$0xff pattern:$0x75316420]  ;;  %v244_v11 = vld.sshfl [vmem:[#allocation1 + $0x8] sm:$0xff pattern:$0x75316420] }
  0x2d   : > { %v248_v12 = vsel %vm247_vm4, %v243_v10, 0.0  ;;  %v255_v13 = vsel %vm247_vm4, %v244_v11, 0.0  ;;  %263 = vst [vmem:[#allocation1] ss:$2 sm:$0xff] %v239_v6 }
  0x2e   : > { %v249_v14 = vrot.slane %v248_v12, 4  ;;  %v256_v15 = vrot.slane %v255_v13, 4 }
  0x30   : > { %v250_v16 = vadd.f32 %v249_v14, %v248_v12  ;;  %v257_v17 = vadd.f32 %v256_v15, %v255_v13 }
  0x32   : > { %v251_v18 = vrot.slane %v250_v16, 2  ;;  %v258_v19 = vrot.slane %v257_v17, 2 }
  0x34   : > { %v252_v20 = vadd.f32 %v251_v18, %v250_v16  ;;  %v264_v21 = vld.sshfl [vmem:[#allocation1] sm:$0xff pattern:$0x75316420]  ;;  %v259_v22 = vadd.f32 %v258_v19, %v257_v17  ;;  %v265_v23 = vld.sshfl [vmem:[#allocation1 + $0x8] sm:$0xff pattern:$0x75316420] }
  0x35   : > { %v268_v26 = vsel %vm247_vm4, %v264_v21, 1.0  ;;  %v269_v27 = vsel %vm247_vm4, %v265_v23, 1.0 }
  0x36   : > { %v253_v24 = vrot.slane %v252_v20, 1  ;;  %v260_v25 = vrot.slane %v259_v22, 1 }
  0x38   : > { %v254_v28 = vadd.f32 %v253_v24, %v252_v20  ;;  %v261_v29 = vadd.f32 %v260_v25, %v259_v22 }
  0x3a   : > { %v271_v30 = vsel %vm270_vm5, %v268_v26, %v254_v28  ;;  %v272_v31 = vsel %vm270_vm5, %v269_v27, %v261_v29 }
  0x3b   : > { %273 = vst [vmem:[#allocation2] sm:$0x1f] %v271_v30 }
  0x3c   : > { %274 = vst [vmem:[#allocation2 + $0x8] sm:$0x1f] %v272_v31 }
  0x3d PF: > { %v1542_v32 = vld [vmem:[%s1533_s27] sm:$0xff]  ;;  %vm314_vm6 = vcmask 23552   ;;  %v1552_v36 = vld [vmem:[%s1533_s27 + $0x48] sm:$0xff]  ;;  %v1560_v39 = vld [vmem:[%s1533_s27 + $0x10] sm:$0xff]  ;;  %vm463_vm7 = vcmask 1044480   ;;  %vm395_vm8 = vcmask 31744  }
  0x3e   : > { %v1545_v33 = vld [vmem:[%s1533_s27 + $0x40] sm:$0xff]  ;;  %v298_v34 = vmul.f32 %v1542_v32, %v1542_v32  ;;  %v1555_v37 = vld [vmem:[%s1533_s27 + $0x8] sm:$0xff]  ;;  %v307_v38 = vmul.f32 %v1552_v36, %v1552_v36  ;;  %v1565_v42 = vld [vmem:[%s1533_s27 + $0x18] sm:$0xff]  ;;  %v300_v45 = vmul.f32 %v1560_v39, %v1560_v39  ;;  %v363_v21 = vmul.f32 -2.0, %v1542_v32  ;;  %p1260_p10 = scmp.ne.s32.totalorder %s1408_s16, 1 }
  0x3f   : > { %v306_v35 = vmul.f32 %v1545_v33, %v1545_v33  ;;  %v299_v44 = vmul.f32 %v1555_v37, %v1555_v37  ;;  %v301_v46 = vmul.f32 %v1565_v42, %v1565_v42  ;;  %v1578_v50 = vld [vmem:[%s1533_s27 + $0x50] sm:$0xff]  ;;  %v1581_v51 = vld [vmem:[%s1533_s27 + $0x20] sm:$0xff]  ;;  %v1584_v52 = vld [vmem:[%s1533_s27 + $0x58] sm:$0xff]  ;;  %v371_v22 = vmul.f32 -2.0, %v1545_v33  ;;  %s1031_s25 = sld [smem:[#allocation6 + %s1416_s18]] (!%p1260_p10)  ;;  %s1437_s16 = smov (!%p1260_p10), 1  }
  0x40   : > { %v315_v40 = vsel %vm314_vm6, %v298_v34, 0.0  ;;  %v342_v43 = vsel %vm314_vm6, %v307_v38, 0.0  ;;  %v321_v48 = vsel %vm314_vm6, %v300_v45, 0.0  ;;  %v308_v53 = vmul.f32 %v1578_v50, %v1578_v50  ;;  %v1596_v59 = vld [vmem:[%s1533_s27 + $0x60] sm:$0xff]  ;;  %v1599_v60 = vld [vmem:[%s1533_s27 + $0x28] sm:$0xff]  ;;  %v1602_v61 = vld [vmem:[%s1533_s27 + $0x30] sm:$0xff] }
  0x41   : > { %v339_v41 = vsel %vm314_vm6, %v306_v35, 0.0  ;;  %316 = vadd.xlane.f32.xlu0 %v315_v40  ;;  %343 = vadd.xlane.f32.xlu2 %v342_v43  ;;  %v318_v47 = vsel %vm314_vm6, %v299_v44, 0.0  ;;  %v324_v49 = vsel %vm314_vm6, %v301_v46, 0.0  ;;  %v302_v54 = vmul.f32 %v1581_v51, %v1581_v51  ;;  %v1614_v7 = vld [vmem:[%s1533_s27 + $0x68] sm:$0xff]  ;;  %v1617_v8 = vld [vmem:[%s1533_s27 + $0x38] sm:$0xff]  ;;  %v1620_v9 = vld [vmem:[%s1533_s27 + $0x70] sm:$0xff] }
  0x42   : > { %340 = vadd.xlane.f32.xlu1 %v339_v41  ;;  %v309_v55 = vmul.f32 %v1584_v52, %v1584_v52  ;;  %v345_v56 = vsel %vm314_vm6, %v308_v53, 0.0  ;;  %v310_v62 = vmul.f32 %v1596_v59, %v1596_v59  ;;  %v303_v63 = vmul.f32 %v1599_v60, %v1599_v60  ;;  %v1632_v16 = vld [vmem:[%s1533_s27 + $0x78] sm:$0xff]  ;;  %v412_v19 = vld [vmem:[#allocation2] sm:$0x1f]  ;;  %s1438_s18 = smov (!%p1260_p10), 2  }
  0x43   : > { %v327_v57 = vsel %vm314_vm6, %v302_v54, 0.0  ;;  %v304_v1 = vmul.f32 %v1602_v61, %v1602_v61  ;;  %v311_v10 = vmul.f32 %v1614_v7, %v1614_v7  ;;  %v305_v11 = vmul.f32 %v1617_v8, %v1617_v8  ;;  %v413_v20 = vld [vmem:[#allocation2 + $0x8] sm:$0x1f]  ;;  %1226 = vmatpush.msk.msra.mxu0 %vm463_vm7, %v412_v19  ;;  %1263 = vmatpush.msk.msra.mxu2 %vm463_vm7, %v412_v19 }
  0x44   : > { %v348_v58 = vsel %vm314_vm6, %v309_v55, 0.0  ;;  %v351_v2 = vsel %vm314_vm6, %v310_v62, 0.0  ;;  %v330_v3 = vsel %vm314_vm6, %v303_v63, 0.0  ;;  %v312_v12 = vmul.f32 %v1620_v9, %v1620_v9  ;;  %1243 = vmatpush.msk.msra.mxu1 %vm463_vm7, %v413_v20  ;;  %1264 = vmatpush.msk.msra.mxu3 %vm463_vm7, %v413_v20 }
  0x45   : > { %v333_v6 = vsel %vm314_vm6, %v304_v1, 0.0  ;;  %v354_v13 = vsel %vm314_vm6, %v311_v10, 0.0  ;;  %v336_v14 = vsel %vm314_vm6, %v305_v11, 0.0  ;;  %v313_v17 = vmul.f32 %v1632_v16, %v1632_v16  ;;  %s1032_s28 = scvt.s32.f32 (!%p1260_p10), %s1031_s25 }
  0x46   : > { %v357_v15 = vsel %vm314_vm6, %v312_v12, 0.0  ;;  %vm414_vm9 = vcmask 39936   ;;  %v372_v28 = vmul.f32 -2.0, %v1552_v36  ;;  %v364_v31 = vmul.f32 -2.0, %v1555_v37 }
  0x47   : > { %v360_v18 = vsel %vm314_vm6, %v313_v17, 0.0  ;;  %v365_v34 = vmul.f32 -2.0, %v1560_v39  ;;  %v373_v37 = vmul.f32 -2.0, %v1578_v50  ;;  %v366_v45 = vmul.f32 -2.0, %v1565_v42 }
  0x48   : > { %v367_v55 = vmul.f32 -2.0, %v1581_v51  ;;  %v368_v1 = vmul.f32 -2.0, %v1599_v60  ;;  %v369_v12 = vmul.f32 -2.0, %v1602_v61  ;;  %v370_v61 = vmul.f32 -2.0, %v1617_v8 }
  0x49   : > { %319 = vadd.xlane.f32.xlu0 %v318_v47  ;;  %325 = vadd.xlane.f32.xlu2 %v324_v49  ;;  %vm678_vm10 = vcmask 1040384   ;;  %vm684_vm11 = vcmp.lt.s32.totalorder %v228_v0, 256 }
  0x4a   : > { %322 = vadd.xlane.f32.xlu1 %v321_v48  ;;  %v374_v48 = vmul.f32 -2.0, %v1584_v52 }
  0x51   : > { %346 = vadd.xlane.f32.xlu0 %v345_v56  ;;  %349 = vadd.xlane.f32.xlu2 %v348_v58 }
  0x52   : > { %328 = vadd.xlane.f32.xlu1 %v327_v57  ;;  %v375_v57 = vmul.f32 -2.0, %v1596_v59 }
  0x59   : > { %331 = vadd.xlane.f32.xlu0 %v330_v3  ;;  %334 = vadd.xlane.f32.xlu2 %v333_v6  ;;  %v376_v3 = vmul.f32 -2.0, %v1614_v7  ;;  %v377_v7 = vmul.f32 -2.0, %v1620_v9  ;;  %v378_v9 = vmul.f32 -2.0, %v1632_v16 }
  0x5a   : > { %352 = vadd.xlane.f32.xlu1 %v351_v2 }
  0x61   : > { %355 = vadd.xlane.f32.xlu0 %v354_v13  ;;  %358 = vadd.xlane.f32.xlu2 %v357_v15 }
  0x62   : > { %337 = vadd.xlane.f32.xlu1 %v336_v14 }
  0x69   : > { %361 = vadd.xlane.f32.xlu0 %v360_v18 }
  0xb4   : > { %v317_v23 = vpop.xlane.xlu0 %316  ;;  %v344_v27 = vpop.xlane.xlu2 %343 }
  0xb5   : > { %v341_v24 = vpop.xlane.xlu1 %340  ;;  %v379_v25 = vsel %vm314_vm6, %v363_v21, %v317_v23  ;;  %v388_v32 = vsel %vm314_vm6, %v372_v28, %v344_v27 }
  0xb6   : > { %v387_v26 = vsel %vm314_vm6, %v371_v22, %v341_v24  ;;  %v396_v29 = vsel %vm395_vm8, %v379_v25, 1.0  ;;  %v405_v36 = vsel %vm395_vm8, %v388_v32, 1.0 }
  0xb7   : > { %v404_v30 = vsel %vm395_vm8, %v387_v26, 1.0  ;;  %1227 = vmatmul.msk.f32.vlgmr.msra.gmra.mxu0 %vm414_vm9, %v396_v29  ;;  %1244 = vmatmul.msk.f32.vlgmr.msra.gmra.mxu1 %vm414_vm9, %v396_v29 }
  0xb8   : > { %1235 = vmatmul.msk.f32.vlgmr.msra.gmra.mxu2 %vm414_vm9, %v404_v30  ;;  %1252 = vmatmul.msk.f32.vlgmr.msra.gmra.mxu3 %vm414_vm9, %v404_v30 }
  0xbc   : > { %v320_v33 = vpop.xlane.xlu0 %319  ;;  %v326_v40 = vpop.xlane.xlu2 %325 }
  0xbd   : > { %v380_v35 = vsel %vm314_vm6, %v364_v31, %v320_v33  ;;  %v323_v38 = vpop.xlane.xlu1 %322  ;;  %v382_v50 = vsel %vm314_vm6, %v366_v45, %v326_v40 }
  0xbe   : > { %v397_v41 = vsel %vm395_vm8, %v380_v35, 1.0  ;;  %v381_v39 = vsel %vm314_vm6, %v365_v34, %v323_v38  ;;  %v399_v54 = vsel %vm395_vm8, %v382_v50, 1.0 }
  0xbf   : > { %1228 = vmatmul.msk.f32.gmra.mxu0 %vm414_vm9, %v397_v41  ;;  %1245 = vmatmul.msk.f32.gmra.mxu1 %vm414_vm9, %v397_v41  ;;  %v398_v44 = vsel %vm395_vm8, %v381_v39, 1.0 }
  0xc0   : > { %1236 = vmatmul.msk.f32.gmra.mxu2 %vm414_vm9, %v405_v36  ;;  %1253 = vmatmul.msk.f32.gmra.mxu3 %vm414_vm9, %v405_v36 }
  0xc4   : > { %v347_v43 = vpop.xlane.xlu0 %346  ;;  %v350_v53 = vpop.xlane.xlu2 %349 }
  0xc5   : > { %v389_v46 = vsel %vm314_vm6, %v373_v37, %v347_v43  ;;  %v329_v47 = vpop.xlane.xlu1 %328  ;;  %v390_v42 = vsel %vm314_vm6, %v374_v48, %v350_v53 }
  0xc6   : > { %v406_v49 = vsel %vm395_vm8, %v389_v46, 1.0  ;;  %v407_v52 = vsel %vm395_vm8, %v390_v42, 1.0  ;;  %v383_v62 = vsel %vm314_vm6, %v367_v55, %v329_v47 }
  0xc7   : > { %1229 = vmatmul.msk.f32.gmra.mxu0 %vm414_vm9, %v398_v44  ;;  %1246 = vmatmul.msk.f32.gmra.mxu1 %vm414_vm9, %v398_v44  ;;  %v400_v51 = vsel %vm395_vm8, %v383_v62, 1.0 }
  0xc8   : > { %1237 = vmatmul.msk.f32.gmra.mxu2 %vm414_vm9, %v406_v49  ;;  %1254 = vmatmul.msk.f32.gmra.mxu3 %vm414_vm9, %v406_v49 }
  0xcc   : > { %v332_v56 = vpop.xlane.xlu0 %331  ;;  %v335_v59 = vpop.xlane.xlu2 %334 }
  0xcd   : > { %v353_v58 = vpop.xlane.xlu1 %352  ;;  %v384_v10 = vsel %vm314_vm6, %v368_v1, %v332_v56  ;;  %v385_v15 = vsel %vm314_vm6, %v369_v12, %v335_v59 }
  0xce   : > { %v391_v63 = vsel %vm314_vm6, %v375_v57, %v353_v58  ;;  %v401_v60 = vsel %vm395_vm8, %v384_v10, 1.0  ;;  %v402_v18 = vsel %vm395_vm8, %v385_v15, 1.0 }
  0xcf   : > { %1230 = vmatmul.msk.f32.gmra.mxu0 %vm414_vm9, %v399_v54  ;;  %1247 = vmatmul.msk.f32.gmra.mxu1 %vm414_vm9, %v399_v54  ;;  %v408_v2 = vsel %vm395_vm8, %v391_v63, 1.0 }
  0xd0   : > { %1238 = vmatmul.msk.f32.gmra.mxu2 %vm414_vm9, %v407_v52  ;;  %1255 = vmatmul.msk.f32.gmra.mxu3 %vm414_vm9, %v407_v52 }
  0xd4   : > { %v356_v6 = vpop.xlane.xlu0 %355  ;;  %v359_v14 = vpop.xlane.xlu2 %358 }
  0xd5   : > { %v392_v11 = vsel %vm314_vm6, %v376_v3, %v356_v6  ;;  %v393_v17 = vsel %vm314_vm6, %v377_v7, %v359_v14  ;;  %v338_v20 = vpop.xlane.xlu1 %337 }
  0xd6   : > { %v409_v13 = vsel %vm395_vm8, %v392_v11, 1.0  ;;  %v410_v19 = vsel %vm395_vm8, %v393_v17, 1.0  ;;  %v386_v22 = vsel %vm314_vm6, %v370_v61, %v338_v20 }
  0xd7   : > { %1231 = vmatmul.msk.f32.gmra.mxu0 %vm414_vm9, %v400_v51  ;;  %1248 = vmatmul.msk.f32.gmra.mxu1 %vm414_vm9, %v400_v51  ;;  %v403_v8 = vsel %vm395_vm8, %v386_v22, 1.0 }
  0xd8   : > { %1239 = vmatmul.msk.f32.gmra.mxu2 %vm414_vm9, %v408_v2  ;;  %1256 = vmatmul.msk.f32.gmra.mxu3 %vm414_vm9, %v408_v2 }
  0xdc   : > { %v362_v21 = vpop.xlane.xlu0 %361 }
  0xdd   : > { %v394_v23 = vsel %vm314_vm6, %v378_v9, %v362_v21 }
  0xde   : > { %v411_v24 = vsel %vm395_vm8, %v394_v23, 1.0 }
  0xdf   : > { %1232 = vmatmul.msk.f32.gmra.mxu0 %vm414_vm9, %v401_v60  ;;  %1249 = vmatmul.msk.f32.gmra.mxu1 %vm414_vm9, %v401_v60 }
  0xe0   : > { %1240 = vmatmul.msk.f32.gmra.mxu2 %vm414_vm9, %v409_v13  ;;  %1257 = vmatmul.msk.f32.gmra.mxu3 %vm414_vm9, %v409_v13 }
  0xe7   : > { %1233 = vmatmul.msk.f32.gmra.mxu0 %vm414_vm9, %v402_v18  ;;  %1250 = vmatmul.msk.f32.gmra.mxu1 %vm414_vm9, %v402_v18 }
  0xe8   : > { %1241 = vmatmul.msk.f32.gmra.mxu2 %vm414_vm9, %v410_v19  ;;  %1258 = vmatmul.msk.f32.gmra.mxu3 %vm414_vm9, %v410_v19 }
  0xef   : > { %1234 = vmatmul.msk.f32.gmra.mxu0 %vm414_vm9, %v403_v8  ;;  %1251 = vmatmul.msk.f32.gmra.mxu1 %vm414_vm9, %v403_v8 }
  0xf0   : > { %1242 = vmatmul.msk.f32.gmra.mxu2 %vm414_vm9, %v411_v24  ;;  %1259 = vmatmul.msk.f32.gmra.mxu3 %vm414_vm9, %v411_v24 }
 0x134   : > { %v487_v16 = vpop.f32.mrf.mxu0  ;;  %v552_v25 = vpop.f32.mrf.mxu1 }
 0x135   : > { %v600_v26 = vmax.f32 %v487_v16, 0.0  ;;  %v601_v27 = vmax.f32 %v552_v25, 0.0 }
 0x137   : > { %v691_v28 = vsel %vm1522_vm0, %v600_v26, inf  ;;  %v692_v29 = vsel %vm1526_vm1, %v601_v27, inf }
 0x138   : > { %v723_v30 = vmin.f32 %v691_v28, %v692_v29 }
 0x13a   : > { %724 = vmin.xlane.f32.xlu1 %v723_v30 }
 0x13b   : > { %v1721_v31 = vpop.f32.mrf.mxu2  ;;  %v1723_v32 = vpop.f32.mrf.mxu3 }
 0x13c   : > { %v1725_v33 = vpop.f32.mrf.mxu0  ;;  %v1727_v34 = vpop.f32.mrf.mxu1  ;;  %v616_v18 = vmax.f32 %v1721_v31, 0.0  ;;  %v617_v61 = vmax.f32 %v1723_v32, 0.0 }
 0x13d   : > { %v602_v35 = vmax.f32 %v1725_v33, 0.0  ;;  %v603_v36 = vmax.f32 %v1727_v34, 0.0 }
 0x13e   : > { %v707_v24 = vsel %vm1522_vm0, %v616_v18, inf  ;;  %v708_v16 = vsel %vm1526_vm1, %v617_v61, inf }
 0x13f   : > { %v693_v38 = vsel %vm1522_vm0, %v602_v35, inf  ;;  %v694_v40 = vsel %vm1526_vm1, %v603_v36, inf }
 0x140   : > { %v726_v41 = vmin.f32 %v693_v38, %v694_v40 }
 0x142   : > { %727 = vmin.xlane.f32.xlu2 %v726_v41 }
 0x143   : > { %v1739_v37 = vpop.f32.mrf.mxu2  ;;  %v1741_v39 = vpop.f32.mrf.mxu3 }
 0x144   : > { %v493_v43 = vpop.f32.mrf.mxu0  ;;  %v558_v44 = vpop.f32.mrf.mxu1  ;;  %v618_v31 = vmax.f32 %v1739_v37, 0.0 }
 0x145   : > { %v604_v45 = vmax.f32 %v493_v43, 0.0  ;;  %v605_v46 = vmax.f32 %v558_v44, 0.0  ;;  %v747_v44 = vmin.f32 %v707_v24, %v708_v16 }
 0x147   : > { %v695_v47 = vsel %vm1522_vm0, %v604_v45, inf  ;;  %v696_v48 = vsel %vm1526_vm1, %v605_v46, inf  ;;  %v633_v9 = vmin.f32 %v600_v26, %v604_v45  ;;  %v654_v20 = vmin.f32 %v601_v27, %v605_v46 }
 0x148   : > { %v729_v49 = vmin.f32 %v695_v47, %v696_v48  ;;  %v619_v26 = vmax.f32 %v1741_v39, 0.0 }
 0x14a   : > { %730 = vmin.xlane.f32.xlu0 %v729_v49 }
 0x14b   : > { %v1747_v53 = vpop.f32.mrf.mxu2  ;;  %v1749_v50 = vpop.f32.mrf.mxu3 }
 0x14c   : > { %v496_v42 = vpop.f32.mrf.mxu0  ;;  %v561_v54 = vpop.f32.mrf.mxu1 }
 0x14d   : > { %v606_v55 = vmax.f32 %v496_v42, 0.0  ;;  %v607_v52 = vmax.f32 %v561_v54, 0.0  ;;  %v709_v42 = vsel %vm1522_vm0, %v618_v31, inf  ;;  %v710_v54 = vsel %vm1526_vm1, %v619_v26, inf }
 0x14f   : > { %v697_v56 = vsel %vm1522_vm0, %v606_v55, inf  ;;  %v698_v57 = vsel %vm1526_vm1, %v607_v52, inf  ;;  %v634_v37 = vmin.f32 %v602_v35, %v606_v55  ;;  %v655_v39 = vmin.f32 %v603_v36, %v607_v52 }
 0x150   : > { %v732_v58 = vmin.f32 %v697_v56, %v698_v57  ;;  %v620_v56 = vmax.f32 %v1747_v53, 0.0  ;;  %v621_v57 = vmax.f32 %v1749_v50, 0.0 }
 0x152   : > { %733 = vmin.xlane.f32.xlu1 %v732_v58 }
 0x153   : > { %v1755_v62 = vpop.f32.mrf.mxu2  ;;  %v1757_v63 = vpop.f32.mrf.mxu3 }
 0x154   : > { %v499_v51 = vpop.f32.mrf.mxu0  ;;  %v564_v1 = vpop.f32.mrf.mxu1  ;;  %v622_v41 = vmax.f32 %v1755_v62, 0.0  ;;  %v623_v43 = vmax.f32 %v1757_v63, 0.0 }
 0x155   : > { %v608_v2 = vmax.f32 %v499_v51, 0.0  ;;  %v609_v59 = vmax.f32 %v564_v1, 0.0  ;;  %v750_v1 = vmin.f32 %v709_v42, %v710_v54 }
 0x156   : > { %v713_v33 = vsel %vm1522_vm0, %v622_v41, inf  ;;  %v714_v34 = vsel %vm1526_vm1, %v623_v43, inf }
 0x157   : > { %v699_v3 = vsel %vm1522_vm0, %v608_v2, inf  ;;  %v700_v6 = vsel %vm1526_vm1, %v609_v59, inf  ;;  %v635_v25 = vmin.f32 %v633_v9, %v608_v2  ;;  %v656_v28 = vmin.f32 %v654_v20, %v609_v59 }
 0x158   : > { %v735_v10 = vmin.f32 %v699_v3, %v700_v6  ;;  %v756_v59 = vmin.f32 %v713_v33, %v714_v34 }
 0x15a   : > { %736 = vmin.xlane.f32.xlu2 %v735_v10 }
 0x15b   : > { %v1763_v11 = vpop.f32.mrf.mxu2  ;;  %v1765_v60 = vpop.f32.mrf.mxu3 }
 0x15c   : > { %v502_v12 = vpop.f32.mrf.mxu0  ;;  %v567_v13 = vpop.f32.mrf.mxu1  ;;  %v624_v3 = vmax.f32 %v1763_v11, 0.0  ;;  %v625_v6 = vmax.f32 %v1765_v60, 0.0 }
 0x15d   : > { %v610_v7 = vmax.f32 %v502_v12, 0.0  ;;  %v611_v14 = vmax.f32 %v567_v13, 0.0 }
 0x15f   : > { %v701_v15 = vsel %vm1522_vm0, %v610_v7, inf  ;;  %v702_v17 = vsel %vm1526_vm1, %v611_v14, inf  ;;  %v636_v35 = vmin.f32 %v634_v37, %v610_v7  ;;  %v657_v36 = vmin.f32 %v655_v39, %v611_v14 }
 0x160   : > { %v738_v19 = vmin.f32 %v701_v15, %v702_v17 }
 0x162   : > { %739 = vmin.xlane.f32.xlu0 %v738_v19 }
 0x163   : > { %v1773_v21 = vpop.f32.mrf.mxu2  ;;  %v1775_v22 = vpop.f32.mrf.mxu3 }
 0x164   : > { %v505_v23 = vpop.f32.mrf.mxu0  ;;  %v570_v8 = vpop.f32.mrf.mxu1  ;;  %v626_v17 = vmax.f32 %v1773_v21, 0.0 }
 0x165   : > { %v612_v29 = vmax.f32 %v505_v23, 0.0  ;;  %v613_v30 = vmax.f32 %v570_v8, 0.0 }
 0x167   : > { %v637_v27 = vmin.f32 %v635_v25, %v612_v29  ;;  %v658_v32 = vmin.f32 %v656_v28, %v613_v30  ;;  %v703_v38 = vsel %vm1522_vm0, %v612_v29, inf  ;;  %v704_v40 = vsel %vm1526_vm1, %v613_v30, inf }
 0x168   : > { %v741_v45 = vmin.f32 %v703_v38, %v704_v40  ;;  %v716_v28 = vsel %vm1526_vm1, %v625_v6, inf  ;;  %v711_v29 = vsel %vm1522_vm0, %v620_v56, inf  ;;  %v712_v30 = vsel %vm1526_vm1, %v621_v57, inf }
 0x169   : > { %v639_v46 = vmin.f32 %v637_v27, %v616_v18  ;;  %v660_v47 = vmin.f32 %v658_v32, %v617_v61  ;;  %v627_v18 = vmax.f32 %v1775_v22, 0.0  ;;  %v715_v22 = vsel %vm1522_vm0, %v624_v3, inf }
 0x16a   : > { %748 = vmin.xlane.f32.xlu0 %v747_v44  ;;  %742 = vmin.xlane.f32.xlu1 %v741_v45  ;;  %v759_v40 = vmin.f32 %v715_v22, %v716_v28  ;;  %v753_v44 = vmin.f32 %v711_v29, %v712_v30 }
 0x16b   : > { %v529_v48 = vpop.f32.mrf.mxu2  ;;  %v594_v49 = vpop.f32.mrf.mxu3  ;;  %v641_v63 = vmin.f32 %v639_v46, %v620_v56  ;;  %v662_v51 = vmin.f32 %v660_v47, %v621_v57  ;;  %v718_v42 = vsel %vm1526_vm1, %v627_v18, inf }
 0x16c   : > { %v508_v58 = vpop.f32.mrf.mxu0  ;;  %v573_v62 = vpop.f32.mrf.mxu1  ;;  %v628_v10 = vmax.f32 %v529_v48, 0.0  ;;  %v629_v14 = vmax.f32 %v594_v49, 0.0  ;;  %v717_v49 = vsel %vm1522_vm0, %v626_v17, inf }
 0x16d   : > { %v614_v55 = vmax.f32 %v508_v58, 0.0  ;;  %v615_v52 = vmax.f32 %v573_v62, 0.0  ;;  %v643_v61 = vmin.f32 %v641_v63, %v624_v3  ;;  %v664_v19 = vmin.f32 %v662_v51, %v625_v6 }
 0x16e   : > { %v719_v23 = vsel %vm1522_vm0, %v628_v10, inf  ;;  %v720_v8 = vsel %vm1526_vm1, %v629_v14, inf  ;;  %v762_v33 = vmin.f32 %v717_v49, %v718_v42 }
 0x16f   : > { %v638_v2 = vmin.f32 %v636_v35, %v614_v55  ;;  %v705_v53 = vsel %vm1522_vm0, %v614_v55, inf  ;;  %v659_v50 = vmin.f32 %v657_v36, %v615_v52  ;;  %v706_v12 = vsel %vm1526_vm1, %v615_v52, inf  ;;  %v632_v52 = vld [vmem:[#allocation3] sm:$0x3] }
 0x170   : > { %v744_v15 = vmin.f32 %v705_v53, %v706_v12  ;;  %v666_v27 = vmin.f32 %v664_v19, %v629_v14 }
 0x171   : > { %v640_v13 = vmin.f32 %v638_v2, %v618_v31  ;;  %v661_v7 = vmin.f32 %v659_v50, %v619_v26  ;;  %v765_v31 = vmin.f32 %v719_v23, %v720_v8  ;;  %v645_v26 = vmin.f32 %v643_v61, %v628_v10 }
 0x172   : > { %757 = vmin.xlane.f32.xlu0 %v756_v59  ;;  %751 = vmin.xlane.f32.xlu1 %v750_v1 }
 0x173   : > { %745 = vmin.xlane.f32.xlu2 %v744_v15  ;;  %v532_v11 = vpop.f32.mrf.mxu2  ;;  %v642_v9 = vmin.f32 %v640_v13, %v622_v41  ;;  %v597_v60 = vpop.f32.mrf.mxu3  ;;  %v663_v20 = vmin.f32 %v661_v7, %v623_v43 }
 0x174   : > { %v630_v24 = vmax.f32 %v532_v11, 0.0  ;;  %v631_v16 = vmax.f32 %v597_v60, 0.0 }
 0x175   : > { %v644_v21 = vmin.f32 %v642_v9, %v626_v17  ;;  %v665_v25 = vmin.f32 %v663_v20, %v627_v18 }
 0x176   : > { %v721_v46 = vsel %vm1522_vm0, %v630_v24, inf  ;;  %v722_v37 = vsel %vm1526_vm1, %v631_v16, inf }
 0x177   : > { %v646_v32 = vmin.f32 %v644_v21, %v630_v24  ;;  %v667_v38 = vmin.f32 %v665_v25, %v631_v16  ;;  %v768_v54 = vmin.f32 %v721_v46, %v722_v37 }
 0x179   : > { %v647_v41 = vmin.f32 %v645_v26, %v646_v32  ;;  %v668_v43 = vmin.f32 %v666_v27, %v667_v38 }
 0x17a   : > { %760 = vmin.xlane.f32.xlu1 %v759_v40  ;;  %766 = vmin.xlane.f32.xlu0 %v765_v31 }
 0x17b   : > { %v648_v45 = vrot.slane %v647_v41, 4  ;;  %v669_v47 = vrot.slane %v668_v43, 4  ;;  %754 = vmin.xlane.f32.xlu2 %v753_v44 }
 0x17d   : > { %v649_v39 = vmin.f32 %v647_v41, %v648_v45  ;;  %v670_v48 = vmin.f32 %v668_v43, %v669_v47 }
 0x17f   : > { %v650_v56 = vrot.slane %v649_v39, 2  ;;  %v671_v57 = vrot.slane %v670_v48, 2 }
 0x181   : > { %v651_v58 = vmin.f32 %v649_v39, %v650_v56  ;;  %v672_v62 = vmin.f32 %v670_v48, %v671_v57 }
 0x182   : > { %769 = vmin.xlane.f32.xlu1 %v768_v54 }
 0x183   : > { %v652_v34 = vrot.slane %v651_v58, 1  ;;  %v673_v35 = vrot.slane %v672_v62, 1  ;;  %763 = vmin.xlane.f32.xlu2 %v762_v33 }
 0x185   : > { %v674_v36 = vmin.f32 %v672_v62, %v673_v35  ;;  %v653_v55 = vmin.f32 %v651_v58, %v652_v34 }
 0x187   : > { %v677_v63 = vrot.slane %v674_v36, 7 }
 0x189   : > { %v679_v51 = vsel %vm678_vm10, %v653_v55, %v677_v63 }
 0x18a   : > { %v681_v1 = vmin.f32 %v632_v52, %v679_v51 }
 0x18c   : > { %686 = vst.msk [vmem:[#allocation3] sm:$0x3] %vm684_vm11, %v681_v1 }
 0x1ad   : > { %v725_v2 = vpop.xlane.xlu1 %724 }
 0x1ae   : > { %v1833_v50 = vadd.f32 1e-12, %v725_v2 }
 0x1b0   : > { %1328 = vrsqrt.f32 %v1833_v50  ;;  %vm815_vm12 = vcmp.eq.f32.partialorder %v1833_v50, inf  ;;  %vm817_vm13 = vcmp.eq.f32.partialorder %v1833_v50, 0.0  ;;  %v818_v42 = vand.u32 2147483648, %v1833_v50 }
 0x1b5   : > { %v728_v53 = vpop.xlane.xlu2 %727 }
 0x1b6   : > { %v1835_v59 = vadd.f32 1e-12, %v728_v53  ;;  %v1329_v10 = vpop.eup %1328  ;;  %v771_v54 = vadd.f32 %v728_v53, %v725_v2 }
 0x1b7   : > { %v809_v7 = vmul.f32 %v1329_v10, %v1833_v50 }
 0x1b8   : > { %1330 = vrsqrt.f32 %v1835_v59  ;;  %vm827_vm14 = vcmp.eq.f32.partialorder %v1835_v59, inf  ;;  %vm829_vm15 = vcmp.eq.f32.partialorder %v1835_v59, 0.0  ;;  %v830_v62 = vand.u32 2147483648, %v1835_v59 }
 0x1b9   : > { %v810_v17 = vmul.f32 %v1329_v10, %v809_v7 }
 0x1bb   : > { %v811_v20 = vmul.f32 0.5, %v810_v17 }
 0x1bd   : > { %v1837_v3 = vpop.xlane.xlu0 %730  ;;  %v812_v16 = vsub.f32 1.5, %v811_v20 }
 0x1be   : > { %v1841_v6 = vadd.f32 1e-12, %v1837_v3  ;;  %v1331_v13 = vpop.eup %1330  ;;  %v772_v36 = vadd.f32 %v771_v54, %v1837_v3 }
 0x1bf   : > { %v821_v15 = vmul.f32 %v1331_v13, %v1835_v59  ;;  %v813_v26 = vmul.f32 %v1329_v10, %v812_v16 }
 0x1c0   : > { %1332 = vrsqrt.f32 %v1841_v6  ;;  %vm839_vm2 = vcmp.eq.f32.partialorder %v1841_v6, inf  ;;  %vm841_vm3 = vcmp.eq.f32.partialorder %v1841_v6, 0.0  ;;  %v842_v52 = vand.u32 2147483648, %v1841_v6 }
 0x1c1   : > { %v822_v9 = vmul.f32 %v1331_v13, %v821_v15  ;;  %v814_v41 = vmul.f32 %v813_v26, %v1833_v50 }
 0x1c3   : > { %v823_v8 = vmul.f32 0.5, %v822_v9  ;;  %v816_v57 = vsel %vm815_vm12, %v1833_v50, %v814_v41 }
 0x1c4   : > { %v819_v55 = vsel %vm817_vm13, %v818_v42, %v816_v57 }
 0x1c5   : > { %v1845_v0 = vpop.xlane.xlu1 %733  ;;  %v824_v29 = vsub.f32 1.5, %v823_v8 }
 0x1c6   : > { %v1848_v12 = vadd.f32 1e-12, %v1845_v0  ;;  %v1333_v14 = vpop.eup %1332  ;;  %v773_v1 = vadd.f32 %v772_v36, %v1845_v0 }
 0x1c7   : > { %v833_v19 = vmul.f32 %v1333_v14, %v1841_v6  ;;  %v825_v38 = vmul.f32 %v1331_v13, %v824_v29 }
 0x1c8   : > { %1334 = vrsqrt.f32 %v1848_v12  ;;  %vm851_vm4 = vcmp.eq.f32.partialorder %v1848_v12, inf  ;;  %vm853_vm5 = vcmp.eq.f32.partialorder %v1848_v12, 0.0  ;;  %v854_v2 = vand.u32 2147483648, %v1848_v12 }
 0x1c9   : > { %v834_v23 = vmul.f32 %v1333_v14, %v833_v19  ;;  %v826_v48 = vmul.f32 %v825_v38, %v1835_v59 }
 0x1cb   : > { %v835_v22 = vmul.f32 0.5, %v834_v23  ;;  %v828_v35 = vsel %vm827_vm14, %v1835_v59, %v826_v48 }
 0x1cc   : > { %v831_v50 = vsel %vm829_vm15, %v830_v62, %v828_v35 }
 0x1cd   : > { %v1853_v18 = vpop.xlane.xlu2 %736  ;;  %v836_v27 = vsub.f32 1.5, %v835_v22  ;;  %v1000_v23 = vadd.f32 %v831_v50, %v819_v55 }
 0x1ce   : > { %v1335_v61 = vpop.eup %1334  ;;  %v1857_v11 = vadd.f32 1e-12, %v1853_v18  ;;  %v774_v17 = vadd.f32 %v773_v1, %v1853_v18 }
 0x1cf   : > { %v845_v60 = vmul.f32 %v1335_v61, %v1848_v12  ;;  %v837_v46 = vmul.f32 %v1333_v14, %v836_v27 }
 0x1d0   : > { %1336 = vrsqrt.f32 %v1857_v11  ;;  %vm863_vm7 = vcmp.eq.f32.partialorder %v1857_v11, inf  ;;  %vm865_vm8 = vcmp.eq.f32.partialorder %v1857_v11, 0.0  ;;  %v866_v26 = vand.u32 2147483648, %v1857_v11 }
 0x1d1   : > { %v846_v24 = vmul.f32 %v1335_v61, %v845_v60  ;;  %v838_v33 = vmul.f32 %v837_v46, %v1841_v6 }
 0x1d3   : > { %v847_v31 = vmul.f32 0.5, %v846_v24  ;;  %v840_v13 = vsel %vm839_vm2, %v1841_v6, %v838_v33 }
 0x1d4   : > { %v843_v18 = vsel %vm841_vm3, %v842_v52, %v840_v13 }
 0x1d5   : > { %v1861_v21 = vpop.xlane.xlu0 %739  ;;  %v848_v40 = vsub.f32 1.5, %v847_v31  ;;  %v1001_v31 = vadd.f32 %v1000_v23, %v843_v18 }
 0x1d6   : > { %v1337_v25 = vpop.eup %1336  ;;  %v1864_v28 = vadd.f32 1e-12, %v1861_v21  ;;  %v775_v8 = vadd.f32 %v774_v17, %v1861_v21 }
 0x1d7   : > { %v857_v30 = vmul.f32 %v1337_v25, %v1857_v11  ;;  %v849_v56 = vmul.f32 %v1335_v61, %v848_v40 }
 0x1d8   : > { %1338 = vrsqrt.f32 %v1864_v28  ;;  %vm875_vm9 = vcmp.eq.f32.partialorder %v1864_v28, inf  ;;  %vm877_vm11 = vcmp.eq.f32.partialorder %v1864_v28, 0.0 }
 0x1d9   : > { %v858_v32 = vmul.f32 %v1337_v25, %v857_v30  ;;  %v850_v63 = vmul.f32 %v849_v56, %v1848_v12 }
 0x1db   : > { %v859_v47 = vmul.f32 0.5, %v858_v32  ;;  %v852_v59 = vsel %vm851_vm4, %v1848_v12, %v850_v63 }
 0x1dc   : > { %v855_v22 = vsel %vm853_vm5, %v854_v2, %v852_v59 }
 0x1dd   : > { %v743_v43 = vpop.xlane.xlu1 %742  ;;  %v1869_v44 = vpop.xlane.xlu0 %748  ;;  %v860_v34 = vsub.f32 1.5, %v859_v47  ;;  %v1002_v40 = vadd.f32 %v1001_v31, %v855_v22 }
 0x1de   : > { %v1871_v45 = vpop.eup %1338  ;;  %v1873_v37 = vadd.f32 1e-12, %v743_v43  ;;  %v1876_v39 = vadd.f32 1e-12, %v1869_v44  ;;  %v776_v29 = vadd.f32 %v775_v8, %v743_v43  ;;  %v878_v43 = vand.u32 2147483648, %v1864_v28 }
 0x1df   : > { %v869_v49 = vmul.f32 %v1871_v45, %v1864_v28  ;;  %v861_v7 = vmul.f32 %v1337_v25, %v860_v34 }
 0x1e0   : > { %1340 = vrsqrt.f32 %v1873_v37  ;;  %vm887_vm12 = vcmp.eq.f32.partialorder %v1873_v37, inf  ;;  %vm889_vm13 = vcmp.eq.f32.partialorder %v1873_v37, 0.0  ;;  %v890_v63 = vand.u32 2147483648, %v1873_v37 }
 0x1e1   : > { %v870_v58 = vmul.f32 %v1871_v45, %v869_v49  ;;  %1342 = vrsqrt.f32 %v1876_v39  ;;  %v862_v16 = vmul.f32 %v861_v7, %v1857_v11  ;;  %vm911_vm14 = vcmp.eq.f32.partialorder %v1876_v39, inf }
 0x1e2   : > { %v914_v2 = vand.u32 2147483648, %v1876_v39  ;;  %vm913_vm15 = vcmp.eq.f32.partialorder %v1876_v39, 0.0 }
 0x1e3   : > { %v871_v51 = vmul.f32 0.5, %v870_v58  ;;  %v864_v41 = vsel %vm863_vm7, %v1857_v11, %v862_v16 }
 0x1e4   : > { %v867_v62 = vsel %vm865_vm8, %v866_v26, %v864_v41 }
 0x1e5   : > { %v1904_v53 = vpop.xlane.xlu1 %751  ;;  %v1906_v3 = vpop.xlane.xlu0 %757  ;;  %v872_v60 = vsub.f32 1.5, %v871_v51  ;;  %v1003_v50 = vadd.f32 %v1002_v40, %v867_v62 }
 0x1e6   : > { %v1341_v10 = vpop.eup %1340  ;;  %v1912_v14 = vadd.f32 1e-12, %v1904_v53  ;;  %v746_v0 = vpop.xlane.xlu2 %745  ;;  %v1919_v9 = vadd.f32 1e-12, %v1906_v3 }
 0x1e7   : > { %v1343_v15 = vpop.eup %1342  ;;  %v881_v61 = vmul.f32 %v1341_v10, %v1873_v37  ;;  %v1916_v19 = vadd.f32 1e-12, %v746_v0  ;;  %v873_v6 = vmul.f32 %v1871_v45, %v872_v60  ;;  %v777_v32 = vadd.f32 %v776_v29, %v746_v0 }
 0x1e8   : > { %v905_v20 = vmul.f32 %v1343_v15, %v1876_v39  ;;  %1344 = vrsqrt.f32 %v1912_v14  ;;  %vm923_vm4 = vcmp.eq.f32.partialorder %v1912_v14, inf  ;;  %vm925_vm5 = vcmp.eq.f32.partialorder %v1912_v14, 0.0 }
 0x1e9   : > { %v882_v24 = vmul.f32 %v1341_v10, %v881_v61  ;;  %1346 = vrsqrt.f32 %v1916_v19  ;;  %v874_v56 = vmul.f32 %v873_v6, %v1864_v28  ;;  %v778_v34 = vadd.f32 %v777_v32, %v1869_v44 }
 0x1ea   : > { %v906_v25 = vmul.f32 %v1343_v15, %v905_v20  ;;  %1348 = vrsqrt.f32 %v1919_v9  ;;  %vm899_vm2 = vcmp.eq.f32.partialorder %v1916_v19, inf  ;;  %vm901_vm3 = vcmp.eq.f32.partialorder %v1916_v19, 0.0 }
 0x1eb   : > { %v883_v30 = vmul.f32 0.5, %v882_v24  ;;  %v876_v44 = vsel %vm875_vm9, %v1864_v28, %v874_v56  ;;  %v779_v0 = vadd.f32 %v778_v34, %v1904_v53  ;;  %v902_v6 = vand.u32 2147483648, %v1916_v19 }
 0x1ec   : > { %v907_v21 = vmul.f32 0.5, %v906_v25  ;;  %v879_v60 = vsel %vm877_vm11, %v878_v43, %v876_v44  ;;  %vm947_vm7 = vcmp.eq.f32.partialorder %v1919_v9, inf  ;;  %vm949_vm11 = vcmp.eq.f32.partialorder %v1919_v9, 0.0 }
 0x1ed   : > { %v884_v27 = vsub.f32 1.5, %v883_v30  ;;  %v1939_v38 = vpop.xlane.xlu1 %760  ;;  %v1953_v42 = vpop.xlane.xlu0 %766  ;;  %v1004_v28 = vadd.f32 %v1003_v50, %v879_v60 }
 0x1ee   : > { %v1345_v12 = vpop.eup %1344  ;;  %v1947_v45 = vadd.f32 1e-12, %v1939_v38  ;;  %v755_v46 = vpop.xlane.xlu2 %754  ;;  %v908_v57 = vsub.f32 1.5, %v907_v21  ;;  %v1966_v52 = vadd.f32 1e-12, %v1953_v42 }
 0x1ef   : > { %v885_v47 = vmul.f32 %v1341_v10, %v884_v27  ;;  %v917_v48 = vmul.f32 %v1345_v12, %v1912_v14  ;;  %v1951_v49 = vadd.f32 1e-12, %v755_v46  ;;  %v1347_v54 = vpop.eup %1346  ;;  %v780_v53 = vadd.f32 %v779_v0, %v755_v46 }
 0x1f0   : > { %1350 = vrsqrt.f32 %v1947_v45  ;;  %v1349_v58 = vpop.eup %1348  ;;  %v893_v35 = vmul.f32 %v1347_v54, %v1916_v19  ;;  %v909_v1 = vmul.f32 %v1343_v15, %v908_v57 }
 0x1f1   : > { %v918_v33 = vmul.f32 %v1345_v12, %v917_v48  ;;  %v886_v36 = vmul.f32 %v885_v47, %v1873_v37  ;;  %v941_v55 = vmul.f32 %v1349_v58, %v1919_v9  ;;  %1352 = vrsqrt.f32 %v1951_v49 }
 0x1f2   : > { %v894_v51 = vmul.f32 %v1347_v54, %v893_v35  ;;  %1354 = vrsqrt.f32 %v1966_v52  ;;  %v910_v8 = vmul.f32 %v909_v1, %v1876_v39  ;;  %v781_v27 = vadd.f32 %v780_v53, %v1906_v3 }
 0x1f3   : > { %v919_v11 = vmul.f32 0.5, %v918_v33  ;;  %v942_v10 = vmul.f32 %v1349_v58, %v941_v55  ;;  %v888_v61 = vsel %vm887_vm12, %v1873_v37, %v886_v36  ;;  %v926_v3 = vand.u32 2147483648, %v1912_v14 }
 0x1f4   : > { %v895_v7 = vmul.f32 0.5, %v894_v51  ;;  %v891_v22 = vsel %vm889_vm13, %v890_v63, %v888_v61  ;;  %v912_v40 = vsel %vm911_vm14, %v1876_v39, %v910_v8  ;;  %v782_v34 = vadd.f32 %v781_v27, %v1939_v38 }
 0x1f5   : > { %v920_v13 = vsub.f32 1.5, %v919_v11  ;;  %v943_v59 = vmul.f32 0.5, %v942_v10  ;;  %v1005_v37 = vadd.f32 %v1004_v28, %v891_v22  ;;  %v770_v56 = vpop.xlane.xlu1 %769  ;;  %vm935_vm8 = vcmp.eq.f32.partialorder %v1951_v49, inf }
 0x1f6   : > { %v1351_v17 = vpop.eup %1350  ;;  %v764_v15 = vpop.xlane.xlu2 %763  ;;  %v896_v20 = vsub.f32 1.5, %v895_v7  ;;  %v2013_v11 = vadd.f32 1e-12, %v770_v56  ;;  %vm937_vm9 = vcmp.eq.f32.partialorder %v1951_v49, 0.0  ;;  %v938_v7 = vand.u32 2147483648, %v1951_v49 }
 0x1f7   : > { %v953_v23 = vmul.f32 %v1351_v17, %v1947_v45  ;;  %v1353_v18 = vpop.eup %1352  ;;  %v921_v24 = vmul.f32 %v1345_v12, %v920_v13  ;;  %v944_v16 = vsub.f32 1.5, %v943_v59  ;;  %v1985_v25 = vadd.f32 1e-12, %v764_v15 }
 0x1f8   : > { %v897_v29 = vmul.f32 %v1347_v54, %v896_v20  ;;  %v929_v31 = vmul.f32 %v1353_v18, %v1951_v49  ;;  %v1355_v12 = vpop.eup %1354  ;;  %v950_v20 = vand.u32 2147483648, %v1919_v9  ;;  %vm959_vm12 = vcmp.eq.f32.partialorder %v1947_v45, inf }
 0x1f9   : > { %v954_v30 = vmul.f32 %v1351_v17, %v953_v23  ;;  %1356 = vrsqrt.f32 %v1985_v25  ;;  %v922_v41 = vmul.f32 %v921_v24, %v1912_v14  ;;  %v945_v43 = vmul.f32 %v1349_v58, %v944_v16 }
 0x1fa   : > { %v898_v21 = vmul.f32 %v897_v29, %v1916_v19  ;;  %v930_v32 = vmul.f32 %v1353_v18, %v929_v31  ;;  %v977_v54 = vmul.f32 %v1355_v12, %v1966_v52  ;;  %v915_v58 = vsel %vm913_vm15, %v914_v2, %v912_v40 }
 0x1fb   : > { %v955_v26 = vmul.f32 0.5, %v954_v30  ;;  %v924_v36 = vsel %vm923_vm4, %v1912_v14, %v922_v41  ;;  %v946_v55 = vmul.f32 %v945_v43, %v1919_v9  ;;  %1358 = vrsqrt.f32 %v2013_v11 }
 0x1fc   : > { %v900_v46 = vsel %vm899_vm2, %v1916_v19, %v898_v21  ;;  %v931_v48 = vmul.f32 0.5, %v930_v32  ;;  %v978_v63 = vmul.f32 %v1355_v12, %v977_v54  ;;  %v783_v2 = vadd.f32 %v782_v34, %v764_v15 }
 0x1fd   : > { %v956_v47 = vsub.f32 1.5, %v955_v26  ;;  %v903_v57 = vsel %vm901_vm3, %v902_v6, %v900_v46  ;;  %v927_v50 = vsel %vm925_vm5, %v926_v3, %v924_v36  ;;  %v948_v13 = vsel %vm947_vm7, %v1919_v9, %v946_v55 }
 0x1fe   : > { %v1006_v62 = vadd.f32 %v1005_v37, %v903_v57  ;;  %v932_v33 = vsub.f32 1.5, %v931_v48  ;;  %v979_v39 = vmul.f32 0.5, %v978_v63  ;;  %v951_v24 = vsel %vm949_vm11, %v950_v20, %v948_v13 }
 0x1ff   : > { %v1357_v35 = vpop.eup %1356  ;;  %v957_v44 = vmul.f32 %v1351_v17, %v956_v47  ;;  %vm961_vm13 = vcmp.eq.f32.partialorder %v1947_v45, 0.0  ;;  %v962_v9 = vand.u32 2147483648, %v1947_v45  ;;  %vm971_vm14 = vcmp.eq.f32.partialorder %v1985_v25, inf }
 0x200   : > { %v1007_v51 = vadd.f32 %v1006_v62, %v915_v58  ;;  %v933_v1 = vmul.f32 %v1353_v18, %v932_v33  ;;  %v965_v19 = vmul.f32 %v1357_v35, %v1985_v25  ;;  %v980_v0 = vsub.f32 1.5, %v979_v39 }
 0x201   : > { %v958_v17 = vmul.f32 %v957_v44, %v1947_v45  ;;  %v784_v18 = vadd.f32 %v783_v2, %v1953_v42  ;;  %v1359_v8 = vpop.eup %1358  ;;  %v974_v6 = vand.u32 2147483648, %v1985_v25  ;;  %vm973_vm15 = vcmp.eq.f32.partialorder %v1985_v25, 0.0 }
 0x202   : > { %v934_v38 = vmul.f32 %v933_v1, %v1951_v49  ;;  %v966_v10 = vmul.f32 %v1357_v35, %v965_v19  ;;  %v1008_v59 = vadd.f32 %v1007_v51, %v927_v50  ;;  %v981_v53 = vmul.f32 %v1355_v12, %v980_v0  ;;  %v1021_v51 = vld [vmem:[#allocation4] sm:$0x1] }
 0x203   : > { %v960_v16 = vsel %vm959_vm12, %v1947_v45, %v958_v17  ;;  %v785_v28 = vadd.f32 %v784_v18, %v770_v56  ;;  %vm983_vm2 = vcmp.eq.f32.partialorder %v1966_v52, inf  ;;  %v986_v43 = vand.u32 2147483648, %v1966_v52 }
 0x204   : > { %v936_v61 = vsel %vm935_vm8, %v1951_v49, %v934_v38  ;;  %v967_v60 = vmul.f32 0.5, %v966_v10  ;;  %v989_v49 = vmul.f32 %v1359_v8, %v2013_v11  ;;  %v982_v30 = vmul.f32 %v981_v53, %v1966_v52 }
 0x205   : > { %v939_v15 = vsel %vm937_vm9, %v938_v7, %v936_v61  ;;  %v963_v21 = vsel %vm961_vm13, %v962_v9, %v960_v16  ;;  %v786_v37 = vrot.slane %v785_v28, 4  ;;  %vm985_vm3 = vcmp.eq.f32.partialorder %v1966_v52, 0.0 }
 0x206   : > { %v1009_v23 = vadd.f32 %v1008_v59, %v939_v15  ;;  %v968_v14 = vsub.f32 1.5, %v967_v60  ;;  %v990_v42 = vmul.f32 %v1359_v8, %v989_v49  ;;  %v984_v12 = vsel %vm983_vm2, %v1966_v52, %v982_v30 }
 0x207   : > { %v987_v47 = vsel %vm985_vm3, %v986_v43, %v984_v12  ;;  %v787_v48 = vadd.f32 %v786_v37, %v785_v28  ;;  %vm995_vm4 = vcmp.eq.f32.partialorder %v2013_v11, inf  ;;  %v998_v56 = vand.u32 2147483648, %v2013_v11 }
 0x208   : > { %v969_v22 = vmul.f32 %v1357_v35, %v968_v14  ;;  %v1010_v29 = vadd.f32 %v1009_v23, %v951_v24  ;;  %v991_v27 = vmul.f32 0.5, %v990_v42  ;;  %vm997_vm5 = vcmp.eq.f32.partialorder %v2013_v11, 0.0 }
 0x209   : > { %v788_v58 = vrot.slane %v787_v48, 2  ;;  %vm1022_vm7 = vcmask 7168   ;;  %vm1025_vm8 = vcmask 8192  }
 0x20a   : > { %v970_v31 = vmul.f32 %v969_v22, %v1985_v25  ;;  %v1011_v32 = vadd.f32 %v1010_v29, %v963_v21  ;;  %v992_v40 = vsub.f32 1.5, %v991_v27 }
 0x20b   : > { %v789_v34 = vadd.f32 %v788_v58, %v787_v48 }
 0x20c   : > { %v972_v26 = vsel %vm971_vm14, %v1985_v25, %v970_v31  ;;  %v993_v46 = vmul.f32 %v1359_v8, %v992_v40 }
 0x20d   : > { %v975_v45 = vsel %vm973_vm15, %v974_v6, %v972_v26  ;;  %v790_v36 = vrot.slane %v789_v34, 1 }
 0x20e   : > { %v1012_v41 = vadd.f32 %v1011_v32, %v975_v45  ;;  %v994_v54 = vmul.f32 %v993_v46, %v2013_v11 }
 0x20f   : > { %v791_v44 = vadd.f32 %v790_v36, %v789_v34 }
 0x210   : > { %v1013_v25 = vadd.f32 %v1012_v41, %v987_v47  ;;  %v996_v3 = vsel %vm995_vm4, %v2013_v11, %v994_v54 }
 0x211   : > { %v999_v57 = vsel %vm997_vm5, %v998_v56, %v996_v3 }
 0x212   : > { %v1014_v62 = vadd.f32 %v1013_v25, %v999_v57 }
 0x214   : > { %v1015_v33 = vrot.slane %v1014_v62, 4 }
 0x216   : > { %v1016_v52 = vadd.f32 %v1015_v33, %v1014_v62 }
 0x218   : > { %v1017_v35 = vrot.slane %v1016_v52, 2 }
 0x21a   : > { %v1018_v55 = vadd.f32 %v1017_v35, %v1016_v52 }
 0x21c   : > { %v1019_v63 = vrot.slane %v1018_v55, 1 }
 0x21e   : > { %v1020_v1 = vadd.f32 %v1019_v63, %v1018_v55 }
 0x21f   : > { %1030 = sbr.rel (%p1260_p10) target bundleno = 699 (0x2bb), region = 36 }
 0x220   : > { %v1023_v19 = vsel %vm1022_vm7, %v791_v44, %v1020_v1 }
 0x221   : > { %v1024_v39 = vadd.f32 %v1023_v19, %v1021_v51 }
 0x223   : > { %1026 = vst.msk [vmem:[#allocation4] sm:$0x1] %vm1025_vm8, %v1024_v39 }
 0x224   : > { %v1049_v11 = vld [vmem:[#allocation3] sm:$0x3]  ;;  %v1033_v15 = vstv %s1032_s28  ;;  %vm1101_vm2 = vcmask 15360  }
 0x225   : > { %v1051_v2 = vperm.slane %v1049_v11, 0  ;;  %v1052_v10 = vperm.slane %v1049_v11, 1  ;;  %v1064_v50 = vadd.f32 1e-12, %v1049_v11  ;;  %v1045_v49 = vand.u32 2147483648, %v1033_v15 }
 0x226   : > { %vm1039_vm11 = vweird.f32 %v1033_v15  ;;  %v1043_v9 = vand.u32 2147483647, %v1033_v15 }
 0x227   : > { %v1055_v7 = vsel %vm1522_vm0, %v1051_v2, 0.0  ;;  %v1056_v0 = vsel %vm1526_vm1, %v1052_v10, 0.0  ;;  %1360 = vrsqrt.f32 %v1064_v50  ;;  %vm1072_vm9 = vcmp.eq.f32.partialorder %v1064_v50, inf }
 0x228   : > { %v1057_v61 = vsel %vm678_vm10, %v1055_v7, 0.0  ;;  %v1058_v59 = vsel %vm678_vm10, %v1056_v0, 0.0  ;;  %1362 = vrcp.f32 %v1033_v15  ;;  %v1075_v22 = vand.u32 2147483648, %v1064_v50 }
 0x229   : > { %v1059_v60 = vadd.f32 %v1058_v59, %v1057_v61  ;;  %vm1074_vm13 = vcmp.eq.f32.partialorder %v1064_v50, 0.0  ;;  %v1046_v42 = vor.u32 1.1754944e-38, %v1045_v49  ;;  %vm1044_vm15 = vcmp.eq.f32.partialorder %v1043_v9, 8.507059e+37 }
 0x22a   : > { %v1090_v38 = vld [vmem:[#allocation4] sm:$0x1] }
 0x22b   : > { %v1091_v13 = vmul.f32 0.00390625, %v1090_v38  ;;  %1060 = vadd.xlane.f32.xlu0 %v1059_v60 }
 0x22d   : > { %v1093_v17 = vperm.slane %v1091_v13, 0  ;;  %v1361_v20 = vpop.eup %1360 }
 0x22e   : > { %v1066_v23 = vmul.f32 %v1361_v20, %v1064_v50  ;;  %v1363_v18 = vpop.eup %1362 }
 0x22f   : > { %1094 = vrot.lane.b32.xlu1 %v1093_v17, %s1437_s16  ;;  %v1035_v24 = vmul.f32 %v1363_v18, %v1033_v15  ;;  %vm1040_vm12 = vweird.f32 %v1363_v18 }
 0x230   : > { %v1067_v53 = vmul.f32 %v1361_v20, %v1066_v23  ;;  %vm1041_vm14 = vmor %vm1039_vm11, %vm1040_vm12 }
 0x231   : > { %v1036_v29 = vsub.f32 1.0, %v1035_v24 }
 0x232   : > { %v1068_v14 = vmul.f32 0.5, %v1067_v53 }
 0x233   : > { %v1037_v31 = vmul.f32 %v1363_v18, %v1036_v29 }
 0x234   : > { %v1069_v8 = vsub.f32 1.5, %v1068_v14 }
 0x235   : > { %v1038_v21 = vadd.f32 %v1363_v18, %v1037_v31 }
 0x236   : > { %v1070_v16 = vmul.f32 %v1361_v20, %v1069_v8 }
 0x237   : > { %1097 = vrot.lane.b32.xlu1 %v1093_v17, %s1438_s18  ;;  %v1042_v32 = vsel %vm1041_vm14, %v1363_v18, %v1038_v21 }
 0x238   : > { %v1071_v30 = vmul.f32 %v1070_v16, %v1064_v50  ;;  %v1047_v37 = vsel %vm1044_vm15, %v1046_v42, %v1042_v32 }
 0x239   : > { %1265 = vpush %v1047_v37 }
 0x23a   : > { %v1073_v28 = vsel %vm1072_vm9, %v1064_v50, %v1071_v30 }
 0x23b   : > { %v1076_v6 = vsel %vm1074_vm13, %v1075_v22, %v1073_v28 }
 0x23c   : > { %v1078_v26 = vperm.slane %v1076_v6, 0  ;;  %v1079_v27 = vperm.slane %v1076_v6, 1 }
 0x23e   : > { %v1082_v45 = vsel %vm1522_vm0, %v1078_v26, 0.0  ;;  %v1083_v12 = vsel %vm1526_vm1, %v1079_v27, 0.0  ;;  %vm1104_vm0 = vcmask 24576  }
 0x23f   : > { %v1084_v40 = vsel %vm678_vm10, %v1082_v45, 0.0  ;;  %v1085_v41 = vsel %vm678_vm10, %v1083_v12, 0.0 }
 0x240   : > { %v1086_v43 = vadd.f32 %v1085_v41, %v1084_v40 }
 0x242   : > { %1087 = vadd.xlane.f32.xlu0 %v1086_v43 }
 0x26a   : > { %s1266_s29 = spop %1265 }
 0x26b   : > { %v1062_v48 = vstv %s1266_s29 }
 0x29e   : > { %v1061_v46 = vpop.xlane.xlu0 %1060 }
 0x29f   : > { %v1063_v54 = vmul.f32 %v1062_v48, %v1061_v46 }
 0x2a1   : > { %v1095_v47 = vpop.permute.xlu1 %1094 }
 0x2a2   : > { %v1100_v5 = vsel %vm1022_vm7, %v1063_v54, %v1095_v47 }
 0x2a9   : > { %v1098_v56 = vpop.permute.xlu1 %1097 }
 0x2b5   : > { %v1088_v25 = vpop.xlane.xlu0 %1087 }
 0x2b6   : > { %v1089_v4 = vmul.f32 %v1088_v25, %v1062_v48 }
 0x2b8   : > { %v1102_v3 = vsel %vm1101_vm2, %v1100_v5, %v1089_v4 }
 0x2b9   : > { %v1103_v57 = vsel %vm314_vm6, %v1102_v3, %v1098_v56 }
 0x2ba   : > { %1105 = vst.msk [vmem:[%s227_s13] sm:$0x1] %vm1104_vm0, %v1103_v57 }
 0x2bb PF: > { %s21_s22 = sadd.s32 1, %s1432_s22   ;;  %s2101_s16 = smov %s1420_s19 }
 0x2bc   : > { %p18_p11 = scmp.ge.s32.totalorder %s21_s22, 18   ;;  %s2102_s17 = smov %s1424_s20 }
 0x2bd   : > { %s2103_s18 = smov %s1428_s21  ;;  %s2104_s19 = smov %s2108_s0 }
 0x2be   : > { %s2105_s20 = smov %s2112_s23  ;;  %s2106_s21 = smov %s2116_s24 }
 0x2bf   :  { %20 = sbr.rel (!%p18_p11) target bundleno = 10 (0xa), region = 69 }

</bundles_post_ra>
